<compile_context>
chip_gen: v6e
topology: v6e:2x2x1
jax: 0.10.0
libtpu: 0.0.40
codegen_flags: <defaults>
</compile_context>

<pallas_src>
import math

import jax
import jax.numpy as jnp
from jax import lax
from jax.experimental import pallas as pl
from jax.experimental.pallas import tpu as pltpu


C_OUT = 8          # out_chans
K1 = 15            # conv1 kernel width (1, 15), pad 7
K3 = 3             # conv2/conv3 kernel width (1, 3), pad 1
EPS = 1e-5         # GroupNorm eps (PyTorch default)
INV_SQRT2 = 1.0 / math.sqrt(2.0)

# row indices into the [9, C*T] per-channel parameter rows (bias / gamma / beta per stage)
_B1, _G1, _BT1 = 0, 1, 2
_B2, _G2, _BT2 = 3, 4, 5
_B3, _G3, _BT3 = 6, 7, 8


# ----------------------------------------------------------------------------- kernel helpers
def _gelu(x):
    # exact GELU (torch.nn.GELU default): 0.5 * x * (1 + erf(x / sqrt(2)))
    return 0.5 * x * (1.0 + lax.erf(x * INV_SQRT2))


def _mean_all(x):
    # [R, C] -> [1, 1]; lane reduce then sublane reduce.
    s = jnp.sum(jnp.sum(x, axis=1, keepdims=True), axis=0, keepdims=True)
    return s * (1.0 / float(x.shape[0] * x.shape[1]))


def _group_norm_gelu(h, g_row, bt_row, b_blk, na):
    """GroupNorm(1, C) per sample over the whole (C, NA, T) slab, folded affine, exact GELU.

    h: [b_blk*na, C*T]; g_row / bt_row: [1, C*T] with the per-channel params replicated in the
    same column layout as h (block layout for stages 1/2, (T C)-interleaved for stage 3)."""
    outs = []
    for b in range(b_blk):                                   # static, per-sample statistics
        hb = h[b * na:(b + 1) * na, :]
        mu = _mean_all(hb)                                   # [1, 1]
        var = _mean_all((hb - mu) * (hb - mu))               # [1, 1], biased variance
        scale = lax.rsqrt(var + EPS) * g_row                 # [1, C*T]  (folded affine)
        bias = bt_row - mu * scale                           # [1, C*T]
        outs.append(_gelu(hb * scale + bias))
    return outs[0] if b_blk == 1 else jnp.concatenate(outs, axis=0)


def _temporal_conv_kernel(x_ref, w1_ref, w2_ref, w3_ref, rows_ref, o_ref):
    # x_ref:  [B_blk, NA, T]           (VMEM block)
    # w1_ref: [T, C*T], w2_ref: [C*T, C*T], w3_ref: [C*T, T*C]   (grid-invariant VMEM)
    # rows_ref: [9, C*T]               (bias/gamma/beta rows)
    # o_ref:  [B_blk, NA, T*C]         (already in the final '(T C)' interleaved layout)
    b_blk, na, t = x_ref.shape
    ct = C_OUT * t

    x = x_ref[...].reshape(b_blk * na, t)

    def row(i):
        return rows_ref[i:i + 1, :]                          # [1, C*T]

    # conv1 (bias folded as a row add) -> GroupNorm1 (+affine) -> GELU
    h = jnp.dot(x, w1_ref[...], preferred_element_type=jnp.float32) + row(_B1)
    h = _group_norm_gelu(h, row(_G1), row(_BT1), b_blk, na)

    # conv2 -> GroupNorm2 -> GELU
    h = jnp.dot(h, w2_ref[...], preferred_element_type=jnp.float32) + row(_B2)
    h = _group_norm_gelu(h, row(_G2), row(_BT2), b_blk, na)

    # conv3 (columns permuted so output is already 'B NA (T C)') -> GroupNorm3 -> GELU
    h = jnp.dot(h, w3_ref[...], preferred_element_type=jnp.float32) + row(_B3)
    h = _group_norm_gelu(h, row(_G3), row(_BT3), b_blk, na)

    o_ref[...] = h.reshape(b_blk, na, ct)


# --------------------------------------------------------------------- wrapper-side operands
def _band_matrix_conv1(w1, T):
    """w1: [C_OUT, K1] -> M: [T, C_OUT*T] with M[t', c*T + t] = w1[c, t' - t + K1//2]."""
    tp = jnp.arange(T)[:, None]
    tt = jnp.arange(T)[None, :]
    k = tp - tt + K1 // 2
    valid = (k >= 0) & (k < K1)
    kc = jnp.clip(k, 0, K1 - 1)
    tap = w1[:, kc]                                          # [C, T, T]
    tap = jnp.where(valid[None, :, :], tap, 0.0)
    return jnp.transpose(tap, (1, 0, 2)).reshape(T, C_OUT * T)


def _band_matrix_mix(w, T):
    """w: [C_OUT, C_OUT, K3] -> M: [C_OUT*T, C_OUT*T], M[ci*T+t', co*T+t] = w[co, ci, t'-t+1]."""
    tp = jnp.arange(T)[:, None]
    tt = jnp.arange(T)[None, :]
    k = tp - tt + K3 // 2
    valid = (k >= 0) & (k < K3)
    kc = jnp.clip(k, 0, K3 - 1)
    tap = w[:, :, kc]                                        # [Co, Ci, T, T]
    tap = jnp.where(valid[None, None, :, :], tap, 0.0)
    return jnp.transpose(tap, (1, 2, 0, 3)).reshape(C_OUT * T, C_OUT * T)


def _interleave_columns(m, T):
    """Permute columns from channel-block layout (c*T + t) to interleaved layout (t*C + c)."""
    perm = (jnp.arange(C_OUT)[None, :] * T + jnp.arange(T)[:, None]).reshape(-1)
    return m[:, perm]


def _make_operands(w1, b1, g1, bt1, w2, b2, g2, bt2, w3, b3, g3, bt3, T):
    w1m = _band_matrix_conv1(w1, T)
    w2m = _band_matrix_mix(w2, T)
    w3m = _interleave_columns(_band_matrix_mix(w3, T), T)

    def block_row(v):    # per-channel value over its T-column block: idx c*T + t -> v[c]
        return jnp.repeat(v, T)[None, :]

    def inter_row(v):    # per-channel value in interleaved layout: idx t*C + c -> v[c]
        return jnp.tile(v, T)[None, :]

    rows = jnp.concatenate([
        block_row(b1), block_row(g1), block_row(bt1),
        block_row(b2), block_row(g2), block_row(bt2),
        inter_row(b3), inter_row(g3), inter_row(bt3)], axis=0)      # [9, C*T]
    return w1m, w2m, w3m, rows


def _pick_block_b(B):
    # Batch samples per grid step to amortize the fixed per-step overhead, but always keep
    # >= 2 grid steps so dimension_semantics=("parallel",) can use both v7x TensorCores.
    for cand in (8, 4, 2):
        if B % cand == 0 and B // cand >= 2:
            return cand
    return 1


@jax.jit
def temporal_conv_forward(x, w1, b1, g1, bt1, w2, b2, g2, bt2, w3, b3, g3, bt3):
    """x: [B, N, A, T] f32 -> [B, N*A, T*C_OUT] f32 (TemporalConv forward)."""
    B, N, A, T = x.shape
    NA = N * A
    x2 = x.reshape(B, NA, T)                                 # 'B N A T -> B (N A) T'

    # Constant, grid-invariant operands (in practice precompute/cache these once per model).
    w1m, w2m, w3m, rows = _make_operands(w1, b1, g1, bt1, w2, b2, g2, bt2,
                                         w3, b3, g3, bt3, T)

    b_blk = _pick_block_b(B)
    vmem_full = pl.BlockSpec(memory_space=pltpu.MemorySpace.VMEM)

    return pl.pallas_call(
        _temporal_conv_kernel,
        out_shape=jax.ShapeDtypeStruct((B, NA, T * C_OUT), jnp.float32),
        grid_spec=pl.GridSpec(
            grid=(B // b_blk,),
            in_specs=[
                pl.BlockSpec((b_blk, NA, T), lambda b: (b, 0, 0)),   # activations
                vmem_full,                                           # conv1 band matrix
                vmem_full,                                           # conv2 band matrix
                vmem_full,                                           # conv3 band matrix (interleaved cols)
                vmem_full,                                           # bias/gamma/beta rows
            ],
            out_specs=pl.BlockSpec((b_blk, NA, T * C_OUT), lambda b: (b, 0, 0)),
        ),
        compiler_params=pltpu.CompilerParams(
            dimension_semantics=("parallel",),               # batch axis -> both v7x TCs
        ),
    )(x2, w1m, w2m, w3m, rows)


# ------------------------------------------------------------------------------- reference
def reference_forward(x, w1, b1, g1, bt1, w2, b2, g2, bt2, w3, b3, g3, bt3):
    """Pure-JAX reference matching the PyTorch TemporalConv forward."""
    B, N, A, T = x.shape
    h = x.reshape(B, N * A, T)[:, None, :, :]                # [B, 1, NA, T]

    def conv_t(h, w, b):                                     # w: [Cout, Cin, K]
        K = w.shape[-1]
        out = lax.conv_general_dilated(
            h, w[:, :, None, :],
            window_strides=(1, 1),
            padding=((0, 0), (K // 2, K // 2)),
            dimension_numbers=("NCHW", "OIHW", "NCHW"),
            precision=lax.Precision.HIGHEST)
        return out + b[None, :, None, None]

    def group_norm(h, g, bt):
        mu = jnp.mean(h, axis=(1, 2, 3), keepdims=True)
        var = jnp.mean((h - mu) ** 2, axis=(1, 2, 3), keepdims=True)
        return (h - mu) / jnp.sqrt(var + EPS) * g[None, :, None, None] + bt[None, :, None, None]

    def gelu(h):
        return 0.5 * h * (1.0 + lax.erf(h * INV_SQRT2))

    h = gelu(group_norm(conv_t(h, w1[:, None, :], b1), g1, bt1))
    h = gelu(group_norm(conv_t(h, w2, b2), g2, bt2))
    h = gelu(group_norm(conv_t(h, w3, b3), g3, bt3))
    return jnp.transpose(h, (0, 2, 3, 1)).reshape(B, N * A, T * C_OUT)


if __name__ == "__main__":
    # Small EEG-style shapes: B=2 samples, N=4 electrodes, A=4 patches, T=128 patch length.
    B, N, A, T = 2, 4, 4, 128

    key = jax.random.PRNGKey(0)
    keys = jax.random.split(key, 13)
    x = jax.random.normal(keys[0], (B, N, A, T), dtype=jnp.float32)

    # Deterministic synthetic parameters (PyTorch conv weight [Cout, Cin, 1, K] with the
    # singleton height dim squeezed out).
    w1 = jax.random.normal(keys[1], (C_OUT, K1), dtype=jnp.float32) / math.sqrt(K1)
    b1 = 0.05 * jax.random.normal(keys[2], (C_OUT,), dtype=jnp.float32)
    g1 = 1.0 + 0.1 * jax.random.normal(keys[3], (C_OUT,), dtype=jnp.float32)
    bt1 = 0.05 * jax.random.normal(keys[4], (C_OUT,), dtype=jnp.float32)

    w2 = jax.random.normal(keys[5], (C_OUT, C_OUT, K3), dtype=jnp.float32) / math.sqrt(C_OUT * K3)
    b2 = 0.05 * jax.random.normal(keys[6], (C_OUT,), dtype=jnp.float32)
    g2 = 1.0 + 0.1 * jax.random.normal(keys[7], (C_OUT,), dtype=jnp.float32)
    bt2 = 0.05 * jax.random.normal(keys[8], (C_OUT,), dtype=jnp.float32)

    w3 = jax.random.normal(keys[9], (C_OUT, C_OUT, K3), dtype=jnp.float32) / math.sqrt(C_OUT * K3)
    b3 = 0.05 * jax.random.normal(keys[10], (C_OUT,), dtype=jnp.float32)
    g3 = 1.0 + 0.1 * jax.random.normal(keys[11], (C_OUT,), dtype=jnp.float32)
    bt3 = 0.05 * jax.random.normal(keys[12], (C_OUT,), dtype=jnp.float32)

    out = temporal_conv_forward(x, w1, b1, g1, bt1, w2, b2, g2, bt2, w3, b3, g3, bt3)
    out = jax.block_until_ready(out)

    ref = reference_forward(x, w1, b1, g1, bt1, w2, b2, g2, bt2, w3, b3, g3, bt3)
    assert out.shape == (B, N * A, T * C_OUT)

    # The three convolutions run on the MXU; depending on how the backend emulates f32
    # matmuls (full-precision multi-pass vs. bf16 passes) the rounding error is ~1e-6 .. ~1e-3.
    # Use a tolerance that accepts MXU rounding while still catching any layout / band-index
    # bug (those produce O(1) errors after GroupNorm).
    err = float(jnp.max(jnp.abs(out - ref)))
    assert err < 2e-2, f"mismatch vs reference, max abs err={err}"

    print("KERNEL_OK")
</pallas_src>

<mosaic_0001>
module attributes {stable_mosaic.version = 11 : i64} {
  func.func @_temporal_conv_kernel(%arg0: i32, %arg1: memref<1x16x128xf32, #tpu.memory_space<vmem>>, %arg2: memref<128x1024xf32, #tpu.memory_space<vmem>>, %arg3: memref<1024x1024xf32, #tpu.memory_space<vmem>>, %arg4: memref<1024x1024xf32, #tpu.memory_space<vmem>>, %arg5: memref<9x1024xf32, #tpu.memory_space<vmem>>, %arg6: memref<1x16x1024xf32, #tpu.memory_space<vmem>>) attributes {dimension_semantics = [#tpu.dimension_semantics<parallel>], iteration_bounds = array<i64: 2>, scalar_prefetch = 0 : i64, scratch_operands = 0 : i64, tpu.core_type = #tpu.core_type<tc>, window_params = [{transform_indices = @transform_0, window_bounds = array<i64: 1, 16, 128>}, {pipeline_mode = #tpu.pipeline_mode<synchronous>, transform_indices = @transform_1, window_bounds = array<i64: 128, 1024>}, {pipeline_mode = #tpu.pipeline_mode<synchronous>, transform_indices = @transform_2, window_bounds = array<i64: 1024, 1024>}, {pipeline_mode = #tpu.pipeline_mode<synchronous>, transform_indices = @transform_3, window_bounds = array<i64: 1024, 1024>}, {pipeline_mode = #tpu.pipeline_mode<synchronous>, transform_indices = @transform_4, window_bounds = array<i64: 9, 1024>}, {transform_indices = @transform_5, window_bounds = array<i64: 1, 16, 1024>}]} {
    %c0 = arith.constant 0 : index
    %c0_0 = arith.constant 0 : index
    %c0_1 = arith.constant 0 : index
    %0 = vector.load %arg1[%c0, %c0_0, %c0_1] : memref<1x16x128xf32, #tpu.memory_space<vmem>>, vector<1x16x128xf32>
    %1 = vector.shape_cast %0 : vector<1x16x128xf32> to vector<16x128xf32>
    %c0_2 = arith.constant 0 : index
    %c0_3 = arith.constant 0 : index
    %2 = vector.load %arg2[%c0_2, %c0_3] : memref<128x1024xf32, #tpu.memory_space<vmem>>, vector<128x1024xf32>
    %cst = arith.constant dense<0.000000e+00> : vector<16x1024xf32>
    %3 = tpu.matmul %1, %2, %cst {dimension_numbers = #tpu.dot_dimension_numbers<[1], [0], [0], [1], [0, 0, 1, 1], [], []>} : vector<16x128xf32>, vector<128x1024xf32>, vector<16x1024xf32> -> vector<16x1024xf32>
    %c0_4 = arith.constant 0 : index
    %c0_5 = arith.constant 0 : index
    %4 = vector.load %arg5[%c0_4, %c0_5] : memref<9x1024xf32, #tpu.memory_space<vmem>>, vector<1x1024xf32>
    %5 = vector.broadcast %4 : vector<1x1024xf32> to vector<16x1024xf32>
    %6 = arith.addf %3, %5 : vector<16x1024xf32>
    %c1 = arith.constant 1 : index
    %c0_6 = arith.constant 0 : index
    %7 = vector.load %arg5[%c1, %c0_6] : memref<9x1024xf32, #tpu.memory_space<vmem>>, vector<1x1024xf32>
    %c2 = arith.constant 2 : index
    %c0_7 = arith.constant 0 : index
    %8 = vector.load %arg5[%c2, %c0_7] : memref<9x1024xf32, #tpu.memory_space<vmem>>, vector<1x1024xf32>
    %cst_8 = arith.constant dense<0.000000e+00> : vector<16xf32>
    %9 = vector.multi_reduction <add>, %6, %cst_8 [1] : vector<16x1024xf32> to vector<16xf32>
    %10 = vector.shape_cast %9 : vector<16xf32> to vector<16x1xf32>
    %cst_9 = arith.constant dense<0.000000e+00> : vector<1xf32>
    %11 = vector.multi_reduction <add>, %10, %cst_9 [0] : vector<16x1xf32> to vector<1xf32>
    %12 = vector.shape_cast %11 : vector<1xf32> to vector<1x1xf32>
    %cst_10 = arith.constant 6.10351563E-5 : f32
    %13 = vector.broadcast %cst_10 : f32 to vector<1x1xf32>
    %14 = arith.mulf %12, %13 : vector<1x1xf32>
    %15 = vector.broadcast %14 : vector<1x1xf32> to vector<16x1024xf32>
    %16 = arith.subf %6, %15 : vector<16x1024xf32>
    %17 = vector.broadcast %14 : vector<1x1xf32> to vector<16x1024xf32>
    %18 = arith.subf %6, %17 : vector<16x1024xf32>
    %19 = arith.mulf %16, %18 : vector<16x1024xf32>
    %cst_11 = arith.constant dense<0.000000e+00> : vector<16xf32>
    %20 = vector.multi_reduction <add>, %19, %cst_11 [1] : vector<16x1024xf32> to vector<16xf32>
    %21 = vector.shape_cast %20 : vector<16xf32> to vector<16x1xf32>
    %cst_12 = arith.constant dense<0.000000e+00> : vector<1xf32>
    %22 = vector.multi_reduction <add>, %21, %cst_12 [0] : vector<16x1xf32> to vector<1xf32>
    %23 = vector.shape_cast %22 : vector<1xf32> to vector<1x1xf32>
    %cst_13 = arith.constant 6.10351563E-5 : f32
    %24 = vector.broadcast %cst_13 : f32 to vector<1x1xf32>
    %25 = arith.mulf %23, %24 : vector<1x1xf32>
    %cst_14 = arith.constant 9.99999974E-6 : f32
    %26 = vector.broadcast %cst_14 : f32 to vector<1x1xf32>
    %27 = arith.addf %25, %26 : vector<1x1xf32>
    %28 = math.rsqrt %27 : vector<1x1xf32>
    %29 = vector.broadcast %28 : vector<1x1xf32> to vector<1x1024xf32>
    %30 = arith.mulf %29, %7 : vector<1x1024xf32>
    %31 = vector.broadcast %14 : vector<1x1xf32> to vector<1x1024xf32>
    %32 = arith.mulf %31, %30 : vector<1x1024xf32>
    %33 = arith.subf %8, %32 : vector<1x1024xf32>
    %34 = vector.broadcast %30 : vector<1x1024xf32> to vector<16x1024xf32>
    %35 = arith.mulf %6, %34 : vector<16x1024xf32>
    %36 = vector.broadcast %33 : vector<1x1024xf32> to vector<16x1024xf32>
    %37 = arith.addf %35, %36 : vector<16x1024xf32>
    %cst_15 = arith.constant 5.000000e-01 : f32
    %38 = vector.broadcast %cst_15 : f32 to vector<16x1024xf32>
    %39 = arith.mulf %38, %37 : vector<16x1024xf32>
    %cst_16 = arith.constant 0.707106769 : f32
    %40 = vector.broadcast %cst_16 : f32 to vector<16x1024xf32>
    %41 = arith.mulf %37, %40 : vector<16x1024xf32>
    %42 = math.erf %41 : vector<16x1024xf32>
    %cst_17 = arith.constant 1.000000e+00 : f32
    %43 = vector.broadcast %cst_17 : f32 to vector<16x1024xf32>
    %44 = arith.addf %43, %42 : vector<16x1024xf32>
    %45 = arith.mulf %39, %44 : vector<16x1024xf32>
    %c0_18 = arith.constant 0 : index
    %c0_19 = arith.constant 0 : index
    %46 = vector.load %arg3[%c0_18, %c0_19] : memref<1024x1024xf32, #tpu.memory_space<vmem>>, vector<1024x1024xf32>
    %cst_20 = arith.constant dense<0.000000e+00> : vector<16x1024xf32>
    %47 = tpu.matmul %45, %46, %cst_20 {dimension_numbers = #tpu.dot_dimension_numbers<[1], [0], [0], [1], [0, 0, 1, 1], [], []>} : vector<16x1024xf32>, vector<1024x1024xf32>, vector<16x1024xf32> -> vector<16x1024xf32>
    %c3 = arith.constant 3 : index
    %c0_21 = arith.constant 0 : index
    %48 = vector.load %arg5[%c3, %c0_21] : memref<9x1024xf32, #tpu.memory_space<vmem>>, vector<1x1024xf32>
    %49 = vector.broadcast %48 : vector<1x1024xf32> to vector<16x1024xf32>
    %50 = arith.addf %47, %49 : vector<16x1024xf32>
    %c4 = arith.constant 4 : index
    %c0_22 = arith.constant 0 : index
    %51 = vector.load %arg5[%c4, %c0_22] : memref<9x1024xf32, #tpu.memory_space<vmem>>, vector<1x1024xf32>
    %c5 = arith.constant 5 : index
    %c0_23 = arith.constant 0 : index
    %52 = vector.load %arg5[%c5, %c0_23] : memref<9x1024xf32, #tpu.memory_space<vmem>>, vector<1x1024xf32>
    %cst_24 = arith.constant dense<0.000000e+00> : vector<16xf32>
    %53 = vector.multi_reduction <add>, %50, %cst_24 [1] : vector<16x1024xf32> to vector<16xf32>
    %54 = vector.shape_cast %53 : vector<16xf32> to vector<16x1xf32>
    %cst_25 = arith.constant dense<0.000000e+00> : vector<1xf32>
    %55 = vector.multi_reduction <add>, %54, %cst_25 [0] : vector<16x1xf32> to vector<1xf32>
    %56 = vector.shape_cast %55 : vector<1xf32> to vector<1x1xf32>
    %cst_26 = arith.constant 6.10351563E-5 : f32
    %57 = vector.broadcast %cst_26 : f32 to vector<1x1xf32>
    %58 = arith.mulf %56, %57 : vector<1x1xf32>
    %59 = vector.broadcast %58 : vector<1x1xf32> to vector<16x1024xf32>
    %60 = arith.subf %50, %59 : vector<16x1024xf32>
    %61 = vector.broadcast %58 : vector<1x1xf32> to vector<16x1024xf32>
    %62 = arith.subf %50, %61 : vector<16x1024xf32>
    %63 = arith.mulf %60, %62 : vector<16x1024xf32>
    %cst_27 = arith.constant dense<0.000000e+00> : vector<16xf32>
    %64 = vector.multi_reduction <add>, %63, %cst_27 [1] : vector<16x1024xf32> to vector<16xf32>
    %65 = vector.shape_cast %64 : vector<16xf32> to vector<16x1xf32>
    %cst_28 = arith.constant dense<0.000000e+00> : vector<1xf32>
    %66 = vector.multi_reduction <add>, %65, %cst_28 [0] : vector<16x1xf32> to vector<1xf32>
    %67 = vector.shape_cast %66 : vector<1xf32> to vector<1x1xf32>
    %cst_29 = arith.constant 6.10351563E-5 : f32
    %68 = vector.broadcast %cst_29 : f32 to vector<1x1xf32>
    %69 = arith.mulf %67, %68 : vector<1x1xf32>
    %cst_30 = arith.constant 9.99999974E-6 : f32
    %70 = vector.broadcast %cst_30 : f32 to vector<1x1xf32>
    %71 = arith.addf %69, %70 : vector<1x1xf32>
    %72 = math.rsqrt %71 : vector<1x1xf32>
    %73 = vector.broadcast %72 : vector<1x1xf32> to vector<1x1024xf32>
    %74 = arith.mulf %73, %51 : vector<1x1024xf32>
    %75 = vector.broadcast %58 : vector<1x1xf32> to vector<1x1024xf32>
    %76 = arith.mulf %75, %74 : vector<1x1024xf32>
    %77 = arith.subf %52, %76 : vector<1x1024xf32>
    %78 = vector.broadcast %74 : vector<1x1024xf32> to vector<16x1024xf32>
    %79 = arith.mulf %50, %78 : vector<16x1024xf32>
    %80 = vector.broadcast %77 : vector<1x1024xf32> to vector<16x1024xf32>
    %81 = arith.addf %79, %80 : vector<16x1024xf32>
    %cst_31 = arith.constant 5.000000e-01 : f32
    %82 = vector.broadcast %cst_31 : f32 to vector<16x1024xf32>
    %83 = arith.mulf %82, %81 : vector<16x1024xf32>
    %cst_32 = arith.constant 0.707106769 : f32
    %84 = vector.broadcast %cst_32 : f32 to vector<16x1024xf32>
    %85 = arith.mulf %81, %84 : vector<16x1024xf32>
    %86 = math.erf %85 : vector<16x1024xf32>
    %cst_33 = arith.constant 1.000000e+00 : f32
    %87 = vector.broadcast %cst_33 : f32 to vector<16x1024xf32>
    %88 = arith.addf %87, %86 : vector<16x1024xf32>
    %89 = arith.mulf %83, %88 : vector<16x1024xf32>
    %c0_34 = arith.constant 0 : index
    %c0_35 = arith.constant 0 : index
    %90 = vector.load %arg4[%c0_34, %c0_35] : memref<1024x1024xf32, #tpu.memory_space<vmem>>, vector<1024x1024xf32>
    %cst_36 = arith.constant dense<0.000000e+00> : vector<16x1024xf32>
    %91 = tpu.matmul %89, %90, %cst_36 {dimension_numbers = #tpu.dot_dimension_numbers<[1], [0], [0], [1], [0, 0, 1, 1], [], []>} : vector<16x1024xf32>, vector<1024x1024xf32>, vector<16x1024xf32> -> vector<16x1024xf32>
    %c6 = arith.constant 6 : index
    %c0_37 = arith.constant 0 : index
    %92 = vector.load %arg5[%c6, %c0_37] : memref<9x1024xf32, #tpu.memory_space<vmem>>, vector<1x1024xf32>
    %93 = vector.broadcast %92 : vector<1x1024xf32> to vector<16x1024xf32>
    %94 = arith.addf %91, %93 : vector<16x1024xf32>
    %c7 = arith.constant 7 : index
    %c0_38 = arith.constant 0 : index
    %95 = vector.load %arg5[%c7, %c0_38] : memref<9x1024xf32, #tpu.memory_space<vmem>>, vector<1x1024xf32>
    %c8 = arith.constant 8 : index
    %c0_39 = arith.constant 0 : index
    %96 = vector.load %arg5[%c8, %c0_39] : memref<9x1024xf32, #tpu.memory_space<vmem>>, vector<1x1024xf32>
    %cst_40 = arith.constant dense<0.000000e+00> : vector<16xf32>
    %97 = vector.multi_reduction <add>, %94, %cst_40 [1] : vector<16x1024xf32> to vector<16xf32>
    %98 = vector.shape_cast %97 : vector<16xf32> to vector<16x1xf32>
    %cst_41 = arith.constant dense<0.000000e+00> : vector<1xf32>
    %99 = vector.multi_reduction <add>, %98, %cst_41 [0] : vector<16x1xf32> to vector<1xf32>
    %100 = vector.shape_cast %99 : vector<1xf32> to vector<1x1xf32>
    %cst_42 = arith.constant 6.10351563E-5 : f32
    %101 = vector.broadcast %cst_42 : f32 to vector<1x1xf32>
    %102 = arith.mulf %100, %101 : vector<1x1xf32>
    %103 = vector.broadcast %102 : vector<1x1xf32> to vector<16x1024xf32>
    %104 = arith.subf %94, %103 : vector<16x1024xf32>
    %105 = vector.broadcast %102 : vector<1x1xf32> to vector<16x1024xf32>
    %106 = arith.subf %94, %105 : vector<16x1024xf32>
    %107 = arith.mulf %104, %106 : vector<16x1024xf32>
    %cst_43 = arith.constant dense<0.000000e+00> : vector<16xf32>
    %108 = vector.multi_reduction <add>, %107, %cst_43 [1] : vector<16x1024xf32> to vector<16xf32>
    %109 = vector.shape_cast %108 : vector<16xf32> to vector<16x1xf32>
    %cst_44 = arith.constant dense<0.000000e+00> : vector<1xf32>
    %110 = vector.multi_reduction <add>, %109, %cst_44 [0] : vector<16x1xf32> to vector<1xf32>
    %111 = vector.shape_cast %110 : vector<1xf32> to vector<1x1xf32>
    %cst_45 = arith.constant 6.10351563E-5 : f32
    %112 = vector.broadcast %cst_45 : f32 to vector<1x1xf32>
    %113 = arith.mulf %111, %112 : vector<1x1xf32>
    %cst_46 = arith.constant 9.99999974E-6 : f32
    %114 = vector.broadcast %cst_46 : f32 to vector<1x1xf32>
    %115 = arith.addf %113, %114 : vector<1x1xf32>
    %116 = math.rsqrt %115 : vector<1x1xf32>
    %117 = vector.broadcast %116 : vector<1x1xf32> to vector<1x1024xf32>
    %118 = arith.mulf %117, %95 : vector<1x1024xf32>
    %119 = vector.broadcast %102 : vector<1x1xf32> to vector<1x1024xf32>
    %120 = arith.mulf %119, %118 : vector<1x1024xf32>
    %121 = arith.subf %96, %120 : vector<1x1024xf32>
    %122 = vector.broadcast %118 : vector<1x1024xf32> to vector<16x1024xf32>
    %123 = arith.mulf %94, %122 : vector<16x1024xf32>
    %124 = vector.broadcast %121 : vector<1x1024xf32> to vector<16x1024xf32>
    %125 = arith.addf %123, %124 : vector<16x1024xf32>
    %cst_47 = arith.constant 5.000000e-01 : f32
    %126 = vector.broadcast %cst_47 : f32 to vector<16x1024xf32>
    %127 = arith.mulf %126, %125 : vector<16x1024xf32>
    %cst_48 = arith.constant 0.707106769 : f32
    %128 = vector.broadcast %cst_48 : f32 to vector<16x1024xf32>
    %129 = arith.mulf %125, %128 : vector<16x1024xf32>
    %130 = math.erf %129 : vector<16x1024xf32>
    %cst_49 = arith.constant 1.000000e+00 : f32
    %131 = vector.broadcast %cst_49 : f32 to vector<16x1024xf32>
    %132 = arith.addf %131, %130 : vector<16x1024xf32>
    %133 = arith.mulf %127, %132 : vector<16x1024xf32>
    %134 = vector.shape_cast %133 : vector<16x1024xf32> to vector<1x16x1024xf32>
    %c0_50 = arith.constant 0 : index
    %c0_51 = arith.constant 0 : index
    %c0_52 = arith.constant 0 : index
    %135 = vector.load %arg6[%c0_50, %c0_51, %c0_52] : memref<1x16x1024xf32, #tpu.memory_space<vmem>>, vector<1x16x1024xf32>
    tpu.vector_store %arg6[%c0_50, %c0_51, %c0_52], %134 {strides = array<i32>} : memref<1x16x1024xf32, #tpu.memory_space<vmem>>, vector<1x16x1024xf32>,
    return
  }
  func.func @transform_0(%arg0: i32) -> (i32, i32, i32) {
    %c0_i32 = arith.constant 0 : i32
    %c0_i32_0 = arith.constant 0 : i32
    %c0_i32_1 = arith.constant 0 : i32
    return %arg0, %c0_i32, %c0_i32_0 : i32, i32, i32
  }
  func.func @transform_1(%arg0: i32) -> (i32, i32) {
    %c0_i32 = arith.constant 0 : i32
    %c0_i32_0 = arith.constant 0 : i32
    %c0_i32_1 = arith.constant 0 : i32
    return %c0_i32, %c0_i32_0 : i32, i32
  }
  func.func @transform_2(%arg0: i32) -> (i32, i32) {
    %c0_i32 = arith.constant 0 : i32
    %c0_i32_0 = arith.constant 0 : i32
    %c0_i32_1 = arith.constant 0 : i32
    return %c0_i32, %c0_i32_0 : i32, i32
  }
  func.func @transform_3(%arg0: i32) -> (i32, i32) {
    %c0_i32 = arith.constant 0 : i32
    %c0_i32_0 = arith.constant 0 : i32
    %c0_i32_1 = arith.constant 0 : i32
    return %c0_i32, %c0_i32_0 : i32, i32
  }
  func.func @transform_4(%arg0: i32) -> (i32, i32) {
    %c0_i32 = arith.constant 0 : i32
    %c0_i32_0 = arith.constant 0 : i32
    %c0_i32_1 = arith.constant 0 : i32
    return %c0_i32, %c0_i32_0 : i32, i32
  }
  func.func @transform_5(%arg0: i32) -> (i32, i32, i32) {
    %c0_i32 = arith.constant 0 : i32
    %c0_i32_0 = arith.constant 0 : i32
    %c0_i32_1 = arith.constant 0 : i32
    return %arg0, %c0_i32, %c0_i32_0 : i32, i32, i32
  }
}

</mosaic_0001>

<bundles_post_ra>
// kernel: tile.18
= control target key start
LH: loop header
LB: loop body
LE: loop exit
PB: predicated region body
PF: predicated region fallthrough
CT: control target
= control target key end

     0   :  { %s112_s0 = inlined_call_operand.vmem [shape: f32[8], index: 0, kind: input, shape index: {}]   ;;  %s113_s1 = inlined_call_operand.vmem [shape: f32[128,8], index: 1, kind: output, shape index: {}]  }
   0x1   :  { %v4_v0 = vld [vmem:[%s112_s0] ss:$0 sm:$0xff] }
   0x2   :  { %5 = vst [vmem:[%s113_s1] sm:$0xff] %v4_v0  ;;  %36 = vst [vmem:[%s113_s1 + $0x8] sm:$0xff] %v4_v0 }
   0x3   :  { %37 = vst [vmem:[%s113_s1 + $0x10] sm:$0xff] %v4_v0  ;;  %38 = vst [vmem:[%s113_s1 + $0x18] sm:$0xff] %v4_v0 }
   0x4   :  { %39 = vst [vmem:[%s113_s1 + $0x20] sm:$0xff] %v4_v0  ;;  %40 = vst [vmem:[%s113_s1 + $0x28] sm:$0xff] %v4_v0 }
   0x5   :  { %41 = vst [vmem:[%s113_s1 + $0x30] sm:$0xff] %v4_v0  ;;  %42 = vst [vmem:[%s113_s1 + $0x38] sm:$0xff] %v4_v0 }
   0x6   :  { %43 = vst [vmem:[%s113_s1 + $0x40] sm:$0xff] %v4_v0  ;;  %44 = vst [vmem:[%s113_s1 + $0x48] sm:$0xff] %v4_v0 }
   0x7   :  { %45 = vst [vmem:[%s113_s1 + $0x50] sm:$0xff] %v4_v0  ;;  %46 = vst [vmem:[%s113_s1 + $0x58] sm:$0xff] %v4_v0 }
   0x8   :  { %47 = vst [vmem:[%s113_s1 + $0x60] sm:$0xff] %v4_v0  ;;  %48 = vst [vmem:[%s113_s1 + $0x68] sm:$0xff] %v4_v0 }
   0x9   :  { %49 = vst [vmem:[%s113_s1 + $0x70] sm:$0xff] %v4_v0  ;;  %50 = vst [vmem:[%s113_s1 + $0x78] sm:$0xff] %v4_v0 }

// kernel: tile.19
= control target key start
LH: loop header
LB: loop body
LE: loop exit
PB: predicated region body
PF: predicated region fallthrough
CT: control target
= control target key end

     0   :  { %vm6_vm0 = vcmask 1043458   ;;  %vm10_vm1 = vcmask 1045508   ;;  %vm14_vm2 = vcmask 1047558   ;;  %s20_s6 = smov 3  ;;  %s23_s7 = smov 12  ;;  %vm16_vm3 = vcmask 64512   ;;  %s797_s0 = inlined_call_operand.vmem [shape: f32[128,8], index: 0, kind: input, shape index: {}]   ;;  %s798_s1 = inlined_call_operand.vmem [shape: f32[1,1024], index: 1, kind: output, shape index: {}]  }
   0x1   :  { %v426_v0 = vld [vmem:[%s797_s0 + $0xf] ss:$16 sm:%s20_s6]   ;;  %s28_s12 = smov 48  ;;  %s33_s13 = smov 192  ;;  %vm39_vm4 = vcmask 1048512   ;;  %vm62_vm5 = vcmask 982912  }
   0x2   :  { %v427_v1 = vld [vmem:[%s797_s0 + $0xf] ss:$16 sm:%s23_s7]   ;;  %s66_s18 = smov 3  ;;  %s69_s21 = smov 12  ;;  %vm85_vm6 = vcmask 917312   ;;  %vm108_vm7 = vcmask 851712  }
   0x3   :  { %v26_v2 = vsel %vm6_vm0, %v427_v1, %v426_v0  ;;  %v428_v3 = vld [vmem:[%s797_s0 + $0xf] ss:$16 sm:%s28_s12]   ;;  %v434_v6 = vld [vmem:[%s797_s0 + $0xd] ss:$16 sm:%s66_s18]   ;;  %s74_s22 = smov 48  ;;  %s79_s27 = smov 192 }
   0x4   :  { %v429_v4 = vld [vmem:[%s797_s0 + $0xf] ss:$16 sm:%s33_s13]   ;;  %v31_v5 = vsel %vm10_vm1, %v428_v3, %v26_v2  ;;  %v435_v8 = vld [vmem:[%s797_s0 + $0xd] ss:$16 sm:%s69_s21]   ;;  %s508_s28 = smov 120   ;;  %s43_s2 = smov 3 }
   0x5   :  { %v36_v7 = vsel %vm14_vm2, %v429_v4, %v31_v5  ;;  %v436_v9 = vld [vmem:[%s797_s0 + $0xd] ss:$16 sm:%s74_s22]   ;;  %v72_v10 = vsel %vm6_vm0, %v435_v8, %v434_v6  ;;  %s46_s3 = smov 12  ;;  %v430_v13 = vld [vmem:[%s797_s0 + $0xe] ss:$16 sm:%s43_s2]   ;;  %s51_s8 = smov 48 }
   0x6   :  { %37 = vrot.lane.b32.xlu0 %v36_v7, %s508_s28  ;;  %v437_v11 = vld [vmem:[%s797_s0 + $0xd] ss:$16 sm:%s79_s27]   ;;  %v77_v12 = vsel %vm10_vm1, %v436_v9, %v72_v10  ;;  %s56_s9 = smov 192  ;;  %s89_s14 = smov 3  ;;  %vm131_vm8 = vcmask 786112   ;;  %vm154_vm9 = vcmask 720512  }
   0x7   :  { %v431_v14 = vld [vmem:[%s797_s0 + $0xe] ss:$16 sm:%s46_s3]   ;;  %v82_v15 = vsel %vm14_vm2, %v437_v11, %v77_v12  ;;  %s509_s15 = smov 104   ;;  %v438_v20 = vld [vmem:[%s797_s0 + $0xc] ss:$16 sm:%s89_s14]   ;;  %s92_s18 = smov 12 }
   0x8   :  { %v49_v16 = vsel %vm6_vm0, %v431_v14, %v430_v13  ;;  %v432_v17 = vld [vmem:[%s797_s0 + $0xe] ss:$16 sm:%s51_s8]   ;;  %83 = vrot.lane.b32.xlu1 %v82_v15, %s509_s15  ;;  %s97_s19 = smov 48  ;;  %s102_s24 = smov 192  ;;  %vm177_vm10 = vcmask 654912   ;;  %vm200_vm11 = vcmask 589312  }
   0x9   :  { %v433_v18 = vld [vmem:[%s797_s0 + $0xe] ss:$16 sm:%s56_s9]   ;;  %v54_v19 = vsel %vm10_vm1, %v432_v17, %v49_v16  ;;  %v439_v22 = vld [vmem:[%s797_s0 + $0xc] ss:$16 sm:%s92_s18]   ;;  %s510_s25 = smov 112   ;;  %s112_s28 = smov 3 }
   0xa   :  { %v59_v21 = vsel %vm14_vm2, %v433_v18, %v54_v19  ;;  %v440_v23 = vld [vmem:[%s797_s0 + $0xc] ss:$16 sm:%s97_s19]   ;;  %v95_v24 = vsel %vm6_vm0, %v439_v22, %v438_v20  ;;  %s115_s29 = smov 12  ;;  %v442_v27 = vld [vmem:[%s797_s0 + $0xb] ss:$16 sm:%s112_s28]   ;;  %s120_s5 = smov 48 }
   0xb   :  { %60 = vrot.lane.b32.xlu0 %v59_v21, %s510_s25  ;;  %v441_v25 = vld [vmem:[%s797_s0 + $0xc] ss:$16 sm:%s102_s24]   ;;  %v100_v26 = vsel %vm10_vm1, %v440_v23, %v95_v24  ;;  %s125_s6 = smov 192  ;;  %s135_s11 = smov 3  ;;  %vm223_vm12 = vcmask 523712   ;;  %vm246_vm13 = vcmask 458112  }
   0xc   :  { %v443_v28 = vld [vmem:[%s797_s0 + $0xb] ss:$16 sm:%s115_s29]   ;;  %v105_v29 = vsel %vm14_vm2, %v441_v25, %v100_v26  ;;  %s511_s12 = smov 96   ;;  %v446_v34 = vld [vmem:[%s797_s0 + $0xa] ss:$16 sm:%s135_s11]   ;;  %s138_s15 = smov 12 }
   0xd   :  { %v118_v30 = vsel %vm6_vm0, %v443_v28, %v442_v27  ;;  %v444_v31 = vld [vmem:[%s797_s0 + $0xb] ss:$16 sm:%s120_s5]   ;;  %106 = vrot.lane.b32.xlu1 %v105_v29, %s511_s12  ;;  %s143_s16 = smov 48  ;;  %s148_s21 = smov 192  ;;  %vm269_vm14 = vcmask 392512   ;;  %vm292_vm15 = vcmask 326912  }
   0xe   :  { %v445_v32 = vld [vmem:[%s797_s0 + $0xb] ss:$16 sm:%s125_s6]   ;;  %v123_v33 = vsel %vm10_vm1, %v444_v31, %v118_v30  ;;  %v447_v36 = vld [vmem:[%s797_s0 + $0xa] ss:$16 sm:%s138_s15]   ;;  %s512_s22 = smov 88   ;;  %s158_s25 = smov 3 }
   0xf   :  { %v128_v35 = vsel %vm14_vm2, %v445_v32, %v123_v33  ;;  %v448_v37 = vld [vmem:[%s797_s0 + $0xa] ss:$16 sm:%s143_s16]   ;;  %v141_v38 = vsel %vm6_vm0, %v447_v36, %v446_v34  ;;  %s161_s26 = smov 12  ;;  %v450_v41 = vld [vmem:[%s797_s0 + $0x9] ss:$16 sm:%s158_s25]   ;;  %s166_s2 = smov 48 }
  0x10   :  { %129 = vrot.lane.b32.xlu0 %v128_v35, %s512_s22  ;;  %v449_v39 = vld [vmem:[%s797_s0 + $0xa] ss:$16 sm:%s148_s21]   ;;  %v146_v40 = vsel %vm10_vm1, %v448_v37, %v141_v38  ;;  %s171_s3 = smov 192  ;;  %s181_s8 = smov 3 }
  0x11   :  { %v451_v42 = vld [vmem:[%s797_s0 + $0x9] ss:$16 sm:%s161_s26]   ;;  %v151_v43 = vsel %vm14_vm2, %v449_v39, %v146_v40  ;;  %s513_s9 = smov 80   ;;  %v454_v48 = vld [vmem:[%s797_s0 + $0x8] ss:$16 sm:%s181_s8]   ;;  %s184_s12 = smov 12 }
  0x12   :  { %v164_v44 = vsel %vm6_vm0, %v451_v42, %v450_v41  ;;  %v452_v45 = vld [vmem:[%s797_s0 + $0x9] ss:$16 sm:%s166_s2]   ;;  %152 = vrot.lane.b32.xlu1 %v151_v43, %s513_s9  ;;  %s189_s13 = smov 48  ;;  %s194_s18 = smov 192 }
  0x13   :  { %v453_v46 = vld [vmem:[%s797_s0 + $0x9] ss:$16 sm:%s171_s3]   ;;  %v169_v47 = vsel %vm10_vm1, %v452_v45, %v164_v44  ;;  %v455_v50 = vld [vmem:[%s797_s0 + $0x8] ss:$16 sm:%s184_s12]   ;;  %s514_s19 = smov 72   ;;  %s204_s22 = smov 3 }
  0x14   :  { %v174_v49 = vsel %vm14_vm2, %v453_v46, %v169_v47  ;;  %v456_v51 = vld [vmem:[%s797_s0 + $0x8] ss:$16 sm:%s189_s13]   ;;  %v187_v52 = vsel %vm6_vm0, %v455_v50, %v454_v48  ;;  %s207_s23 = smov 12  ;;  %v458_v55 = vld [vmem:[%s797_s0 + $0x7] ss:$16 sm:%s204_s22]   ;;  %s212_s28 = smov 48 }
  0x15   :  { %175 = vrot.lane.b32.xlu0 %v174_v49, %s514_s19  ;;  %v457_v53 = vld [vmem:[%s797_s0 + $0x8] ss:$16 sm:%s194_s18]   ;;  %v192_v54 = vsel %vm10_vm1, %v456_v51, %v187_v52  ;;  %s217_s29 = smov 192  ;;  %s227_s5 = smov 3 }
  0x16   :  { %v459_v56 = vld [vmem:[%s797_s0 + $0x7] ss:$16 sm:%s207_s23]   ;;  %v197_v57 = vsel %vm14_vm2, %v457_v53, %v192_v54  ;;  %s515_s6 = smov 64   ;;  %v462_v62 = vld [vmem:[%s797_s0 + $0x6] ss:$16 sm:%s227_s5]   ;;  %s230_s9 = smov 12 }
  0x17   :  { %v210_v58 = vsel %vm6_vm0, %v459_v56, %v458_v55  ;;  %v460_v59 = vld [vmem:[%s797_s0 + $0x7] ss:$16 sm:%s212_s28]   ;;  %198 = vrot.lane.b32.xlu1 %v197_v57, %s515_s6  ;;  %s235_s10 = smov 48  ;;  %s240_s15 = smov 192 }
  0x18   :  { %v461_v60 = vld [vmem:[%s797_s0 + $0x7] ss:$16 sm:%s217_s29]   ;;  %v215_v61 = vsel %vm10_vm1, %v460_v59, %v210_v58  ;;  %v463_v0 = vld [vmem:[%s797_s0 + $0x6] ss:$16 sm:%s230_s9]   ;;  %s516_s16 = smov 56   ;;  %s250_s19 = smov 3 }
  0x19   :  { %v220_v63 = vsel %vm14_vm2, %v461_v60, %v215_v61  ;;  %v464_v1 = vld [vmem:[%s797_s0 + $0x6] ss:$16 sm:%s235_s10]   ;;  %v233_v2 = vsel %vm6_vm0, %v463_v0, %v462_v62  ;;  %s253_s20 = smov 12  ;;  %v466_v5 = vld [vmem:[%s797_s0 + $0x5] ss:$16 sm:%s250_s19]   ;;  %s258_s25 = smov 48 }
  0x1a   :  { %221 = vrot.lane.b32.xlu0 %v220_v63, %s516_s16  ;;  %v465_v3 = vld [vmem:[%s797_s0 + $0x6] ss:$16 sm:%s240_s15]   ;;  %v238_v4 = vsel %vm10_vm1, %v464_v1, %v233_v2  ;;  %s263_s26 = smov 192  ;;  %s273_s2 = smov 3 }
  0x1b   :  { %v467_v6 = vld [vmem:[%s797_s0 + $0x5] ss:$16 sm:%s253_s20]   ;;  %v243_v7 = vsel %vm14_vm2, %v465_v3, %v238_v4  ;;  %s517_s3 = smov 48   ;;  %v470_v12 = vld [vmem:[%s797_s0 + $0x4] ss:$16 sm:%s273_s2]   ;;  %s276_s6 = smov 12 }
  0x1c   :  { %v256_v8 = vsel %vm6_vm0, %v467_v6, %v466_v5  ;;  %v468_v9 = vld [vmem:[%s797_s0 + $0x5] ss:$16 sm:%s258_s25]   ;;  %244 = vrot.lane.b32.xlu1 %v243_v7, %s517_s3  ;;  %s281_s7 = smov 48  ;;  %s286_s12 = smov 192 }
  0x1d   :  { %v469_v10 = vld [vmem:[%s797_s0 + $0x5] ss:$16 sm:%s263_s26]   ;;  %v261_v11 = vsel %vm10_vm1, %v468_v9, %v256_v8  ;;  %v471_v14 = vld [vmem:[%s797_s0 + $0x4] ss:$16 sm:%s276_s6]   ;;  %s518_s13 = smov 40   ;;  %s296_s16 = smov 3 }
  0x1e   :  { %v266_v13 = vsel %vm14_vm2, %v469_v10, %v261_v11  ;;  %v472_v15 = vld [vmem:[%s797_s0 + $0x4] ss:$16 sm:%s281_s7]   ;;  %v279_v16 = vsel %vm6_vm0, %v471_v14, %v470_v12  ;;  %s299_s17 = smov 12  ;;  %v474_v19 = vld [vmem:[%s797_s0 + $0x3] ss:$16 sm:%s296_s16]   ;;  %s304_s22 = smov 48 }
  0x1f   :  { %267 = vrot.lane.b32.xlu0 %v266_v13, %s518_s13  ;;  %v473_v17 = vld [vmem:[%s797_s0 + $0x4] ss:$16 sm:%s286_s12]   ;;  %v284_v18 = vsel %vm10_vm1, %v472_v15, %v279_v16  ;;  %s309_s23 = smov 192  ;;  %s319_s28 = smov 3 }
  0x20   :  { %v475_v20 = vld [vmem:[%s797_s0 + $0x3] ss:$16 sm:%s299_s17]   ;;  %v289_v21 = vsel %vm14_vm2, %v473_v17, %v284_v18  ;;  %s519_s29 = smov 32   ;;  %v478_v26 = vld [vmem:[%s797_s0 + $0x2] ss:$16 sm:%s319_s28]   ;;  %s322_s3 = smov 12 }
  0x21   :  { %v302_v22 = vsel %vm6_vm0, %v475_v20, %v474_v19  ;;  %v476_v23 = vld [vmem:[%s797_s0 + $0x3] ss:$16 sm:%s304_s22]   ;;  %290 = vrot.lane.b32.xlu1 %v289_v21, %s519_s29  ;;  %s327_s4 = smov 48  ;;  %s332_s9 = smov 192 }
  0x22   :  { %v477_v24 = vld [vmem:[%s797_s0 + $0x3] ss:$16 sm:%s309_s23]   ;;  %v307_v25 = vsel %vm10_vm1, %v476_v23, %v302_v22  ;;  %v479_v28 = vld [vmem:[%s797_s0 + $0x2] ss:$16 sm:%s322_s3]   ;;  %s520_s10 = smov 24   ;;  %s342_s13 = smov 3 }
  0x23   :  { %v312_v27 = vsel %vm14_vm2, %v477_v24, %v307_v25  ;;  %v480_v29 = vld [vmem:[%s797_s0 + $0x2] ss:$16 sm:%s327_s4]   ;;  %v325_v30 = vsel %vm6_vm0, %v479_v28, %v478_v26  ;;  %s345_s14 = smov 12  ;;  %v482_v33 = vld [vmem:[%s797_s0 + $0x1] ss:$16 sm:%s342_s13]   ;;  %s350_s19 = smov 48 }
  0x24   :  { %313 = vrot.lane.b32.xlu0 %v312_v27, %s520_s10  ;;  %v481_v31 = vld [vmem:[%s797_s0 + $0x2] ss:$16 sm:%s332_s9]   ;;  %v330_v32 = vsel %vm10_vm1, %v480_v29, %v325_v30  ;;  %s355_s20 = smov 192  ;;  %s8_s25 = smov 48 }
  0x25   :  { %v483_v34 = vld [vmem:[%s797_s0 + $0x1] ss:$16 sm:%s345_s14]   ;;  %v335_v35 = vsel %vm14_vm2, %v481_v31, %v330_v32  ;;  %s521_s26 = smov 16   ;;  %v9_v40 = vld [vmem:[%s797_s0] ss:$16 sm:%s8_s25]   ;;  %s12_s29 = smov 192 }
  0x26   :  { %v348_v36 = vsel %vm6_vm0, %v483_v34, %v482_v33  ;;  %v484_v37 = vld [vmem:[%s797_s0 + $0x1] ss:$16 sm:%s350_s19]   ;;  %336 = vrot.lane.b32.xlu1 %v335_v35, %s521_s26  ;;  %s2_s30 = smov 3  ;;  %s4_s6 = smov 12 }
  0x27   :  { %v485_v38 = vld [vmem:[%s797_s0 + $0x1] ss:$16 sm:%s355_s20]   ;;  %v353_v39 = vsel %vm10_vm1, %v484_v37, %v348_v36  ;;  %v13_v42 = vld [vmem:[%s797_s0] ss:$16 sm:%s12_s29]   ;;  %s522_s7 = smov 8  }
  0x28   :  { %v358_v41 = vsel %vm14_vm2, %v485_v38, %v353_v39  ;;  %v3_v43 = vld [vmem:[%s797_s0] ss:$16 sm:%s2_s30]  }
  0x29   :  { %359 = vrot.lane.b32.xlu0 %v358_v41, %s522_s7  ;;  %v5_v44 = vld [vmem:[%s797_s0] ss:$16 sm:%s4_s6]  }
  0x2a   :  { %v7_v45 = vsel %vm6_vm0, %v5_v44, %v3_v43  ;;  %vm315_vm0 = vcmask 261312  }
  0x2b   :  { %v11_v46 = vsel %vm10_vm1, %v9_v40, %v7_v45  ;;  %vm338_vm1 = vcmask 195712  }
  0x2c   :  { %v15_v47 = vsel %vm14_vm2, %v13_v42, %v11_v46  ;;  %vm361_vm2 = vcmask 130112  }
  0x2d   :  { %17 = vst.msk [vmem:[#allocation0] ss:$8 sm:$0xf] %vm16_vm3, %v15_v47   ;;  %18 = vst.msk [vmem:[#allocation0] ss:$8 sm:$0xf0] %vm16_vm3, %v15_v47  }
  0x78   :  { %v38_v48 = vpop.permute.xlu0 %37  }
  0x79   :  { %40 = vst.msk [vmem:[#allocation0] ss:$8 sm:$0xf] %vm39_vm4, %v38_v48   ;;  %41 = vst.msk [vmem:[#allocation0] ss:$8 sm:$0xf0] %vm39_vm4, %v38_v48  }
  0x7a   :  { %v84_v49 = vpop.permute.xlu1 %83  }
  0x7d   :  { %v61_v50 = vpop.permute.xlu0 %60  }
  0x7e   :  { %63 = vst.msk [vmem:[#allocation0] ss:$8 sm:$0xf] %vm62_vm5, %v61_v50   ;;  %64 = vst.msk [vmem:[#allocation0] ss:$8 sm:$0xf0] %vm62_vm5, %v61_v50  }
  0x7f   :  { %86 = vst.msk [vmem:[#allocation0] ss:$8 sm:$0xf] %vm85_vm6, %v84_v49   ;;  %87 = vst.msk [vmem:[#allocation0] ss:$8 sm:$0xf0] %vm85_vm6, %v84_v49   ;;  %v107_v51 = vpop.permute.xlu1 %106  }
  0x80   :  { %109 = vst.msk [vmem:[#allocation0] ss:$8 sm:$0xf] %vm108_vm7, %v107_v51   ;;  %110 = vst.msk [vmem:[#allocation0] ss:$8 sm:$0xf0] %vm108_vm7, %v107_v51  }
  0x82   :  { %v130_v52 = vpop.permute.xlu0 %129  }
  0x83   :  { %132 = vst.msk [vmem:[#allocation0] ss:$8 sm:$0xf] %vm131_vm8, %v130_v52   ;;  %133 = vst.msk [vmem:[#allocation0] ss:$8 sm:$0xf0] %vm131_vm8, %v130_v52  }
  0x84   :  { %v153_v53 = vpop.permute.xlu1 %152  }
  0x85   :  { %155 = vst.msk [vmem:[#allocation0] ss:$8 sm:$0xf] %vm154_vm9, %v153_v53   ;;  %156 = vst.msk [vmem:[#allocation0] ss:$8 sm:$0xf0] %vm154_vm9, %v153_v53  }
  0x87   :  { %v176_v54 = vpop.permute.xlu0 %175  }
  0x88   :  { %178 = vst.msk [vmem:[#allocation0] ss:$8 sm:$0xf] %vm177_vm10, %v176_v54   ;;  %179 = vst.msk [vmem:[#allocation0] ss:$8 sm:$0xf0] %vm177_vm10, %v176_v54  }
  0x89   :  { %v199_v55 = vpop.permute.xlu1 %198  }
  0x8a   :  { %201 = vst.msk [vmem:[#allocation0] ss:$8 sm:$0xf] %vm200_vm11, %v199_v55   ;;  %202 = vst.msk [vmem:[#allocation0] ss:$8 sm:$0xf0] %vm200_vm11, %v199_v55  }
  0x8c   :  { %v222_v56 = vpop.permute.xlu0 %221  }
  0x8d   :  { %224 = vst.msk [vmem:[#allocation0] ss:$8 sm:$0xf] %vm223_vm12, %v222_v56   ;;  %225 = vst.msk [vmem:[#allocation0] ss:$8 sm:$0xf0] %vm223_vm12, %v222_v56  }
  0x8e   :  { %v245_v57 = vpop.permute.xlu1 %244  }
  0x8f   :  { %247 = vst.msk [vmem:[#allocation0] ss:$8 sm:$0xf] %vm246_vm13, %v245_v57   ;;  %248 = vst.msk [vmem:[#allocation0] ss:$8 sm:$0xf0] %vm246_vm13, %v245_v57  }
  0x91   :  { %v268_v58 = vpop.permute.xlu0 %267  }
  0x92   :  { %270 = vst.msk [vmem:[#allocation0] ss:$8 sm:$0xf] %vm269_vm14, %v268_v58   ;;  %271 = vst.msk [vmem:[#allocation0] ss:$8 sm:$0xf0] %vm269_vm14, %v268_v58  }
  0x93   :  { %v291_v59 = vpop.permute.xlu1 %290  }
  0x94   :  { %293 = vst.msk [vmem:[#allocation0] ss:$8 sm:$0xf] %vm292_vm15, %v291_v59   ;;  %294 = vst.msk [vmem:[#allocation0] ss:$8 sm:$0xf0] %vm292_vm15, %v291_v59  }
  0x96   :  { %v314_v60 = vpop.permute.xlu0 %313  }
  0x97   :  { %316 = vst.msk [vmem:[#allocation0] ss:$8 sm:$0xf] %vm315_vm0, %v314_v60   ;;  %317 = vst.msk [vmem:[#allocation0] ss:$8 sm:$0xf0] %vm315_vm0, %v314_v60  }
  0x98   :  { %v337_v61 = vpop.permute.xlu1 %336  }
  0x99   :  { %339 = vst.msk [vmem:[#allocation0] ss:$8 sm:$0xf] %vm338_vm1, %v337_v61   ;;  %340 = vst.msk [vmem:[#allocation0] ss:$8 sm:$0xf0] %vm338_vm1, %v337_v61  }
  0x9b   :  { %v360_v62 = vpop.permute.xlu0 %359  }
  0x9c   :  { %362 = vst.msk [vmem:[#allocation0] ss:$8 sm:$0xf] %vm361_vm2, %v360_v62   ;;  %363 = vst.msk [vmem:[#allocation0] ss:$8 sm:$0xf0] %vm361_vm2, %v360_v62  }
  0xa3   :  { %v368_v63 = vld [vmem:[#allocation0] sm:$0x1]  ;;  %v373_v0 = vld [vmem:[#allocation0 + $0x8] sm:$0x1]  ;;  %v379_v1 = vld [vmem:[#allocation0 + $0x10] sm:$0x1] }
  0xa4   :  { %371 = vst [vmem:[%s798_s1] sm:$0x1] %v368_v63  ;;  %486 = vst [vmem:[%s798_s1 + $0x1] sm:$0x1] %v373_v0  ;;  %v386_v2 = vld [vmem:[#allocation0 + $0x18] sm:$0x1] }
  0xa5   :  { %487 = vst [vmem:[%s798_s1 + $0x2] sm:$0x1] %v379_v1  ;;  %v393_v3 = vld [vmem:[#allocation0 + $0x20] sm:$0x1]  ;;  %v400_v4 = vld [vmem:[#allocation0 + $0x28] sm:$0x1] }
  0xa6   :  { %488 = vst [vmem:[%s798_s1 + $0x3] sm:$0x1] %v386_v2  ;;  %489 = vst [vmem:[%s798_s1 + $0x4] sm:$0x1] %v393_v3  ;;  %v407_v5 = vld [vmem:[#allocation0 + $0x30] sm:$0x1] }
  0xa7   :  { %490 = vst [vmem:[%s798_s1 + $0x5] sm:$0x1] %v400_v4  ;;  %v414_v6 = vld [vmem:[#allocation0 + $0x38] sm:$0x1]  ;;  %491 = vst [vmem:[%s798_s1 + $0x6] sm:$0x1] %v407_v5 }
  0xa8   :  { %492 = vst [vmem:[%s798_s1 + $0x7] sm:$0x1] %v414_v6 }

// kernel: temporal_conv_forward.1
= control target key start
LH: loop header
LB: loop body
LE: loop exit
PB: predicated region body
PF: predicated region fallthrough
CT: control target
= control target key end

     0   :  { %10 = vsyncpa [#allocation3], 0  ;;  %s14127_s0 = inlined_call_operand.vmem [shape: f32[2,16,128], index: 0, kind: input, shape index: {}]   ;;  %s14128_s1 = inlined_call_operand.vmem [shape: f32[128,1024], index: 1, kind: input, shape index: {}]   ;;  %s14129_s2 = inlined_call_operand.vmem [shape: f32[1024,1024], index: 2, kind: input, shape index: {}]   ;;  %s14130_s3 = inlined_call_operand.vmem [shape: f32[1024,1024], index: 3, kind: input, shape index: {}]   ;;  %s14131_s4 = inlined_call_operand.vmem [shape: f32[9,1024], index: 4, kind: input, shape index: {}]   ;;  %s14132_s5 = inlined_call_operand.hbm [shape: f32[2,16,1024], index: 5, kind: output, shape index: {}]  }
   0x1   :  { %12 = vsyncpa [#allocation3 + $0x1], 0  ;;  %s6542_s18 = smov 0   ;;  %s6544_s19 = smov 0  }
   0x2   :  { %s6546_s20 = smov 0   ;;  %s6548_s21 = smov 0  }
   0x3 LB: > { %s6563_s22 = sadd.s32 4294967295, %s6506_s21   ;;  %s6272_s23 = sadd.s32 4294967294, %s6506_s21   ;;  %s6506_s21 = sphi %s6548_s21, %s14184_s21   ;;  %s6502_s20 = sphi %s6546_s20, %s14183_s20   ;;  %s6498_s19 = sphi %s6544_s19, %s14182_s19   ;;  %s6494_s18 = sphi %s6542_s18, %s14181_s18  }
   0x4   : > { %s6567_s24 = sadd.s32 1, %s6506_s21   ;;  %s135_s25 = sadd.s32 1, %s6502_s20 }
   0x5   : > { %s132_s26 = ssub.s32 %s6506_s21, %s6567_s24  ;;  %p145_p0 = scmp.ne.s32.totalorder %s6502_s20, %s6498_s19 }
   0x6   : > { %p133_p1 = scmp.eq.s32.totalorder %s132_s26, 0  ;;  %p146_p2 = scmp.eq.s32.totalorder %s6563_s22, 1 }
   0x7   : > { %p151_p3 = scmp.ne.s32.totalorder %s6498_s19, %s6494_s18  ;;  %p152_p4 = scmp.eq.s32.totalorder %s6272_s23, 1 }
   0x8   : > { %s6578_s27 = scalar_select %p133_p1, %s6502_s20, %s135_s25  }
   0x9   : > { %p6580_p5 = por %p146_p2, %p145_p0  ;;  %p6584_p6 = por %p152_p4, %p151_p3 }
   0xa   : > { %p6275_p7 = scmp.ge.s32.totalorder %s6506_s21, 1  ;;  %p190_p8 = scmp.lt.s32.totalorder %s6506_s21, 3 }
   0xc   : > { %p191_p9 = pnand %p6275_p7, %p190_p8 }
   0xe   : > { %194 = sbr.rel (%p191_p9) target bundleno = 2809 (0xaf9), region = 40 }
  0x13   : > { %v346_v0 = vld [vmem:[%s14128_s1 + $0x3c8] sm:$0xff]  ;;  %v345_v1 = vld [vmem:[%s14128_s1 + $0x3c0] sm:$0xff]  ;;  %v348_v3 = vld [vmem:[%s14128_s1 + $0x3d8] sm:$0xff]  ;;  %v6508_v6 = vmov 0.0   ;;  %p218_p10 = scmp.lt.s32.totalorder %s6563_s22, 1  ;;  %s215_s7 = sand.u32 1, %s6498_s19  }
  0x14   : > { %v338_v2 = vld [vmem:[%s14128_s1 + $0x388] sm:$0xff]  ;;  %397 = vmatprep.subr.mxu0 %v346_v0  ;;  %v337_v4 = vld [vmem:[%s14128_s1 + $0x380] sm:$0xff]  ;;  %v347_v5 = vld [vmem:[%s14128_s1 + $0x3d0] sm:$0xff]  ;;  %461 = vmatprep.mubr.f32.mxu0 %v6508_v6  ;;  %s6276_s8 = sshll.u32 %s215_s7, 7  ;;  %s6301_s9 = sshll.u32 %s6563_s22, 11 }
  0x15   : > { %398 = vmatpush1.msra.mxu0 %v345_v1  ;;  %474 = vmatprep.subr.mxu1 %v348_v3  ;;  %v330_v7 = vld [vmem:[%s14128_s1 + $0x348] sm:$0xff]  ;;  %v340_v8 = vld [vmem:[%s14128_s1 + $0x398] sm:$0xff]  ;;  %v329_v9 = vld [vmem:[%s14128_s1 + $0x340] sm:$0xff]  ;;  %s6730_s15 = scalar_select %p218_p10, %s6563_s22, 1 }
  0x16   : > { %399 = vmatprep.subr.mxu0 %v338_v2  ;;  %475 = vmatpush1.msra.mxu1 %v347_v5  ;;  %v339_v10 = vld [vmem:[%s14128_s1 + $0x390] sm:$0xff]  ;;  %v332_v11 = vld [vmem:[%s14128_s1 + $0x358] sm:$0xff]  ;;  %v322_v12 = vld [vmem:[%s14128_s1 + $0x308] sm:$0xff]  ;;  %s14078_s11 = scalar_lea.hbm %s14132_s5, %s6301_s9  ;;  %s14087_s12 = scalar_lea.sflag [#allocation3], %s215_s7 }
  0x17   : > { %400 = vmatpush1.msra.mxu0 %v337_v4  ;;  %476 = vmatprep.subr.mxu1 %v340_v8  ;;  %v331_v13 = vld [vmem:[%s14128_s1 + $0x350] sm:$0xff]  ;;  %v321_v14 = vld [vmem:[%s14128_s1 + $0x300] sm:$0xff]  ;;  %v324_v15 = vld [vmem:[%s14128_s1 + $0x318] sm:$0xff]  ;;  %s6300_s17 = sshll.u32 %s6730_s15, 4  ;;  %s6509_s13 = smov [#allocation2]  }
  0x18   : > { %401 = vmatprep.subr.mxu0 %v330_v7  ;;  %477 = vmatpush1.msra.mxu1 %v339_v10  ;;  %v314_v16 = vld [vmem:[%s14128_s1 + $0x2c8] sm:$0xff]  ;;  %v323_v17 = vld [vmem:[%s14128_s1 + $0x310] sm:$0xff]  ;;  %v313_v18 = vld [vmem:[%s14128_s1 + $0x2c0] sm:$0xff]  ;;  %s6778_s16 = scalar_lea.vmem %s14127_s0, %s6300_s17  ;;  %s14047_s17 = scalar_lea.vmem [#allocation2], %s6276_s8 }
  0x19   : > { %402 = vmatpush1.msra.mxu0 %v329_v9  ;;  %478 = vmatprep.subr.mxu1 %v332_v11  ;;  %v316_v19 = vld [vmem:[%s14128_s1 + $0x2d8] sm:$0xff]  ;;  %v306_v20 = vld [vmem:[%s14128_s1 + $0x288] sm:$0xff]  ;;  %v315_v21 = vld [vmem:[%s14128_s1 + $0x2d0] sm:$0xff]  ;;  %s6210_s15 = sshll.u32 %s14047_s17, 4  ;;  %s6450_s14 = sshll.u32 %s6509_s13, 4  ;;  %s14080_s15 = int_to_ptr.vmem [resolvable:$true] %s6210_s15  ;;  %s6451_s14 = int_to_ptr.vmem [resolvable:$false] %s6450_s14 }
  0x1a   : > { %403 = vmatprep.subr.mxu0 %v322_v12  ;;  %479 = vmatpush1.msra.mxu1 %v331_v13  ;;  %v305_v22 = vld [vmem:[%s14128_s1 + $0x280] sm:$0xff]  ;;  %v308_v23 = vld [vmem:[%s14128_s1 + $0x298] sm:$0xff]  ;;  %v298_v24 = vld [vmem:[%s14128_s1 + $0x248] sm:$0xff]  ;;  %s6452_s23 = scalar_lea.vmem %s6451_s14, 4096  ;;  %p6453_p0 = scmp.lt.s32.totalorder %s14080_s15, %s6451_s14 }
  0x1b   : > { %404 = vmatpush1.msra.mxu0 %v321_v14  ;;  %480 = vmatprep.subr.mxu1 %v324_v15  ;;  %v307_v25 = vld [vmem:[%s14128_s1 + $0x290] sm:$0xff]  ;;  %v297_v26 = vld [vmem:[%s14128_s1 + $0x240] sm:$0xff]  ;;  %v300_v27 = vld [vmem:[%s14128_s1 + $0x258] sm:$0xff] }
  0x1c   : > { %405 = vmatprep.subr.mxu0 %v314_v16  ;;  %481 = vmatpush1.msra.mxu1 %v323_v17  ;;  %v290_v28 = vld [vmem:[%s14128_s1 + $0x208] sm:$0xff]  ;;  %v299_v29 = vld [vmem:[%s14128_s1 + $0x250] sm:$0xff]  ;;  %v289_v30 = vld [vmem:[%s14128_s1 + $0x200] sm:$0xff] }
  0x1d   : > { %406 = vmatpush1.msra.mxu0 %v313_v18  ;;  %482 = vmatprep.subr.mxu1 %v316_v19  ;;  %v292_v31 = vld [vmem:[%s14128_s1 + $0x218] sm:$0xff]  ;;  %v282_v32 = vld [vmem:[%s14128_s1 + $0x1c8] sm:$0xff]  ;;  %v291_v33 = vld [vmem:[%s14128_s1 + $0x210] sm:$0xff] }
  0x1e   : > { %407 = vmatprep.subr.mxu0 %v306_v20  ;;  %483 = vmatpush1.msra.mxu1 %v315_v21  ;;  %v281_v34 = vld [vmem:[%s14128_s1 + $0x1c0] sm:$0xff]  ;;  %v284_v35 = vld [vmem:[%s14128_s1 + $0x1d8] sm:$0xff]  ;;  %v274_v36 = vld [vmem:[%s14128_s1 + $0x188] sm:$0xff] }
  0x1f   : > { %408 = vmatpush1.msra.mxu0 %v305_v22  ;;  %484 = vmatprep.subr.mxu1 %v308_v23  ;;  %v283_v37 = vld [vmem:[%s14128_s1 + $0x1d0] sm:$0xff]  ;;  %v273_v38 = vld [vmem:[%s14128_s1 + $0x180] sm:$0xff]  ;;  %v276_v39 = vld [vmem:[%s14128_s1 + $0x198] sm:$0xff] }
  0x20   : > { %409 = vmatprep.subr.mxu0 %v298_v24  ;;  %485 = vmatpush1.msra.mxu1 %v307_v25  ;;  %v266_v40 = vld [vmem:[%s14128_s1 + $0x148] sm:$0xff]  ;;  %v275_v41 = vld [vmem:[%s14128_s1 + $0x190] sm:$0xff]  ;;  %v265_v42 = vld [vmem:[%s14128_s1 + $0x140] sm:$0xff] }
  0x21   : > { %410 = vmatpush1.msra.mxu0 %v297_v26  ;;  %486 = vmatprep.subr.mxu1 %v300_v27  ;;  %v268_v43 = vld [vmem:[%s14128_s1 + $0x158] sm:$0xff]  ;;  %v258_v44 = vld [vmem:[%s14128_s1 + $0x108] sm:$0xff]  ;;  %v267_v45 = vld [vmem:[%s14128_s1 + $0x150] sm:$0xff] }
  0x22   : > { %411 = vmatprep.subr.mxu0 %v290_v28  ;;  %487 = vmatpush1.msra.mxu1 %v299_v29  ;;  %v257_v46 = vld [vmem:[%s14128_s1 + $0x100] sm:$0xff]  ;;  %v260_v47 = vld [vmem:[%s14128_s1 + $0x118] sm:$0xff]  ;;  %v250_v48 = vld [vmem:[%s14128_s1 + $0xc8] sm:$0xff] }
  0x23   : > { %412 = vmatpush1.msra.mxu0 %v289_v30  ;;  %488 = vmatprep.subr.mxu1 %v292_v31  ;;  %v259_v49 = vld [vmem:[%s14128_s1 + $0x110] sm:$0xff]  ;;  %v249_v50 = vld [vmem:[%s14128_s1 + $0xc0] sm:$0xff]  ;;  %v252_v51 = vld [vmem:[%s14128_s1 + $0xd8] sm:$0xff] }
  0x24   : > { %413 = vmatprep.subr.mxu0 %v282_v32  ;;  %489 = vmatpush1.msra.mxu1 %v291_v33  ;;  %v242_v52 = vld [vmem:[%s14128_s1 + $0x88] sm:$0xff]  ;;  %v251_v53 = vld [vmem:[%s14128_s1 + $0xd0] sm:$0xff]  ;;  %v241_v54 = vld [vmem:[%s14128_s1 + $0x80] sm:$0xff] }
  0x25   : > { %414 = vmatpush1.msra.mxu0 %v281_v34  ;;  %490 = vmatprep.subr.mxu1 %v284_v35  ;;  %v244_v55 = vld [vmem:[%s14128_s1 + $0x98] sm:$0xff]  ;;  %v234_v56 = vld [vmem:[%s14128_s1 + $0x48] sm:$0xff]  ;;  %v243_v57 = vld [vmem:[%s14128_s1 + $0x90] sm:$0xff] }
  0x26   : > { %415 = vmatprep.subr.mxu0 %v274_v36  ;;  %491 = vmatpush1.msra.mxu1 %v283_v37  ;;  %v233_v58 = vld [vmem:[%s14128_s1 + $0x40] sm:$0xff]  ;;  %v236_v59 = vld [vmem:[%s14128_s1 + $0x58] sm:$0xff]  ;;  %v226_v60 = vld [vmem:[%s14128_s1 + $0x8] sm:$0xff] }
  0x27   : > { %416 = vmatpush1.msra.mxu0 %v273_v38  ;;  %492 = vmatprep.subr.mxu1 %v276_v39  ;;  %v235_v61 = vld [vmem:[%s14128_s1 + $0x50] sm:$0xff]  ;;  %v225_v62 = vld [vmem:[%s14128_s1] sm:$0xff]  ;;  %v228_v63 = vld [vmem:[%s14128_s1 + $0x18] sm:$0xff] }
  0x28   : > { %417 = vmatprep.subr.mxu0 %v266_v40  ;;  %493 = vmatpush1.msra.mxu1 %v275_v41  ;;  %v6793_v0 = vld [vmem:[%s6778_s16] sm:$0xff]  ;;  %v350_v1 = vld [vmem:[%s14128_s1 + $0x3e8] sm:$0xff]  ;;  %v227_v2 = vld [vmem:[%s14128_s1 + $0x10] sm:$0xff] }
  0x29   : > { %418 = vmatpush1.msra.mxu0 %v265_v42  ;;  %494 = vmatprep.subr.mxu1 %v268_v43  ;;  %v349_v3 = vld [vmem:[%s14128_s1 + $0x3e0] sm:$0xff]  ;;  %v342_v4 = vld [vmem:[%s14128_s1 + $0x3a8] sm:$0xff]  ;;  %v352_v5 = vld [vmem:[%s14128_s1 + $0x3f8] sm:$0xff] }
  0x2a   : > { %419 = vmatprep.subr.mxu0 %v258_v44  ;;  %495 = vmatpush1.msra.mxu1 %v267_v45  ;;  %v341_v7 = vld [vmem:[%s14128_s1 + $0x3a0] sm:$0xff]  ;;  %v351_v8 = vld [vmem:[%s14128_s1 + $0x3f0] sm:$0xff]  ;;  %v334_v9 = vld [vmem:[%s14128_s1 + $0x368] sm:$0xff] }
  0x2b   : > { %420 = vmatpush1.msra.mxu0 %v257_v46  ;;  %496 = vmatprep.subr.mxu1 %v260_v47  ;;  %v344_v10 = vld [vmem:[%s14128_s1 + $0x3b8] sm:$0xff]  ;;  %v333_v11 = vld [vmem:[%s14128_s1 + $0x360] sm:$0xff]  ;;  %v343_v12 = vld [vmem:[%s14128_s1 + $0x3b0] sm:$0xff] }
  0x2c   : > { %421 = vmatprep.subr.mxu0 %v250_v48  ;;  %497 = vmatpush1.msra.mxu1 %v259_v49  ;;  %v326_v13 = vld [vmem:[%s14128_s1 + $0x328] sm:$0xff]  ;;  %v336_v14 = vld [vmem:[%s14128_s1 + $0x378] sm:$0xff]  ;;  %v325_v15 = vld [vmem:[%s14128_s1 + $0x320] sm:$0xff] }
  0x2d   : > { %422 = vmatpush1.msra.mxu0 %v249_v50  ;;  %498 = vmatprep.subr.mxu1 %v252_v51  ;;  %v335_v16 = vld [vmem:[%s14128_s1 + $0x370] sm:$0xff]  ;;  %v318_v17 = vld [vmem:[%s14128_s1 + $0x2e8] sm:$0xff]  ;;  %v328_v18 = vld [vmem:[%s14128_s1 + $0x338] sm:$0xff] }
  0x2e   : > { %423 = vmatprep.subr.mxu0 %v242_v52  ;;  %499 = vmatpush1.msra.mxu1 %v251_v53  ;;  %v317_v19 = vld [vmem:[%s14128_s1 + $0x2e0] sm:$0xff]  ;;  %v327_v20 = vld [vmem:[%s14128_s1 + $0x330] sm:$0xff]  ;;  %v310_v21 = vld [vmem:[%s14128_s1 + $0x2a8] sm:$0xff] }
  0x2f   : > { %424 = vmatpush1.msra.mxu0 %v241_v54  ;;  %500 = vmatprep.subr.mxu1 %v244_v55  ;;  %v320_v22 = vld [vmem:[%s14128_s1 + $0x2f8] sm:$0xff]  ;;  %v309_v23 = vld [vmem:[%s14128_s1 + $0x2a0] sm:$0xff]  ;;  %v319_v24 = vld [vmem:[%s14128_s1 + $0x2f0] sm:$0xff] }
  0x30   : > { %425 = vmatprep.subr.mxu0 %v234_v56  ;;  %501 = vmatpush1.msra.mxu1 %v243_v57  ;;  %v302_v25 = vld [vmem:[%s14128_s1 + $0x268] sm:$0xff]  ;;  %v312_v26 = vld [vmem:[%s14128_s1 + $0x2b8] sm:$0xff]  ;;  %v301_v27 = vld [vmem:[%s14128_s1 + $0x260] sm:$0xff] }
  0x31   : > { %426 = vmatpush1.msra.mxu0 %v233_v58  ;;  %502 = vmatprep.subr.mxu1 %v236_v59  ;;  %v311_v28 = vld [vmem:[%s14128_s1 + $0x2b0] sm:$0xff]  ;;  %v294_v29 = vld [vmem:[%s14128_s1 + $0x228] sm:$0xff]  ;;  %v304_v30 = vld [vmem:[%s14128_s1 + $0x278] sm:$0xff] }
  0x32   : > { %427 = vmatprep.subr.mxu0 %v226_v60  ;;  %503 = vmatpush1.msra.mxu1 %v235_v61  ;;  %v293_v31 = vld [vmem:[%s14128_s1 + $0x220] sm:$0xff]  ;;  %v303_v32 = vld [vmem:[%s14128_s1 + $0x270] sm:$0xff]  ;;  %v286_v33 = vld [vmem:[%s14128_s1 + $0x1e8] sm:$0xff] }
  0x33   : > { %428 = vmatpush1.msra.mxu0 %v225_v62  ;;  %504 = vmatprep.subr.mxu1 %v228_v63  ;;  %v296_v34 = vld [vmem:[%s14128_s1 + $0x238] sm:$0xff]  ;;  %v285_v35 = vld [vmem:[%s14128_s1 + $0x1e0] sm:$0xff]  ;;  %v295_v36 = vld [vmem:[%s14128_s1 + $0x230] sm:$0xff] }
  0x34   : > { %462 = vmatmul.mubr.f32.vlgmr.msra.gmra.mxu0 %v6793_v0  ;;  %551 = vmatprep.subr.mxu0 %v350_v1  ;;  %v278_v37 = vld [vmem:[%s14128_s1 + $0x1a8] sm:$0xff]  ;;  %v288_v38 = vld [vmem:[%s14128_s1 + $0x1f8] sm:$0xff]  ;;  %v277_v39 = vld [vmem:[%s14128_s1 + $0x1a0] sm:$0xff] }
  0x35   : > { %505 = vmatpush1.msra.mxu1 %v227_v2  ;;  %552 = vmatpush1.msra.mxu0 %v349_v3  ;;  %v287_v40 = vld [vmem:[%s14128_s1 + $0x1f0] sm:$0xff]  ;;  %v270_v41 = vld [vmem:[%s14128_s1 + $0x168] sm:$0xff]  ;;  %v280_v42 = vld [vmem:[%s14128_s1 + $0x1b8] sm:$0xff] }
  0x36   : > { %538 = vmatprep.mubr.f32.mxu1 %v6508_v6  ;;  %553 = vmatprep.subr.mxu0 %v342_v4  ;;  %v269_v43 = vld [vmem:[%s14128_s1 + $0x160] sm:$0xff]  ;;  %v279_v44 = vld [vmem:[%s14128_s1 + $0x1b0] sm:$0xff]  ;;  %v262_v45 = vld [vmem:[%s14128_s1 + $0x128] sm:$0xff] }
  0x37   : > { %628 = vmatprep.subr.mxu1 %v352_v5  ;;  %539 = vmatmul.mubr.f32.vlgmr.msra.gmra.mxu1 %v6793_v0  ;;  %v272_v46 = vld [vmem:[%s14128_s1 + $0x178] sm:$0xff]  ;;  %v261_v47 = vld [vmem:[%s14128_s1 + $0x120] sm:$0xff]  ;;  %v271_v48 = vld [vmem:[%s14128_s1 + $0x170] sm:$0xff]  ;;  %v357_v5 = vlaneseq }
  0x38   : > { %554 = vmatpush1.msra.mxu0 %v341_v7  ;;  %629 = vmatpush1.msra.mxu1 %v351_v8  ;;  %v254_v49 = vld [vmem:[%s14128_s1 + $0xe8] sm:$0xff]  ;;  %v264_v50 = vld [vmem:[%s14128_s1 + $0x138] sm:$0xff]  ;;  %v253_v51 = vld [vmem:[%s14128_s1 + $0xe0] sm:$0xff] }
  0x39   : > { %555 = vmatprep.subr.mxu0 %v334_v9  ;;  %630 = vmatprep.subr.mxu1 %v344_v10  ;;  %v263_v52 = vld [vmem:[%s14128_s1 + $0x130] sm:$0xff]  ;;  %v224_v53 = vld [vmem:[%s6778_s16 + $0x8] sm:$0xff]  ;;  %v256_v55 = vld [vmem:[%s14128_s1 + $0xf8] sm:$0xff]  ;;  %v358_v7 = vshrl.u32 %v357_v5, 7  ;;  %s6446_s16 = scalar_lea.vmem %s14080_s15, 2048 }
  0x3a   : > { %556 = vmatpush1.msra.mxu0 %v333_v11  ;;  %631 = vmatpush1.msra.mxu1 %v343_v12  ;;  %v246_v54 = vld [vmem:[%s14128_s1 + $0xa8] sm:$0xff]  ;;  %v245_v56 = vld [vmem:[%s14128_s1 + $0xa0] sm:$0xff]  ;;  %v255_v57 = vld [vmem:[%s14128_s1 + $0xf0] sm:$0xff]  ;;  %p6447_p11 = scmp.ne.s32.totalorder %s14080_s15, %s6446_s16  ;;  %p6454_p1 = scmp.lt.s32.totalorder %s6452_s23, %s6446_s16 }
  0x3b   : > { %557 = vmatprep.subr.mxu0 %v326_v13  ;;  %632 = vmatprep.subr.mxu1 %v336_v14  ;;  %v238_v58 = vld [vmem:[%s14128_s1 + $0x68] sm:$0xff]  ;;  %v248_v59 = vld [vmem:[%s14128_s1 + $0xb8] sm:$0xff]  ;;  %v237_v60 = vld [vmem:[%s14128_s1 + $0x60] sm:$0xff]  ;;  %v7008_v11 = vsub.s32 0, %v358_v7  ;;  %v7010_v12 = vsub.s32 1, %v358_v7  ;;  %v7014_v14 = vsub.s32 2, %v358_v7 }
  0x3c   : > { %558 = vmatpush1.msra.mxu0 %v325_v15  ;;  %633 = vmatpush1.msra.mxu1 %v335_v16  ;;  %v247_v61 = vld [vmem:[%s14128_s1 + $0xb0] sm:$0xff]  ;;  %v230_v62 = vld [vmem:[%s14128_s1 + $0x28] sm:$0xff]  ;;  %v240_v63 = vld [vmem:[%s14128_s1 + $0x78] sm:$0xff]  ;;  %v7016_v16 = vsub.s32 3, %v358_v7  ;;  %p6448_p12 = pnand %p6447_p11, %p6580_p5  ;;  %p6455_p2 = por %p6454_p1, %p6453_p0 }
  0x3d   : > { %559 = vmatprep.subr.mxu0 %v318_v17  ;;  %634 = vmatprep.subr.mxu1 %v328_v18  ;;  %v229_v1 = vld [vmem:[%s14128_s1 + $0x20] sm:$0xff]  ;;  %v239_v2 = vld [vmem:[%s14128_s1 + $0x70] sm:$0xff]  ;;  %v232_v3 = vld [vmem:[%s14128_s1 + $0x38] sm:$0xff]  ;;  %14150 = vst [vmem:[#allocation5_spill] sm:$0xff] %v7008_v11 }
  0x3e   : > { %560 = vmatpush1.msra.mxu0 %v317_v19  ;;  %635 = vmatpush1.msra.mxu1 %v327_v20  ;;  %v231_v4 = vld [vmem:[%s14128_s1 + $0x30] sm:$0xff]  ;;  %14151 = vst [vmem:[#allocation6_spill] sm:$0xff] %v7010_v12  ;;  %14152 = vst [vmem:[#allocation7_spill] sm:$0xff] %v7014_v14  ;;  %p6449_p13 = pneg %p6448_p12 }
  0x3f   : > { %561 = vmatprep.subr.mxu0 %v310_v21  ;;  %636 = vmatprep.subr.mxu1 %v320_v22  ;;  %v353_v8 = vld [vmem:[%s14131_s4] ss:$8 sm:$0xf]  ;;  %14153 = vst [vmem:[#allocation8_spill] sm:$0xff] %v7016_v16 }
  0x40   : > { %562 = vmatpush1.msra.mxu0 %v309_v23  ;;  %637 = vmatpush1.msra.mxu1 %v319_v24  ;;  %v354_v9 = vld [vmem:[%s14131_s4] ss:$8 sm:$0xf0]  ;;  %p6456_p3 = pnand %p6455_p2, %p6449_p13 }
  0x41   : > { %563 = vmatprep.subr.mxu0 %v302_v25  ;;  %638 = vmatprep.subr.mxu1 %v312_v26  ;;  %v355_v10 = vor.u32 %v354_v9, %v353_v8  ;;  %v7030_v26 = vsub.s32 4, %v358_v7 }
  0x42   : > { %564 = vmatpush1.msra.mxu0 %v301_v27  ;;  %639 = vmatpush1.msra.mxu1 %v311_v28 }
  0x43   : > { %565 = vmatprep.subr.mxu0 %v294_v29  ;;  %640 = vmatprep.subr.mxu1 %v304_v30  ;;  %v360_v13 = vrot.slane %v355_v10, %v7008_v11  ;;  %v368_v19 = vrot.slane %v355_v10, %v7014_v14  ;;  %v372_v21 = vrot.slane %v355_v10, %v7016_v16  ;;  %v7034_v30 = vsub.s32 5, %v358_v7 }
  0x44   : > { %566 = vmatpush1.msra.mxu0 %v293_v31  ;;  %641 = vmatpush1.msra.mxu1 %v303_v32  ;;  %v7036_v31 = vsub.s32 6, %v358_v7 }
  0x45   : > { %567 = vmatprep.subr.mxu0 %v286_v33  ;;  %642 = vmatprep.subr.mxu1 %v296_v34 }
  0x46   : > { %568 = vmatpush1.msra.mxu0 %v285_v35  ;;  %643 = vmatpush1.msra.mxu1 %v295_v36  ;;  %v376_v35 = vrot.slane %v355_v10, %v7030_v26 }
  0x47   : > { %569 = vmatprep.subr.mxu0 %v278_v37  ;;  %644 = vmatprep.subr.mxu1 %v288_v38  ;;  %v380_v38 = vrot.slane %v355_v10, %v7034_v30 }
  0x48   : > { %570 = vmatpush1.msra.mxu0 %v277_v39  ;;  %645 = vmatpush1.msra.mxu1 %v287_v40  ;;  %v7047_v39 = vsub.s32 7, %v358_v7 }
  0x49   : > { %571 = vmatprep.subr.mxu0 %v270_v41  ;;  %646 = vmatprep.subr.mxu1 %v280_v42  ;;  %v384_v42 = vrot.slane %v355_v10, %v7036_v31 }
  0x4a   : > { %572 = vmatpush1.msra.mxu0 %v269_v43  ;;  %647 = vmatpush1.msra.mxu1 %v279_v44  ;;  %14154 = vst [vmem:[#allocation9_spill] sm:$0xff] %v7047_v39 }
  0x4b   : > { %573 = vmatprep.subr.mxu0 %v262_v45  ;;  %648 = vmatprep.subr.mxu1 %v272_v46 }
  0x4c   : > { %574 = vmatpush1.msra.mxu0 %v261_v47  ;;  %649 = vmatpush1.msra.mxu1 %v271_v48 }
  0x4d   : > { %575 = vmatprep.subr.mxu0 %v254_v49  ;;  %650 = vmatprep.subr.mxu1 %v264_v50 }
  0x4e   : > { %467 = vmatprep.mubr.f32.mxu0 %v6508_v6  ;;  %576 = vmatpush1.msra.mxu0 %v253_v51  ;;  %v388_v51 = vrot.slane %v355_v10, %v7047_v39 }
  0x4f   : > { %651 = vmatpush1.msra.mxu1 %v263_v52  ;;  %468 = vmatmul.mubr.f32.gmra.mxu0 %v224_v53 }
  0x50   : > { %577 = vmatprep.subr.mxu0 %v246_v54  ;;  %652 = vmatprep.subr.mxu1 %v256_v55 }
  0x51   : > { %578 = vmatpush1.msra.mxu0 %v245_v56  ;;  %653 = vmatpush1.msra.mxu1 %v255_v57 }
  0x52   : > { %579 = vmatprep.subr.mxu0 %v238_v58  ;;  %654 = vmatprep.subr.mxu1 %v248_v59 }
  0x53   : > { %544 = vmatprep.mubr.f32.mxu1 %v6508_v6  ;;  %580 = vmatpush1.msra.mxu0 %v237_v60 }
  0x54   : > { %655 = vmatpush1.msra.mxu1 %v247_v61  ;;  %581 = vmatprep.subr.mxu0 %v230_v62 }
  0x55   : > { %545 = vmatmul.mubr.f32.gmra.mxu1 %v224_v53  ;;  %656 = vmatprep.subr.mxu1 %v240_v63 }
  0x56   : > { %582 = vmatpush1.msra.mxu0 %v229_v1  ;;  %615 = vmatprep.mubr.f32.mxu0 %v6508_v6 }
  0x57   : > { %657 = vmatpush1.msra.mxu1 %v239_v2  ;;  %616 = vmatmul.mubr.f32.vlgmr.msra.gmra.mxu0 %v6793_v0 }
  0x58   : > { %658 = vmatprep.subr.mxu1 %v232_v3  ;;  %692 = vmatprep.mubr.f32.mxu1 %v6508_v6 }
  0x59   : > { %659 = vmatpush1.msra.mxu1 %v231_v4  ;;  %621 = vmatprep.mubr.f32.mxu0 %v6508_v6 }
  0x5a   : > { %693 = vmatmul.mubr.f32.vlgmr.msra.gmra.mxu1 %v6793_v0 }
  0x5b   : > { %622 = vmatmul.mubr.f32.gmra.mxu0 %v224_v53  ;;  %698 = vmatprep.mubr.f32.mxu1 %v6508_v6  ;;  %v364_v6 = vrot.slane %v355_v10, %v7010_v12 }
  0x5e   : > { %699 = vmatmul.mubr.f32.gmra.mxu1 %v224_v53 }
  0xf4   : > { %v463_v0 = vpop.f32.mrf.mxu0 }
  0xf5   : > { %v7018_v17 = vadd.f32 %v463_v0, %v360_v13 }
  0xf6   : > { %v465_v15 = vpop.f32.mrf.mxu0 }
  0xf7   : > { %v7020_v18 = vadd.f32 %v465_v15, %v364_v6  ;;  %v540_v20 = vpop.f32.mrf.mxu1 }
  0xf8   : > { %v7026_v24 = vadd.f32 %v540_v20, %v368_v19 }
  0xf9   : > { %v713_v23 = vadd.f32 %v7020_v18, %v7018_v17  ;;  %v542_v27 = vpop.f32.mrf.mxu1 }
  0xfa   : > { %v7039_v33 = vadd.f32 %v542_v27, %v372_v21 }
  0xfb   : > { %v714_v32 = vadd.f32 %v713_v23, %v7026_v24 }
  0xfd   : > { %v715_v43 = vadd.f32 %v714_v32, %v7039_v33 }
 0x10f   : > { %v469_v22 = vpop.f32.mrf.mxu0 }
 0x110   : > { %v7028_v25 = vadd.f32 %v469_v22, %v360_v13 }
 0x111   : > { %v471_v28 = vpop.f32.mrf.mxu0 }
 0x112   : > { %v7032_v29 = vadd.f32 %v471_v28, %v364_v6 }
 0x114   : > { %v722_v34 = vadd.f32 %v7032_v29, %v7028_v25 }
 0x115   : > { %v546_v36 = vpop.f32.mrf.mxu1 }
 0x116   : > { %v7044_v37 = vadd.f32 %v546_v36, %v368_v19 }
 0x117   : > { %v548_v40 = vpop.f32.mrf.mxu1  ;;  %v617_v41 = vpop.f32.mrf.mxu0 }
 0x118   : > { %v723_v44 = vadd.f32 %v722_v34, %v7044_v37  ;;  %v7052_v45 = vadd.f32 %v548_v40, %v372_v21  ;;  %v7054_v46 = vadd.f32 %v617_v41, %v376_v35 }
 0x119   : > { %v619_v47 = vpop.f32.mrf.mxu0 }
 0x11a   : > { %v716_v48 = vadd.f32 %v715_v43, %v7054_v46  ;;  %v7057_v49 = vadd.f32 %v619_v47, %v380_v38  ;;  %v694_v50 = vpop.f32.mrf.mxu1  ;;  %v724_v54 = vadd.f32 %v723_v44, %v7052_v45 }
 0x11b   : > { %v7060_v52 = vadd.f32 %v694_v50, %v384_v42  ;;  %v623_v53 = vpop.f32.mrf.mxu0 }
 0x11c   : > { %v7063_v55 = vadd.f32 %v623_v53, %v376_v35  ;;  %v696_v56 = vpop.f32.mrf.mxu1  ;;  %v717_v57 = vadd.f32 %v716_v48, %v7057_v49 }
 0x11d   : > { %v625_v58 = vpop.f32.mrf.mxu0  ;;  %v7067_v60 = vadd.f32 %v696_v56, %v388_v51 }
 0x11e   : > { %v725_v59 = vadd.f32 %v724_v54, %v7063_v55  ;;  %v7069_v61 = vadd.f32 %v625_v58, %v380_v38  ;;  %v700_v62 = vpop.f32.mrf.mxu1  ;;  %v718_v63 = vadd.f32 %v717_v57, %v7060_v52 }
 0x11f   : > { %v7072_v1 = vadd.f32 %v700_v62, %v384_v42 }
 0x120   : > { %v726_v2 = vadd.f32 %v725_v59, %v7069_v61  ;;  %v702_v3 = vpop.f32.mrf.mxu1  ;;  %v719_v4 = vadd.f32 %v718_v63, %v7067_v60 }
 0x121   : > { %v7076_v5 = vadd.f32 %v702_v3, %v388_v51 }
 0x122   : > { %720 = vadd.xlane.f32.xlu0 %v719_v4  ;;  %v727_v7 = vadd.f32 %v726_v2, %v7072_v1 }
 0x124   : > { %v728_v8 = vadd.f32 %v727_v7, %v7076_v5 }
 0x126   : > { %729 = vadd.xlane.f32.xlu0 %v728_v8 }
 0x1ab   : > { %v721_v9 = vpop.xlane.xlu0 %720 }
 0x1af   : > { %v730_v10 = vpop.xlane.xlu0 %729 }
 0x1b0   : > { %v731_v0 = vadd.f32 %v730_v10, %v721_v9 }
 0x1b2   : > { %v732_v13 = vrot.slane %v731_v0, 4 }
 0x1b4   : > { %v733_v6 = vadd.f32 %v732_v13, %v731_v0 }
 0x1b6   : > { %v734_v15 = vrot.slane %v733_v6, 2 }
 0x1b8   : > { %v735_v19 = vadd.f32 %v734_v15, %v733_v6 }
 0x1ba   : > { %v736_v20 = vrot.slane %v735_v19, 1 }
 0x1bc   : > { %v737_v21 = vadd.f32 %v736_v20, %v735_v19 }
 0x1be   : > { %v7080_v22 = vmul.f32 6.1035156e-05, %v737_v21 }
 0x1c0   : > { %v739_v23 = vsub.f32 %v7018_v17, %v7080_v22  ;;  %v740_v27 = vsub.f32 %v7020_v18, %v7080_v22  ;;  %v741_v28 = vsub.f32 %v7026_v24, %v7080_v22  ;;  %v742_v32 = vsub.f32 %v7039_v33, %v7080_v22 }
 0x1c1   : > { %v743_v36 = vsub.f32 %v7054_v46, %v7080_v22  ;;  %v747_v41 = vsub.f32 %v7028_v25, %v7080_v22  ;;  %v748_v42 = vsub.f32 %v7032_v29, %v7080_v22  ;;  %v749_v43 = vsub.f32 %v7044_v37, %v7080_v22 }
 0x1c2   : > { %v755_v34 = vmul.f32 %v739_v23, %v739_v23  ;;  %v756_v35 = vmul.f32 %v740_v27, %v740_v27  ;;  %v757_v38 = vmul.f32 %v741_v28, %v741_v28  ;;  %v744_v44 = vsub.f32 %v7057_v49, %v7080_v22 }
 0x1c3   : > { %v758_v47 = vmul.f32 %v742_v32, %v742_v32  ;;  %v750_v50 = vsub.f32 %v7052_v45, %v7080_v22  ;;  %v763_v51 = vmul.f32 %v747_v41, %v747_v41  ;;  %v764_v53 = vmul.f32 %v748_v42, %v748_v42  ;;  %v1116_v41 = vld [vmem:[%s14129_s2 + $0x3c0] sm:$0xff] }
 0x1c4   : > { %v771_v40 = vadd.f32 %v756_v35, %v755_v34  ;;  %v745_v54 = vsub.f32 %v7060_v52, %v7080_v22  ;;  %v759_v56 = vmul.f32 %v743_v36, %v743_v36  ;;  %v751_v58 = vsub.f32 %v7063_v55, %v7080_v22  ;;  %v1372_v42 = vld [vmem:[%s14129_s2 + $0xbc0] sm:$0xff] }
 0x1c5   : > { %v765_v59 = vmul.f32 %v749_v43, %v749_v43  ;;  %v780_v62 = vadd.f32 %v764_v53, %v763_v51  ;;  %v746_v63 = vsub.f32 %v7067_v60, %v7080_v22  ;;  %v760_v2 = vmul.f32 %v744_v44, %v744_v44  ;;  %v1109_v43 = vld [vmem:[%s14129_s2 + $0x388] sm:$0xff]  ;;  %v1100_v53 = vld [vmem:[%s14129_s2 + $0x340] sm:$0xff] }
 0x1c6   : > { %v772_v48 = vadd.f32 %v771_v40, %v757_v38  ;;  %v752_v4 = vsub.f32 %v7069_v61, %v7080_v22  ;;  %v766_v7 = vmul.f32 %v750_v50, %v750_v50  ;;  %v761_v9 = vmul.f32 %v745_v54, %v745_v54  ;;  %v1117_v38 = vld [vmem:[%s14129_s2 + $0x3c8] sm:$0xff]  ;;  %v1356_v54 = vld [vmem:[%s14129_s2 + $0xb40] sm:$0xff] }
 0x1c7   : > { %v781_v8 = vadd.f32 %v780_v62, %v765_v59  ;;  %v753_v0 = vsub.f32 %v7072_v1, %v7080_v22  ;;  %v767_v13 = vmul.f32 %v751_v58, %v751_v58  ;;  %v762_v15 = vmul.f32 %v746_v63, %v746_v63  ;;  %v1373_v40 = vld [vmem:[%s14129_s2 + $0xbc8] sm:$0xff]  ;;  %2065 = vmatprep.subr.mxu0 %v1117_v38  ;;  %v1092_v58 = vld [vmem:[%s14129_s2 + $0x300] sm:$0xff] }
 0x1c8   : > { %v773_v57 = vadd.f32 %v772_v48, %v758_v47  ;;  %v754_v20 = vsub.f32 %v7076_v5, %v7080_v22  ;;  %v768_v21 = vmul.f32 %v752_v4, %v752_v4  ;;  %2142 = vmatprep.subr.mxu1 %v1373_v40  ;;  %2066 = vmatpush1.msra.mxu0 %v1116_v41  ;;  %v1365_v44 = vld [vmem:[%s14129_s2 + $0xb88] sm:$0xff]  ;;  %v1108_v47 = vld [vmem:[%s14129_s2 + $0x380] sm:$0xff] }
 0x1c9   : > { %v782_v6 = vadd.f32 %v781_v8, %v766_v7  ;;  %v769_v28 = vmul.f32 %v753_v0, %v753_v0  ;;  %2143 = vmatpush1.msra.mxu1 %v1372_v42  ;;  %2067 = vmatprep.subr.mxu0 %v1109_v43  ;;  %v1364_v48 = vld [vmem:[%s14129_s2 + $0xb80] sm:$0xff]  ;;  %v1101_v50 = vld [vmem:[%s14129_s2 + $0x348] sm:$0xff] }
 0x1ca   : > { %v774_v3 = vadd.f32 %v773_v57, %v759_v56  ;;  %v770_v34 = vmul.f32 %v754_v20, %v754_v20  ;;  %2144 = vmatprep.subr.mxu1 %v1365_v44  ;;  %2068 = vmatpush1.msra.mxu0 %v1108_v47  ;;  %v1357_v51 = vld [vmem:[%s14129_s2 + $0xb48] sm:$0xff]  ;;  %v1348_v59 = vld [vmem:[%s14129_s2 + $0xb00] sm:$0xff] }
 0x1cb   : > { %v783_v23 = vadd.f32 %v782_v6, %v767_v13  ;;  %2145 = vmatpush1.msra.mxu1 %v1364_v48  ;;  %2069 = vmatprep.subr.mxu0 %v1101_v50  ;;  %v1093_v56 = vld [vmem:[%s14129_s2 + $0x308] sm:$0xff]  ;;  %v1076_v8 = vld [vmem:[%s14129_s2 + $0x280] sm:$0xff] }
 0x1cc   : > { %v775_v10 = vadd.f32 %v774_v3, %v760_v2  ;;  %2146 = vmatprep.subr.mxu1 %v1357_v51  ;;  %2070 = vmatpush1.msra.mxu0 %v1100_v53  ;;  %v1349_v57 = vld [vmem:[%s14129_s2 + $0xb08] sm:$0xff]  ;;  %v1084_v2 = vld [vmem:[%s14129_s2 + $0x2c0] sm:$0xff] }
 0x1cd   : > { %v784_v32 = vadd.f32 %v783_v23, %v768_v21  ;;  %2147 = vmatpush1.msra.mxu1 %v1356_v54  ;;  %2071 = vmatprep.subr.mxu0 %v1093_v56  ;;  %v1085_v62 = vld [vmem:[%s14129_s2 + $0x2c8] sm:$0xff]  ;;  %v1340_v3 = vld [vmem:[%s14129_s2 + $0xac0] sm:$0xff] }
 0x1ce   : > { %v776_v19 = vadd.f32 %v775_v10, %v761_v9  ;;  %2148 = vmatprep.subr.mxu1 %v1349_v57  ;;  %2072 = vmatpush1.msra.mxu0 %v1092_v58  ;;  %v1341_v63 = vld [vmem:[%s14129_s2 + $0xac8] sm:$0xff]  ;;  %v1332_v9 = vld [vmem:[%s14129_s2 + $0xa80] sm:$0xff] }
 0x1cf   : > { %v785_v35 = vadd.f32 %v784_v32, %v769_v28  ;;  %2149 = vmatpush1.msra.mxu1 %v1348_v59  ;;  %2073 = vmatprep.subr.mxu0 %v1085_v62  ;;  %v1077_v4 = vld [vmem:[%s14129_s2 + $0x288] sm:$0xff]  ;;  %v1068_v13 = vld [vmem:[%s14129_s2 + $0x240] sm:$0xff] }
 0x1d0   : > { %v777_v27 = vadd.f32 %v776_v19, %v762_v15  ;;  %2150 = vmatprep.subr.mxu1 %v1341_v63  ;;  %2074 = vmatpush1.msra.mxu0 %v1084_v2  ;;  %v1333_v7 = vld [vmem:[%s14129_s2 + $0xa88] sm:$0xff]  ;;  %v1324_v6 = vld [vmem:[%s14129_s2 + $0xa40] sm:$0xff] }
 0x1d1   : > { %v786_v36 = vadd.f32 %v785_v35, %v770_v34  ;;  %2151 = vmatpush1.msra.mxu1 %v1340_v3  ;;  %2075 = vmatprep.subr.mxu0 %v1077_v4  ;;  %v1069_v10 = vld [vmem:[%s14129_s2 + $0x248] sm:$0xff]  ;;  %v1060_v20 = vld [vmem:[%s14129_s2 + $0x200] sm:$0xff] }
 0x1d2   : > { %778 = vadd.xlane.f32.xlu1 %v777_v27  ;;  %2152 = vmatprep.subr.mxu1 %v1333_v7  ;;  %v1325_v0 = vld [vmem:[%s14129_s2 + $0xa48] sm:$0xff]  ;;  %v1316_v21 = vld [vmem:[%s14129_s2 + $0xa00] sm:$0xff] }
 0x1d3   : > { %2076 = vmatpush1.msra.mxu0 %v1076_v8  ;;  %2153 = vmatpush1.msra.mxu1 %v1332_v9  ;;  %v1061_v15 = vld [vmem:[%s14129_s2 + $0x208] sm:$0xff]  ;;  %v1052_v28 = vld [vmem:[%s14129_s2 + $0x1c0] sm:$0xff] }
 0x1d4   : > { %2077 = vmatprep.subr.mxu0 %v1069_v10  ;;  %2154 = vmatprep.subr.mxu1 %v1325_v0  ;;  %v1317_v19 = vld [vmem:[%s14129_s2 + $0xa08] sm:$0xff]  ;;  %v1308_v32 = vld [vmem:[%s14129_s2 + $0x9c0] sm:$0xff] }
 0x1d5   : > { %2078 = vmatpush1.msra.mxu0 %v1068_v13  ;;  %2155 = vmatpush1.msra.mxu1 %v1324_v6  ;;  %v1053_v23 = vld [vmem:[%s14129_s2 + $0x1c8] sm:$0xff]  ;;  %v1300_v38 = vld [vmem:[%s14129_s2 + $0x980] sm:$0xff] }
 0x1d6   : > { %787 = vadd.xlane.f32.xlu1 %v786_v36  ;;  %2079 = vmatprep.subr.mxu0 %v1061_v15  ;;  %v1309_v27 = vld [vmem:[%s14129_s2 + $0x9c8] sm:$0xff]  ;;  %v1044_v36 = vld [vmem:[%s14129_s2 + $0x180] sm:$0xff] }
 0x1d7   : > { %2156 = vmatprep.subr.mxu1 %v1317_v19  ;;  %2080 = vmatpush1.msra.mxu0 %v1060_v20  ;;  %v1045_v34 = vld [vmem:[%s14129_s2 + $0x188] sm:$0xff]  ;;  %v1036_v42 = vld [vmem:[%s14129_s2 + $0x140] sm:$0xff] }
 0x1d8   : > { %2157 = vmatpush1.msra.mxu1 %v1316_v21  ;;  %2081 = vmatprep.subr.mxu0 %v1053_v23  ;;  %v1301_v35 = vld [vmem:[%s14129_s2 + $0x988] sm:$0xff]  ;;  %v1292_v43 = vld [vmem:[%s14129_s2 + $0x940] sm:$0xff] }
 0x1d9   : > { %2158 = vmatprep.subr.mxu1 %v1309_v27  ;;  %2082 = vmatpush1.msra.mxu0 %v1052_v28  ;;  %v1037_v40 = vld [vmem:[%s14129_s2 + $0x148] sm:$0xff]  ;;  %v1028_v48 = vld [vmem:[%s14129_s2 + $0x100] sm:$0xff] }
 0x1da   : > { %2159 = vmatpush1.msra.mxu1 %v1308_v32  ;;  %2083 = vmatprep.subr.mxu0 %v1045_v34  ;;  %v1293_v41 = vld [vmem:[%s14129_s2 + $0x948] sm:$0xff]  ;;  %v1284_v50 = vld [vmem:[%s14129_s2 + $0x900] sm:$0xff] }
 0x1db   : > { %2160 = vmatprep.subr.mxu1 %v1301_v35  ;;  %2084 = vmatpush1.msra.mxu0 %v1044_v36  ;;  %v1029_v44 = vld [vmem:[%s14129_s2 + $0x108] sm:$0xff]  ;;  %v1020_v54 = vld [vmem:[%s14129_s2 + $0xc0] sm:$0xff] }
 0x1dc   : > { %2161 = vmatpush1.msra.mxu1 %v1300_v38  ;;  %2085 = vmatprep.subr.mxu0 %v1037_v40  ;;  %v1285_v47 = vld [vmem:[%s14129_s2 + $0x908] sm:$0xff]  ;;  %v1276_v56 = vld [vmem:[%s14129_s2 + $0x8c0] sm:$0xff] }
 0x1dd   : > { %2162 = vmatprep.subr.mxu1 %v1293_v41  ;;  %2086 = vmatpush1.msra.mxu0 %v1036_v42  ;;  %v1021_v51 = vld [vmem:[%s14129_s2 + $0xc8] sm:$0xff]  ;;  %v1012_v59 = vld [vmem:[%s14129_s2 + $0x80] sm:$0xff] }
 0x1de   : > { %2163 = vmatpush1.msra.mxu1 %v1292_v43  ;;  %2087 = vmatprep.subr.mxu0 %v1029_v44  ;;  %v1277_v53 = vld [vmem:[%s14129_s2 + $0x8c8] sm:$0xff]  ;;  %v1268_v62 = vld [vmem:[%s14129_s2 + $0x880] sm:$0xff] }
 0x1df   : > { %2164 = vmatprep.subr.mxu1 %v1285_v47  ;;  %2088 = vmatpush1.msra.mxu0 %v1028_v48  ;;  %v1013_v57 = vld [vmem:[%s14129_s2 + $0x88] sm:$0xff]  ;;  %v1004_v3 = vld [vmem:[%s14129_s2 + $0x40] sm:$0xff] }
 0x1e0   : > { %2165 = vmatpush1.msra.mxu1 %v1284_v50  ;;  %2089 = vmatprep.subr.mxu0 %v1021_v51  ;;  %v1269_v58 = vld [vmem:[%s14129_s2 + $0x888] sm:$0xff]  ;;  %v1260_v4 = vld [vmem:[%s14129_s2 + $0x840] sm:$0xff] }
 0x1e1   : > { %2166 = vmatprep.subr.mxu1 %v1277_v53  ;;  %2090 = vmatpush1.msra.mxu0 %v1020_v54  ;;  %v1005_v63 = vld [vmem:[%s14129_s2 + $0x48] sm:$0xff]  ;;  %v996_v9 = vld [vmem:[%s14129_s2] sm:$0xff] }
 0x1e2   : > { %2167 = vmatpush1.msra.mxu1 %v1276_v56  ;;  %2091 = vmatprep.subr.mxu0 %v1013_v57  ;;  %v1261_v2 = vld [vmem:[%s14129_s2 + $0x848] sm:$0xff]  ;;  %v1252_v10 = vld [vmem:[%s14129_s2 + $0x800] sm:$0xff] }
 0x1e3   : > { %2168 = vmatprep.subr.mxu1 %v1269_v58  ;;  %2092 = vmatpush1.msra.mxu0 %v1012_v59  ;;  %v997_v7 = vld [vmem:[%s14129_s2 + $0x8] sm:$0xff]  ;;  %v1244_v6 = vld [vmem:[%s14129_s2 + $0x7c0] sm:$0xff] }
 0x1e4   : > { %2169 = vmatpush1.msra.mxu1 %v1268_v62  ;;  %2093 = vmatprep.subr.mxu0 %v1005_v63  ;;  %v1253_v8 = vld [vmem:[%s14129_s2 + $0x808] sm:$0xff]  ;;  %v1500_v15 = vld [vmem:[%s14129_s2 + $0xfc0] sm:$0xff] }
 0x1e5   : > { %2170 = vmatprep.subr.mxu1 %v1261_v2  ;;  %2094 = vmatpush1.msra.mxu0 %v1004_v3  ;;  %v1245_v0 = vld [vmem:[%s14129_s2 + $0x7c8] sm:$0xff]  ;;  %v1236_v21 = vld [vmem:[%s14129_s2 + $0x780] sm:$0xff] }
 0x1e6   : > { %2171 = vmatpush1.msra.mxu1 %v1260_v4  ;;  %2095 = vmatprep.subr.mxu0 %v997_v7  ;;  %v1501_v13 = vld [vmem:[%s14129_s2 + $0xfc8] sm:$0xff]  ;;  %v1492_v23 = vld [vmem:[%s14129_s2 + $0xf80] sm:$0xff] }
 0x1e7   : > { %2172 = vmatprep.subr.mxu1 %v1253_v8  ;;  %2096 = vmatpush1.msra.mxu0 %v996_v9  ;;  %v1237_v19 = vld [vmem:[%s14129_s2 + $0x788] sm:$0xff]  ;;  %v1228_v32 = vld [vmem:[%s14129_s2 + $0x740] sm:$0xff] }
 0x1e8   : > { %2173 = vmatpush1.msra.mxu1 %v1252_v10  ;;  %v1493_v20 = vld [vmem:[%s14129_s2 + $0xf88] sm:$0xff]  ;;  %2097 = vmatprep.subr.mxu0 %v1245_v0  ;;  %v1484_v34 = vld [vmem:[%s14129_s2 + $0xf40] sm:$0xff] }
 0x1e9   : > { %2174 = vmatprep.subr.mxu1 %v1501_v13  ;;  %2098 = vmatpush2.msra.mxu0 %v1244_v6  ;;  %v1229_v27 = vld [vmem:[%s14129_s2 + $0x748] sm:$0xff]  ;;  %v1220_v38 = vld [vmem:[%s14129_s2 + $0x700] sm:$0xff] }
 0x1ea   : > { %2175 = vmatpush2.msra.mxu1 %v1500_v15  ;;  %v1485_v28 = vld [vmem:[%s14129_s2 + $0xf48] sm:$0xff]  ;;  %2099 = vmatprep.subr.mxu0 %v1237_v19  ;;  %v1476_v40 = vld [vmem:[%s14129_s2 + $0xf00] sm:$0xff] }
 0x1eb   : > { %2176 = vmatprep.subr.mxu1 %v1493_v20  ;;  %2100 = vmatpush2.msra.mxu0 %v1236_v21  ;;  %v1221_v35 = vld [vmem:[%s14129_s2 + $0x708] sm:$0xff]  ;;  %v1212_v43 = vld [vmem:[%s14129_s2 + $0x6c0] sm:$0xff] }
 0x1ec   : > { %2177 = vmatpush2.msra.mxu1 %v1492_v23  ;;  %v1477_v36 = vld [vmem:[%s14129_s2 + $0xf08] sm:$0xff]  ;;  %2101 = vmatprep.subr.mxu0 %v1229_v27  ;;  %v1468_v44 = vld [vmem:[%s14129_s2 + $0xec0] sm:$0xff] }
 0x1ed   : > { %2178 = vmatprep.subr.mxu1 %v1485_v28  ;;  %2102 = vmatpush2.msra.mxu0 %v1228_v32  ;;  %v1213_v41 = vld [vmem:[%s14129_s2 + $0x6c8] sm:$0xff]  ;;  %v1204_v50 = vld [vmem:[%s14129_s2 + $0x680] sm:$0xff] }
 0x1ee   : > { %2179 = vmatpush2.msra.mxu1 %v1484_v34  ;;  %v1469_v42 = vld [vmem:[%s14129_s2 + $0xec8] sm:$0xff]  ;;  %2103 = vmatprep.subr.mxu0 %v1221_v35  ;;  %v1460_v51 = vld [vmem:[%s14129_s2 + $0xe80] sm:$0xff] }
 0x1ef   : > { %2180 = vmatprep.subr.mxu1 %v1477_v36  ;;  %2104 = vmatpush2.msra.mxu0 %v1220_v38  ;;  %v1205_v47 = vld [vmem:[%s14129_s2 + $0x688] sm:$0xff]  ;;  %v1196_v56 = vld [vmem:[%s14129_s2 + $0x640] sm:$0xff] }
 0x1f0   : > { %2181 = vmatpush2.msra.mxu1 %v1476_v40  ;;  %v1461_v48 = vld [vmem:[%s14129_s2 + $0xe88] sm:$0xff]  ;;  %2105 = vmatprep.subr.mxu0 %v1213_v41  ;;  %v1452_v57 = vld [vmem:[%s14129_s2 + $0xe40] sm:$0xff] }
 0x1f1   : > { %2182 = vmatprep.subr.mxu1 %v1469_v42  ;;  %2106 = vmatpush2.msra.mxu0 %v1212_v43  ;;  %v1197_v53 = vld [vmem:[%s14129_s2 + $0x648] sm:$0xff]  ;;  %v1188_v62 = vld [vmem:[%s14129_s2 + $0x600] sm:$0xff] }
 0x1f2   : > { %2183 = vmatpush2.msra.mxu1 %v1468_v44  ;;  %v1453_v54 = vld [vmem:[%s14129_s2 + $0xe48] sm:$0xff]  ;;  %2107 = vmatprep.subr.mxu0 %v1205_v47  ;;  %v1444_v63 = vld [vmem:[%s14129_s2 + $0xe00] sm:$0xff] }
 0x1f3   : > { %2184 = vmatprep.subr.mxu1 %v1461_v48  ;;  %2108 = vmatpush2.msra.mxu0 %v1204_v50  ;;  %v1189_v58 = vld [vmem:[%s14129_s2 + $0x608] sm:$0xff]  ;;  %v1180_v4 = vld [vmem:[%s14129_s2 + $0x5c0] sm:$0xff] }
 0x1f4   : > { %2185 = vmatpush2.msra.mxu1 %v1460_v51  ;;  %v1445_v59 = vld [vmem:[%s14129_s2 + $0xe08] sm:$0xff]  ;;  %2109 = vmatprep.subr.mxu0 %v1197_v53  ;;  %v1436_v7 = vld [vmem:[%s14129_s2 + $0xdc0] sm:$0xff] }
 0x1f5   : > { %2186 = vmatprep.subr.mxu1 %v1453_v54  ;;  %2110 = vmatpush2.msra.mxu0 %v1196_v56  ;;  %v1181_v2 = vld [vmem:[%s14129_s2 + $0x5c8] sm:$0xff]  ;;  %v1172_v10 = vld [vmem:[%s14129_s2 + $0x580] sm:$0xff] }
 0x1f6   : > { %2187 = vmatpush2.msra.mxu1 %v1452_v57  ;;  %v1437_v3 = vld [vmem:[%s14129_s2 + $0xdc8] sm:$0xff]  ;;  %2111 = vmatprep.subr.mxu0 %v1189_v58  ;;  %v1428_v0 = vld [vmem:[%s14129_s2 + $0xd80] sm:$0xff] }
 0x1f7   : > { %2188 = vmatprep.subr.mxu1 %v1445_v59  ;;  %2112 = vmatpush2.msra.mxu0 %v1188_v62  ;;  %v1173_v8 = vld [vmem:[%s14129_s2 + $0x588] sm:$0xff]  ;;  %v1164_v15 = vld [vmem:[%s14129_s2 + $0x540] sm:$0xff] }
 0x1f8   : > { %2189 = vmatpush2.msra.mxu1 %v1444_v63  ;;  %v1429_v9 = vld [vmem:[%s14129_s2 + $0xd88] sm:$0xff]  ;;  %2113 = vmatprep.subr.mxu0 %v1181_v2  ;;  %v1420_v19 = vld [vmem:[%s14129_s2 + $0xd40] sm:$0xff] }
 0x1f9   : > { %2190 = vmatprep.subr.mxu1 %v1437_v3  ;;  %2114 = vmatpush2.msra.mxu0 %v1180_v4  ;;  %v1165_v13 = vld [vmem:[%s14129_s2 + $0x548] sm:$0xff]  ;;  %v1156_v23 = vld [vmem:[%s14129_s2 + $0x500] sm:$0xff] }
 0x1fa   : > { %2191 = vmatpush2.msra.mxu1 %v1436_v7  ;;  %v1421_v6 = vld [vmem:[%s14129_s2 + $0xd48] sm:$0xff]  ;;  %2115 = vmatprep.subr.mxu0 %v1173_v8  ;;  %v1412_v27 = vld [vmem:[%s14129_s2 + $0xd00] sm:$0xff] }
 0x1fb   : > { %2192 = vmatprep.subr.mxu1 %v1429_v9  ;;  %2116 = vmatpush2.msra.mxu0 %v1172_v10  ;;  %v1157_v20 = vld [vmem:[%s14129_s2 + $0x508] sm:$0xff]  ;;  %v1148_v34 = vld [vmem:[%s14129_s2 + $0x4c0] sm:$0xff] }
 0x1fc   : > { %2193 = vmatpush2.msra.mxu1 %v1428_v0  ;;  %v1413_v21 = vld [vmem:[%s14129_s2 + $0xd08] sm:$0xff]  ;;  %2117 = vmatprep.subr.mxu0 %v1165_v13  ;;  %v1404_v35 = vld [vmem:[%s14129_s2 + $0xcc0] sm:$0xff] }
 0x1fd   : > { %2194 = vmatprep.subr.mxu1 %v1421_v6  ;;  %2118 = vmatpush2.msra.mxu0 %v1164_v15  ;;  %v1149_v28 = vld [vmem:[%s14129_s2 + $0x4c8] sm:$0xff]  ;;  %v1140_v40 = vld [vmem:[%s14129_s2 + $0x480] sm:$0xff] }
 0x1fe   : > { %2195 = vmatpush2.msra.mxu1 %v1420_v19  ;;  %v1405_v32 = vld [vmem:[%s14129_s2 + $0xcc8] sm:$0xff]  ;;  %2119 = vmatprep.subr.mxu0 %v1157_v20  ;;  %v1396_v41 = vld [vmem:[%s14129_s2 + $0xc80] sm:$0xff] }
 0x1ff   : > { %2196 = vmatprep.subr.mxu1 %v1413_v21  ;;  %2120 = vmatpush2.msra.mxu0 %v1156_v23  ;;  %v1141_v36 = vld [vmem:[%s14129_s2 + $0x488] sm:$0xff]  ;;  %v1132_v44 = vld [vmem:[%s14129_s2 + $0x440] sm:$0xff] }
 0x200   : > { %2197 = vmatpush2.msra.mxu1 %v1412_v27  ;;  %v1397_v38 = vld [vmem:[%s14129_s2 + $0xc88] sm:$0xff]  ;;  %2121 = vmatprep.subr.mxu0 %v1149_v28  ;;  %v1388_v47 = vld [vmem:[%s14129_s2 + $0xc40] sm:$0xff] }
 0x201   : > { %2198 = vmatprep.subr.mxu1 %v1405_v32  ;;  %2122 = vmatpush2.msra.mxu0 %v1148_v34  ;;  %v1133_v42 = vld [vmem:[%s14129_s2 + $0x448] sm:$0xff]  ;;  %v1124_v51 = vld [vmem:[%s14129_s2 + $0x400] sm:$0xff] }
 0x202   : > { %2199 = vmatpush2.msra.mxu1 %v1404_v35  ;;  %v1389_v43 = vld [vmem:[%s14129_s2 + $0xc48] sm:$0xff]  ;;  %2123 = vmatprep.subr.mxu0 %v1141_v36  ;;  %v1380_v53 = vld [vmem:[%s14129_s2 + $0xc00] sm:$0xff] }
 0x203   : > { %2200 = vmatprep.subr.mxu1 %v1397_v38  ;;  %2124 = vmatpush2.msra.mxu0 %v1140_v40  ;;  %v1125_v48 = vld [vmem:[%s14129_s2 + $0x408] sm:$0xff] }
 0x204   : > { %2201 = vmatpush2.msra.mxu1 %v1396_v41  ;;  %v1381_v50 = vld [vmem:[%s14129_s2 + $0xc08] sm:$0xff]  ;;  %2125 = vmatprep.subr.mxu0 %v1133_v42 }
 0x205   : > { %2202 = vmatprep.subr.mxu1 %v1389_v43  ;;  %2126 = vmatpush2.msra.mxu0 %v1132_v44  ;;  %v1629_v54 = vld [vmem:[%s14129_s2 + $0x13c8] sm:$0xff] }
 0x206   : > { %2203 = vmatpush2.msra.mxu1 %v1388_v47  ;;  %v1885_v56 = vld [vmem:[%s14129_s2 + $0x1bc8] sm:$0xff]  ;;  %2127 = vmatprep.subr.mxu0 %v1125_v48 }
 0x207   : > { %2204 = vmatprep.subr.mxu1 %v1381_v50  ;;  %2128 = vmatpush2.msra.mxu0 %v1124_v51  ;;  %v6279_v10 = vld [vmem:[%s14131_s4 + $0x1] ss:$8 sm:$0xf]  ;;  %v6281_v6 = vld [vmem:[%s14131_s4 + $0x2] ss:$8 sm:$0xf] }
 0x208   : > { %2205 = vmatpush2.msra.mxu1 %v1380_v53  ;;  %2219 = vmatprep.subr.mxu0 %v1629_v54  ;;  %v6280_v0 = vld [vmem:[%s14131_s4 + $0x1] ss:$8 sm:$0xf0]  ;;  %v6282_v15 = vld [vmem:[%s14131_s4 + $0x2] ss:$8 sm:$0xf0] }
 0x209   : > { %2296 = vmatprep.subr.mxu1 %v1885_v56  ;;  %v708_v13 = vor.u32 %v6280_v0, %v6279_v10  ;;  %v712_v21 = vor.u32 %v6282_v15, %v6281_v6 }
 0x25b   : > { %v779_v57 = vpop.xlane.xlu1 %778 }
 0x25f   : > { %v788_v58 = vpop.xlane.xlu1 %787 }
 0x260   : > { %v789_v59 = vadd.f32 %v788_v58, %v779_v57 }
 0x262   : > { %v790_v62 = vrot.slane %v789_v59, 4 }
 0x264   : > { %v791_v63 = vadd.f32 %v790_v62, %v789_v59 }
 0x266   : > { %v792_v2 = vrot.slane %v791_v63, 2 }
 0x268   : > { %v793_v3 = vadd.f32 %v792_v2, %v791_v63 }
 0x26a   : > { %v794_v4 = vrot.slane %v793_v3, 1 }
 0x26c   : > { %v795_v7 = vadd.f32 %v794_v4, %v793_v3 }
 0x26e   : > { %v796_v8 = vmul.f32 6.1035156e-05, %v795_v7 }
 0x270   : > { %v797_v9 = vadd.f32 1e-05, %v796_v8 }
 0x272   : > { %6344 = vrsqrt.f32 %v797_v9 }
 0x27f   : > { %v6345_v19 = vpop.eup %6344 }
 0x280   : > { %v799_v20 = vmul.f32 %v6345_v19, %v708_v13 }
 0x282   : > { %v800_v23 = vmul.f32 %v799_v20, %v7080_v22  ;;  %v810_v27 = vrot.slane %v799_v20, %v7010_v12  ;;  %v818_v28 = vrot.slane %v799_v20, %v7016_v16  ;;  %v806_v32 = vrot.slane %v799_v20, %v7008_v11 }
 0x283   : > { %v814_v34 = vrot.slane %v799_v20, %v7014_v14  ;;  %v7522_v36 = vrot.slane %v799_v20, %v7034_v30  ;;  %v7542_v58 = vrot.slane %v799_v20, %v7047_v39  ;;  %v822_v63 = vrot.slane %v799_v20, %v7030_v26 }
 0x284   : > { %v801_v35 = vsub.f32 %v712_v21, %v800_v23  ;;  %v844_v38 = vmul.f32 %v810_v27, %v7020_v18  ;;  %v846_v40 = vmul.f32 %v818_v28, %v7039_v33  ;;  %v843_v41 = vmul.f32 %v806_v32, %v7018_v17 }
 0x285   : > { %v845_v22 = vmul.f32 %v814_v34, %v7026_v24  ;;  %v852_v48 = vmul.f32 %v810_v27, %v7032_v29  ;;  %v854_v50 = vmul.f32 %v818_v28, %v7052_v45  ;;  %v851_v18 = vmul.f32 %v806_v32, %v7028_v25 }
 0x286   : > { %v867_v42 = vrot.slane %v801_v35, %v7010_v12  ;;  %v875_v43 = vrot.slane %v801_v35, %v7016_v16  ;;  %v863_v44 = vrot.slane %v801_v35, %v7008_v11  ;;  %v871_v47 = vrot.slane %v801_v35, %v7014_v14 }
 0x287   : > { %v853_v33 = vmul.f32 %v814_v34, %v7044_v37  ;;  %v7539_v57 = vrot.slane %v801_v35, %v7034_v30  ;;  %v848_v3 = vmul.f32 %v7522_v36, %v7057_v49  ;;  %v850_v7 = vmul.f32 %v7542_v58, %v7067_v60 }
 0x288   : > { %v901_v51 = vadd.f32 %v867_v42, %v844_v38  ;;  %v903_v17 = vadd.f32 %v875_v43, %v846_v40  ;;  %v900_v53 = vadd.f32 %v863_v44, %v843_v41  ;;  %v902_v24 = vadd.f32 %v871_v47, %v845_v22 }
 0x289   : > { %v909_v54 = vadd.f32 %v867_v42, %v852_v48  ;;  %v7536_v56 = vadd.f32 %v875_v43, %v854_v50  ;;  %v7544_v45 = vadd.f32 %v863_v44, %v851_v18  ;;  %v7546_v25 = vadd.f32 %v871_v47, %v853_v33 }
 0x28a   : > { %v933_v29 = vmul.f32 0.70710677, %v901_v51  ;;  %v935_v59 = vmul.f32 0.70710677, %v903_v17  ;;  %v932_v37 = vmul.f32 0.70710677, %v900_v53  ;;  %v7557_v10 = vadd.f32 %v7539_v57, %v848_v3 }
 0x28b   : > { %v934_v62 = vmul.f32 0.70710677, %v902_v24  ;;  %v941_v2 = vmul.f32 0.70710677, %v909_v54  ;;  %v943_v4 = vmul.f32 0.70710677, %v7536_v56  ;;  %v7560_v0 = vrot.slane %v801_v35, %v7047_v39 }
 0x28c   : > { %6346 = verf.f32 %v933_v29  ;;  %v940_v8 = vmul.f32 0.70710677, %v7544_v45  ;;  %v942_v9 = vmul.f32 0.70710677, %v7546_v25  ;;  %v847_v49 = vmul.f32 %v822_v63, %v7054_v46 }
 0x28d   : > { %6348 = verf.f32 %v935_v59  ;;  %v879_v13 = vrot.slane %v801_v35, %v7030_v26  ;;  %v937_v6 = vmul.f32 0.70710677, %v7557_v10  ;;  %v830_v60 = vrot.slane %v799_v20, %v7036_v31 }
 0x28e   : > { %6350 = verf.f32 %v932_v37  ;;  %v7567_v15 = vadd.f32 %v7560_v0, %v850_v7  ;;  %v887_v21 = vrot.slane %v801_v35, %v7036_v31  ;;  %v855_v20 = vmul.f32 %v822_v63, %v7063_v55 }
 0x28f   : > { %6352 = verf.f32 %v934_v62  ;;  %v7569_v19 = vadd.f32 %v879_v13, %v847_v49  ;;  %v849_v23 = vmul.f32 %v830_v60, %v7060_v52  ;;  %v857_v28 = vmul.f32 %v830_v60, %v7072_v1  ;;  %v1613_v60 = vld [vmem:[%s14129_s2 + $0x1348] sm:$0xff] }
 0x290   : > { %6354 = verf.f32 %v941_v2  ;;  %v939_v46 = vmul.f32 0.70710677, %v7567_v15  ;;  %v7578_v32 = vadd.f32 %v879_v13, %v855_v20  ;;  %v917_v40 = vmul.f32 0.5, %v901_v51  ;;  %v1628_v51 = vld [vmem:[%s14129_s2 + $0x13c0] sm:$0xff] }
 0x291   : > { %6356 = verf.f32 %v943_v4  ;;  %v7574_v27 = vadd.f32 %v887_v21, %v849_v23  ;;  %v7580_v34 = vadd.f32 %v887_v21, %v857_v28  ;;  %v919_v22 = vmul.f32 0.5, %v903_v17  ;;  %v1869_v23 = vld [vmem:[%s14129_s2 + $0x1b48] sm:$0xff] }
 0x292   : > { %6358 = verf.f32 %v940_v8  ;;  %v916_v47 = vmul.f32 0.5, %v900_v53  ;;  %v918_v1 = vmul.f32 0.5, %v902_v24  ;;  %v925_v17 = vmul.f32 0.5, %v909_v54  ;;  %v1884_v24 = vld [vmem:[%s14129_s2 + $0x1bc0] sm:$0xff]  ;;  %v1621_v54 = vld [vmem:[%s14129_s2 + $0x1388] sm:$0xff] }
 0x293   : > { %6360 = verf.f32 %v942_v9  ;;  %v927_v62 = vmul.f32 0.5, %v7536_v56  ;;  %v1877_v56 = vld [vmem:[%s14129_s2 + $0x1b88] sm:$0xff]  ;;  %v1620_v9 = vld [vmem:[%s14129_s2 + $0x1380] sm:$0xff]  ;;  %v924_v21 = vmul.f32 0.5, %v7544_v45 }
 0x294   : > { %6362 = verf.f32 %v937_v6  ;;  %v1876_v6 = vld [vmem:[%s14129_s2 + $0x1b80] sm:$0xff] }
 0x295   : > { %6364 = verf.f32 %v939_v46  ;;  %v926_v46 = vmul.f32 0.5, %v7546_v25  ;;  %v1605_v25 = vld [vmem:[%s14129_s2 + $0x1308] sm:$0xff] }
 0x299   : > { %v6347_v38 = vpop.eup %6346 }
 0x29a   : > { %v6349_v35 = vpop.eup %6348  ;;  %v965_v41 = vadd.f32 1.0, %v6347_v38  ;;  %v1612_v38 = vld [vmem:[%s14129_s2 + $0x1340] sm:$0xff] }
 0x29b   : > { %v6351_v52 = vpop.eup %6350  ;;  %v967_v42 = vadd.f32 1.0, %v6349_v35 }
 0x29c   : > { %v6353_v43 = vpop.eup %6352  ;;  %v7582_v44 = vmul.f32 %v965_v41, %v917_v40  ;;  %v964_v48 = vadd.f32 1.0, %v6351_v52  ;;  %v1868_v40 = vld [vmem:[%s14129_s2 + $0x1b40] sm:$0xff]  ;;  %v921_v41 = vmul.f32 0.5, %v7557_v10  ;;  %v1861_v52 = vld [vmem:[%s14129_s2 + $0x1b08] sm:$0xff] }
 0x29d   : > { %v6355_v50 = vpop.eup %6354  ;;  %v7584_v55 = vmul.f32 %v967_v42, %v919_v22  ;;  %v966_v18 = vadd.f32 1.0, %v6353_v43  ;;  %v923_v22 = vmul.f32 0.5, %v7567_v15  ;;  %v1604_v43 = vld [vmem:[%s14129_s2 + $0x1300] sm:$0xff]  ;;  %v1597_v15 = vld [vmem:[%s14129_s2 + $0x12c8] sm:$0xff] }
 0x29e   : > { %v6357_v33 = vpop.eup %6356  ;;  %2129 = vmatprep.mubr.f32.mxu0 %v7582_v44  ;;  %v7587_v29 = vmul.f32 %v964_v48, %v916_v47  ;;  %v973_v59 = vadd.f32 1.0, %v6355_v50  ;;  %v1860_v47 = vld [vmem:[%s14129_s2 + $0x1b00] sm:$0xff]  ;;  %v1853_v48 = vld [vmem:[%s14129_s2 + $0x1ac8] sm:$0xff] }
 0x29f   : > { %v6359_v37 = vpop.eup %6358  ;;  %2206 = vmatprep.mubr.f32.mxu1 %v7584_v55  ;;  %v7593_v53 = vmul.f32 %v966_v18, %v918_v1  ;;  %v975_v63 = vadd.f32 1.0, %v6357_v33  ;;  %v1596_v50 = vld [vmem:[%s14129_s2 + $0x12c0] sm:$0xff]  ;;  %v1589_v18 = vld [vmem:[%s14129_s2 + $0x1288] sm:$0xff] }
 0x2a0   : > { %v6361_v2 = vpop.eup %6360  ;;  %2130 = vmatmul.mubr.f32.vlgmr.msra.gmra.mxu0 %v7587_v29  ;;  %v7600_v3 = vmul.f32 %v973_v59, %v925_v17  ;;  %v972_v4 = vadd.f32 1.0, %v6359_v37  ;;  %v1852_v1 = vld [vmem:[%s14129_s2 + $0x1ac0] sm:$0xff]  ;;  %v1845_v33 = vld [vmem:[%s14129_s2 + $0x1a88] sm:$0xff] }
 0x2a1   : > { %v6363_v7 = vpop.eup %6362  ;;  %2207 = vmatmul.mubr.f32.vlgmr.msra.gmra.mxu1 %v7593_v53  ;;  %2220 = vmatpush1.msra.mxu0 %v1628_v51  ;;  %v7606_v8 = vmul.f32 %v975_v63, %v927_v62  ;;  %v974_v49 = vadd.f32 1.0, %v6361_v2  ;;  %v1588_v51 = vld [vmem:[%s14129_s2 + $0x1280] sm:$0xff]  ;;  %v1581_v59 = vld [vmem:[%s14129_s2 + $0x1248] sm:$0xff] }
 0x2a2   : > { %v6365_v13 = vpop.eup %6364  ;;  %2297 = vmatpush1.msra.mxu1 %v1884_v24  ;;  %2135 = vmatprep.mubr.f32.mxu0 %v7600_v3  ;;  %v969_v20 = vadd.f32 1.0, %v6363_v7  ;;  %v7627_v28 = vmul.f32 %v972_v4, %v924_v21  ;;  %v1844_v17 = vld [vmem:[%s14129_s2 + $0x1a80] sm:$0xff]  ;;  %v1837_v37 = vld [vmem:[%s14129_s2 + $0x1a48] sm:$0xff] }
 0x2a3   : > { %2212 = vmatprep.mubr.f32.mxu1 %v7606_v8  ;;  %2221 = vmatprep.subr.mxu0 %v1621_v54  ;;  %v971_v35 = vadd.f32 1.0, %v6365_v13  ;;  %v7632_v45 = vmul.f32 %v974_v49, %v926_v46  ;;  %v1580_v24 = vld [vmem:[%s14129_s2 + $0x1240] sm:$0xff]  ;;  %v1573_v63 = vld [vmem:[%s14129_s2 + $0x1208] sm:$0xff] }
 0x2a4   : > { %2298 = vmatprep.subr.mxu1 %v1877_v56  ;;  %2222 = vmatpush1.msra.mxu0 %v1620_v9  ;;  %v7647_v42 = vmul.f32 %v969_v20, %v921_v41  ;;  %v1836_v62 = vld [vmem:[%s14129_s2 + $0x1a40] sm:$0xff]  ;;  %v1829_v2 = vld [vmem:[%s14129_s2 + $0x1a08] sm:$0xff] }
 0x2a5   : > { %2299 = vmatpush1.msra.mxu1 %v1876_v6  ;;  %2223 = vmatprep.subr.mxu0 %v1613_v60  ;;  %v7652_v10 = vmul.f32 %v971_v35, %v923_v22  ;;  %v1572_v54 = vld [vmem:[%s14129_s2 + $0x1200] sm:$0xff]  ;;  %v1565_v7 = vld [vmem:[%s14129_s2 + $0x11c8] sm:$0xff] }
 0x2a6   : > { %2300 = vmatprep.subr.mxu1 %v1869_v23  ;;  %2136 = vmatmul.mubr.f32.gmra.mxu0 %v7627_v28  ;;  %v1828_v4 = vld [vmem:[%s14129_s2 + $0x1a00] sm:$0xff]  ;;  %v1821_v56 = vld [vmem:[%s14129_s2 + $0x19c8] sm:$0xff] }
 0x2a7   : > { %2213 = vmatmul.mubr.f32.gmra.mxu1 %v7632_v45  ;;  %2224 = vmatpush1.msra.mxu0 %v1612_v38  ;;  %v1564_v9 = vld [vmem:[%s14129_s2 + $0x11c0] sm:$0xff]  ;;  %v1557_v13 = vld [vmem:[%s14129_s2 + $0x1188] sm:$0xff] }
 0x2a8   : > { %2301 = vmatpush1.msra.mxu1 %v1868_v40  ;;  %2225 = vmatprep.subr.mxu0 %v1605_v25  ;;  %v1820_v49 = vld [vmem:[%s14129_s2 + $0x19c0] sm:$0xff]  ;;  %v1813_v6 = vld [vmem:[%s14129_s2 + $0x1988] sm:$0xff] }
 0x2a9   : > { %2283 = vmatprep.mubr.f32.mxu0 %v7647_v42  ;;  %2302 = vmatprep.subr.mxu1 %v1861_v52  ;;  %v1556_v60 = vld [vmem:[%s14129_s2 + $0x1180] sm:$0xff]  ;;  %v1549_v23 = vld [vmem:[%s14129_s2 + $0x1148] sm:$0xff] }
 0x2aa   : > { %2360 = vmatprep.mubr.f32.mxu1 %v7652_v10  ;;  %2226 = vmatpush1.msra.mxu0 %v1604_v43  ;;  %v1812_v21 = vld [vmem:[%s14129_s2 + $0x1980] sm:$0xff]  ;;  %v1805_v46 = vld [vmem:[%s14129_s2 + $0x1948] sm:$0xff] }
 0x2ab   : > { %2303 = vmatpush1.msra.mxu1 %v1860_v47  ;;  %2227 = vmatprep.subr.mxu0 %v1597_v15  ;;  %v1548_v20 = vld [vmem:[%s14129_s2 + $0x1140] sm:$0xff]  ;;  %v1541_v35 = vld [vmem:[%s14129_s2 + $0x1108] sm:$0xff] }
 0x2ac   : > { %2304 = vmatprep.subr.mxu1 %v1853_v48  ;;  %2228 = vmatpush1.msra.mxu0 %v1596_v50  ;;  %v1804_v38 = vld [vmem:[%s14129_s2 + $0x1940] sm:$0xff]  ;;  %v1797_v40 = vld [vmem:[%s14129_s2 + $0x1908] sm:$0xff] }
 0x2ad   : > { %2305 = vmatpush1.msra.mxu1 %v1852_v1  ;;  %2229 = vmatprep.subr.mxu0 %v1589_v18  ;;  %v1540_v25 = vld [vmem:[%s14129_s2 + $0x1100] sm:$0xff]  ;;  %v1533_v52 = vld [vmem:[%s14129_s2 + $0x10c8] sm:$0xff] }
 0x2ae   : > { %2306 = vmatprep.subr.mxu1 %v1845_v33  ;;  %2230 = vmatpush1.msra.mxu0 %v1588_v51  ;;  %v1796_v41 = vld [vmem:[%s14129_s2 + $0x1900] sm:$0xff]  ;;  %v1789_v22 = vld [vmem:[%s14129_s2 + $0x18c8] sm:$0xff] }
 0x2af   : > { %2307 = vmatpush1.msra.mxu1 %v1844_v17  ;;  %2231 = vmatprep.subr.mxu0 %v1581_v59  ;;  %v1532_v43 = vld [vmem:[%s14129_s2 + $0x10c0] sm:$0xff]  ;;  %v1525_v15 = vld [vmem:[%s14129_s2 + $0x1088] sm:$0xff] }
 0x2b0   : > { %2308 = vmatprep.subr.mxu1 %v1837_v37  ;;  %2232 = vmatpush1.msra.mxu0 %v1580_v24  ;;  %v1788_v47 = vld [vmem:[%s14129_s2 + $0x18c0] sm:$0xff]  ;;  %v1781_v48 = vld [vmem:[%s14129_s2 + $0x1888] sm:$0xff] }
 0x2b1   : > { %2309 = vmatpush1.msra.mxu1 %v1836_v62  ;;  %2233 = vmatprep.subr.mxu0 %v1573_v63  ;;  %v1524_v50 = vld [vmem:[%s14129_s2 + $0x1080] sm:$0xff]  ;;  %v1517_v18 = vld [vmem:[%s14129_s2 + $0x1048] sm:$0xff] }
 0x2b2   : > { %2310 = vmatprep.subr.mxu1 %v1829_v2  ;;  %2234 = vmatpush1.msra.mxu0 %v1572_v54  ;;  %v1780_v1 = vld [vmem:[%s14129_s2 + $0x1880] sm:$0xff]  ;;  %v1773_v33 = vld [vmem:[%s14129_s2 + $0x1848] sm:$0xff] }
 0x2b3   : > { %2311 = vmatpush1.msra.mxu1 %v1828_v4  ;;  %2235 = vmatprep.subr.mxu0 %v1565_v7  ;;  %v1516_v51 = vld [vmem:[%s14129_s2 + $0x1040] sm:$0xff]  ;;  %v1509_v59 = vld [vmem:[%s14129_s2 + $0x1008] sm:$0xff] }
 0x2b4   : > { %2312 = vmatprep.subr.mxu1 %v1821_v56  ;;  %2236 = vmatpush1.msra.mxu0 %v1564_v9  ;;  %v1772_v17 = vld [vmem:[%s14129_s2 + $0x1840] sm:$0xff]  ;;  %v1765_v37 = vld [vmem:[%s14129_s2 + $0x1808] sm:$0xff] }
 0x2b5   : > { %2313 = vmatpush1.msra.mxu1 %v1820_v49  ;;  %2237 = vmatprep.subr.mxu0 %v1557_v13  ;;  %v1508_v24 = vld [vmem:[%s14129_s2 + $0x1000] sm:$0xff]  ;;  %v1757_v63 = vld [vmem:[%s14129_s2 + $0x17c8] sm:$0xff] }
 0x2b6   : > { %2314 = vmatprep.subr.mxu1 %v1813_v6  ;;  %2238 = vmatpush1.msra.mxu0 %v1556_v60  ;;  %v1764_v62 = vld [vmem:[%s14129_s2 + $0x1800] sm:$0xff]  ;;  %v2013_v2 = vld [vmem:[%s14129_s2 + $0x1fc8] sm:$0xff] }
 0x2b7   : > { %2315 = vmatpush1.msra.mxu1 %v1812_v21  ;;  %2239 = vmatprep.subr.mxu0 %v1549_v23  ;;  %v1756_v54 = vld [vmem:[%s14129_s2 + $0x17c0] sm:$0xff]  ;;  %v1749_v7 = vld [vmem:[%s14129_s2 + $0x1788] sm:$0xff]  ;;  %v856_v21 = vmul.f32 %v7522_v36, %v7069_v61 }
 0x2b8   : > { %2316 = vmatprep.subr.mxu1 %v1805_v46  ;;  %2240 = vmatpush1.msra.mxu0 %v1548_v20  ;;  %v2012_v4 = vld [vmem:[%s14129_s2 + $0x1fc0] sm:$0xff]  ;;  %v2005_v56 = vld [vmem:[%s14129_s2 + $0x1f88] sm:$0xff]  ;;  %v858_v20 = vmul.f32 %v7542_v58, %v7076_v5 }
 0x2b9   : > { %2317 = vmatpush1.msra.mxu1 %v1804_v38  ;;  %2241 = vmatprep.subr.mxu0 %v1541_v35  ;;  %v1748_v9 = vld [vmem:[%s14129_s2 + $0x1780] sm:$0xff]  ;;  %v1741_v13 = vld [vmem:[%s14129_s2 + $0x1748] sm:$0xff]  ;;  %v7853_v36 = vadd.f32 %v7539_v57, %v856_v21 }
 0x2ba   : > { %2318 = vmatprep.subr.mxu1 %v1797_v40  ;;  %2242 = vmatpush1.msra.mxu0 %v1540_v25  ;;  %v2004_v49 = vld [vmem:[%s14129_s2 + $0x1f80] sm:$0xff]  ;;  %v1997_v6 = vld [vmem:[%s14129_s2 + $0x1f48] sm:$0xff]  ;;  %v7862_v58 = vadd.f32 %v7560_v0, %v858_v20  ;;  %v936_v25 = vmul.f32 0.70710677, %v7569_v19 }
 0x2bb   : > { %2319 = vmatpush1.msra.mxu1 %v1796_v41  ;;  %2243 = vmatprep.subr.mxu0 %v1533_v52  ;;  %v1740_v60 = vld [vmem:[%s14129_s2 + $0x1740] sm:$0xff]  ;;  %v1733_v46 = vld [vmem:[%s14129_s2 + $0x1708] sm:$0xff]  ;;  %v938_v52 = vmul.f32 0.70710677, %v7574_v27 }
 0x2bc   : > { %2320 = vmatprep.subr.mxu1 %v1789_v22  ;;  %2244 = vmatpush1.msra.mxu0 %v1532_v43  ;;  %v1996_v23 = vld [vmem:[%s14129_s2 + $0x1f40] sm:$0xff]  ;;  %v1989_v38 = vld [vmem:[%s14129_s2 + $0x1f08] sm:$0xff]  ;;  %6366 = verf.f32 %v936_v25 }
 0x2bd   : > { %2321 = vmatpush1.msra.mxu1 %v1788_v47  ;;  %2245 = vmatprep.subr.mxu0 %v1525_v15  ;;  %v1732_v61 = vld [vmem:[%s14129_s2 + $0x1700] sm:$0xff]  ;;  %v1725_v5 = vld [vmem:[%s14129_s2 + $0x16c8] sm:$0xff]  ;;  %v945_v47 = vmul.f32 0.70710677, %v7853_v36  ;;  %6368 = verf.f32 %v938_v52 }
 0x2be   : > { %2322 = vmatprep.subr.mxu1 %v1781_v48  ;;  %2246 = vmatpush1.msra.mxu0 %v1524_v50  ;;  %v1988_v35 = vld [vmem:[%s14129_s2 + $0x1f00] sm:$0xff]  ;;  %v1981_v57 = vld [vmem:[%s14129_s2 + $0x1ec8] sm:$0xff]  ;;  %v947_v50 = vmul.f32 0.70710677, %v7862_v58 }
 0x2bf   : > { %2323 = vmatpush1.msra.mxu1 %v1780_v1  ;;  %2247 = vmatprep.subr.mxu0 %v1517_v18  ;;  %v1724_v40 = vld [vmem:[%s14129_s2 + $0x16c0] sm:$0xff]  ;;  %v1717_v0 = vld [vmem:[%s14129_s2 + $0x1688] sm:$0xff]  ;;  %6370 = verf.f32 %v945_v47 }
 0x2c0   : > { %2324 = vmatprep.subr.mxu1 %v1773_v33  ;;  %2248 = vmatpush1.msra.mxu0 %v1516_v51  ;;  %v1980_v41 = vld [vmem:[%s14129_s2 + $0x1ec0] sm:$0xff]  ;;  %v1973_v22 = vld [vmem:[%s14129_s2 + $0x1e88] sm:$0xff]  ;;  %6372 = verf.f32 %v947_v50 }
 0x2c1   : > { %2325 = vmatpush1.msra.mxu1 %v1772_v17  ;;  %2249 = vmatprep.subr.mxu0 %v1509_v59  ;;  %v1716_v43 = vld [vmem:[%s14129_s2 + $0x1680] sm:$0xff]  ;;  %v1709_v48 = vld [vmem:[%s14129_s2 + $0x1648] sm:$0xff] }
 0x2c2   : > { %2326 = vmatprep.subr.mxu1 %v1765_v37  ;;  %2250 = vmatpush1.msra.mxu0 %v1508_v24  ;;  %v1972_v15 = vld [vmem:[%s14129_s2 + $0x1e80] sm:$0xff]  ;;  %v1965_v1 = vld [vmem:[%s14129_s2 + $0x1e48] sm:$0xff]  ;;  %v944_v37 = vmul.f32 0.70710677, %v7578_v32 }
 0x2c3   : > { %2327 = vmatpush1.msra.mxu1 %v1764_v62  ;;  %2251 = vmatprep.subr.mxu0 %v1757_v63  ;;  %v1708_v18 = vld [vmem:[%s14129_s2 + $0x1640] sm:$0xff]  ;;  %v1701_v51 = vld [vmem:[%s14129_s2 + $0x1608] sm:$0xff]  ;;  %v946_v63 = vmul.f32 0.70710677, %v7580_v34 }
 0x2c4   : > { %2328 = vmatprep.subr.mxu1 %v2013_v2  ;;  %2252 = vmatpush2.msra.mxu0 %v1756_v54  ;;  %v1964_v33 = vld [vmem:[%s14129_s2 + $0x1e40] sm:$0xff]  ;;  %v1957_v17 = vld [vmem:[%s14129_s2 + $0x1e08] sm:$0xff]  ;;  %6374 = verf.f32 %v944_v37  ;;  %v920_v37 = vmul.f32 0.5, %v7569_v19  ;;  %v1119_v19 = vld [vmem:[%s14129_s2 + $0x3d8] sm:$0xff] }
 0x2c5   : > { %2329 = vmatpush2.msra.mxu1 %v2012_v4  ;;  %2253 = vmatprep.subr.mxu0 %v1749_v7  ;;  %v1700_v59 = vld [vmem:[%s14129_s2 + $0x1600] sm:$0xff]  ;;  %v1693_v62 = vld [vmem:[%s14129_s2 + $0x15c8] sm:$0xff]  ;;  %6376 = verf.f32 %v946_v63 }
 0x2c6   : > { %2330 = vmatprep.subr.mxu1 %v2005_v56  ;;  %2254 = vmatpush2.msra.mxu0 %v1748_v9  ;;  %v1956_v24 = vld [vmem:[%s14129_s2 + $0x1e00] sm:$0xff]  ;;  %v1949_v2 = vld [vmem:[%s14129_s2 + $0x1dc8] sm:$0xff] }
 0x2c7   : > { %2331 = vmatpush2.msra.mxu1 %v2004_v49  ;;  %2255 = vmatprep.subr.mxu0 %v1741_v13  ;;  %v1692_v54 = vld [vmem:[%s14129_s2 + $0x15c0] sm:$0xff]  ;;  %v1685_v7 = vld [vmem:[%s14129_s2 + $0x1588] sm:$0xff] }
 0x2c8   : > { %2332 = vmatprep.subr.mxu1 %v1997_v6  ;;  %2256 = vmatpush2.msra.mxu0 %v1740_v60  ;;  %v1948_v4 = vld [vmem:[%s14129_s2 + $0x1dc0] sm:$0xff]  ;;  %v1941_v56 = vld [vmem:[%s14129_s2 + $0x1d88] sm:$0xff] }
 0x2c9   : > { %2333 = vmatpush2.msra.mxu1 %v1996_v23  ;;  %2257 = vmatprep.subr.mxu0 %v1733_v46  ;;  %v1684_v9 = vld [vmem:[%s14129_s2 + $0x1580] sm:$0xff]  ;;  %v1677_v13 = vld [vmem:[%s14129_s2 + $0x1548] sm:$0xff] }
 0x2ca   : > { %2334 = vmatprep.subr.mxu1 %v1989_v38  ;;  %2258 = vmatpush2.msra.mxu0 %v1732_v61  ;;  %v1940_v49 = vld [vmem:[%s14129_s2 + $0x1d80] sm:$0xff]  ;;  %v1933_v6 = vld [vmem:[%s14129_s2 + $0x1d48] sm:$0xff] }
 0x2cb   : > { %2335 = vmatpush2.msra.mxu1 %v1988_v35  ;;  %2259 = vmatprep.subr.mxu0 %v1725_v5  ;;  %v1676_v60 = vld [vmem:[%s14129_s2 + $0x1540] sm:$0xff]  ;;  %v1669_v23 = vld [vmem:[%s14129_s2 + $0x1508] sm:$0xff] }
 0x2cc   : > { %2336 = vmatprep.subr.mxu1 %v1981_v57  ;;  %2260 = vmatpush2.msra.mxu0 %v1724_v40  ;;  %v1932_v21 = vld [vmem:[%s14129_s2 + $0x1d40] sm:$0xff]  ;;  %v1925_v46 = vld [vmem:[%s14129_s2 + $0x1d08] sm:$0xff]  ;;  %v6367_v57 = vpop.eup %6366 }
 0x2cd   : > { %2337 = vmatpush2.msra.mxu1 %v1980_v41  ;;  %2261 = vmatprep.subr.mxu0 %v1717_v0  ;;  %v1668_v20 = vld [vmem:[%s14129_s2 + $0x1500] sm:$0xff]  ;;  %v1661_v61 = vld [vmem:[%s14129_s2 + $0x14c8] sm:$0xff]  ;;  %v6369_v41 = vpop.eup %6368 }
 0x2ce   : > { %2338 = vmatprep.subr.mxu1 %v1973_v22  ;;  %2262 = vmatpush2.msra.mxu0 %v1716_v43  ;;  %v1924_v38 = vld [vmem:[%s14129_s2 + $0x1d00] sm:$0xff]  ;;  %v1917_v35 = vld [vmem:[%s14129_s2 + $0x1cc8] sm:$0xff]  ;;  %v6371_v22 = vpop.eup %6370 }
 0x2cf   : > { %2339 = vmatpush2.msra.mxu1 %v1972_v15  ;;  %2263 = vmatprep.subr.mxu0 %v1709_v48  ;;  %v1660_v5 = vld [vmem:[%s14129_s2 + $0x14c0] sm:$0xff]  ;;  %v1653_v25 = vld [vmem:[%s14129_s2 + $0x1488] sm:$0xff]  ;;  %v6373_v15 = vpop.eup %6372 }
 0x2d0   : > { %2340 = vmatprep.subr.mxu1 %v1965_v1  ;;  %2264 = vmatpush2.msra.mxu0 %v1708_v18  ;;  %v1916_v40 = vld [vmem:[%s14129_s2 + $0x1cc0] sm:$0xff]  ;;  %v1909_v0 = vld [vmem:[%s14129_s2 + $0x1c88] sm:$0xff]  ;;  %v968_v1 = vadd.f32 1.0, %v6367_v57  ;;  %v1103_v57 = vld [vmem:[%s14129_s2 + $0x358] sm:$0xff] }
 0x2d1   : > { %2341 = vmatpush2.msra.mxu1 %v1964_v33  ;;  %2265 = vmatprep.subr.mxu0 %v1701_v51  ;;  %v1652_v52 = vld [vmem:[%s14129_s2 + $0x1480] sm:$0xff]  ;;  %v1645_v47 = vld [vmem:[%s14129_s2 + $0x1448] sm:$0xff]  ;;  %v970_v51 = vadd.f32 1.0, %v6369_v41  ;;  %v1095_v41 = vld [vmem:[%s14129_s2 + $0x318] sm:$0xff] }
 0x2d2   : > { %2342 = vmatprep.subr.mxu1 %v1957_v17  ;;  %2266 = vmatpush2.msra.mxu0 %v1700_v59  ;;  %v1908_v43 = vld [vmem:[%s14129_s2 + $0x1c80] sm:$0xff]  ;;  %v1901_v48 = vld [vmem:[%s14129_s2 + $0x1c48] sm:$0xff] }
 0x2d3   : > { %2343 = vmatpush2.msra.mxu1 %v1956_v24  ;;  %2267 = vmatprep.subr.mxu0 %v1693_v62  ;;  %v1644_v50 = vld [vmem:[%s14129_s2 + $0x1440] sm:$0xff]  ;;  %v1637_v33 = vld [vmem:[%s14129_s2 + $0x1408] sm:$0xff]  ;;  %v977_v24 = vadd.f32 1.0, %v6371_v22  ;;  %v6375_v62 = vpop.eup %6374  ;;  %v1350_v22 = vld [vmem:[%s14129_s2 + $0xb10] sm:$0xff] }
 0x2d4   : > { %2344 = vmatprep.subr.mxu1 %v1949_v2  ;;  %2268 = vmatpush2.msra.mxu0 %v1692_v54  ;;  %v1900_v18 = vld [vmem:[%s14129_s2 + $0x1c40] sm:$0xff]  ;;  %v1893_v17 = vld [vmem:[%s14129_s2 + $0x1c08] sm:$0xff]  ;;  %v922_v2 = vmul.f32 0.5, %v7574_v27  ;;  %v979_v54 = vadd.f32 1.0, %v6373_v15  ;;  %v1375_v27 = vld [vmem:[%s14129_s2 + $0xbd8] sm:$0xff] }
 0x2d5   : > { %2345 = vmatpush2.msra.mxu1 %v1948_v4  ;;  %2269 = vmatprep.subr.mxu0 %v1685_v7  ;;  %v1636_v59 = vld [vmem:[%s14129_s2 + $0x1400] sm:$0xff]  ;;  %v6377_v4 = vpop.eup %6376  ;;  %v8013_v7 = vmul.f32 %v968_v1, %v920_v37  ;;  %v1086_v15 = vld [vmem:[%s14129_s2 + $0x2d0] sm:$0xff]  ;;  %v1335_v1 = vld [vmem:[%s14129_s2 + $0xa98] sm:$0xff] }
 0x2d6   : > { %2346 = vmatprep.subr.mxu1 %v1941_v56  ;;  %2270 = vmatpush2.msra.mxu0 %v1684_v9  ;;  %v1892_v63 = vld [vmem:[%s14129_s2 + $0x1c00] sm:$0xff]  ;;  %v929_v56 = vmul.f32 0.5, %v7853_v36  ;;  %v8019_v9 = vmul.f32 %v970_v51, %v922_v2  ;;  %v976_v36 = vadd.f32 1.0, %v6375_v62  ;;  %v1071_v51 = vld [vmem:[%s14129_s2 + $0x258] sm:$0xff]  ;;  %v1326_v37 = vld [vmem:[%s14129_s2 + $0xa50] sm:$0xff] }
 0x2d7   : > { %2347 = vmatpush2.msra.mxu1 %v1940_v49  ;;  %2271 = vmatprep.subr.mxu0 %v1677_v13  ;;  %v931_v49 = vmul.f32 0.5, %v7862_v58  ;;  %v1111_v58 = vld [vmem:[%s14129_s2 + $0x398] sm:$0xff]  ;;  %v1318_v2 = vld [vmem:[%s14129_s2 + $0xa10] sm:$0xff] }
 0x2d8   : > { %2348 = vmatprep.subr.mxu1 %v1933_v6  ;;  %2272 = vmatpush2.msra.mxu0 %v1676_v60  ;;  %v8026_v13 = vmul.f32 %v977_v24, %v929_v56  ;;  %v1118_v6 = vld [vmem:[%s14129_s2 + $0x3d0] sm:$0xff]  ;;  %v1063_v24 = vld [vmem:[%s14129_s2 + $0x218] sm:$0xff] }
 0x2d9   : > { %2349 = vmatpush2.msra.mxu1 %v1932_v21  ;;  %2273 = vmatprep.subr.mxu0 %v1669_v23  ;;  %v8032_v60 = vmul.f32 %v979_v54, %v931_v49  ;;  %v1374_v21 = vld [vmem:[%s14129_s2 + $0xbd0] sm:$0xff]  ;;  %v978_v23 = vadd.f32 1.0, %v6377_v4  ;;  %v1319_v62 = vld [vmem:[%s14129_s2 + $0xa18] sm:$0xff] }
 0x2da   : > { %2350 = vmatprep.subr.mxu1 %v1925_v46  ;;  %2274 = vmatpush2.msra.mxu0 %v1668_v20  ;;  %v1367_v46 = vld [vmem:[%s14129_s2 + $0xb98] sm:$0xff]  ;;  %v1110_v20 = vld [vmem:[%s14129_s2 + $0x390] sm:$0xff] }
 0x2db   : > { %2351 = vmatpush2.msra.mxu1 %v1924_v38  ;;  %2275 = vmatprep.subr.mxu0 %v1661_v61  ;;  %v928_v38 = vmul.f32 0.5, %v7578_v32  ;;  %v1366_v61 = vld [vmem:[%s14129_s2 + $0xb90] sm:$0xff]  ;;  %v1055_v54 = vld [vmem:[%s14129_s2 + $0x1d8] sm:$0xff] }
 0x2dc   : > { %2352 = vmatprep.subr.mxu1 %v1917_v35  ;;  %2276 = vmatpush2.msra.mxu0 %v1660_v5  ;;  %v930_v35 = vmul.f32 0.5, %v7580_v34  ;;  %v1102_v34 = vld [vmem:[%s14129_s2 + $0x350] sm:$0xff]  ;;  %v1311_v4 = vld [vmem:[%s14129_s2 + $0x9d8] sm:$0xff] }
 0x2dd   : > { %2353 = vmatpush2.msra.mxu1 %v1916_v40  ;;  %2277 = vmatprep.subr.mxu0 %v1653_v25  ;;  %v8053_v5 = vmul.f32 %v976_v36, %v928_v38  ;;  %v1359_v40 = vld [vmem:[%s14129_s2 + $0xb58] sm:$0xff]  ;;  %v1358_v25 = vld [vmem:[%s14129_s2 + $0xb50] sm:$0xff] }
 0x2de   : > { %2354 = vmatprep.subr.mxu1 %v1909_v0  ;;  %2278 = vmatpush2.msra.mxu0 %v1652_v52  ;;  %v8058_v32 = vmul.f32 %v978_v23, %v930_v35  ;;  %v1351_v0 = vld [vmem:[%s14129_s2 + $0xb18] sm:$0xff]  ;;  %v1094_v52 = vld [vmem:[%s14129_s2 + $0x310] sm:$0xff] }
 0x2df   : > { %2355 = vmatpush2.msra.mxu1 %v1908_v43  ;;  %2279 = vmatprep.subr.mxu0 %v1645_v47  ;;  %v1087_v43 = vld [vmem:[%s14129_s2 + $0x2d8] sm:$0xff]  ;;  %v1310_v56 = vld [vmem:[%s14129_s2 + $0x9d0] sm:$0xff] }
 0x2e0   : > { %2356 = vmatprep.subr.mxu1 %v1901_v48  ;;  %2280 = vmatpush2.msra.mxu0 %v1644_v50  ;;  %v1343_v47 = vld [vmem:[%s14129_s2 + $0xad8] sm:$0xff]  ;;  %v1342_v48 = vld [vmem:[%s14129_s2 + $0xad0] sm:$0xff] }
 0x2e1   : > { %2357 = vmatpush2.msra.mxu1 %v1900_v18  ;;  %2281 = vmatprep.subr.mxu0 %v1637_v33  ;;  %v1079_v50 = vld [vmem:[%s14129_s2 + $0x298] sm:$0xff]  ;;  %v1078_v18 = vld [vmem:[%s14129_s2 + $0x290] sm:$0xff] }
 0x2e2   : > { %2358 = vmatprep.subr.mxu1 %v1893_v17  ;;  %2282 = vmatpush2.msra.mxu0 %v1636_v59  ;;  %v1334_v33 = vld [vmem:[%s14129_s2 + $0xa90] sm:$0xff]  ;;  %v1327_v17 = vld [vmem:[%s14129_s2 + $0xa58] sm:$0xff] }
 0x2e3   : > { %2359 = vmatpush2.msra.mxu1 %v1892_v63  ;;  %2284 = vmatmul.mubr.f32.vlgmr.msra.gmra.mxu0 %v8013_v7  ;;  %v1070_v59 = vld [vmem:[%s14129_s2 + $0x250] sm:$0xff]  ;;  %v1303_v49 = vld [vmem:[%s14129_s2 + $0x998] sm:$0xff] }
 0x2e4   : > { %2361 = vmatmul.mubr.f32.vlgmr.msra.gmra.mxu1 %v8019_v9  ;;  %2373 = vmatprep.subr.mxu0 %v1119_v19  ;;  %v1062_v63 = vld [vmem:[%s14129_s2 + $0x210] sm:$0xff]  ;;  %v1287_v38 = vld [vmem:[%s14129_s2 + $0x918] sm:$0xff] }
 0x2e5   : > { %2450 = vmatprep.subr.mxu1 %v1375_v27  ;;  %2289 = vmatprep.mubr.f32.mxu0 %v8026_v13  ;;  %v1054_v19 = vld [vmem:[%s14129_s2 + $0x1d0] sm:$0xff]  ;;  %v1047_v27 = vld [vmem:[%s14129_s2 + $0x198] sm:$0xff] }
 0x2e6   : > { %2366 = vmatprep.mubr.f32.mxu1 %v8032_v60  ;;  %2374 = vmatpush1.msra.mxu0 %v1118_v6  ;;  %v1046_v6 = vld [vmem:[%s14129_s2 + $0x190] sm:$0xff] }
 0x2e7   : > { %2451 = vmatpush1.msra.mxu1 %v1374_v21  ;;  %2375 = vmatprep.subr.mxu0 %v1111_v58  ;;  %v1302_v36 = vld [vmem:[%s14129_s2 + $0x990] sm:$0xff]  ;;  %v1039_v21 = vld [vmem:[%s14129_s2 + $0x158] sm:$0xff] }
 0x2e8   : > { %2452 = vmatprep.subr.mxu1 %v1367_v46  ;;  %2376 = vmatpush1.msra.mxu0 %v1110_v20  ;;  %v1295_v58 = vld [vmem:[%s14129_s2 + $0x958] sm:$0xff]  ;;  %v1038_v23 = vld [vmem:[%s14129_s2 + $0x150] sm:$0xff] }
 0x2e9   : > { %2453 = vmatpush1.msra.mxu1 %v1366_v61  ;;  %2290 = vmatmul.mubr.f32.gmra.mxu0 %v8053_v5  ;;  %v1294_v46 = vld [vmem:[%s14129_s2 + $0x950] sm:$0xff]  ;;  %v1031_v20 = vld [vmem:[%s14129_s2 + $0x118] sm:$0xff] }
 0x2ea   : > { %2367 = vmatmul.mubr.f32.gmra.mxu1 %v8058_v32  ;;  %2377 = vmatprep.subr.mxu0 %v1103_v57  ;;  %v1030_v61 = vld [vmem:[%s14129_s2 + $0x110] sm:$0xff]  ;;  %v1023_v57 = vld [vmem:[%s14129_s2 + $0xd8] sm:$0xff] }
 0x2eb   : > { %2454 = vmatprep.subr.mxu1 %v1359_v40  ;;  %2378 = vmatpush1.msra.mxu0 %v1102_v34  ;;  %v1286_v35 = vld [vmem:[%s14129_s2 + $0x910] sm:$0xff]  ;;  %v1279_v40 = vld [vmem:[%s14129_s2 + $0x8d8] sm:$0xff] }
 0x2ec   : > { %2437 = vmatprep.mubr.f32.mxu0 %v7582_v44  ;;  %2455 = vmatpush1.msra.mxu1 %v1358_v25  ;;  %v1022_v34 = vld [vmem:[%s14129_s2 + $0xd0] sm:$0xff] }
 0x2ed   : > { %2514 = vmatprep.mubr.f32.mxu1 %v7584_v55  ;;  %2379 = vmatprep.subr.mxu0 %v1095_v41  ;;  %v1278_v25 = vld [vmem:[%s14129_s2 + $0x8d0] sm:$0xff]  ;;  %v1015_v41 = vld [vmem:[%s14129_s2 + $0x98] sm:$0xff] }
 0x2ee   : > { %2456 = vmatprep.subr.mxu1 %v1351_v0  ;;  %2380 = vmatpush1.msra.mxu0 %v1094_v52  ;;  %v1271_v0 = vld [vmem:[%s14129_s2 + $0x898] sm:$0xff]  ;;  %v1014_v52 = vld [vmem:[%s14129_s2 + $0x90] sm:$0xff] }
 0x2ef   : > { %2457 = vmatpush1.msra.mxu1 %v1350_v22  ;;  %2381 = vmatprep.subr.mxu0 %v1087_v43  ;;  %v1270_v22 = vld [vmem:[%s14129_s2 + $0x890] sm:$0xff]  ;;  %v1007_v43 = vld [vmem:[%s14129_s2 + $0x58] sm:$0xff] }
 0x2f0   : > { %2458 = vmatprep.subr.mxu1 %v1343_v47  ;;  %2382 = vmatpush1.msra.mxu0 %v1086_v15  ;;  %v1263_v47 = vld [vmem:[%s14129_s2 + $0x858] sm:$0xff]  ;;  %v1006_v15 = vld [vmem:[%s14129_s2 + $0x50] sm:$0xff] }
 0x2f1   : > { %2459 = vmatpush1.msra.mxu1 %v1342_v48  ;;  %2383 = vmatprep.subr.mxu0 %v1079_v50  ;;  %v1262_v48 = vld [vmem:[%s14129_s2 + $0x850] sm:$0xff]  ;;  %v999_v50 = vld [vmem:[%s14129_s2 + $0x18] sm:$0xff] }
 0x2f2   : > { %2460 = vmatprep.subr.mxu1 %v1335_v1  ;;  %2384 = vmatpush1.msra.mxu0 %v1078_v18  ;;  %v1255_v1 = vld [vmem:[%s14129_s2 + $0x818] sm:$0xff]  ;;  %v998_v18 = vld [vmem:[%s14129_s2 + $0x10] sm:$0xff] }
 0x2f3   : > { %2461 = vmatpush1.msra.mxu1 %v1334_v33  ;;  %2385 = vmatprep.subr.mxu0 %v1071_v51  ;;  %v1254_v33 = vld [vmem:[%s14129_s2 + $0x810] sm:$0xff]  ;;  %v1247_v51 = vld [vmem:[%s14129_s2 + $0x7d8] sm:$0xff] }
 0x2f4   : > { %2462 = vmatprep.subr.mxu1 %v1327_v17  ;;  %2386 = vmatpush1.msra.mxu0 %v1070_v59  ;;  %v1503_v17 = vld [vmem:[%s14129_s2 + $0xfd8] sm:$0xff]  ;;  %v1246_v59 = vld [vmem:[%s14129_s2 + $0x7d0] sm:$0xff] }
 0x2f5   : > { %2463 = vmatpush1.msra.mxu1 %v1326_v37  ;;  %2387 = vmatprep.subr.mxu0 %v1063_v24  ;;  %v1502_v37 = vld [vmem:[%s14129_s2 + $0xfd0] sm:$0xff]  ;;  %v1239_v24 = vld [vmem:[%s14129_s2 + $0x798] sm:$0xff] }
 0x2f6   : > { %2464 = vmatprep.subr.mxu1 %v1319_v62  ;;  %2388 = vmatpush1.msra.mxu0 %v1062_v63  ;;  %v1495_v62 = vld [vmem:[%s14129_s2 + $0xf98] sm:$0xff]  ;;  %v1238_v63 = vld [vmem:[%s14129_s2 + $0x790] sm:$0xff] }
 0x2f7   : > { %2465 = vmatpush1.msra.mxu1 %v1318_v2  ;;  %2389 = vmatprep.subr.mxu0 %v1055_v54  ;;  %v1494_v2 = vld [vmem:[%s14129_s2 + $0xf90] sm:$0xff]  ;;  %v1231_v54 = vld [vmem:[%s14129_s2 + $0x758] sm:$0xff] }
 0x2f8   : > { %2466 = vmatprep.subr.mxu1 %v1311_v4  ;;  %2390 = vmatpush1.msra.mxu0 %v1054_v19  ;;  %v1487_v4 = vld [vmem:[%s14129_s2 + $0xf58] sm:$0xff]  ;;  %v1230_v19 = vld [vmem:[%s14129_s2 + $0x750] sm:$0xff] }
 0x2f9   : > { %2467 = vmatpush1.msra.mxu1 %v1310_v56  ;;  %2391 = vmatprep.subr.mxu0 %v1047_v27  ;;  %v1486_v56 = vld [vmem:[%s14129_s2 + $0xf50] sm:$0xff]  ;;  %v1223_v27 = vld [vmem:[%s14129_s2 + $0x718] sm:$0xff] }
 0x2fa   : > { %2468 = vmatprep.subr.mxu1 %v1303_v49  ;;  %2392 = vmatpush1.msra.mxu0 %v1046_v6  ;;  %v1479_v49 = vld [vmem:[%s14129_s2 + $0xf18] sm:$0xff]  ;;  %v1222_v6 = vld [vmem:[%s14129_s2 + $0x710] sm:$0xff] }
 0x2fb   : > { %2469 = vmatpush1.msra.mxu1 %v1302_v36  ;;  %2393 = vmatprep.subr.mxu0 %v1039_v21  ;;  %v1478_v36 = vld [vmem:[%s14129_s2 + $0xf10] sm:$0xff]  ;;  %v1215_v21 = vld [vmem:[%s14129_s2 + $0x6d8] sm:$0xff] }
 0x2fc   : > { %2470 = vmatprep.subr.mxu1 %v1295_v58  ;;  %2394 = vmatpush1.msra.mxu0 %v1038_v23  ;;  %v1471_v58 = vld [vmem:[%s14129_s2 + $0xed8] sm:$0xff]  ;;  %v1214_v23 = vld [vmem:[%s14129_s2 + $0x6d0] sm:$0xff] }
 0x2fd   : > { %2471 = vmatpush1.msra.mxu1 %v1294_v46  ;;  %2395 = vmatprep.subr.mxu0 %v1031_v20  ;;  %v1470_v46 = vld [vmem:[%s14129_s2 + $0xed0] sm:$0xff]  ;;  %v1207_v20 = vld [vmem:[%s14129_s2 + $0x698] sm:$0xff] }
 0x2fe   : > { %2472 = vmatprep.subr.mxu1 %v1287_v38  ;;  %2396 = vmatpush1.msra.mxu0 %v1030_v61  ;;  %v1463_v38 = vld [vmem:[%s14129_s2 + $0xe98] sm:$0xff]  ;;  %v1206_v61 = vld [vmem:[%s14129_s2 + $0x690] sm:$0xff] }
 0x2ff   : > { %2473 = vmatpush1.msra.mxu1 %v1286_v35  ;;  %2397 = vmatprep.subr.mxu0 %v1023_v57  ;;  %v1462_v35 = vld [vmem:[%s14129_s2 + $0xe90] sm:$0xff]  ;;  %v1199_v57 = vld [vmem:[%s14129_s2 + $0x658] sm:$0xff] }
 0x300   : > { %2474 = vmatprep.subr.mxu1 %v1279_v40  ;;  %2398 = vmatpush1.msra.mxu0 %v1022_v34  ;;  %v1455_v40 = vld [vmem:[%s14129_s2 + $0xe58] sm:$0xff]  ;;  %v1198_v34 = vld [vmem:[%s14129_s2 + $0x650] sm:$0xff] }
 0x301   : > { %2475 = vmatpush1.msra.mxu1 %v1278_v25  ;;  %2399 = vmatprep.subr.mxu0 %v1015_v41  ;;  %v1454_v25 = vld [vmem:[%s14129_s2 + $0xe50] sm:$0xff]  ;;  %v1191_v41 = vld [vmem:[%s14129_s2 + $0x618] sm:$0xff] }
 0x302   : > { %2476 = vmatprep.subr.mxu1 %v1271_v0  ;;  %2400 = vmatpush1.msra.mxu0 %v1014_v52  ;;  %v1447_v0 = vld [vmem:[%s14129_s2 + $0xe18] sm:$0xff]  ;;  %v1190_v52 = vld [vmem:[%s14129_s2 + $0x610] sm:$0xff] }
 0x303   : > { %2477 = vmatpush1.msra.mxu1 %v1270_v22  ;;  %2401 = vmatprep.subr.mxu0 %v1007_v43  ;;  %v1446_v22 = vld [vmem:[%s14129_s2 + $0xe10] sm:$0xff]  ;;  %v1183_v43 = vld [vmem:[%s14129_s2 + $0x5d8] sm:$0xff] }
 0x304   : > { %2478 = vmatprep.subr.mxu1 %v1263_v47  ;;  %2402 = vmatpush1.msra.mxu0 %v1006_v15  ;;  %v1439_v47 = vld [vmem:[%s14129_s2 + $0xdd8] sm:$0xff]  ;;  %v1182_v15 = vld [vmem:[%s14129_s2 + $0x5d0] sm:$0xff] }
 0x305   : > { %2479 = vmatpush1.msra.mxu1 %v1262_v48  ;;  %2403 = vmatprep.subr.mxu0 %v999_v50  ;;  %v1438_v48 = vld [vmem:[%s14129_s2 + $0xdd0] sm:$0xff]  ;;  %v1175_v50 = vld [vmem:[%s14129_s2 + $0x598] sm:$0xff] }
 0x306   : > { %2480 = vmatprep.subr.mxu1 %v1255_v1  ;;  %2404 = vmatpush1.msra.mxu0 %v998_v18  ;;  %v1431_v1 = vld [vmem:[%s14129_s2 + $0xd98] sm:$0xff]  ;;  %v1174_v18 = vld [vmem:[%s14129_s2 + $0x590] sm:$0xff] }
 0x307   : > { %2481 = vmatpush1.msra.mxu1 %v1254_v33  ;;  %2405 = vmatprep.subr.mxu0 %v1247_v51  ;;  %v1430_v33 = vld [vmem:[%s14129_s2 + $0xd90] sm:$0xff]  ;;  %v1167_v51 = vld [vmem:[%s14129_s2 + $0x558] sm:$0xff] }
 0x308   : > { %2482 = vmatprep.subr.mxu1 %v1503_v17  ;;  %2406 = vmatpush2.msra.mxu0 %v1246_v59  ;;  %v1423_v17 = vld [vmem:[%s14129_s2 + $0xd58] sm:$0xff]  ;;  %v1166_v59 = vld [vmem:[%s14129_s2 + $0x550] sm:$0xff] }
 0x309   : > { %2483 = vmatpush2.msra.mxu1 %v1502_v37  ;;  %2407 = vmatprep.subr.mxu0 %v1239_v24  ;;  %v1422_v37 = vld [vmem:[%s14129_s2 + $0xd50] sm:$0xff]  ;;  %v1159_v24 = vld [vmem:[%s14129_s2 + $0x518] sm:$0xff] }
 0x30a   : > { %2484 = vmatprep.subr.mxu1 %v1495_v62  ;;  %2408 = vmatpush2.msra.mxu0 %v1238_v63  ;;  %v1415_v62 = vld [vmem:[%s14129_s2 + $0xd18] sm:$0xff]  ;;  %v1158_v63 = vld [vmem:[%s14129_s2 + $0x510] sm:$0xff] }
 0x30b   : > { %2485 = vmatpush2.msra.mxu1 %v1494_v2  ;;  %2409 = vmatprep.subr.mxu0 %v1231_v54  ;;  %v1414_v2 = vld [vmem:[%s14129_s2 + $0xd10] sm:$0xff]  ;;  %v1151_v54 = vld [vmem:[%s14129_s2 + $0x4d8] sm:$0xff] }
 0x30c   : > { %2486 = vmatprep.subr.mxu1 %v1487_v4  ;;  %2410 = vmatpush2.msra.mxu0 %v1230_v19  ;;  %v1407_v4 = vld [vmem:[%s14129_s2 + $0xcd8] sm:$0xff]  ;;  %v1150_v19 = vld [vmem:[%s14129_s2 + $0x4d0] sm:$0xff] }
 0x30d   : > { %2487 = vmatpush2.msra.mxu1 %v1486_v56  ;;  %2411 = vmatprep.subr.mxu0 %v1223_v27  ;;  %v1406_v56 = vld [vmem:[%s14129_s2 + $0xcd0] sm:$0xff]  ;;  %v1143_v27 = vld [vmem:[%s14129_s2 + $0x498] sm:$0xff] }
 0x30e   : > { %2488 = vmatprep.subr.mxu1 %v1479_v49  ;;  %2412 = vmatpush2.msra.mxu0 %v1222_v6  ;;  %v1399_v49 = vld [vmem:[%s14129_s2 + $0xc98] sm:$0xff]  ;;  %v1142_v6 = vld [vmem:[%s14129_s2 + $0x490] sm:$0xff] }
 0x30f   : > { %2489 = vmatpush2.msra.mxu1 %v1478_v36  ;;  %2413 = vmatprep.subr.mxu0 %v1215_v21  ;;  %v1398_v36 = vld [vmem:[%s14129_s2 + $0xc90] sm:$0xff]  ;;  %v1135_v21 = vld [vmem:[%s14129_s2 + $0x458] sm:$0xff] }
 0x310   : > { %2490 = vmatprep.subr.mxu1 %v1471_v58  ;;  %2414 = vmatpush2.msra.mxu0 %v1214_v23  ;;  %v1391_v58 = vld [vmem:[%s14129_s2 + $0xc58] sm:$0xff]  ;;  %v1134_v23 = vld [vmem:[%s14129_s2 + $0x450] sm:$0xff] }
 0x311   : > { %2491 = vmatpush2.msra.mxu1 %v1470_v46  ;;  %2415 = vmatprep.subr.mxu0 %v1207_v20  ;;  %v1390_v46 = vld [vmem:[%s14129_s2 + $0xc50] sm:$0xff]  ;;  %v1127_v20 = vld [vmem:[%s14129_s2 + $0x418] sm:$0xff] }
 0x312   : > { %2492 = vmatprep.subr.mxu1 %v1463_v38  ;;  %2416 = vmatpush2.msra.mxu0 %v1206_v61  ;;  %v1383_v38 = vld [vmem:[%s14129_s2 + $0xc18] sm:$0xff]  ;;  %v1126_v61 = vld [vmem:[%s14129_s2 + $0x410] sm:$0xff] }
 0x313   : > { %2493 = vmatpush2.msra.mxu1 %v1462_v35  ;;  %2417 = vmatprep.subr.mxu0 %v1199_v57  ;;  %v1382_v35 = vld [vmem:[%s14129_s2 + $0xc10] sm:$0xff]  ;;  %v1631_v57 = vld [vmem:[%s14129_s2 + $0x13d8] sm:$0xff] }
 0x314   : > { %2494 = vmatprep.subr.mxu1 %v1455_v40  ;;  %2418 = vmatpush2.msra.mxu0 %v1198_v34  ;;  %v1887_v40 = vld [vmem:[%s14129_s2 + $0x1bd8] sm:$0xff]  ;;  %v1630_v34 = vld [vmem:[%s14129_s2 + $0x13d0] sm:$0xff] }
 0x315   : > { %2495 = vmatpush2.msra.mxu1 %v1454_v25  ;;  %2419 = vmatprep.subr.mxu0 %v1191_v41  ;;  %v1886_v25 = vld [vmem:[%s14129_s2 + $0x1bd0] sm:$0xff]  ;;  %v1623_v41 = vld [vmem:[%s14129_s2 + $0x1398] sm:$0xff] }
 0x316   : > { %2496 = vmatprep.subr.mxu1 %v1447_v0  ;;  %2420 = vmatpush2.msra.mxu0 %v1190_v52  ;;  %v1879_v0 = vld [vmem:[%s14129_s2 + $0x1b98] sm:$0xff]  ;;  %v1622_v52 = vld [vmem:[%s14129_s2 + $0x1390] sm:$0xff] }
 0x317   : > { %2497 = vmatpush2.msra.mxu1 %v1446_v22  ;;  %2421 = vmatprep.subr.mxu0 %v1183_v43  ;;  %v1878_v22 = vld [vmem:[%s14129_s2 + $0x1b90] sm:$0xff]  ;;  %v1615_v43 = vld [vmem:[%s14129_s2 + $0x1358] sm:$0xff] }
 0x318   : > { %2498 = vmatprep.subr.mxu1 %v1439_v47  ;;  %2422 = vmatpush2.msra.mxu0 %v1182_v15  ;;  %v1871_v47 = vld [vmem:[%s14129_s2 + $0x1b58] sm:$0xff]  ;;  %v1614_v15 = vld [vmem:[%s14129_s2 + $0x1350] sm:$0xff] }
 0x319   : > { %2499 = vmatpush2.msra.mxu1 %v1438_v48  ;;  %2423 = vmatprep.subr.mxu0 %v1175_v50  ;;  %v1870_v48 = vld [vmem:[%s14129_s2 + $0x1b50] sm:$0xff]  ;;  %v1607_v50 = vld [vmem:[%s14129_s2 + $0x1318] sm:$0xff] }
 0x31a   : > { %2500 = vmatprep.subr.mxu1 %v1431_v1  ;;  %2424 = vmatpush2.msra.mxu0 %v1174_v18  ;;  %v1863_v1 = vld [vmem:[%s14129_s2 + $0x1b18] sm:$0xff]  ;;  %v1606_v18 = vld [vmem:[%s14129_s2 + $0x1310] sm:$0xff] }
 0x31b   : > { %2501 = vmatpush2.msra.mxu1 %v1430_v33  ;;  %2425 = vmatprep.subr.mxu0 %v1167_v51  ;;  %v1862_v33 = vld [vmem:[%s14129_s2 + $0x1b10] sm:$0xff]  ;;  %v1599_v51 = vld [vmem:[%s14129_s2 + $0x12d8] sm:$0xff] }
 0x31c   : > { %2502 = vmatprep.subr.mxu1 %v1423_v17  ;;  %2426 = vmatpush2.msra.mxu0 %v1166_v59  ;;  %v1855_v17 = vld [vmem:[%s14129_s2 + $0x1ad8] sm:$0xff]  ;;  %v1598_v59 = vld [vmem:[%s14129_s2 + $0x12d0] sm:$0xff] }
 0x31d   : > { %2503 = vmatpush2.msra.mxu1 %v1422_v37  ;;  %2427 = vmatprep.subr.mxu0 %v1159_v24  ;;  %v1854_v37 = vld [vmem:[%s14129_s2 + $0x1ad0] sm:$0xff]  ;;  %v1591_v24 = vld [vmem:[%s14129_s2 + $0x1298] sm:$0xff] }
 0x31e   : > { %2504 = vmatprep.subr.mxu1 %v1415_v62  ;;  %2428 = vmatpush2.msra.mxu0 %v1158_v63  ;;  %v1847_v62 = vld [vmem:[%s14129_s2 + $0x1a98] sm:$0xff]  ;;  %v1590_v63 = vld [vmem:[%s14129_s2 + $0x1290] sm:$0xff] }
 0x31f   : > { %2505 = vmatpush2.msra.mxu1 %v1414_v2  ;;  %2429 = vmatprep.subr.mxu0 %v1151_v54  ;;  %v1846_v2 = vld [vmem:[%s14129_s2 + $0x1a90] sm:$0xff]  ;;  %v1583_v54 = vld [vmem:[%s14129_s2 + $0x1258] sm:$0xff] }
 0x320   : > { %2506 = vmatprep.subr.mxu1 %v1407_v4  ;;  %2430 = vmatpush2.msra.mxu0 %v1150_v19  ;;  %v1839_v4 = vld [vmem:[%s14129_s2 + $0x1a58] sm:$0xff]  ;;  %v1582_v19 = vld [vmem:[%s14129_s2 + $0x1250] sm:$0xff] }
 0x321   : > { %2507 = vmatpush2.msra.mxu1 %v1406_v56  ;;  %2431 = vmatprep.subr.mxu0 %v1143_v27  ;;  %v1838_v56 = vld [vmem:[%s14129_s2 + $0x1a50] sm:$0xff]  ;;  %v1575_v27 = vld [vmem:[%s14129_s2 + $0x1218] sm:$0xff] }
 0x322   : > { %2508 = vmatprep.subr.mxu1 %v1399_v49  ;;  %2432 = vmatpush2.msra.mxu0 %v1142_v6  ;;  %v1831_v49 = vld [vmem:[%s14129_s2 + $0x1a18] sm:$0xff]  ;;  %v1574_v6 = vld [vmem:[%s14129_s2 + $0x1210] sm:$0xff] }
 0x323   : > { %2509 = vmatpush2.msra.mxu1 %v1398_v36  ;;  %2433 = vmatprep.subr.mxu0 %v1135_v21  ;;  %v1830_v36 = vld [vmem:[%s14129_s2 + $0x1a10] sm:$0xff]  ;;  %v1567_v21 = vld [vmem:[%s14129_s2 + $0x11d8] sm:$0xff] }
 0x324   : > { %2510 = vmatprep.subr.mxu1 %v1391_v58  ;;  %2434 = vmatpush2.msra.mxu0 %v1134_v23  ;;  %v1823_v58 = vld [vmem:[%s14129_s2 + $0x19d8] sm:$0xff]  ;;  %v1566_v23 = vld [vmem:[%s14129_s2 + $0x11d0] sm:$0xff] }
 0x325   : > { %2511 = vmatpush2.msra.mxu1 %v1390_v46  ;;  %2435 = vmatprep.subr.mxu0 %v1127_v20  ;;  %v1822_v46 = vld [vmem:[%s14129_s2 + $0x19d0] sm:$0xff]  ;;  %v1559_v20 = vld [vmem:[%s14129_s2 + $0x1198] sm:$0xff] }
 0x326   : > { %2512 = vmatprep.subr.mxu1 %v1383_v38  ;;  %2436 = vmatpush2.msra.mxu0 %v1126_v61  ;;  %v1815_v38 = vld [vmem:[%s14129_s2 + $0x1998] sm:$0xff]  ;;  %v1558_v61 = vld [vmem:[%s14129_s2 + $0x1190] sm:$0xff] }
 0x327   : > { %2513 = vmatpush2.msra.mxu1 %v1382_v35  ;;  %2438 = vmatmul.mubr.f32.vlgmr.msra.gmra.mxu0 %v7587_v29  ;;  %v1814_v35 = vld [vmem:[%s14129_s2 + $0x1990] sm:$0xff] }
 0x328   : > { %2515 = vmatmul.mubr.f32.vlgmr.msra.gmra.mxu1 %v7593_v53  ;;  %2527 = vmatprep.subr.mxu0 %v1631_v57  ;;  %v1551_v57 = vld [vmem:[%s14129_s2 + $0x1158] sm:$0xff] }
 0x329   : > { %2604 = vmatprep.subr.mxu1 %v1887_v40  ;;  %2443 = vmatprep.mubr.f32.mxu0 %v7600_v3  ;;  %v1807_v40 = vld [vmem:[%s14129_s2 + $0x1958] sm:$0xff] }
 0x32a   : > { %2520 = vmatprep.mubr.f32.mxu1 %v7606_v8  ;;  %2528 = vmatpush1.msra.mxu0 %v1630_v34  ;;  %v1550_v34 = vld [vmem:[%s14129_s2 + $0x1150] sm:$0xff] }
 0x32b   : > { %2605 = vmatpush1.msra.mxu1 %v1886_v25  ;;  %2529 = vmatprep.subr.mxu0 %v1623_v41  ;;  %v1806_v25 = vld [vmem:[%s14129_s2 + $0x1950] sm:$0xff]  ;;  %v1543_v41 = vld [vmem:[%s14129_s2 + $0x1118] sm:$0xff] }
 0x32c   : > { %2606 = vmatprep.subr.mxu1 %v1879_v0  ;;  %2530 = vmatpush1.msra.mxu0 %v1622_v52  ;;  %v1799_v0 = vld [vmem:[%s14129_s2 + $0x1918] sm:$0xff]  ;;  %v1542_v52 = vld [vmem:[%s14129_s2 + $0x1110] sm:$0xff] }
 0x32d   : > { %2607 = vmatpush1.msra.mxu1 %v1878_v22  ;;  %2444 = vmatmul.mubr.f32.gmra.mxu0 %v7627_v28  ;;  %v1798_v22 = vld [vmem:[%s14129_s2 + $0x1910] sm:$0xff] }
 0x32e   : > { %2521 = vmatmul.mubr.f32.gmra.mxu1 %v7632_v45  ;;  %2531 = vmatprep.subr.mxu0 %v1615_v43  ;;  %v1535_v43 = vld [vmem:[%s14129_s2 + $0x10d8] sm:$0xff] }
 0x32f   : > { %2608 = vmatprep.subr.mxu1 %v1871_v47  ;;  %2532 = vmatpush1.msra.mxu0 %v1614_v15  ;;  %v1791_v47 = vld [vmem:[%s14129_s2 + $0x18d8] sm:$0xff]  ;;  %v1534_v15 = vld [vmem:[%s14129_s2 + $0x10d0] sm:$0xff] }
 0x330   : > { %2591 = vmatprep.mubr.f32.mxu0 %v7647_v42  ;;  %2609 = vmatpush1.msra.mxu1 %v1870_v48  ;;  %v1790_v48 = vld [vmem:[%s14129_s2 + $0x18d0] sm:$0xff] }
 0x331   : > { %2668 = vmatprep.mubr.f32.mxu1 %v7652_v10  ;;  %2533 = vmatprep.subr.mxu0 %v1607_v50  ;;  %v1527_v50 = vld [vmem:[%s14129_s2 + $0x1098] sm:$0xff] }
 0x332   : > { %2610 = vmatprep.subr.mxu1 %v1863_v1  ;;  %2534 = vmatpush1.msra.mxu0 %v1606_v18  ;;  %v1783_v1 = vld [vmem:[%s14129_s2 + $0x1898] sm:$0xff]  ;;  %v1526_v18 = vld [vmem:[%s14129_s2 + $0x1090] sm:$0xff] }
 0x333   : > { %2611 = vmatpush1.msra.mxu1 %v1862_v33  ;;  %2535 = vmatprep.subr.mxu0 %v1599_v51  ;;  %v1782_v33 = vld [vmem:[%s14129_s2 + $0x1890] sm:$0xff]  ;;  %v1519_v51 = vld [vmem:[%s14129_s2 + $0x1058] sm:$0xff] }
 0x334   : > { %2612 = vmatprep.subr.mxu1 %v1855_v17  ;;  %2536 = vmatpush1.msra.mxu0 %v1598_v59  ;;  %v1775_v17 = vld [vmem:[%s14129_s2 + $0x1858] sm:$0xff]  ;;  %v1518_v59 = vld [vmem:[%s14129_s2 + $0x1050] sm:$0xff] }
 0x335   : > { %2613 = vmatpush1.msra.mxu1 %v1854_v37  ;;  %2537 = vmatprep.subr.mxu0 %v1591_v24  ;;  %v1774_v37 = vld [vmem:[%s14129_s2 + $0x1850] sm:$0xff]  ;;  %v1511_v24 = vld [vmem:[%s14129_s2 + $0x1018] sm:$0xff] }
 0x336   : > { %2614 = vmatprep.subr.mxu1 %v1847_v62  ;;  %2538 = vmatpush1.msra.mxu0 %v1590_v63  ;;  %v1767_v62 = vld [vmem:[%s14129_s2 + $0x1818] sm:$0xff]  ;;  %v1510_v63 = vld [vmem:[%s14129_s2 + $0x1010] sm:$0xff] }
 0x337   : > { %2615 = vmatpush1.msra.mxu1 %v1846_v2  ;;  %2539 = vmatprep.subr.mxu0 %v1583_v54  ;;  %v1766_v2 = vld [vmem:[%s14129_s2 + $0x1810] sm:$0xff]  ;;  %v1759_v54 = vld [vmem:[%s14129_s2 + $0x17d8] sm:$0xff] }
 0x338   : > { %2616 = vmatprep.subr.mxu1 %v1839_v4  ;;  %2540 = vmatpush1.msra.mxu0 %v1582_v19  ;;  %v2015_v4 = vld [vmem:[%s14129_s2 + $0x1fd8] sm:$0xff]  ;;  %v1758_v19 = vld [vmem:[%s14129_s2 + $0x17d0] sm:$0xff] }
 0x339   : > { %2617 = vmatpush1.msra.mxu1 %v1838_v56  ;;  %2541 = vmatprep.subr.mxu0 %v1575_v27  ;;  %v2014_v56 = vld [vmem:[%s14129_s2 + $0x1fd0] sm:$0xff]  ;;  %v1751_v27 = vld [vmem:[%s14129_s2 + $0x1798] sm:$0xff] }
 0x33a   : > { %2618 = vmatprep.subr.mxu1 %v1831_v49  ;;  %2542 = vmatpush1.msra.mxu0 %v1574_v6  ;;  %v2007_v49 = vld [vmem:[%s14129_s2 + $0x1f98] sm:$0xff]  ;;  %v1750_v6 = vld [vmem:[%s14129_s2 + $0x1790] sm:$0xff] }
 0x33b   : > { %2619 = vmatpush1.msra.mxu1 %v1830_v36  ;;  %2543 = vmatprep.subr.mxu0 %v1567_v21  ;;  %v2006_v36 = vld [vmem:[%s14129_s2 + $0x1f90] sm:$0xff]  ;;  %v1743_v21 = vld [vmem:[%s14129_s2 + $0x1758] sm:$0xff] }
 0x33c   : > { %2620 = vmatprep.subr.mxu1 %v1823_v58  ;;  %2544 = vmatpush1.msra.mxu0 %v1566_v23  ;;  %v1999_v58 = vld [vmem:[%s14129_s2 + $0x1f58] sm:$0xff]  ;;  %v1742_v23 = vld [vmem:[%s14129_s2 + $0x1750] sm:$0xff] }
 0x33d   : > { %2621 = vmatpush1.msra.mxu1 %v1822_v46  ;;  %2545 = vmatprep.subr.mxu0 %v1559_v20  ;;  %v1998_v46 = vld [vmem:[%s14129_s2 + $0x1f50] sm:$0xff]  ;;  %v1735_v20 = vld [vmem:[%s14129_s2 + $0x1718] sm:$0xff] }
 0x33e   : > { %2622 = vmatprep.subr.mxu1 %v1815_v38  ;;  %2546 = vmatpush1.msra.mxu0 %v1558_v61  ;;  %v1991_v38 = vld [vmem:[%s14129_s2 + $0x1f18] sm:$0xff]  ;;  %v1734_v61 = vld [vmem:[%s14129_s2 + $0x1710] sm:$0xff] }
 0x33f   : > { %2623 = vmatpush1.msra.mxu1 %v1814_v35  ;;  %2547 = vmatprep.subr.mxu0 %v1551_v57  ;;  %v1990_v35 = vld [vmem:[%s14129_s2 + $0x1f10] sm:$0xff]  ;;  %v1727_v57 = vld [vmem:[%s14129_s2 + $0x16d8] sm:$0xff] }
 0x340   : > { %2624 = vmatprep.subr.mxu1 %v1807_v40  ;;  %2548 = vmatpush1.msra.mxu0 %v1550_v34  ;;  %v1983_v40 = vld [vmem:[%s14129_s2 + $0x1ed8] sm:$0xff]  ;;  %v1726_v34 = vld [vmem:[%s14129_s2 + $0x16d0] sm:$0xff] }
 0x341   : > { %2625 = vmatpush1.msra.mxu1 %v1806_v25  ;;  %2549 = vmatprep.subr.mxu0 %v1543_v41  ;;  %v1982_v25 = vld [vmem:[%s14129_s2 + $0x1ed0] sm:$0xff]  ;;  %v1719_v41 = vld [vmem:[%s14129_s2 + $0x1698] sm:$0xff] }
 0x342   : > { %2626 = vmatprep.subr.mxu1 %v1799_v0  ;;  %2550 = vmatpush1.msra.mxu0 %v1542_v52  ;;  %v1975_v0 = vld [vmem:[%s14129_s2 + $0x1e98] sm:$0xff]  ;;  %v1718_v52 = vld [vmem:[%s14129_s2 + $0x1690] sm:$0xff] }
 0x343   : > { %2627 = vmatpush1.msra.mxu1 %v1798_v22  ;;  %2551 = vmatprep.subr.mxu0 %v1535_v43  ;;  %v1974_v22 = vld [vmem:[%s14129_s2 + $0x1e90] sm:$0xff]  ;;  %v1711_v43 = vld [vmem:[%s14129_s2 + $0x1658] sm:$0xff] }
 0x344   : > { %2628 = vmatprep.subr.mxu1 %v1791_v47  ;;  %2552 = vmatpush1.msra.mxu0 %v1534_v15  ;;  %v1967_v47 = vld [vmem:[%s14129_s2 + $0x1e58] sm:$0xff]  ;;  %v1710_v15 = vld [vmem:[%s14129_s2 + $0x1650] sm:$0xff] }
 0x345   : > { %2629 = vmatpush1.msra.mxu1 %v1790_v48  ;;  %2553 = vmatprep.subr.mxu0 %v1527_v50  ;;  %v1966_v48 = vld [vmem:[%s14129_s2 + $0x1e50] sm:$0xff]  ;;  %v1703_v50 = vld [vmem:[%s14129_s2 + $0x1618] sm:$0xff] }
 0x346   : > { %2630 = vmatprep.subr.mxu1 %v1783_v1  ;;  %2554 = vmatpush1.msra.mxu0 %v1526_v18  ;;  %v1959_v1 = vld [vmem:[%s14129_s2 + $0x1e18] sm:$0xff]  ;;  %v1702_v18 = vld [vmem:[%s14129_s2 + $0x1610] sm:$0xff] }
 0x347   : > { %2631 = vmatpush1.msra.mxu1 %v1782_v33  ;;  %2555 = vmatprep.subr.mxu0 %v1519_v51  ;;  %v1958_v33 = vld [vmem:[%s14129_s2 + $0x1e10] sm:$0xff]  ;;  %v1695_v51 = vld [vmem:[%s14129_s2 + $0x15d8] sm:$0xff] }
 0x348   : > { %2632 = vmatprep.subr.mxu1 %v1775_v17  ;;  %2556 = vmatpush1.msra.mxu0 %v1518_v59  ;;  %v1951_v17 = vld [vmem:[%s14129_s2 + $0x1dd8] sm:$0xff]  ;;  %v1694_v59 = vld [vmem:[%s14129_s2 + $0x15d0] sm:$0xff] }
 0x349   : > { %2633 = vmatpush1.msra.mxu1 %v1774_v37  ;;  %2557 = vmatprep.subr.mxu0 %v1511_v24  ;;  %v1950_v37 = vld [vmem:[%s14129_s2 + $0x1dd0] sm:$0xff]  ;;  %v1687_v24 = vld [vmem:[%s14129_s2 + $0x1598] sm:$0xff] }
 0x34a   : > { %2634 = vmatprep.subr.mxu1 %v1767_v62  ;;  %2558 = vmatpush1.msra.mxu0 %v1510_v63  ;;  %v1943_v62 = vld [vmem:[%s14129_s2 + $0x1d98] sm:$0xff]  ;;  %v1686_v63 = vld [vmem:[%s14129_s2 + $0x1590] sm:$0xff] }
 0x34b   : > { %2635 = vmatpush1.msra.mxu1 %v1766_v2  ;;  %2559 = vmatprep.subr.mxu0 %v1759_v54  ;;  %v1942_v2 = vld [vmem:[%s14129_s2 + $0x1d90] sm:$0xff]  ;;  %v1679_v54 = vld [vmem:[%s14129_s2 + $0x1558] sm:$0xff] }
 0x34c   : > { %2636 = vmatprep.subr.mxu1 %v2015_v4  ;;  %2560 = vmatpush2.msra.mxu0 %v1758_v19  ;;  %v1935_v4 = vld [vmem:[%s14129_s2 + $0x1d58] sm:$0xff]  ;;  %v1678_v19 = vld [vmem:[%s14129_s2 + $0x1550] sm:$0xff] }
 0x34d   : > { %2637 = vmatpush2.msra.mxu1 %v2014_v56  ;;  %2561 = vmatprep.subr.mxu0 %v1751_v27  ;;  %v1934_v56 = vld [vmem:[%s14129_s2 + $0x1d50] sm:$0xff]  ;;  %v1671_v27 = vld [vmem:[%s14129_s2 + $0x1518] sm:$0xff] }
 0x34e   : > { %2638 = vmatprep.subr.mxu1 %v2007_v49  ;;  %2562 = vmatpush2.msra.mxu0 %v1750_v6  ;;  %v1927_v49 = vld [vmem:[%s14129_s2 + $0x1d18] sm:$0xff]  ;;  %v1670_v6 = vld [vmem:[%s14129_s2 + $0x1510] sm:$0xff] }
 0x34f   : > { %2639 = vmatpush2.msra.mxu1 %v2006_v36  ;;  %2563 = vmatprep.subr.mxu0 %v1743_v21  ;;  %v1926_v36 = vld [vmem:[%s14129_s2 + $0x1d10] sm:$0xff]  ;;  %v1663_v21 = vld [vmem:[%s14129_s2 + $0x14d8] sm:$0xff] }
 0x350   : > { %2640 = vmatprep.subr.mxu1 %v1999_v58  ;;  %2564 = vmatpush2.msra.mxu0 %v1742_v23  ;;  %v1919_v58 = vld [vmem:[%s14129_s2 + $0x1cd8] sm:$0xff]  ;;  %v1662_v23 = vld [vmem:[%s14129_s2 + $0x14d0] sm:$0xff] }
 0x351   : > { %2641 = vmatpush2.msra.mxu1 %v1998_v46  ;;  %2565 = vmatprep.subr.mxu0 %v1735_v20  ;;  %v1918_v46 = vld [vmem:[%s14129_s2 + $0x1cd0] sm:$0xff]  ;;  %v1655_v20 = vld [vmem:[%s14129_s2 + $0x1498] sm:$0xff] }
 0x352   : > { %2642 = vmatprep.subr.mxu1 %v1991_v38  ;;  %2566 = vmatpush2.msra.mxu0 %v1734_v61  ;;  %v1911_v38 = vld [vmem:[%s14129_s2 + $0x1c98] sm:$0xff]  ;;  %v1654_v61 = vld [vmem:[%s14129_s2 + $0x1490] sm:$0xff] }
 0x353   : > { %2643 = vmatpush2.msra.mxu1 %v1990_v35  ;;  %2567 = vmatprep.subr.mxu0 %v1727_v57  ;;  %v1910_v35 = vld [vmem:[%s14129_s2 + $0x1c90] sm:$0xff]  ;;  %v1647_v57 = vld [vmem:[%s14129_s2 + $0x1458] sm:$0xff] }
 0x354   : > { %2644 = vmatprep.subr.mxu1 %v1983_v40  ;;  %2568 = vmatpush2.msra.mxu0 %v1726_v34  ;;  %v1903_v40 = vld [vmem:[%s14129_s2 + $0x1c58] sm:$0xff]  ;;  %v1646_v34 = vld [vmem:[%s14129_s2 + $0x1450] sm:$0xff] }
 0x355   : > { %2645 = vmatpush2.msra.mxu1 %v1982_v25  ;;  %2569 = vmatprep.subr.mxu0 %v1719_v41  ;;  %v1902_v25 = vld [vmem:[%s14129_s2 + $0x1c50] sm:$0xff]  ;;  %v1639_v41 = vld [vmem:[%s14129_s2 + $0x1418] sm:$0xff] }
 0x356   : > { %2646 = vmatprep.subr.mxu1 %v1975_v0  ;;  %2570 = vmatpush2.msra.mxu0 %v1718_v52  ;;  %v1895_v0 = vld [vmem:[%s14129_s2 + $0x1c18] sm:$0xff]  ;;  %v1638_v52 = vld [vmem:[%s14129_s2 + $0x1410] sm:$0xff] }
 0x357   : > { %2647 = vmatpush2.msra.mxu1 %v1974_v22  ;;  %2571 = vmatprep.subr.mxu0 %v1711_v43  ;;  %v1894_v22 = vld [vmem:[%s14129_s2 + $0x1c10] sm:$0xff]  ;;  %v1121_v43 = vld [vmem:[%s14129_s2 + $0x3e8] sm:$0xff] }
 0x358   : > { %2648 = vmatprep.subr.mxu1 %v1967_v47  ;;  %2572 = vmatpush2.msra.mxu0 %v1710_v15  ;;  %v1377_v47 = vld [vmem:[%s14129_s2 + $0xbe8] sm:$0xff]  ;;  %v1120_v15 = vld [vmem:[%s14129_s2 + $0x3e0] sm:$0xff] }
 0x359   : > { %2649 = vmatpush2.msra.mxu1 %v1966_v48  ;;  %2573 = vmatprep.subr.mxu0 %v1703_v50  ;;  %v1376_v48 = vld [vmem:[%s14129_s2 + $0xbe0] sm:$0xff]  ;;  %v1113_v50 = vld [vmem:[%s14129_s2 + $0x3a8] sm:$0xff] }
 0x35a   : > { %2650 = vmatprep.subr.mxu1 %v1959_v1  ;;  %2574 = vmatpush2.msra.mxu0 %v1702_v18  ;;  %v1369_v1 = vld [vmem:[%s14129_s2 + $0xba8] sm:$0xff]  ;;  %v1112_v18 = vld [vmem:[%s14129_s2 + $0x3a0] sm:$0xff] }
 0x35b   : > { %2651 = vmatpush2.msra.mxu1 %v1958_v33  ;;  %2575 = vmatprep.subr.mxu0 %v1695_v51  ;;  %v1368_v33 = vld [vmem:[%s14129_s2 + $0xba0] sm:$0xff]  ;;  %v1105_v51 = vld [vmem:[%s14129_s2 + $0x368] sm:$0xff] }
 0x35c   : > { %2652 = vmatprep.subr.mxu1 %v1951_v17  ;;  %2576 = vmatpush2.msra.mxu0 %v1694_v59  ;;  %v1361_v17 = vld [vmem:[%s14129_s2 + $0xb68] sm:$0xff]  ;;  %v1104_v59 = vld [vmem:[%s14129_s2 + $0x360] sm:$0xff] }
 0x35d   : > { %2653 = vmatpush2.msra.mxu1 %v1950_v37  ;;  %2577 = vmatprep.subr.mxu0 %v1687_v24  ;;  %v1360_v37 = vld [vmem:[%s14129_s2 + $0xb60] sm:$0xff]  ;;  %v1097_v24 = vld [vmem:[%s14129_s2 + $0x328] sm:$0xff] }
 0x35e   : > { %2654 = vmatprep.subr.mxu1 %v1943_v62  ;;  %2578 = vmatpush2.msra.mxu0 %v1686_v63  ;;  %v1353_v62 = vld [vmem:[%s14129_s2 + $0xb28] sm:$0xff]  ;;  %v1096_v63 = vld [vmem:[%s14129_s2 + $0x320] sm:$0xff] }
 0x35f   : > { %2655 = vmatpush2.msra.mxu1 %v1942_v2  ;;  %2579 = vmatprep.subr.mxu0 %v1679_v54  ;;  %v1352_v2 = vld [vmem:[%s14129_s2 + $0xb20] sm:$0xff]  ;;  %v1089_v54 = vld [vmem:[%s14129_s2 + $0x2e8] sm:$0xff] }
 0x360   : > { %2656 = vmatprep.subr.mxu1 %v1935_v4  ;;  %2580 = vmatpush2.msra.mxu0 %v1678_v19  ;;  %v1345_v4 = vld [vmem:[%s14129_s2 + $0xae8] sm:$0xff]  ;;  %v1088_v19 = vld [vmem:[%s14129_s2 + $0x2e0] sm:$0xff] }
 0x361   : > { %2657 = vmatpush2.msra.mxu1 %v1934_v56  ;;  %2581 = vmatprep.subr.mxu0 %v1671_v27  ;;  %v1344_v56 = vld [vmem:[%s14129_s2 + $0xae0] sm:$0xff]  ;;  %v1081_v27 = vld [vmem:[%s14129_s2 + $0x2a8] sm:$0xff] }
 0x362   : > { %2658 = vmatprep.subr.mxu1 %v1927_v49  ;;  %2582 = vmatpush2.msra.mxu0 %v1670_v6  ;;  %v1337_v49 = vld [vmem:[%s14129_s2 + $0xaa8] sm:$0xff]  ;;  %v1080_v6 = vld [vmem:[%s14129_s2 + $0x2a0] sm:$0xff] }
 0x363   : > { %2659 = vmatpush2.msra.mxu1 %v1926_v36  ;;  %2583 = vmatprep.subr.mxu0 %v1663_v21  ;;  %v1336_v36 = vld [vmem:[%s14129_s2 + $0xaa0] sm:$0xff]  ;;  %v1073_v21 = vld [vmem:[%s14129_s2 + $0x268] sm:$0xff] }
 0x364   : > { %2660 = vmatprep.subr.mxu1 %v1919_v58  ;;  %2584 = vmatpush2.msra.mxu0 %v1662_v23  ;;  %v1329_v58 = vld [vmem:[%s14129_s2 + $0xa68] sm:$0xff]  ;;  %v1072_v23 = vld [vmem:[%s14129_s2 + $0x260] sm:$0xff] }
 0x365   : > { %2661 = vmatpush2.msra.mxu1 %v1918_v46  ;;  %2585 = vmatprep.subr.mxu0 %v1655_v20  ;;  %v1328_v46 = vld [vmem:[%s14129_s2 + $0xa60] sm:$0xff]  ;;  %v1065_v20 = vld [vmem:[%s14129_s2 + $0x228] sm:$0xff] }
 0x366   : > { %2662 = vmatprep.subr.mxu1 %v1911_v38  ;;  %2586 = vmatpush2.msra.mxu0 %v1654_v61  ;;  %v1321_v38 = vld [vmem:[%s14129_s2 + $0xa28] sm:$0xff]  ;;  %v1064_v61 = vld [vmem:[%s14129_s2 + $0x220] sm:$0xff] }
 0x367   : > { %2663 = vmatpush2.msra.mxu1 %v1910_v35  ;;  %2587 = vmatprep.subr.mxu0 %v1647_v57  ;;  %v1320_v35 = vld [vmem:[%s14129_s2 + $0xa20] sm:$0xff]  ;;  %v1057_v57 = vld [vmem:[%s14129_s2 + $0x1e8] sm:$0xff] }
 0x368   : > { %2664 = vmatprep.subr.mxu1 %v1903_v40  ;;  %2588 = vmatpush2.msra.mxu0 %v1646_v34  ;;  %v1313_v40 = vld [vmem:[%s14129_s2 + $0x9e8] sm:$0xff]  ;;  %v1056_v34 = vld [vmem:[%s14129_s2 + $0x1e0] sm:$0xff] }
 0x369   : > { %2665 = vmatpush2.msra.mxu1 %v1902_v25  ;;  %2589 = vmatprep.subr.mxu0 %v1639_v41  ;;  %v1312_v25 = vld [vmem:[%s14129_s2 + $0x9e0] sm:$0xff]  ;;  %v1049_v41 = vld [vmem:[%s14129_s2 + $0x1a8] sm:$0xff] }
 0x36a   : > { %2666 = vmatprep.subr.mxu1 %v1895_v0  ;;  %2590 = vmatpush2.msra.mxu0 %v1638_v52  ;;  %v1305_v0 = vld [vmem:[%s14129_s2 + $0x9a8] sm:$0xff]  ;;  %v1048_v52 = vld [vmem:[%s14129_s2 + $0x1a0] sm:$0xff] }
 0x36b   : > { %2667 = vmatpush2.msra.mxu1 %v1894_v22  ;;  %2592 = vmatmul.mubr.f32.vlgmr.msra.gmra.mxu0 %v8013_v7  ;;  %v1304_v22 = vld [vmem:[%s14129_s2 + $0x9a0] sm:$0xff] }
 0x36c   : > { %2669 = vmatmul.mubr.f32.vlgmr.msra.gmra.mxu1 %v8019_v9  ;;  %2681 = vmatprep.subr.mxu0 %v1121_v43  ;;  %v1041_v43 = vld [vmem:[%s14129_s2 + $0x168] sm:$0xff] }
 0x36d   : > { %2758 = vmatprep.subr.mxu1 %v1377_v47  ;;  %2597 = vmatprep.mubr.f32.mxu0 %v8026_v13  ;;  %v1297_v47 = vld [vmem:[%s14129_s2 + $0x968] sm:$0xff] }
 0x36e   : > { %2674 = vmatprep.mubr.f32.mxu1 %v8032_v60  ;;  %2682 = vmatpush1.msra.mxu0 %v1120_v15  ;;  %v1040_v15 = vld [vmem:[%s14129_s2 + $0x160] sm:$0xff] }
 0x36f   : > { %2759 = vmatpush1.msra.mxu1 %v1376_v48  ;;  %2683 = vmatprep.subr.mxu0 %v1113_v50  ;;  %v1296_v48 = vld [vmem:[%s14129_s2 + $0x960] sm:$0xff]  ;;  %v1033_v50 = vld [vmem:[%s14129_s2 + $0x128] sm:$0xff] }
 0x370   : > { %2760 = vmatprep.subr.mxu1 %v1369_v1  ;;  %2684 = vmatpush1.msra.mxu0 %v1112_v18  ;;  %v1289_v1 = vld [vmem:[%s14129_s2 + $0x928] sm:$0xff]  ;;  %v1032_v18 = vld [vmem:[%s14129_s2 + $0x120] sm:$0xff] }
 0x371   : > { %2761 = vmatpush1.msra.mxu1 %v1368_v33  ;;  %2598 = vmatmul.mubr.f32.gmra.mxu0 %v8053_v5  ;;  %v1288_v33 = vld [vmem:[%s14129_s2 + $0x920] sm:$0xff] }
 0x372   : > { %2675 = vmatmul.mubr.f32.gmra.mxu1 %v8058_v32  ;;  %2685 = vmatprep.subr.mxu0 %v1105_v51  ;;  %v1025_v51 = vld [vmem:[%s14129_s2 + $0xe8] sm:$0xff] }
 0x373   : > { %2762 = vmatprep.subr.mxu1 %v1361_v17  ;;  %2686 = vmatpush1.msra.mxu0 %v1104_v59  ;;  %v1281_v17 = vld [vmem:[%s14129_s2 + $0x8e8] sm:$0xff]  ;;  %v1024_v59 = vld [vmem:[%s14129_s2 + $0xe0] sm:$0xff] }
 0x374   : > { %2745 = vmatprep.mubr.f32.mxu0 %v7582_v44  ;;  %2763 = vmatpush1.msra.mxu1 %v1360_v37  ;;  %v1280_v37 = vld [vmem:[%s14129_s2 + $0x8e0] sm:$0xff] }
 0x375   : > { %2822 = vmatprep.mubr.f32.mxu1 %v7584_v55  ;;  %2687 = vmatprep.subr.mxu0 %v1097_v24  ;;  %v1017_v24 = vld [vmem:[%s14129_s2 + $0xa8] sm:$0xff] }
 0x376   : > { %2764 = vmatprep.subr.mxu1 %v1353_v62  ;;  %2688 = vmatpush1.msra.mxu0 %v1096_v63  ;;  %v1273_v62 = vld [vmem:[%s14129_s2 + $0x8a8] sm:$0xff]  ;;  %v1016_v63 = vld [vmem:[%s14129_s2 + $0xa0] sm:$0xff] }
 0x377   : > { %2765 = vmatpush1.msra.mxu1 %v1352_v2  ;;  %2689 = vmatprep.subr.mxu0 %v1089_v54  ;;  %v1272_v2 = vld [vmem:[%s14129_s2 + $0x8a0] sm:$0xff]  ;;  %v1009_v54 = vld [vmem:[%s14129_s2 + $0x68] sm:$0xff] }
 0x378   : > { %2766 = vmatprep.subr.mxu1 %v1345_v4  ;;  %2690 = vmatpush1.msra.mxu0 %v1088_v19  ;;  %v1265_v4 = vld [vmem:[%s14129_s2 + $0x868] sm:$0xff]  ;;  %v1008_v19 = vld [vmem:[%s14129_s2 + $0x60] sm:$0xff] }
 0x379   : > { %2767 = vmatpush1.msra.mxu1 %v1344_v56  ;;  %2691 = vmatprep.subr.mxu0 %v1081_v27  ;;  %v1264_v56 = vld [vmem:[%s14129_s2 + $0x860] sm:$0xff]  ;;  %v1001_v27 = vld [vmem:[%s14129_s2 + $0x28] sm:$0xff] }
 0x37a   : > { %2768 = vmatprep.subr.mxu1 %v1337_v49  ;;  %2692 = vmatpush1.msra.mxu0 %v1080_v6  ;;  %v1257_v49 = vld [vmem:[%s14129_s2 + $0x828] sm:$0xff]  ;;  %v1000_v6 = vld [vmem:[%s14129_s2 + $0x20] sm:$0xff] }
 0x37b   : > { %2769 = vmatpush1.msra.mxu1 %v1336_v36  ;;  %2693 = vmatprep.subr.mxu0 %v1073_v21  ;;  %v1256_v36 = vld [vmem:[%s14129_s2 + $0x820] sm:$0xff]  ;;  %v1249_v21 = vld [vmem:[%s14129_s2 + $0x7e8] sm:$0xff] }
 0x37c   : > { %2770 = vmatprep.subr.mxu1 %v1329_v58  ;;  %2694 = vmatpush1.msra.mxu0 %v1072_v23  ;;  %v1505_v58 = vld [vmem:[%s14129_s2 + $0xfe8] sm:$0xff]  ;;  %v1248_v23 = vld [vmem:[%s14129_s2 + $0x7e0] sm:$0xff] }
 0x37d   : > { %2771 = vmatpush1.msra.mxu1 %v1328_v46  ;;  %2695 = vmatprep.subr.mxu0 %v1065_v20  ;;  %v1504_v46 = vld [vmem:[%s14129_s2 + $0xfe0] sm:$0xff]  ;;  %v1241_v20 = vld [vmem:[%s14129_s2 + $0x7a8] sm:$0xff] }
 0x37e   : > { %2772 = vmatprep.subr.mxu1 %v1321_v38  ;;  %2696 = vmatpush1.msra.mxu0 %v1064_v61  ;;  %v1497_v38 = vld [vmem:[%s14129_s2 + $0xfa8] sm:$0xff]  ;;  %v1240_v61 = vld [vmem:[%s14129_s2 + $0x7a0] sm:$0xff] }
 0x37f   : > { %2773 = vmatpush1.msra.mxu1 %v1320_v35  ;;  %2697 = vmatprep.subr.mxu0 %v1057_v57  ;;  %v1496_v35 = vld [vmem:[%s14129_s2 + $0xfa0] sm:$0xff]  ;;  %v1233_v57 = vld [vmem:[%s14129_s2 + $0x768] sm:$0xff] }
 0x380   : > { %2774 = vmatprep.subr.mxu1 %v1313_v40  ;;  %2698 = vmatpush1.msra.mxu0 %v1056_v34  ;;  %v1489_v40 = vld [vmem:[%s14129_s2 + $0xf68] sm:$0xff]  ;;  %v1232_v34 = vld [vmem:[%s14129_s2 + $0x760] sm:$0xff] }
 0x381   : > { %2775 = vmatpush1.msra.mxu1 %v1312_v25  ;;  %2699 = vmatprep.subr.mxu0 %v1049_v41  ;;  %v1488_v25 = vld [vmem:[%s14129_s2 + $0xf60] sm:$0xff]  ;;  %v1225_v41 = vld [vmem:[%s14129_s2 + $0x728] sm:$0xff] }
 0x382   : > { %2776 = vmatprep.subr.mxu1 %v1305_v0  ;;  %2700 = vmatpush1.msra.mxu0 %v1048_v52  ;;  %v1481_v0 = vld [vmem:[%s14129_s2 + $0xf28] sm:$0xff]  ;;  %v1224_v52 = vld [vmem:[%s14129_s2 + $0x720] sm:$0xff] }
 0x383   : > { %2777 = vmatpush1.msra.mxu1 %v1304_v22  ;;  %2701 = vmatprep.subr.mxu0 %v1041_v43  ;;  %v1480_v22 = vld [vmem:[%s14129_s2 + $0xf20] sm:$0xff]  ;;  %v1217_v43 = vld [vmem:[%s14129_s2 + $0x6e8] sm:$0xff] }
 0x384   : > { %2778 = vmatprep.subr.mxu1 %v1297_v47  ;;  %2702 = vmatpush1.msra.mxu0 %v1040_v15  ;;  %v1473_v47 = vld [vmem:[%s14129_s2 + $0xee8] sm:$0xff]  ;;  %v1216_v15 = vld [vmem:[%s14129_s2 + $0x6e0] sm:$0xff] }
 0x385   : > { %2779 = vmatpush1.msra.mxu1 %v1296_v48  ;;  %2703 = vmatprep.subr.mxu0 %v1033_v50  ;;  %v1472_v48 = vld [vmem:[%s14129_s2 + $0xee0] sm:$0xff]  ;;  %v1209_v50 = vld [vmem:[%s14129_s2 + $0x6a8] sm:$0xff] }
 0x386   : > { %2780 = vmatprep.subr.mxu1 %v1289_v1  ;;  %2704 = vmatpush1.msra.mxu0 %v1032_v18  ;;  %v1465_v1 = vld [vmem:[%s14129_s2 + $0xea8] sm:$0xff]  ;;  %v1208_v18 = vld [vmem:[%s14129_s2 + $0x6a0] sm:$0xff] }
 0x387   : > { %2781 = vmatpush1.msra.mxu1 %v1288_v33  ;;  %2705 = vmatprep.subr.mxu0 %v1025_v51  ;;  %v1464_v33 = vld [vmem:[%s14129_s2 + $0xea0] sm:$0xff]  ;;  %v1201_v51 = vld [vmem:[%s14129_s2 + $0x668] sm:$0xff] }
 0x388   : > { %2782 = vmatprep.subr.mxu1 %v1281_v17  ;;  %2706 = vmatpush1.msra.mxu0 %v1024_v59  ;;  %v1457_v17 = vld [vmem:[%s14129_s2 + $0xe68] sm:$0xff]  ;;  %v1200_v59 = vld [vmem:[%s14129_s2 + $0x660] sm:$0xff] }
 0x389   : > { %2783 = vmatpush1.msra.mxu1 %v1280_v37  ;;  %2707 = vmatprep.subr.mxu0 %v1017_v24  ;;  %v1456_v37 = vld [vmem:[%s14129_s2 + $0xe60] sm:$0xff]  ;;  %v1193_v24 = vld [vmem:[%s14129_s2 + $0x628] sm:$0xff] }
 0x38a   : > { %2784 = vmatprep.subr.mxu1 %v1273_v62  ;;  %2708 = vmatpush1.msra.mxu0 %v1016_v63  ;;  %v1449_v62 = vld [vmem:[%s14129_s2 + $0xe28] sm:$0xff]  ;;  %v1192_v63 = vld [vmem:[%s14129_s2 + $0x620] sm:$0xff] }
 0x38b   : > { %2785 = vmatpush1.msra.mxu1 %v1272_v2  ;;  %2709 = vmatprep.subr.mxu0 %v1009_v54  ;;  %v1448_v2 = vld [vmem:[%s14129_s2 + $0xe20] sm:$0xff]  ;;  %v1185_v54 = vld [vmem:[%s14129_s2 + $0x5e8] sm:$0xff] }
 0x38c   : > { %2786 = vmatprep.subr.mxu1 %v1265_v4  ;;  %2710 = vmatpush1.msra.mxu0 %v1008_v19  ;;  %v1441_v4 = vld [vmem:[%s14129_s2 + $0xde8] sm:$0xff]  ;;  %v1184_v19 = vld [vmem:[%s14129_s2 + $0x5e0] sm:$0xff] }
 0x38d   : > { %2787 = vmatpush1.msra.mxu1 %v1264_v56  ;;  %2711 = vmatprep.subr.mxu0 %v1001_v27  ;;  %v1440_v56 = vld [vmem:[%s14129_s2 + $0xde0] sm:$0xff]  ;;  %v1177_v27 = vld [vmem:[%s14129_s2 + $0x5a8] sm:$0xff] }
 0x38e   : > { %2788 = vmatprep.subr.mxu1 %v1257_v49  ;;  %2712 = vmatpush1.msra.mxu0 %v1000_v6  ;;  %v1433_v49 = vld [vmem:[%s14129_s2 + $0xda8] sm:$0xff]  ;;  %v1176_v6 = vld [vmem:[%s14129_s2 + $0x5a0] sm:$0xff] }
 0x38f   : > { %2789 = vmatpush1.msra.mxu1 %v1256_v36  ;;  %2713 = vmatprep.subr.mxu0 %v1249_v21  ;;  %v1432_v36 = vld [vmem:[%s14129_s2 + $0xda0] sm:$0xff]  ;;  %v1169_v21 = vld [vmem:[%s14129_s2 + $0x568] sm:$0xff] }
 0x390   : > { %2790 = vmatprep.subr.mxu1 %v1505_v58  ;;  %2714 = vmatpush2.msra.mxu0 %v1248_v23  ;;  %v1425_v58 = vld [vmem:[%s14129_s2 + $0xd68] sm:$0xff]  ;;  %v1168_v23 = vld [vmem:[%s14129_s2 + $0x560] sm:$0xff] }
 0x391   : > { %2791 = vmatpush2.msra.mxu1 %v1504_v46  ;;  %2715 = vmatprep.subr.mxu0 %v1241_v20  ;;  %v1424_v46 = vld [vmem:[%s14129_s2 + $0xd60] sm:$0xff]  ;;  %v1161_v20 = vld [vmem:[%s14129_s2 + $0x528] sm:$0xff] }
 0x392   : > { %2792 = vmatprep.subr.mxu1 %v1497_v38  ;;  %2716 = vmatpush2.msra.mxu0 %v1240_v61  ;;  %v1417_v38 = vld [vmem:[%s14129_s2 + $0xd28] sm:$0xff]  ;;  %v1160_v61 = vld [vmem:[%s14129_s2 + $0x520] sm:$0xff] }
 0x393   : > { %2793 = vmatpush2.msra.mxu1 %v1496_v35  ;;  %2717 = vmatprep.subr.mxu0 %v1233_v57  ;;  %v1416_v35 = vld [vmem:[%s14129_s2 + $0xd20] sm:$0xff]  ;;  %v1153_v57 = vld [vmem:[%s14129_s2 + $0x4e8] sm:$0xff] }
 0x394   : > { %2794 = vmatprep.subr.mxu1 %v1489_v40  ;;  %2718 = vmatpush2.msra.mxu0 %v1232_v34  ;;  %v1409_v40 = vld [vmem:[%s14129_s2 + $0xce8] sm:$0xff]  ;;  %v1152_v34 = vld [vmem:[%s14129_s2 + $0x4e0] sm:$0xff] }
 0x395   : > { %2795 = vmatpush2.msra.mxu1 %v1488_v25  ;;  %2719 = vmatprep.subr.mxu0 %v1225_v41  ;;  %v1408_v25 = vld [vmem:[%s14129_s2 + $0xce0] sm:$0xff]  ;;  %v1145_v41 = vld [vmem:[%s14129_s2 + $0x4a8] sm:$0xff] }
 0x396   : > { %2796 = vmatprep.subr.mxu1 %v1481_v0  ;;  %2720 = vmatpush2.msra.mxu0 %v1224_v52  ;;  %v1401_v0 = vld [vmem:[%s14129_s2 + $0xca8] sm:$0xff]  ;;  %v1144_v52 = vld [vmem:[%s14129_s2 + $0x4a0] sm:$0xff] }
 0x397   : > { %2797 = vmatpush2.msra.mxu1 %v1480_v22  ;;  %2721 = vmatprep.subr.mxu0 %v1217_v43  ;;  %v1400_v22 = vld [vmem:[%s14129_s2 + $0xca0] sm:$0xff]  ;;  %v1137_v43 = vld [vmem:[%s14129_s2 + $0x468] sm:$0xff] }
 0x398   : > { %2798 = vmatprep.subr.mxu1 %v1473_v47  ;;  %2722 = vmatpush2.msra.mxu0 %v1216_v15  ;;  %v1393_v47 = vld [vmem:[%s14129_s2 + $0xc68] sm:$0xff]  ;;  %v1136_v15 = vld [vmem:[%s14129_s2 + $0x460] sm:$0xff] }
 0x399   : > { %2799 = vmatpush2.msra.mxu1 %v1472_v48  ;;  %2723 = vmatprep.subr.mxu0 %v1209_v50  ;;  %v1392_v48 = vld [vmem:[%s14129_s2 + $0xc60] sm:$0xff]  ;;  %v1129_v50 = vld [vmem:[%s14129_s2 + $0x428] sm:$0xff] }
 0x39a   : > { %2800 = vmatprep.subr.mxu1 %v1465_v1  ;;  %2724 = vmatpush2.msra.mxu0 %v1208_v18  ;;  %v1385_v1 = vld [vmem:[%s14129_s2 + $0xc28] sm:$0xff]  ;;  %v1128_v18 = vld [vmem:[%s14129_s2 + $0x420] sm:$0xff] }
 0x39b   : > { %2801 = vmatpush2.msra.mxu1 %v1464_v33  ;;  %2725 = vmatprep.subr.mxu0 %v1201_v51  ;;  %v1384_v33 = vld [vmem:[%s14129_s2 + $0xc20] sm:$0xff]  ;;  %v1633_v51 = vld [vmem:[%s14129_s2 + $0x13e8] sm:$0xff] }
 0x39c   : > { %2802 = vmatprep.subr.mxu1 %v1457_v17  ;;  %2726 = vmatpush2.msra.mxu0 %v1200_v59  ;;  %v1889_v17 = vld [vmem:[%s14129_s2 + $0x1be8] sm:$0xff]  ;;  %v1632_v59 = vld [vmem:[%s14129_s2 + $0x13e0] sm:$0xff] }
 0x39d   : > { %2803 = vmatpush2.msra.mxu1 %v1456_v37  ;;  %2727 = vmatprep.subr.mxu0 %v1193_v24  ;;  %v1888_v37 = vld [vmem:[%s14129_s2 + $0x1be0] sm:$0xff]  ;;  %v1625_v24 = vld [vmem:[%s14129_s2 + $0x13a8] sm:$0xff] }
 0x39e   : > { %2804 = vmatprep.subr.mxu1 %v1449_v62  ;;  %2728 = vmatpush2.msra.mxu0 %v1192_v63  ;;  %v1881_v62 = vld [vmem:[%s14129_s2 + $0x1ba8] sm:$0xff]  ;;  %v1624_v63 = vld [vmem:[%s14129_s2 + $0x13a0] sm:$0xff] }
 0x39f   : > { %2805 = vmatpush2.msra.mxu1 %v1448_v2  ;;  %2729 = vmatprep.subr.mxu0 %v1185_v54  ;;  %v1880_v2 = vld [vmem:[%s14129_s2 + $0x1ba0] sm:$0xff]  ;;  %v1617_v54 = vld [vmem:[%s14129_s2 + $0x1368] sm:$0xff] }
 0x3a0   : > { %2806 = vmatprep.subr.mxu1 %v1441_v4  ;;  %2730 = vmatpush2.msra.mxu0 %v1184_v19  ;;  %v1873_v4 = vld [vmem:[%s14129_s2 + $0x1b68] sm:$0xff]  ;;  %v1616_v19 = vld [vmem:[%s14129_s2 + $0x1360] sm:$0xff] }
 0x3a1   : > { %2807 = vmatpush2.msra.mxu1 %v1440_v56  ;;  %2731 = vmatprep.subr.mxu0 %v1177_v27  ;;  %v1872_v56 = vld [vmem:[%s14129_s2 + $0x1b60] sm:$0xff]  ;;  %v1609_v27 = vld [vmem:[%s14129_s2 + $0x1328] sm:$0xff] }
 0x3a2   : > { %2808 = vmatprep.subr.mxu1 %v1433_v49  ;;  %2732 = vmatpush2.msra.mxu0 %v1176_v6  ;;  %v1865_v49 = vld [vmem:[%s14129_s2 + $0x1b28] sm:$0xff]  ;;  %v1608_v6 = vld [vmem:[%s14129_s2 + $0x1320] sm:$0xff] }
 0x3a3   : > { %2809 = vmatpush2.msra.mxu1 %v1432_v36  ;;  %2733 = vmatprep.subr.mxu0 %v1169_v21  ;;  %v1864_v36 = vld [vmem:[%s14129_s2 + $0x1b20] sm:$0xff]  ;;  %v1601_v21 = vld [vmem:[%s14129_s2 + $0x12e8] sm:$0xff] }
 0x3a4   : > { %2810 = vmatprep.subr.mxu1 %v1425_v58  ;;  %2734 = vmatpush2.msra.mxu0 %v1168_v23  ;;  %v1857_v58 = vld [vmem:[%s14129_s2 + $0x1ae8] sm:$0xff]  ;;  %v1600_v23 = vld [vmem:[%s14129_s2 + $0x12e0] sm:$0xff] }
 0x3a5   : > { %2811 = vmatpush2.msra.mxu1 %v1424_v46  ;;  %2735 = vmatprep.subr.mxu0 %v1161_v20  ;;  %v1856_v46 = vld [vmem:[%s14129_s2 + $0x1ae0] sm:$0xff]  ;;  %v1593_v20 = vld [vmem:[%s14129_s2 + $0x12a8] sm:$0xff] }
 0x3a6   : > { %2812 = vmatprep.subr.mxu1 %v1417_v38  ;;  %2736 = vmatpush2.msra.mxu0 %v1160_v61  ;;  %v1849_v38 = vld [vmem:[%s14129_s2 + $0x1aa8] sm:$0xff]  ;;  %v1592_v61 = vld [vmem:[%s14129_s2 + $0x12a0] sm:$0xff] }
 0x3a7   : > { %2813 = vmatpush2.msra.mxu1 %v1416_v35  ;;  %2737 = vmatprep.subr.mxu0 %v1153_v57  ;;  %v1848_v35 = vld [vmem:[%s14129_s2 + $0x1aa0] sm:$0xff]  ;;  %v1585_v57 = vld [vmem:[%s14129_s2 + $0x1268] sm:$0xff] }
 0x3a8   : > { %2814 = vmatprep.subr.mxu1 %v1409_v40  ;;  %2738 = vmatpush2.msra.mxu0 %v1152_v34  ;;  %v1841_v40 = vld [vmem:[%s14129_s2 + $0x1a68] sm:$0xff]  ;;  %v1584_v34 = vld [vmem:[%s14129_s2 + $0x1260] sm:$0xff] }
 0x3a9   : > { %2815 = vmatpush2.msra.mxu1 %v1408_v25  ;;  %2739 = vmatprep.subr.mxu0 %v1145_v41  ;;  %v1840_v25 = vld [vmem:[%s14129_s2 + $0x1a60] sm:$0xff]  ;;  %v1577_v41 = vld [vmem:[%s14129_s2 + $0x1228] sm:$0xff] }
 0x3aa   : > { %2816 = vmatprep.subr.mxu1 %v1401_v0  ;;  %2740 = vmatpush2.msra.mxu0 %v1144_v52  ;;  %v1833_v0 = vld [vmem:[%s14129_s2 + $0x1a28] sm:$0xff]  ;;  %v1576_v52 = vld [vmem:[%s14129_s2 + $0x1220] sm:$0xff] }
 0x3ab   : > { %2817 = vmatpush2.msra.mxu1 %v1400_v22  ;;  %2741 = vmatprep.subr.mxu0 %v1137_v43  ;;  %v1832_v22 = vld [vmem:[%s14129_s2 + $0x1a20] sm:$0xff]  ;;  %v1569_v43 = vld [vmem:[%s14129_s2 + $0x11e8] sm:$0xff] }
 0x3ac   : > { %2818 = vmatprep.subr.mxu1 %v1393_v47  ;;  %2742 = vmatpush2.msra.mxu0 %v1136_v15  ;;  %v1825_v47 = vld [vmem:[%s14129_s2 + $0x19e8] sm:$0xff]  ;;  %v1568_v15 = vld [vmem:[%s14129_s2 + $0x11e0] sm:$0xff] }
 0x3ad   : > { %2819 = vmatpush2.msra.mxu1 %v1392_v48  ;;  %2743 = vmatprep.subr.mxu0 %v1129_v50  ;;  %v1824_v48 = vld [vmem:[%s14129_s2 + $0x19e0] sm:$0xff]  ;;  %v1561_v50 = vld [vmem:[%s14129_s2 + $0x11a8] sm:$0xff] }
 0x3ae   : > { %2820 = vmatprep.subr.mxu1 %v1385_v1  ;;  %2744 = vmatpush2.msra.mxu0 %v1128_v18  ;;  %v1817_v1 = vld [vmem:[%s14129_s2 + $0x19a8] sm:$0xff]  ;;  %v1560_v18 = vld [vmem:[%s14129_s2 + $0x11a0] sm:$0xff] }
 0x3af   : > { %2821 = vmatpush2.msra.mxu1 %v1384_v33  ;;  %2746 = vmatmul.mubr.f32.vlgmr.msra.gmra.mxu0 %v7587_v29  ;;  %v1816_v33 = vld [vmem:[%s14129_s2 + $0x19a0] sm:$0xff] }
 0x3b0   : > { %2823 = vmatmul.mubr.f32.vlgmr.msra.gmra.mxu1 %v7593_v53  ;;  %2835 = vmatprep.subr.mxu0 %v1633_v51  ;;  %v1553_v51 = vld [vmem:[%s14129_s2 + $0x1168] sm:$0xff] }
 0x3b1   : > { %2912 = vmatprep.subr.mxu1 %v1889_v17  ;;  %2751 = vmatprep.mubr.f32.mxu0 %v7600_v3  ;;  %v1809_v17 = vld [vmem:[%s14129_s2 + $0x1968] sm:$0xff] }
 0x3b2   : > { %2828 = vmatprep.mubr.f32.mxu1 %v7606_v8  ;;  %2836 = vmatpush1.msra.mxu0 %v1632_v59  ;;  %v1552_v59 = vld [vmem:[%s14129_s2 + $0x1160] sm:$0xff] }
 0x3b3   : > { %2913 = vmatpush1.msra.mxu1 %v1888_v37  ;;  %2837 = vmatprep.subr.mxu0 %v1625_v24  ;;  %v1808_v37 = vld [vmem:[%s14129_s2 + $0x1960] sm:$0xff]  ;;  %v1545_v24 = vld [vmem:[%s14129_s2 + $0x1128] sm:$0xff] }
 0x3b4   : > { %2914 = vmatprep.subr.mxu1 %v1881_v62  ;;  %2838 = vmatpush1.msra.mxu0 %v1624_v63  ;;  %v1801_v62 = vld [vmem:[%s14129_s2 + $0x1928] sm:$0xff]  ;;  %v1544_v63 = vld [vmem:[%s14129_s2 + $0x1120] sm:$0xff] }
 0x3b5   : > { %2915 = vmatpush1.msra.mxu1 %v1880_v2  ;;  %2752 = vmatmul.mubr.f32.gmra.mxu0 %v7627_v28  ;;  %v1800_v2 = vld [vmem:[%s14129_s2 + $0x1920] sm:$0xff] }
 0x3b6   : > { %2829 = vmatmul.mubr.f32.gmra.mxu1 %v7632_v45  ;;  %2839 = vmatprep.subr.mxu0 %v1617_v54  ;;  %v1537_v54 = vld [vmem:[%s14129_s2 + $0x10e8] sm:$0xff] }
 0x3b7   : > { %2916 = vmatprep.subr.mxu1 %v1873_v4  ;;  %2840 = vmatpush1.msra.mxu0 %v1616_v19  ;;  %v1793_v4 = vld [vmem:[%s14129_s2 + $0x18e8] sm:$0xff]  ;;  %v1536_v19 = vld [vmem:[%s14129_s2 + $0x10e0] sm:$0xff] }
 0x3b8   : > { %2899 = vmatprep.mubr.f32.mxu0 %v7647_v42  ;;  %2917 = vmatpush1.msra.mxu1 %v1872_v56  ;;  %v1792_v56 = vld [vmem:[%s14129_s2 + $0x18e0] sm:$0xff] }
 0x3b9   : > { %2976 = vmatprep.mubr.f32.mxu1 %v7652_v10  ;;  %2841 = vmatprep.subr.mxu0 %v1609_v27  ;;  %v1529_v27 = vld [vmem:[%s14129_s2 + $0x10a8] sm:$0xff] }
 0x3ba   : > { %2918 = vmatprep.subr.mxu1 %v1865_v49  ;;  %2842 = vmatpush1.msra.mxu0 %v1608_v6  ;;  %v1785_v49 = vld [vmem:[%s14129_s2 + $0x18a8] sm:$0xff]  ;;  %v1528_v6 = vld [vmem:[%s14129_s2 + $0x10a0] sm:$0xff] }
 0x3bb   : > { %2919 = vmatpush1.msra.mxu1 %v1864_v36  ;;  %2843 = vmatprep.subr.mxu0 %v1601_v21  ;;  %v1784_v36 = vld [vmem:[%s14129_s2 + $0x18a0] sm:$0xff]  ;;  %v1521_v21 = vld [vmem:[%s14129_s2 + $0x1068] sm:$0xff] }
 0x3bc   : > { %2920 = vmatprep.subr.mxu1 %v1857_v58  ;;  %2844 = vmatpush1.msra.mxu0 %v1600_v23  ;;  %v1777_v58 = vld [vmem:[%s14129_s2 + $0x1868] sm:$0xff]  ;;  %v1520_v23 = vld [vmem:[%s14129_s2 + $0x1060] sm:$0xff] }
 0x3bd   : > { %2921 = vmatpush1.msra.mxu1 %v1856_v46  ;;  %2845 = vmatprep.subr.mxu0 %v1593_v20  ;;  %v1776_v46 = vld [vmem:[%s14129_s2 + $0x1860] sm:$0xff]  ;;  %v1513_v20 = vld [vmem:[%s14129_s2 + $0x1028] sm:$0xff] }
 0x3be   : > { %2922 = vmatprep.subr.mxu1 %v1849_v38  ;;  %2846 = vmatpush1.msra.mxu0 %v1592_v61  ;;  %v1769_v38 = vld [vmem:[%s14129_s2 + $0x1828] sm:$0xff]  ;;  %v1512_v61 = vld [vmem:[%s14129_s2 + $0x1020] sm:$0xff] }
 0x3bf   : > { %2923 = vmatpush1.msra.mxu1 %v1848_v35  ;;  %2847 = vmatprep.subr.mxu0 %v1585_v57  ;;  %v1768_v35 = vld [vmem:[%s14129_s2 + $0x1820] sm:$0xff]  ;;  %v1761_v57 = vld [vmem:[%s14129_s2 + $0x17e8] sm:$0xff] }
 0x3c0   : > { %2924 = vmatprep.subr.mxu1 %v1841_v40  ;;  %2848 = vmatpush1.msra.mxu0 %v1584_v34  ;;  %v2017_v40 = vld [vmem:[%s14129_s2 + $0x1fe8] sm:$0xff]  ;;  %v1760_v34 = vld [vmem:[%s14129_s2 + $0x17e0] sm:$0xff] }
 0x3c1   : > { %2925 = vmatpush1.msra.mxu1 %v1840_v25  ;;  %2849 = vmatprep.subr.mxu0 %v1577_v41  ;;  %v2016_v25 = vld [vmem:[%s14129_s2 + $0x1fe0] sm:$0xff]  ;;  %v1753_v41 = vld [vmem:[%s14129_s2 + $0x17a8] sm:$0xff] }
 0x3c2   : > { %2926 = vmatprep.subr.mxu1 %v1833_v0  ;;  %2850 = vmatpush1.msra.mxu0 %v1576_v52  ;;  %v2009_v0 = vld [vmem:[%s14129_s2 + $0x1fa8] sm:$0xff]  ;;  %v1752_v52 = vld [vmem:[%s14129_s2 + $0x17a0] sm:$0xff] }
 0x3c3   : > { %2927 = vmatpush1.msra.mxu1 %v1832_v22  ;;  %2851 = vmatprep.subr.mxu0 %v1569_v43  ;;  %v2008_v22 = vld [vmem:[%s14129_s2 + $0x1fa0] sm:$0xff]  ;;  %v1745_v43 = vld [vmem:[%s14129_s2 + $0x1768] sm:$0xff] }
 0x3c4   : > { %2928 = vmatprep.subr.mxu1 %v1825_v47  ;;  %2852 = vmatpush1.msra.mxu0 %v1568_v15  ;;  %v2001_v47 = vld [vmem:[%s14129_s2 + $0x1f68] sm:$0xff]  ;;  %v1744_v15 = vld [vmem:[%s14129_s2 + $0x1760] sm:$0xff] }
 0x3c5   : > { %2929 = vmatpush1.msra.mxu1 %v1824_v48  ;;  %2853 = vmatprep.subr.mxu0 %v1561_v50  ;;  %v2000_v48 = vld [vmem:[%s14129_s2 + $0x1f60] sm:$0xff]  ;;  %v1737_v50 = vld [vmem:[%s14129_s2 + $0x1728] sm:$0xff] }
 0x3c6   : > { %2930 = vmatprep.subr.mxu1 %v1817_v1  ;;  %2854 = vmatpush1.msra.mxu0 %v1560_v18  ;;  %v1993_v1 = vld [vmem:[%s14129_s2 + $0x1f28] sm:$0xff]  ;;  %v1736_v18 = vld [vmem:[%s14129_s2 + $0x1720] sm:$0xff] }
 0x3c7   : > { %2931 = vmatpush1.msra.mxu1 %v1816_v33  ;;  %2855 = vmatprep.subr.mxu0 %v1553_v51  ;;  %v1992_v33 = vld [vmem:[%s14129_s2 + $0x1f20] sm:$0xff]  ;;  %v1729_v51 = vld [vmem:[%s14129_s2 + $0x16e8] sm:$0xff] }
 0x3c8   : > { %2932 = vmatprep.subr.mxu1 %v1809_v17  ;;  %2856 = vmatpush1.msra.mxu0 %v1552_v59  ;;  %v1985_v17 = vld [vmem:[%s14129_s2 + $0x1ee8] sm:$0xff]  ;;  %v1728_v59 = vld [vmem:[%s14129_s2 + $0x16e0] sm:$0xff] }
 0x3c9   : > { %2933 = vmatpush1.msra.mxu1 %v1808_v37  ;;  %2857 = vmatprep.subr.mxu0 %v1545_v24  ;;  %v1984_v37 = vld [vmem:[%s14129_s2 + $0x1ee0] sm:$0xff]  ;;  %v1721_v24 = vld [vmem:[%s14129_s2 + $0x16a8] sm:$0xff] }
 0x3ca   : > { %2934 = vmatprep.subr.mxu1 %v1801_v62  ;;  %2858 = vmatpush1.msra.mxu0 %v1544_v63  ;;  %v1977_v62 = vld [vmem:[%s14129_s2 + $0x1ea8] sm:$0xff]  ;;  %v1720_v63 = vld [vmem:[%s14129_s2 + $0x16a0] sm:$0xff] }
 0x3cb   : > { %2935 = vmatpush1.msra.mxu1 %v1800_v2  ;;  %2859 = vmatprep.subr.mxu0 %v1537_v54  ;;  %v1976_v2 = vld [vmem:[%s14129_s2 + $0x1ea0] sm:$0xff]  ;;  %v1713_v54 = vld [vmem:[%s14129_s2 + $0x1668] sm:$0xff] }
 0x3cc   : > { %2936 = vmatprep.subr.mxu1 %v1793_v4  ;;  %2860 = vmatpush1.msra.mxu0 %v1536_v19  ;;  %v1969_v4 = vld [vmem:[%s14129_s2 + $0x1e68] sm:$0xff]  ;;  %v1712_v19 = vld [vmem:[%s14129_s2 + $0x1660] sm:$0xff] }
 0x3cd   : > { %2937 = vmatpush1.msra.mxu1 %v1792_v56  ;;  %2861 = vmatprep.subr.mxu0 %v1529_v27  ;;  %v1968_v56 = vld [vmem:[%s14129_s2 + $0x1e60] sm:$0xff]  ;;  %v1705_v27 = vld [vmem:[%s14129_s2 + $0x1628] sm:$0xff] }
 0x3ce   : > { %2938 = vmatprep.subr.mxu1 %v1785_v49  ;;  %2862 = vmatpush1.msra.mxu0 %v1528_v6  ;;  %v1961_v49 = vld [vmem:[%s14129_s2 + $0x1e28] sm:$0xff]  ;;  %v1704_v6 = vld [vmem:[%s14129_s2 + $0x1620] sm:$0xff] }
 0x3cf   : > { %2939 = vmatpush1.msra.mxu1 %v1784_v36  ;;  %2863 = vmatprep.subr.mxu0 %v1521_v21  ;;  %v1960_v36 = vld [vmem:[%s14129_s2 + $0x1e20] sm:$0xff]  ;;  %v1697_v21 = vld [vmem:[%s14129_s2 + $0x15e8] sm:$0xff] }
 0x3d0   : > { %2940 = vmatprep.subr.mxu1 %v1777_v58  ;;  %2864 = vmatpush1.msra.mxu0 %v1520_v23  ;;  %v1953_v58 = vld [vmem:[%s14129_s2 + $0x1de8] sm:$0xff]  ;;  %v1696_v23 = vld [vmem:[%s14129_s2 + $0x15e0] sm:$0xff] }
 0x3d1   : > { %2941 = vmatpush1.msra.mxu1 %v1776_v46  ;;  %2865 = vmatprep.subr.mxu0 %v1513_v20  ;;  %v1952_v46 = vld [vmem:[%s14129_s2 + $0x1de0] sm:$0xff]  ;;  %v1689_v20 = vld [vmem:[%s14129_s2 + $0x15a8] sm:$0xff] }
 0x3d2   : > { %2942 = vmatprep.subr.mxu1 %v1769_v38  ;;  %2866 = vmatpush1.msra.mxu0 %v1512_v61  ;;  %v1945_v38 = vld [vmem:[%s14129_s2 + $0x1da8] sm:$0xff]  ;;  %v1688_v61 = vld [vmem:[%s14129_s2 + $0x15a0] sm:$0xff] }
 0x3d3   : > { %2943 = vmatpush1.msra.mxu1 %v1768_v35  ;;  %2867 = vmatprep.subr.mxu0 %v1761_v57  ;;  %v1944_v35 = vld [vmem:[%s14129_s2 + $0x1da0] sm:$0xff]  ;;  %v1681_v57 = vld [vmem:[%s14129_s2 + $0x1568] sm:$0xff] }
 0x3d4   : > { %2944 = vmatprep.subr.mxu1 %v2017_v40  ;;  %2868 = vmatpush2.msra.mxu0 %v1760_v34  ;;  %v1937_v40 = vld [vmem:[%s14129_s2 + $0x1d68] sm:$0xff]  ;;  %v1680_v34 = vld [vmem:[%s14129_s2 + $0x1560] sm:$0xff] }
 0x3d5   : > { %2945 = vmatpush2.msra.mxu1 %v2016_v25  ;;  %2869 = vmatprep.subr.mxu0 %v1753_v41  ;;  %v1936_v25 = vld [vmem:[%s14129_s2 + $0x1d60] sm:$0xff]  ;;  %v1673_v41 = vld [vmem:[%s14129_s2 + $0x1528] sm:$0xff] }
 0x3d6   : > { %2946 = vmatprep.subr.mxu1 %v2009_v0  ;;  %2870 = vmatpush2.msra.mxu0 %v1752_v52  ;;  %v1929_v0 = vld [vmem:[%s14129_s2 + $0x1d28] sm:$0xff]  ;;  %v1672_v52 = vld [vmem:[%s14129_s2 + $0x1520] sm:$0xff] }
 0x3d7   : > { %2947 = vmatpush2.msra.mxu1 %v2008_v22  ;;  %2871 = vmatprep.subr.mxu0 %v1745_v43  ;;  %v1928_v22 = vld [vmem:[%s14129_s2 + $0x1d20] sm:$0xff]  ;;  %v1665_v43 = vld [vmem:[%s14129_s2 + $0x14e8] sm:$0xff] }
 0x3d8   : > { %2948 = vmatprep.subr.mxu1 %v2001_v47  ;;  %2872 = vmatpush2.msra.mxu0 %v1744_v15  ;;  %v1921_v47 = vld [vmem:[%s14129_s2 + $0x1ce8] sm:$0xff]  ;;  %v1664_v15 = vld [vmem:[%s14129_s2 + $0x14e0] sm:$0xff] }
 0x3d9   : > { %2949 = vmatpush2.msra.mxu1 %v2000_v48  ;;  %2873 = vmatprep.subr.mxu0 %v1737_v50  ;;  %v1920_v48 = vld [vmem:[%s14129_s2 + $0x1ce0] sm:$0xff]  ;;  %v1657_v50 = vld [vmem:[%s14129_s2 + $0x14a8] sm:$0xff] }
 0x3da   : > { %2950 = vmatprep.subr.mxu1 %v1993_v1  ;;  %2874 = vmatpush2.msra.mxu0 %v1736_v18  ;;  %v1913_v1 = vld [vmem:[%s14129_s2 + $0x1ca8] sm:$0xff]  ;;  %v1656_v18 = vld [vmem:[%s14129_s2 + $0x14a0] sm:$0xff] }
 0x3db   : > { %2951 = vmatpush2.msra.mxu1 %v1992_v33  ;;  %2875 = vmatprep.subr.mxu0 %v1729_v51  ;;  %v1912_v33 = vld [vmem:[%s14129_s2 + $0x1ca0] sm:$0xff]  ;;  %v1649_v51 = vld [vmem:[%s14129_s2 + $0x1468] sm:$0xff] }
 0x3dc   : > { %2952 = vmatprep.subr.mxu1 %v1985_v17  ;;  %2876 = vmatpush2.msra.mxu0 %v1728_v59  ;;  %v1905_v17 = vld [vmem:[%s14129_s2 + $0x1c68] sm:$0xff]  ;;  %v1648_v59 = vld [vmem:[%s14129_s2 + $0x1460] sm:$0xff] }
 0x3dd   : > { %2953 = vmatpush2.msra.mxu1 %v1984_v37  ;;  %2877 = vmatprep.subr.mxu0 %v1721_v24  ;;  %v1904_v37 = vld [vmem:[%s14129_s2 + $0x1c60] sm:$0xff]  ;;  %v1641_v24 = vld [vmem:[%s14129_s2 + $0x1428] sm:$0xff] }
 0x3de   : > { %2954 = vmatprep.subr.mxu1 %v1977_v62  ;;  %2878 = vmatpush2.msra.mxu0 %v1720_v63  ;;  %v1897_v62 = vld [vmem:[%s14129_s2 + $0x1c28] sm:$0xff]  ;;  %v1640_v63 = vld [vmem:[%s14129_s2 + $0x1420] sm:$0xff] }
 0x3df   : > { %2955 = vmatpush2.msra.mxu1 %v1976_v2  ;;  %2879 = vmatprep.subr.mxu0 %v1713_v54  ;;  %v1896_v2 = vld [vmem:[%s14129_s2 + $0x1c20] sm:$0xff]  ;;  %v1123_v54 = vld [vmem:[%s14129_s2 + $0x3f8] sm:$0xff] }
 0x3e0   : > { %2956 = vmatprep.subr.mxu1 %v1969_v4  ;;  %2880 = vmatpush2.msra.mxu0 %v1712_v19  ;;  %v1379_v4 = vld [vmem:[%s14129_s2 + $0xbf8] sm:$0xff]  ;;  %v1122_v19 = vld [vmem:[%s14129_s2 + $0x3f0] sm:$0xff] }
 0x3e1   : > { %2957 = vmatpush2.msra.mxu1 %v1968_v56  ;;  %2881 = vmatprep.subr.mxu0 %v1705_v27  ;;  %v1378_v56 = vld [vmem:[%s14129_s2 + $0xbf0] sm:$0xff]  ;;  %v1115_v27 = vld [vmem:[%s14129_s2 + $0x3b8] sm:$0xff] }
 0x3e2   : > { %2958 = vmatprep.subr.mxu1 %v1961_v49  ;;  %2882 = vmatpush2.msra.mxu0 %v1704_v6  ;;  %v1371_v49 = vld [vmem:[%s14129_s2 + $0xbb8] sm:$0xff]  ;;  %v1114_v6 = vld [vmem:[%s14129_s2 + $0x3b0] sm:$0xff] }
 0x3e3   : > { %2959 = vmatpush2.msra.mxu1 %v1960_v36  ;;  %2883 = vmatprep.subr.mxu0 %v1697_v21  ;;  %v1370_v36 = vld [vmem:[%s14129_s2 + $0xbb0] sm:$0xff]  ;;  %v1107_v21 = vld [vmem:[%s14129_s2 + $0x378] sm:$0xff] }
 0x3e4   : > { %2960 = vmatprep.subr.mxu1 %v1953_v58  ;;  %2884 = vmatpush2.msra.mxu0 %v1696_v23  ;;  %v1363_v58 = vld [vmem:[%s14129_s2 + $0xb78] sm:$0xff]  ;;  %v1106_v23 = vld [vmem:[%s14129_s2 + $0x370] sm:$0xff] }
 0x3e5   : > { %2961 = vmatpush2.msra.mxu1 %v1952_v46  ;;  %2885 = vmatprep.subr.mxu0 %v1689_v20  ;;  %v1362_v46 = vld [vmem:[%s14129_s2 + $0xb70] sm:$0xff]  ;;  %v1099_v20 = vld [vmem:[%s14129_s2 + $0x338] sm:$0xff] }
 0x3e6   : > { %2962 = vmatprep.subr.mxu1 %v1945_v38  ;;  %2886 = vmatpush2.msra.mxu0 %v1688_v61  ;;  %v1355_v38 = vld [vmem:[%s14129_s2 + $0xb38] sm:$0xff]  ;;  %v1098_v61 = vld [vmem:[%s14129_s2 + $0x330] sm:$0xff] }
 0x3e7   : > { %2963 = vmatpush2.msra.mxu1 %v1944_v35  ;;  %2887 = vmatprep.subr.mxu0 %v1681_v57  ;;  %v1354_v35 = vld [vmem:[%s14129_s2 + $0xb30] sm:$0xff]  ;;  %v1091_v57 = vld [vmem:[%s14129_s2 + $0x2f8] sm:$0xff] }
 0x3e8   : > { %2964 = vmatprep.subr.mxu1 %v1937_v40  ;;  %2888 = vmatpush2.msra.mxu0 %v1680_v34  ;;  %v1347_v40 = vld [vmem:[%s14129_s2 + $0xaf8] sm:$0xff]  ;;  %v1346_v34 = vld [vmem:[%s14129_s2 + $0xaf0] sm:$0xff] }
 0x3e9   : > { %2965 = vmatpush2.msra.mxu1 %v1936_v25  ;;  %2889 = vmatprep.subr.mxu0 %v1673_v41  ;;  %v1083_v25 = vld [vmem:[%s14129_s2 + $0x2b8] sm:$0xff]  ;;  %v1082_v41 = vld [vmem:[%s14129_s2 + $0x2b0] sm:$0xff] }
 0x3ea   : > { %2966 = vmatprep.subr.mxu1 %v1929_v0  ;;  %2890 = vmatpush2.msra.mxu0 %v1672_v52  ;;  %v1338_v0 = vld [vmem:[%s14129_s2 + $0xab0] sm:$0xff]  ;;  %v1075_v52 = vld [vmem:[%s14129_s2 + $0x278] sm:$0xff] }
 0x3eb   : > { %2967 = vmatpush2.msra.mxu1 %v1928_v22  ;;  %2891 = vmatprep.subr.mxu0 %v1665_v43  ;;  %v1331_v22 = vld [vmem:[%s14129_s2 + $0xa78] sm:$0xff]  ;;  %v1074_v43 = vld [vmem:[%s14129_s2 + $0x270] sm:$0xff] }
 0x3ec   : > { %2968 = vmatprep.subr.mxu1 %v1921_v47  ;;  %2892 = vmatpush2.msra.mxu0 %v1664_v15  ;;  %v1330_v47 = vld [vmem:[%s14129_s2 + $0xa70] sm:$0xff]  ;;  %v1067_v15 = vld [vmem:[%s14129_s2 + $0x238] sm:$0xff] }
 0x3ed   : > { %2969 = vmatpush2.msra.mxu1 %v1920_v48  ;;  %2893 = vmatprep.subr.mxu0 %v1657_v50  ;;  %v1323_v48 = vld [vmem:[%s14129_s2 + $0xa38] sm:$0xff]  ;;  %v1066_v50 = vld [vmem:[%s14129_s2 + $0x230] sm:$0xff] }
 0x3ee   : > { %2970 = vmatprep.subr.mxu1 %v1913_v1  ;;  %2894 = vmatpush2.msra.mxu0 %v1656_v18  ;;  %v1322_v1 = vld [vmem:[%s14129_s2 + $0xa30] sm:$0xff]  ;;  %v1059_v18 = vld [vmem:[%s14129_s2 + $0x1f8] sm:$0xff] }
 0x3ef   : > { %2971 = vmatpush2.msra.mxu1 %v1912_v33  ;;  %2895 = vmatprep.subr.mxu0 %v1649_v51  ;;  %v1315_v33 = vld [vmem:[%s14129_s2 + $0x9f8] sm:$0xff]  ;;  %v1058_v51 = vld [vmem:[%s14129_s2 + $0x1f0] sm:$0xff] }
 0x3f0   : > { %2972 = vmatprep.subr.mxu1 %v1905_v17  ;;  %2896 = vmatpush2.msra.mxu0 %v1648_v59  ;;  %v1314_v17 = vld [vmem:[%s14129_s2 + $0x9f0] sm:$0xff]  ;;  %v1051_v59 = vld [vmem:[%s14129_s2 + $0x1b8] sm:$0xff] }
 0x3f1   : > { %2973 = vmatpush2.msra.mxu1 %v1904_v37  ;;  %2897 = vmatprep.subr.mxu0 %v1641_v24  ;;  %v1307_v37 = vld [vmem:[%s14129_s2 + $0x9b8] sm:$0xff]  ;;  %v1050_v24 = vld [vmem:[%s14129_s2 + $0x1b0] sm:$0xff] }
 0x3f2   : > { %2974 = vmatprep.subr.mxu1 %v1897_v62  ;;  %2898 = vmatpush2.msra.mxu0 %v1640_v63  ;;  %v1306_v62 = vld [vmem:[%s14129_s2 + $0x9b0] sm:$0xff]  ;;  %v1043_v63 = vld [vmem:[%s14129_s2 + $0x178] sm:$0xff] }
 0x3f3   : > { %2975 = vmatpush2.msra.mxu1 %v1896_v2  ;;  %2900 = vmatmul.mubr.f32.vlgmr.msra.gmra.mxu0 %v8013_v7  ;;  %v1299_v2 = vld [vmem:[%s14129_s2 + $0x978] sm:$0xff] }
 0x3f4   : > { %2977 = vmatmul.mubr.f32.vlgmr.msra.gmra.mxu1 %v8019_v9  ;;  %2989 = vmatprep.subr.mxu0 %v1123_v54  ;;  %v1042_v54 = vld [vmem:[%s14129_s2 + $0x170] sm:$0xff] }
 0x3f5   : > { %3066 = vmatprep.subr.mxu1 %v1379_v4  ;;  %2905 = vmatprep.mubr.f32.mxu0 %v8026_v13  ;;  %v1298_v4 = vld [vmem:[%s14129_s2 + $0x970] sm:$0xff] }
 0x3f6   : > { %2982 = vmatprep.mubr.f32.mxu1 %v8032_v60  ;;  %2990 = vmatpush1.msra.mxu0 %v1122_v19  ;;  %v1035_v19 = vld [vmem:[%s14129_s2 + $0x138] sm:$0xff] }
 0x3f7   : > { %3067 = vmatpush1.msra.mxu1 %v1378_v56  ;;  %2991 = vmatprep.subr.mxu0 %v1115_v27  ;;  %v1291_v56 = vld [vmem:[%s14129_s2 + $0x938] sm:$0xff]  ;;  %v1034_v27 = vld [vmem:[%s14129_s2 + $0x130] sm:$0xff] }
 0x3f8   : > { %3068 = vmatprep.subr.mxu1 %v1371_v49  ;;  %2992 = vmatpush1.msra.mxu0 %v1114_v6  ;;  %v1290_v49 = vld [vmem:[%s14129_s2 + $0x930] sm:$0xff]  ;;  %v1027_v6 = vld [vmem:[%s14129_s2 + $0xf8] sm:$0xff] }
 0x3f9   : > { %3069 = vmatpush1.msra.mxu1 %v1370_v36  ;;  %2906 = vmatmul.mubr.f32.gmra.mxu0 %v8053_v5  ;;  %v1283_v36 = vld [vmem:[%s14129_s2 + $0x8f8] sm:$0xff] }
 0x3fa   : > { %2983 = vmatmul.mubr.f32.gmra.mxu1 %v8058_v32  ;;  %2993 = vmatprep.subr.mxu0 %v1107_v21  ;;  %v1026_v21 = vld [vmem:[%s14129_s2 + $0xf0] sm:$0xff] }
 0x3fb   : > { %3070 = vmatprep.subr.mxu1 %v1363_v58  ;;  %2994 = vmatpush1.msra.mxu0 %v1106_v23  ;;  %v1282_v58 = vld [vmem:[%s14129_s2 + $0x8f0] sm:$0xff]  ;;  %v1019_v23 = vld [vmem:[%s14129_s2 + $0xb8] sm:$0xff] }
 0x3fc   : > { %3053 = vmatprep.mubr.f32.mxu0 %v7582_v44  ;;  %3071 = vmatpush1.msra.mxu1 %v1362_v46  ;;  %v1090_v44 = vld [vmem:[%s14129_s2 + $0x2f0] sm:$0xff]  ;;  %v1275_v46 = vld [vmem:[%s14129_s2 + $0x8b8] sm:$0xff] }
 0x3fd   : > { %3130 = vmatprep.mubr.f32.mxu1 %v7584_v55  ;;  %2995 = vmatprep.subr.mxu0 %v1099_v20  ;;  %v1339_v55 = vld [vmem:[%s14129_s2 + $0xab8] sm:$0xff]  ;;  %v1018_v20 = vld [vmem:[%s14129_s2 + $0xb0] sm:$0xff] }
 0x3fe   : > { %3072 = vmatprep.subr.mxu1 %v1355_v38  ;;  %2996 = vmatpush1.msra.mxu0 %v1098_v61  ;;  %v1274_v38 = vld [vmem:[%s14129_s2 + $0x8b0] sm:$0xff]  ;;  %v1011_v61 = vld [vmem:[%s14129_s2 + $0x78] sm:$0xff] }
 0x3ff   : > { %3073 = vmatpush1.msra.mxu1 %v1354_v35  ;;  %2997 = vmatprep.subr.mxu0 %v1091_v57  ;;  %v1267_v35 = vld [vmem:[%s14129_s2 + $0x878] sm:$0xff]  ;;  %v1010_v57 = vld [vmem:[%s14129_s2 + $0x70] sm:$0xff] }
 0x400   : > { %3074 = vmatprep.subr.mxu1 %v1347_v40  ;;  %2998 = vmatpush1.msra.mxu0 %v1090_v44  ;;  %v1266_v40 = vld [vmem:[%s14129_s2 + $0x870] sm:$0xff]  ;;  %v1003_v44 = vld [vmem:[%s14129_s2 + $0x38] sm:$0xff] }
 0x401   : > { %3075 = vmatpush1.msra.mxu1 %v1346_v34  ;;  %2999 = vmatprep.subr.mxu0 %v1083_v25  ;;  %v1259_v34 = vld [vmem:[%s14129_s2 + $0x838] sm:$0xff]  ;;  %v1002_v25 = vld [vmem:[%s14129_s2 + $0x30] sm:$0xff] }
 0x402   : > { %3076 = vmatprep.subr.mxu1 %v1339_v55  ;;  %3000 = vmatpush1.msra.mxu0 %v1082_v41  ;;  %v1258_v55 = vld [vmem:[%s14129_s2 + $0x830] sm:$0xff]  ;;  %v1251_v41 = vld [vmem:[%s14129_s2 + $0x7f8] sm:$0xff] }
 0x403   : > { %3077 = vmatpush1.msra.mxu1 %v1338_v0  ;;  %3001 = vmatprep.subr.mxu0 %v1075_v52  ;;  %v1507_v0 = vld [vmem:[%s14129_s2 + $0xff8] sm:$0xff]  ;;  %v1250_v52 = vld [vmem:[%s14129_s2 + $0x7f0] sm:$0xff] }
 0x404   : > { %3078 = vmatprep.subr.mxu1 %v1331_v22  ;;  %3002 = vmatpush1.msra.mxu0 %v1074_v43  ;;  %v1506_v22 = vld [vmem:[%s14129_s2 + $0xff0] sm:$0xff]  ;;  %v1243_v43 = vld [vmem:[%s14129_s2 + $0x7b8] sm:$0xff] }
 0x405   : > { %3079 = vmatpush1.msra.mxu1 %v1330_v47  ;;  %3003 = vmatprep.subr.mxu0 %v1067_v15  ;;  %v1499_v47 = vld [vmem:[%s14129_s2 + $0xfb8] sm:$0xff]  ;;  %v1242_v15 = vld [vmem:[%s14129_s2 + $0x7b0] sm:$0xff] }
 0x406   : > { %3080 = vmatprep.subr.mxu1 %v1323_v48  ;;  %3004 = vmatpush1.msra.mxu0 %v1066_v50  ;;  %v1498_v48 = vld [vmem:[%s14129_s2 + $0xfb0] sm:$0xff]  ;;  %v1235_v50 = vld [vmem:[%s14129_s2 + $0x778] sm:$0xff] }
 0x407   : > { %3081 = vmatpush1.msra.mxu1 %v1322_v1  ;;  %3005 = vmatprep.subr.mxu0 %v1059_v18  ;;  %v1491_v1 = vld [vmem:[%s14129_s2 + $0xf78] sm:$0xff]  ;;  %v1234_v18 = vld [vmem:[%s14129_s2 + $0x770] sm:$0xff] }
 0x408   : > { %3082 = vmatprep.subr.mxu1 %v1315_v33  ;;  %3006 = vmatpush1.msra.mxu0 %v1058_v51  ;;  %v1490_v33 = vld [vmem:[%s14129_s2 + $0xf70] sm:$0xff]  ;;  %v1227_v51 = vld [vmem:[%s14129_s2 + $0x738] sm:$0xff] }
 0x409   : > { %3083 = vmatpush1.msra.mxu1 %v1314_v17  ;;  %3007 = vmatprep.subr.mxu0 %v1051_v59  ;;  %v1483_v17 = vld [vmem:[%s14129_s2 + $0xf38] sm:$0xff]  ;;  %v1226_v59 = vld [vmem:[%s14129_s2 + $0x730] sm:$0xff] }
 0x40a   : > { %3084 = vmatprep.subr.mxu1 %v1307_v37  ;;  %3008 = vmatpush1.msra.mxu0 %v1050_v24  ;;  %v1482_v37 = vld [vmem:[%s14129_s2 + $0xf30] sm:$0xff]  ;;  %v1219_v24 = vld [vmem:[%s14129_s2 + $0x6f8] sm:$0xff] }
 0x40b   : > { %3085 = vmatpush1.msra.mxu1 %v1306_v62  ;;  %3009 = vmatprep.subr.mxu0 %v1043_v63  ;;  %v1475_v62 = vld [vmem:[%s14129_s2 + $0xef8] sm:$0xff]  ;;  %v1218_v63 = vld [vmem:[%s14129_s2 + $0x6f0] sm:$0xff] }
 0x40c   : > { %3086 = vmatprep.subr.mxu1 %v1299_v2  ;;  %3010 = vmatpush1.msra.mxu0 %v1042_v54  ;;  %v1474_v2 = vld [vmem:[%s14129_s2 + $0xef0] sm:$0xff]  ;;  %v1211_v54 = vld [vmem:[%s14129_s2 + $0x6b8] sm:$0xff] }
 0x40d   : > { %3087 = vmatpush1.msra.mxu1 %v1298_v4  ;;  %3011 = vmatprep.subr.mxu0 %v1035_v19  ;;  %v1467_v4 = vld [vmem:[%s14129_s2 + $0xeb8] sm:$0xff]  ;;  %v1210_v19 = vld [vmem:[%s14129_s2 + $0x6b0] sm:$0xff] }
 0x40e   : > { %3088 = vmatprep.subr.mxu1 %v1291_v56  ;;  %3012 = vmatpush1.msra.mxu0 %v1034_v27  ;;  %v1466_v56 = vld [vmem:[%s14129_s2 + $0xeb0] sm:$0xff]  ;;  %v1203_v27 = vld [vmem:[%s14129_s2 + $0x678] sm:$0xff] }
 0x40f   : > { %3089 = vmatpush1.msra.mxu1 %v1290_v49  ;;  %3013 = vmatprep.subr.mxu0 %v1027_v6  ;;  %v1459_v49 = vld [vmem:[%s14129_s2 + $0xe78] sm:$0xff]  ;;  %v1202_v6 = vld [vmem:[%s14129_s2 + $0x670] sm:$0xff] }
 0x410   : > { %3090 = vmatprep.subr.mxu1 %v1283_v36  ;;  %3014 = vmatpush1.msra.mxu0 %v1026_v21  ;;  %v1458_v36 = vld [vmem:[%s14129_s2 + $0xe70] sm:$0xff]  ;;  %v1195_v21 = vld [vmem:[%s14129_s2 + $0x638] sm:$0xff] }
 0x411   : > { %3091 = vmatpush1.msra.mxu1 %v1282_v58  ;;  %3015 = vmatprep.subr.mxu0 %v1019_v23  ;;  %v1451_v58 = vld [vmem:[%s14129_s2 + $0xe38] sm:$0xff]  ;;  %v1194_v23 = vld [vmem:[%s14129_s2 + $0x630] sm:$0xff] }
 0x412   : > { %3092 = vmatprep.subr.mxu1 %v1275_v46  ;;  %3016 = vmatpush1.msra.mxu0 %v1018_v20  ;;  %v1450_v46 = vld [vmem:[%s14129_s2 + $0xe30] sm:$0xff]  ;;  %v1187_v20 = vld [vmem:[%s14129_s2 + $0x5f8] sm:$0xff] }
 0x413   : > { %3093 = vmatpush1.msra.mxu1 %v1274_v38  ;;  %3017 = vmatprep.subr.mxu0 %v1011_v61  ;;  %v1443_v38 = vld [vmem:[%s14129_s2 + $0xdf8] sm:$0xff]  ;;  %v1186_v61 = vld [vmem:[%s14129_s2 + $0x5f0] sm:$0xff] }
 0x414   : > { %3094 = vmatprep.subr.mxu1 %v1267_v35  ;;  %3018 = vmatpush1.msra.mxu0 %v1010_v57  ;;  %v1442_v35 = vld [vmem:[%s14129_s2 + $0xdf0] sm:$0xff]  ;;  %v1179_v57 = vld [vmem:[%s14129_s2 + $0x5b8] sm:$0xff] }
 0x415   : > { %3095 = vmatpush1.msra.mxu1 %v1266_v40  ;;  %3019 = vmatprep.subr.mxu0 %v1003_v44  ;;  %v1435_v40 = vld [vmem:[%s14129_s2 + $0xdb8] sm:$0xff]  ;;  %v1178_v44 = vld [vmem:[%s14129_s2 + $0x5b0] sm:$0xff] }
 0x416   : > { %3096 = vmatprep.subr.mxu1 %v1259_v34  ;;  %3020 = vmatpush1.msra.mxu0 %v1002_v25  ;;  %v1434_v34 = vld [vmem:[%s14129_s2 + $0xdb0] sm:$0xff]  ;;  %v1171_v25 = vld [vmem:[%s14129_s2 + $0x578] sm:$0xff] }
 0x417   : > { %3097 = vmatpush1.msra.mxu1 %v1258_v55  ;;  %3021 = vmatprep.subr.mxu0 %v1251_v41  ;;  %v1427_v55 = vld [vmem:[%s14129_s2 + $0xd78] sm:$0xff]  ;;  %v1170_v41 = vld [vmem:[%s14129_s2 + $0x570] sm:$0xff] }
 0x418   : > { %3098 = vmatprep.subr.mxu1 %v1507_v0  ;;  %3022 = vmatpush2.msra.mxu0 %v1250_v52  ;;  %v1426_v0 = vld [vmem:[%s14129_s2 + $0xd70] sm:$0xff]  ;;  %v1163_v52 = vld [vmem:[%s14129_s2 + $0x538] sm:$0xff] }
 0x419   : > { %3099 = vmatpush2.msra.mxu1 %v1506_v22  ;;  %3023 = vmatprep.subr.mxu0 %v1243_v43  ;;  %v1419_v22 = vld [vmem:[%s14129_s2 + $0xd38] sm:$0xff]  ;;  %v1162_v43 = vld [vmem:[%s14129_s2 + $0x530] sm:$0xff] }
 0x41a   : > { %3100 = vmatprep.subr.mxu1 %v1499_v47  ;;  %3024 = vmatpush2.msra.mxu0 %v1242_v15  ;;  %v1418_v47 = vld [vmem:[%s14129_s2 + $0xd30] sm:$0xff]  ;;  %v1155_v15 = vld [vmem:[%s14129_s2 + $0x4f8] sm:$0xff] }
 0x41b   : > { %3101 = vmatpush2.msra.mxu1 %v1498_v48  ;;  %3025 = vmatprep.subr.mxu0 %v1235_v50  ;;  %v1411_v48 = vld [vmem:[%s14129_s2 + $0xcf8] sm:$0xff]  ;;  %v1154_v50 = vld [vmem:[%s14129_s2 + $0x4f0] sm:$0xff] }
 0x41c   : > { %3102 = vmatprep.subr.mxu1 %v1491_v1  ;;  %3026 = vmatpush2.msra.mxu0 %v1234_v18  ;;  %v1410_v1 = vld [vmem:[%s14129_s2 + $0xcf0] sm:$0xff]  ;;  %v1147_v18 = vld [vmem:[%s14129_s2 + $0x4b8] sm:$0xff] }
 0x41d   : > { %3103 = vmatpush2.msra.mxu1 %v1490_v33  ;;  %3027 = vmatprep.subr.mxu0 %v1227_v51  ;;  %v1403_v33 = vld [vmem:[%s14129_s2 + $0xcb8] sm:$0xff]  ;;  %v1146_v51 = vld [vmem:[%s14129_s2 + $0x4b0] sm:$0xff] }
 0x41e   : > { %3104 = vmatprep.subr.mxu1 %v1483_v17  ;;  %3028 = vmatpush2.msra.mxu0 %v1226_v59  ;;  %v1402_v17 = vld [vmem:[%s14129_s2 + $0xcb0] sm:$0xff]  ;;  %v1139_v59 = vld [vmem:[%s14129_s2 + $0x478] sm:$0xff] }
 0x41f   : > { %3105 = vmatpush2.msra.mxu1 %v1482_v37  ;;  %3029 = vmatprep.subr.mxu0 %v1219_v24  ;;  %v1395_v37 = vld [vmem:[%s14129_s2 + $0xc78] sm:$0xff]  ;;  %v1138_v24 = vld [vmem:[%s14129_s2 + $0x470] sm:$0xff] }
 0x420   : > { %3106 = vmatprep.subr.mxu1 %v1475_v62  ;;  %3030 = vmatpush2.msra.mxu0 %v1218_v63  ;;  %v1394_v62 = vld [vmem:[%s14129_s2 + $0xc70] sm:$0xff]  ;;  %v1131_v63 = vld [vmem:[%s14129_s2 + $0x438] sm:$0xff] }
 0x421   : > { %3107 = vmatpush2.msra.mxu1 %v1474_v2  ;;  %3031 = vmatprep.subr.mxu0 %v1211_v54  ;;  %v1387_v2 = vld [vmem:[%s14129_s2 + $0xc38] sm:$0xff]  ;;  %v1130_v54 = vld [vmem:[%s14129_s2 + $0x430] sm:$0xff] }
 0x422   : > { %3108 = vmatprep.subr.mxu1 %v1467_v4  ;;  %3032 = vmatpush2.msra.mxu0 %v1210_v19  ;;  %v1386_v4 = vld [vmem:[%s14129_s2 + $0xc30] sm:$0xff]  ;;  %v1635_v19 = vld [vmem:[%s14129_s2 + $0x13f8] sm:$0xff] }
 0x423   : > { %3109 = vmatpush2.msra.mxu1 %v1466_v56  ;;  %3033 = vmatprep.subr.mxu0 %v1203_v27  ;;  %v1891_v56 = vld [vmem:[%s14129_s2 + $0x1bf8] sm:$0xff]  ;;  %v1634_v27 = vld [vmem:[%s14129_s2 + $0x13f0] sm:$0xff] }
 0x424   : > { %3110 = vmatprep.subr.mxu1 %v1459_v49  ;;  %3034 = vmatpush2.msra.mxu0 %v1202_v6  ;;  %v1890_v49 = vld [vmem:[%s14129_s2 + $0x1bf0] sm:$0xff]  ;;  %v1627_v6 = vld [vmem:[%s14129_s2 + $0x13b8] sm:$0xff] }
 0x425   : > { %3111 = vmatpush2.msra.mxu1 %v1458_v36  ;;  %3035 = vmatprep.subr.mxu0 %v1195_v21  ;;  %v1882_v36 = vld [vmem:[%s14129_s2 + $0x1bb0] sm:$0xff]  ;;  %v1875_v21 = vld [vmem:[%s14129_s2 + $0x1b78] sm:$0xff] }
 0x426   : > { %3112 = vmatprep.subr.mxu1 %v1451_v58  ;;  %3036 = vmatpush2.msra.mxu0 %v1194_v23  ;;  %v1874_v58 = vld [vmem:[%s14129_s2 + $0x1b70] sm:$0xff]  ;;  %v1611_v23 = vld [vmem:[%s14129_s2 + $0x1338] sm:$0xff] }
 0x427   : > { %3113 = vmatpush2.msra.mxu1 %v1450_v46  ;;  %3037 = vmatprep.subr.mxu0 %v1187_v20  ;;  %v1867_v46 = vld [vmem:[%s14129_s2 + $0x1b38] sm:$0xff] }
 0x428   : > { %3114 = vmatprep.subr.mxu1 %v1443_v38  ;;  %3038 = vmatpush2.msra.mxu0 %v1186_v61  ;;  %v1603_v20 = vld [vmem:[%s14129_s2 + $0x12f8] sm:$0xff]  ;;  %v1858_v61 = vld [vmem:[%s14129_s2 + $0x1af0] sm:$0xff] }
 0x429   : > { %3115 = vmatpush2.msra.mxu1 %v1442_v35  ;;  %3039 = vmatprep.subr.mxu0 %v1179_v57  ;;  %v1859_v38 = vld [vmem:[%s14129_s2 + $0x1af8] sm:$0xff]  ;;  %v1594_v57 = vld [vmem:[%s14129_s2 + $0x12b0] sm:$0xff] }
 0x42a   : > { %3116 = vmatprep.subr.mxu1 %v1435_v40  ;;  %3040 = vmatpush2.msra.mxu0 %v1178_v44  ;;  %v1595_v35 = vld [vmem:[%s14129_s2 + $0x12b8] sm:$0xff]  ;;  %v1850_v40 = vld [vmem:[%s14129_s2 + $0x1ab0] sm:$0xff] }
 0x42b   : > { %3117 = vmatpush2.msra.mxu1 %v1434_v34  ;;  %3041 = vmatprep.subr.mxu0 %v1171_v25  ;;  %v1587_v44 = vld [vmem:[%s14129_s2 + $0x1278] sm:$0xff]  ;;  %v1586_v25 = vld [vmem:[%s14129_s2 + $0x1270] sm:$0xff] }
 0x42c   : > { %3118 = vmatprep.subr.mxu1 %v1427_v55  ;;  %3042 = vmatpush2.msra.mxu0 %v1170_v41  ;;  %v1843_v34 = vld [vmem:[%s14129_s2 + $0x1a78] sm:$0xff]  ;;  %v1842_v55 = vld [vmem:[%s14129_s2 + $0x1a70] sm:$0xff] }
 0x42d   : > { %3119 = vmatpush2.msra.mxu1 %v1426_v0  ;;  %3043 = vmatprep.subr.mxu0 %v1163_v52  ;;  %v1579_v41 = vld [vmem:[%s14129_s2 + $0x1238] sm:$0xff]  ;;  %v1578_v52 = vld [vmem:[%s14129_s2 + $0x1230] sm:$0xff] }
 0x42e   : > { %3120 = vmatprep.subr.mxu1 %v1419_v22  ;;  %3044 = vmatpush2.msra.mxu0 %v1162_v43  ;;  %v1835_v0 = vld [vmem:[%s14129_s2 + $0x1a38] sm:$0xff]  ;;  %v1834_v22 = vld [vmem:[%s14129_s2 + $0x1a30] sm:$0xff] }
 0x42f   : > { %3121 = vmatpush2.msra.mxu1 %v1418_v47  ;;  %3045 = vmatprep.subr.mxu0 %v1155_v15  ;;  %v1571_v43 = vld [vmem:[%s14129_s2 + $0x11f8] sm:$0xff]  ;;  %v1570_v15 = vld [vmem:[%s14129_s2 + $0x11f0] sm:$0xff] }
 0x430   : > { %3122 = vmatprep.subr.mxu1 %v1411_v48  ;;  %3046 = vmatpush2.msra.mxu0 %v1154_v50  ;;  %v1827_v47 = vld [vmem:[%s14129_s2 + $0x19f8] sm:$0xff]  ;;  %v1826_v48 = vld [vmem:[%s14129_s2 + $0x19f0] sm:$0xff] }
 0x431   : > { %3123 = vmatpush2.msra.mxu1 %v1410_v1  ;;  %3047 = vmatprep.subr.mxu0 %v1147_v18  ;;  %v1563_v50 = vld [vmem:[%s14129_s2 + $0x11b8] sm:$0xff]  ;;  %v1562_v18 = vld [vmem:[%s14129_s2 + $0x11b0] sm:$0xff] }
 0x432   : > { %3124 = vmatprep.subr.mxu1 %v1403_v33  ;;  %3048 = vmatpush2.msra.mxu0 %v1146_v51  ;;  %v1819_v1 = vld [vmem:[%s14129_s2 + $0x19b8] sm:$0xff]  ;;  %v1818_v33 = vld [vmem:[%s14129_s2 + $0x19b0] sm:$0xff] }
 0x433   : > { %3125 = vmatpush2.msra.mxu1 %v1402_v17  ;;  %3049 = vmatprep.subr.mxu0 %v1139_v59  ;;  %v1555_v51 = vld [vmem:[%s14129_s2 + $0x1178] sm:$0xff]  ;;  %v1554_v59 = vld [vmem:[%s14129_s2 + $0x1170] sm:$0xff] }
 0x434   : > { %3126 = vmatprep.subr.mxu1 %v1395_v37  ;;  %3050 = vmatpush2.msra.mxu0 %v1138_v24  ;;  %v1811_v17 = vld [vmem:[%s14129_s2 + $0x1978] sm:$0xff]  ;;  %v1810_v37 = vld [vmem:[%s14129_s2 + $0x1970] sm:$0xff] }
 0x435   : > { %3127 = vmatpush2.msra.mxu1 %v1394_v62  ;;  %3051 = vmatprep.subr.mxu0 %v1131_v63  ;;  %v1547_v24 = vld [vmem:[%s14129_s2 + $0x1138] sm:$0xff]  ;;  %v1546_v63 = vld [vmem:[%s14129_s2 + $0x1130] sm:$0xff] }
 0x436   : > { %3128 = vmatprep.subr.mxu1 %v1387_v2  ;;  %3052 = vmatpush2.msra.mxu0 %v1130_v54  ;;  %v1803_v62 = vld [vmem:[%s14129_s2 + $0x1938] sm:$0xff]  ;;  %v1802_v2 = vld [vmem:[%s14129_s2 + $0x1930] sm:$0xff] }
 0x437   : > { %3129 = vmatpush2.msra.mxu1 %v1386_v4  ;;  %3054 = vmatmul.mubr.f32.vlgmr.msra.gmra.mxu0 %v7587_v29  ;;  %v1883_v29 = vld [vmem:[%s14129_s2 + $0x1bb8] sm:$0xff] }
 0x438   : > { %3131 = vmatmul.mubr.f32.vlgmr.msra.gmra.mxu1 %v7593_v53  ;;  %3143 = vmatprep.subr.mxu0 %v1635_v19  ;;  %v1626_v53 = vld [vmem:[%s14129_s2 + $0x13b0] sm:$0xff]  ;;  %v1539_v54 = vld [vmem:[%s14129_s2 + $0x10f8] sm:$0xff] }
 0x439   : > { %3220 = vmatprep.subr.mxu1 %v1891_v56  ;;  %3059 = vmatprep.mubr.f32.mxu0 %v7600_v3  ;;  %v1619_v3 = vld [vmem:[%s14129_s2 + $0x1378] sm:$0xff]  ;;  %v1538_v19 = vld [vmem:[%s14129_s2 + $0x10f0] sm:$0xff] }
 0x43a   : > { %3136 = vmatprep.mubr.f32.mxu1 %v7606_v8  ;;  %3144 = vmatpush1.msra.mxu0 %v1634_v27  ;;  %v1618_v8 = vld [vmem:[%s14129_s2 + $0x1370] sm:$0xff]  ;;  %v1795_v4 = vld [vmem:[%s14129_s2 + $0x18f8] sm:$0xff] }
 0x43b   : > { %3221 = vmatpush1.msra.mxu1 %v1890_v49  ;;  %3145 = vmatprep.subr.mxu0 %v1627_v6  ;;  %v1794_v56 = vld [vmem:[%s14129_s2 + $0x18f0] sm:$0xff]  ;;  %v1531_v27 = vld [vmem:[%s14129_s2 + $0x10b8] sm:$0xff] }
 0x43c   : > { %3222 = vmatprep.subr.mxu1 %v1883_v29  ;;  %3146 = vmatpush1.msra.mxu0 %v1626_v53  ;;  %v1787_v49 = vld [vmem:[%s14129_s2 + $0x18b8] sm:$0xff]  ;;  %v1530_v6 = vld [vmem:[%s14129_s2 + $0x10b0] sm:$0xff] }
 0x43d   : > { %3223 = vmatpush1.msra.mxu1 %v1882_v36  ;;  %3060 = vmatmul.mubr.f32.gmra.mxu0 %v7627_v28  ;;  %v1610_v28 = vld [vmem:[%s14129_s2 + $0x1330] sm:$0xff]  ;;  %v1523_v53 = vld [vmem:[%s14129_s2 + $0x1078] sm:$0xff] }
 0x43e   : > { %3137 = vmatmul.mubr.f32.gmra.mxu1 %v7632_v45  ;;  %3147 = vmatprep.subr.mxu0 %v1619_v3  ;;  %v1866_v45 = vld [vmem:[%s14129_s2 + $0x1b30] sm:$0xff]  ;;  %v1779_v36 = vld [vmem:[%s14129_s2 + $0x1878] sm:$0xff] }
 0x43f   : > { %3224 = vmatprep.subr.mxu1 %v1875_v21  ;;  %3148 = vmatpush1.msra.mxu0 %v1618_v8  ;;  %v1786_v29 = vld [vmem:[%s14129_s2 + $0x18b0] sm:$0xff]  ;;  %v1515_v8 = vld [vmem:[%s14129_s2 + $0x1038] sm:$0xff] }
 0x440   : > { %3207 = vmatprep.mubr.f32.mxu0 %v7647_v42  ;;  %3225 = vmatpush1.msra.mxu1 %v1874_v58  ;;  %v1602_v42 = vld [vmem:[%s14129_s2 + $0x12f0] sm:$0xff]  ;;  %v1771_v58 = vld [vmem:[%s14129_s2 + $0x1838] sm:$0xff] }
 0x441   : > { %3284 = vmatprep.mubr.f32.mxu1 %v7652_v10  ;;  %3149 = vmatprep.subr.mxu0 %v1611_v23  ;;  %v1851_v10 = vld [vmem:[%s14129_s2 + $0x1ab8] sm:$0xff]  ;;  %v1522_v3 = vld [vmem:[%s14129_s2 + $0x1070] sm:$0xff] }
 0x442   : > { %3226 = vmatprep.subr.mxu1 %v1867_v46  ;;  %3150 = vmatpush1.msra.mxu0 %v1610_v28  ;;  %v1778_v21 = vld [vmem:[%s14129_s2 + $0x1870] sm:$0xff]  ;;  %v1763_v28 = vld [vmem:[%s14129_s2 + $0x17f8] sm:$0xff] }
 0x443   : > { %3227 = vmatpush1.msra.mxu1 %v1866_v45  ;;  %3151 = vmatprep.subr.mxu0 %v1603_v20  ;;  %v1514_v23 = vld [vmem:[%s14129_s2 + $0x1030] sm:$0xff]  ;;  %v2019_v45 = vld [vmem:[%s14129_s2 + $0x1ff8] sm:$0xff] }
 0x444   : > { %3228 = vmatprep.subr.mxu1 %v1859_v38  ;;  %3152 = vmatpush1.msra.mxu0 %v1602_v42  ;;  %v1770_v46 = vld [vmem:[%s14129_s2 + $0x1830] sm:$0xff]  ;;  %v1755_v42 = vld [vmem:[%s14129_s2 + $0x17b8] sm:$0xff] }
 0x445   : > { %3229 = vmatpush1.msra.mxu1 %v1858_v61  ;;  %3153 = vmatprep.subr.mxu0 %v1595_v35  ;;  %v1762_v20 = vld [vmem:[%s14129_s2 + $0x17f0] sm:$0xff]  ;;  %v2011_v61 = vld [vmem:[%s14129_s2 + $0x1fb8] sm:$0xff] }
 0x446   : > { %3230 = vmatprep.subr.mxu1 %v1851_v10  ;;  %3154 = vmatpush1.msra.mxu0 %v1594_v57  ;;  %v2018_v38 = vld [vmem:[%s14129_s2 + $0x1ff0] sm:$0xff]  ;;  %v1747_v57 = vld [vmem:[%s14129_s2 + $0x1778] sm:$0xff] }
 0x447   : > { %3231 = vmatpush1.msra.mxu1 %v1850_v40  ;;  %3155 = vmatprep.subr.mxu0 %v1587_v44  ;;  %v1754_v35 = vld [vmem:[%s14129_s2 + $0x17b0] sm:$0xff]  ;;  %v2003_v40 = vld [vmem:[%s14129_s2 + $0x1f78] sm:$0xff] }
 0x448   : > { %3232 = vmatprep.subr.mxu1 %v1843_v34  ;;  %3156 = vmatpush1.msra.mxu0 %v1586_v25  ;;  %v2010_v10 = vld [vmem:[%s14129_s2 + $0x1fb0] sm:$0xff]  ;;  %v1739_v25 = vld [vmem:[%s14129_s2 + $0x1738] sm:$0xff] }
 0x449   : > { %3233 = vmatpush1.msra.mxu1 %v1842_v55  ;;  %3157 = vmatprep.subr.mxu0 %v1579_v41  ;;  %v1746_v44 = vld [vmem:[%s14129_s2 + $0x1770] sm:$0xff]  ;;  %v1995_v55 = vld [vmem:[%s14129_s2 + $0x1f38] sm:$0xff] }
 0x44a   : > { %3234 = vmatprep.subr.mxu1 %v1835_v0  ;;  %3158 = vmatpush1.msra.mxu0 %v1578_v52  ;;  %v2002_v34 = vld [vmem:[%s14129_s2 + $0x1f70] sm:$0xff]  ;;  %v1731_v52 = vld [vmem:[%s14129_s2 + $0x16f8] sm:$0xff] }
 0x44b   : > { %3235 = vmatpush1.msra.mxu1 %v1834_v22  ;;  %3159 = vmatprep.subr.mxu0 %v1571_v43  ;;  %v1738_v41 = vld [vmem:[%s14129_s2 + $0x1730] sm:$0xff]  ;;  %v1987_v22 = vld [vmem:[%s14129_s2 + $0x1ef8] sm:$0xff] }
 0x44c   : > { %3236 = vmatprep.subr.mxu1 %v1827_v47  ;;  %3160 = vmatpush1.msra.mxu0 %v1570_v15  ;;  %v1994_v0 = vld [vmem:[%s14129_s2 + $0x1f30] sm:$0xff]  ;;  %v1723_v15 = vld [vmem:[%s14129_s2 + $0x16b8] sm:$0xff] }
 0x44d   : > { %3237 = vmatpush1.msra.mxu1 %v1826_v48  ;;  %3161 = vmatprep.subr.mxu0 %v1563_v50  ;;  %v1730_v43 = vld [vmem:[%s14129_s2 + $0x16f0] sm:$0xff]  ;;  %v1979_v48 = vld [vmem:[%s14129_s2 + $0x1eb8] sm:$0xff] }
 0x44e   : > { %3238 = vmatprep.subr.mxu1 %v1819_v1  ;;  %3162 = vmatpush1.msra.mxu0 %v1562_v18  ;;  %v1986_v47 = vld [vmem:[%s14129_s2 + $0x1ef0] sm:$0xff]  ;;  %v1715_v18 = vld [vmem:[%s14129_s2 + $0x1678] sm:$0xff] }
 0x44f   : > { %3239 = vmatpush1.msra.mxu1 %v1818_v33  ;;  %3163 = vmatprep.subr.mxu0 %v1555_v51  ;;  %v1722_v50 = vld [vmem:[%s14129_s2 + $0x16b0] sm:$0xff]  ;;  %v1971_v33 = vld [vmem:[%s14129_s2 + $0x1e78] sm:$0xff] }
 0x450   : > { %3240 = vmatprep.subr.mxu1 %v1811_v17  ;;  %3164 = vmatpush1.msra.mxu0 %v1554_v59  ;;  %v1978_v1 = vld [vmem:[%s14129_s2 + $0x1eb0] sm:$0xff]  ;;  %v1707_v59 = vld [vmem:[%s14129_s2 + $0x1638] sm:$0xff] }
 0x451   : > { %3241 = vmatpush1.msra.mxu1 %v1810_v37  ;;  %3165 = vmatprep.subr.mxu0 %v1547_v24  ;;  %v1714_v51 = vld [vmem:[%s14129_s2 + $0x1670] sm:$0xff]  ;;  %v1963_v37 = vld [vmem:[%s14129_s2 + $0x1e38] sm:$0xff] }
 0x452   : > { %3242 = vmatprep.subr.mxu1 %v1803_v62  ;;  %3166 = vmatpush1.msra.mxu0 %v1546_v63  ;;  %v1970_v17 = vld [vmem:[%s14129_s2 + $0x1e70] sm:$0xff]  ;;  %v1699_v63 = vld [vmem:[%s14129_s2 + $0x15f8] sm:$0xff] }
 0x453   : > { %3243 = vmatpush1.msra.mxu1 %v1802_v2  ;;  %3167 = vmatprep.subr.mxu0 %v1539_v54  ;;  %v1706_v24 = vld [vmem:[%s14129_s2 + $0x1630] sm:$0xff]  ;;  %v1955_v2 = vld [vmem:[%s14129_s2 + $0x1df8] sm:$0xff] }
 0x454   : > { %3244 = vmatprep.subr.mxu1 %v1795_v4  ;;  %3168 = vmatpush1.msra.mxu0 %v1538_v19  ;;  %v1962_v62 = vld [vmem:[%s14129_s2 + $0x1e30] sm:$0xff]  ;;  %v1691_v19 = vld [vmem:[%s14129_s2 + $0x15b8] sm:$0xff] }
 0x455   : > { %3245 = vmatpush1.msra.mxu1 %v1794_v56  ;;  %3169 = vmatprep.subr.mxu0 %v1531_v27  ;;  %v1698_v54 = vld [vmem:[%s14129_s2 + $0x15f0] sm:$0xff]  ;;  %v1947_v56 = vld [vmem:[%s14129_s2 + $0x1db8] sm:$0xff] }
 0x456   : > { %3246 = vmatprep.subr.mxu1 %v1787_v49  ;;  %3170 = vmatpush1.msra.mxu0 %v1530_v6  ;;  %v1954_v4 = vld [vmem:[%s14129_s2 + $0x1df0] sm:$0xff]  ;;  %v1683_v6 = vld [vmem:[%s14129_s2 + $0x1578] sm:$0xff] }
 0x457   : > { %3247 = vmatpush1.msra.mxu1 %v1786_v29  ;;  %3171 = vmatprep.subr.mxu0 %v1523_v53  ;;  %v1690_v27 = vld [vmem:[%s14129_s2 + $0x15b0] sm:$0xff]  ;;  %v1939_v29 = vld [vmem:[%s14129_s2 + $0x1d78] sm:$0xff] }
 0x458   : > { %3248 = vmatprep.subr.mxu1 %v1779_v36  ;;  %3172 = vmatpush1.msra.mxu0 %v1522_v3  ;;  %v1946_v49 = vld [vmem:[%s14129_s2 + $0x1db0] sm:$0xff]  ;;  %v1675_v3 = vld [vmem:[%s14129_s2 + $0x1538] sm:$0xff] }
 0x459   : > { %3249 = vmatpush1.msra.mxu1 %v1778_v21  ;;  %3173 = vmatprep.subr.mxu0 %v1515_v8  ;;  %v1682_v53 = vld [vmem:[%s14129_s2 + $0x1570] sm:$0xff]  ;;  %v1931_v21 = vld [vmem:[%s14129_s2 + $0x1d38] sm:$0xff] }
 0x45a   : > { %3250 = vmatprep.subr.mxu1 %v1771_v58  ;;  %3174 = vmatpush1.msra.mxu0 %v1514_v23  ;;  %v1938_v36 = vld [vmem:[%s14129_s2 + $0x1d70] sm:$0xff]  ;;  %v1667_v23 = vld [vmem:[%s14129_s2 + $0x14f8] sm:$0xff] }
 0x45b   : > { %3251 = vmatpush1.msra.mxu1 %v1770_v46  ;;  %3175 = vmatprep.subr.mxu0 %v1763_v28  ;;  %v1674_v8 = vld [vmem:[%s14129_s2 + $0x1530] sm:$0xff]  ;;  %v1923_v46 = vld [vmem:[%s14129_s2 + $0x1cf8] sm:$0xff] }
 0x45c   : > { %3252 = vmatprep.subr.mxu1 %v2019_v45  ;;  %3176 = vmatpush2.msra.mxu0 %v1762_v20  ;;  %v1930_v58 = vld [vmem:[%s14129_s2 + $0x1d30] sm:$0xff]  ;;  %v1659_v20 = vld [vmem:[%s14129_s2 + $0x14b8] sm:$0xff] }
 0x45d   : > { %3253 = vmatpush2.msra.mxu1 %v2018_v38  ;;  %3177 = vmatprep.subr.mxu0 %v1755_v42  ;;  %v1666_v28 = vld [vmem:[%s14129_s2 + $0x14f0] sm:$0xff]  ;;  %v1915_v38 = vld [vmem:[%s14129_s2 + $0x1cb8] sm:$0xff] }
 0x45e   : > { %3254 = vmatprep.subr.mxu1 %v2011_v61  ;;  %3178 = vmatpush2.msra.mxu0 %v1754_v35  ;;  %v1922_v45 = vld [vmem:[%s14129_s2 + $0x1cf0] sm:$0xff]  ;;  %v1651_v35 = vld [vmem:[%s14129_s2 + $0x1478] sm:$0xff] }
 0x45f   : > { %3255 = vmatpush2.msra.mxu1 %v2010_v10  ;;  %3179 = vmatprep.subr.mxu0 %v1747_v57  ;;  %v1658_v42 = vld [vmem:[%s14129_s2 + $0x14b0] sm:$0xff]  ;;  %v1907_v10 = vld [vmem:[%s14129_s2 + $0x1c78] sm:$0xff] }
 0x460   : > { %3256 = vmatprep.subr.mxu1 %v2003_v40  ;;  %3180 = vmatpush2.msra.mxu0 %v1746_v44  ;;  %v1914_v61 = vld [vmem:[%s14129_s2 + $0x1cb0] sm:$0xff]  ;;  %v1643_v44 = vld [vmem:[%s14129_s2 + $0x1438] sm:$0xff] }
 0x461   : > { %3257 = vmatpush2.msra.mxu1 %v2002_v34  ;;  %3181 = vmatprep.subr.mxu0 %v1739_v25  ;;  %v1650_v57 = vld [vmem:[%s14129_s2 + $0x1470] sm:$0xff]  ;;  %v1899_v34 = vld [vmem:[%s14129_s2 + $0x1c38] sm:$0xff] }
 0x462   : > { %3258 = vmatprep.subr.mxu1 %v1995_v55  ;;  %3182 = vmatpush2.msra.mxu0 %v1738_v41  ;;  %v1906_v40 = vld [vmem:[%s14129_s2 + $0x1c70] sm:$0xff]  ;;  %v2131_v41 = vpop.f32.mrf.mxu0 }
 0x463   : > { %3259 = vmatpush2.msra.mxu1 %v1994_v0  ;;  %3183 = vmatprep.subr.mxu0 %v1731_v52  ;;  %v1642_v25 = vld [vmem:[%s14129_s2 + $0x1430] sm:$0xff]  ;;  %v2208_v0 = vpop.f32.mrf.mxu1 }
 0x464   : > { %3260 = vmatprep.subr.mxu1 %v1987_v22  ;;  %3184 = vmatpush2.msra.mxu0 %v1730_v43  ;;  %v1898_v55 = vld [vmem:[%s14129_s2 + $0x1c30] sm:$0xff]  ;;  %v2133_v52 = vpop.f32.mrf.mxu0 }
 0x465   : > { %3261 = vmatpush2.msra.mxu1 %v1986_v47  ;;  %3185 = vmatprep.subr.mxu0 %v1723_v15  ;;  %v2210_v22 = vpop.f32.mrf.mxu1 }
 0x466   : > { %3262 = vmatprep.subr.mxu1 %v1979_v48  ;;  %3186 = vmatpush2.msra.mxu0 %v1722_v50  ;;  %v2137_v43 = vpop.f32.mrf.mxu0 }
 0x467   : > { %3263 = vmatpush2.msra.mxu1 %v1978_v1  ;;  %3187 = vmatprep.subr.mxu0 %v1715_v18  ;;  %v10387_v47 = vpop.f32.mrf.mxu1 }
 0x468   : > { %3264 = vmatprep.subr.mxu1 %v1971_v33  ;;  %3188 = vmatpush2.msra.mxu0 %v1714_v51  ;;  %v2139_v15 = vpop.f32.mrf.mxu0 }
 0x469   : > { %3265 = vmatpush2.msra.mxu1 %v1970_v17  ;;  %3189 = vmatprep.subr.mxu0 %v1707_v59  ;;  %v2216_v48 = vpop.f32.mrf.mxu1 }
 0x46a   : > { %3266 = vmatprep.subr.mxu1 %v1963_v37  ;;  %3190 = vmatpush2.msra.mxu0 %v1706_v24 }
 0x46b   : > { %3267 = vmatpush2.msra.mxu1 %v1962_v62  ;;  %3191 = vmatprep.subr.mxu0 %v1699_v63  ;;  %v10389_v50 = vpop.f32.mrf.mxu1 }
 0x46c   : > { %3268 = vmatprep.subr.mxu1 %v1955_v2  ;;  %3192 = vmatpush2.msra.mxu0 %v1698_v54 }
 0x46d   : > { %3269 = vmatpush2.msra.mxu1 %v1954_v4  ;;  %3193 = vmatprep.subr.mxu0 %v1691_v19 }
 0x46e   : > { %3270 = vmatprep.subr.mxu1 %v1947_v56  ;;  %3194 = vmatpush2.msra.mxu0 %v1690_v27 }
 0x46f   : > { %3271 = vmatpush2.msra.mxu1 %v1946_v49  ;;  %3195 = vmatprep.subr.mxu0 %v1683_v6 }
 0x470   : > { %3272 = vmatprep.subr.mxu1 %v1939_v29  ;;  %3196 = vmatpush2.msra.mxu0 %v1682_v53 }
 0x471   : > { %3273 = vmatpush2.msra.mxu1 %v1938_v36  ;;  %3197 = vmatprep.subr.mxu0 %v1675_v3  ;;  %v6283_v3 = vld [vmem:[%s14131_s4 + $0x3] ss:$8 sm:$0xf] }
 0x472   : > { %3274 = vmatprep.subr.mxu1 %v1931_v21  ;;  %3198 = vmatpush2.msra.mxu0 %v1674_v8  ;;  %v6284_v21 = vld [vmem:[%s14131_s4 + $0x3] ss:$8 sm:$0xf0] }
 0x473   : > { %3275 = vmatpush2.msra.mxu1 %v1930_v58  ;;  %3199 = vmatprep.subr.mxu0 %v1667_v23  ;;  %v10415_v23 = vor.u32 %v6284_v21, %v6283_v3 }
 0x474   : > { %3276 = vmatprep.subr.mxu1 %v1923_v46  ;;  %3200 = vmatpush2.msra.mxu0 %v1666_v28 }
 0x475   : > { %3277 = vmatpush2.msra.mxu1 %v1922_v45  ;;  %3201 = vmatprep.subr.mxu0 %v1659_v20  ;;  %v2032_v28 = vrot.slane %v10415_v23, %v7010_v12  ;;  %v2028_v20 = vrot.slane %v10415_v23, %v7008_v11  ;;  %v2044_v21 = vrot.slane %v10415_v23, %v7030_v26 }
 0x476   : > { %3278 = vmatprep.subr.mxu1 %v1915_v38  ;;  %3202 = vmatpush2.msra.mxu0 %v1658_v42  ;;  %v2036_v42 = vrot.slane %v10415_v23, %v7014_v14 }
 0x477   : > { %3279 = vmatpush2.msra.mxu1 %v1914_v61  ;;  %3203 = vmatprep.subr.mxu0 %v1651_v35  ;;  %v2134_v35 = vadd.f32 %v2133_v52, %v2032_v28  ;;  %v2140_v3 = vadd.f32 %v2139_v15, %v2032_v28  ;;  %v2138_v12 = vadd.f32 %v2137_v43, %v2028_v20 }
 0x478   : > { %3280 = vmatprep.subr.mxu1 %v1907_v10  ;;  %3204 = vmatpush2.msra.mxu0 %v1650_v57  ;;  %v2132_v10 = vadd.f32 %v2131_v41, %v2028_v20 }
 0x479   : > { %3281 = vmatpush2.msra.mxu1 %v1906_v40  ;;  %3205 = vmatprep.subr.mxu0 %v1643_v44  ;;  %v2040_v44 = vrot.slane %v10415_v23, %v7016_v16  ;;  %v2048_v16 = vrot.slane %v10415_v23, %v7034_v30 }
 0x47a   : > { %3282 = vmatprep.subr.mxu1 %v1899_v34  ;;  %3206 = vmatpush2.msra.mxu0 %v1642_v25  ;;  %v2211_v25 = vadd.f32 %v2210_v22, %v2134_v35 }
 0x47b   : > { %3283 = vmatpush2.msra.mxu1 %v1898_v55  ;;  %3208 = vmatmul.mubr.f32.vlgmr.msra.gmra.mxu0 %v8013_v7  ;;  %v2285_v7 = vpop.f32.mrf.mxu0  ;;  %v2209_v55 = vadd.f32 %v2208_v0, %v2132_v10  ;;  %v2215_v0 = vadd.f32 %v10387_v47, %v2138_v12 }
 0x47c   : > { %3285 = vmatmul.mubr.f32.vlgmr.msra.gmra.mxu1 %v8019_v9  ;;  %3213 = vmatprep.mubr.f32.mxu0 %v8026_v13  ;;  %v2364_v13 = vpop.f32.mrf.mxu1 }
 0x47d   : > { %3290 = vmatprep.mubr.f32.mxu1 %v8032_v60  ;;  %v2287_v9 = vpop.f32.mrf.mxu0  ;;  %v2286_v39 = vadd.f32 %v2285_v7, %v2209_v55 }
 0x47e   : > { %v10393_v60 = vpop.f32.mrf.mxu1 }
 0x47f   : > { %3214 = vmatmul.mubr.f32.gmra.mxu0 %v8053_v5  ;;  %v10391_v1 = vpop.f32.mrf.mxu0 }
 0x480   : > { %3291 = vmatmul.mubr.f32.gmra.mxu1 %v8058_v32  ;;  %v10395_v32 = vpop.f32.mrf.mxu1 }
 0x481   : > { %v2293_v5 = vpop.f32.mrf.mxu0 }
 0x482   : > { %v2516_v33 = vpop.f32.mrf.mxu1 }
 0x483   : > { %v2439_v18 = vpop.f32.mrf.mxu0 }
 0x484   : > { %v2518_v17 = vpop.f32.mrf.mxu1  ;;  %v2440_v40 = vadd.f32 %v2439_v18, %v2036_v42 }
 0x485   : > { %v2441_v51 = vpop.f32.mrf.mxu0 }
 0x486   : > { %v2522_v37 = vpop.f32.mrf.mxu1  ;;  %v2517_v14 = vadd.f32 %v2516_v33, %v2440_v40 }
 0x487   : > { %v2445_v59 = vpop.f32.mrf.mxu0 }
 0x488   : > { %v10397_v62 = vpop.f32.mrf.mxu1  ;;  %v2446_v41 = vadd.f32 %v2445_v59, %v2036_v42  ;;  %v10437_v59 = vadd.f32 %v10389_v50, %v2286_v39 }
 0x489   : > { %v2447_v24 = vpop.f32.mrf.mxu0 }
 0x48a   : > { %v2670_v2 = vpop.f32.mrf.mxu1  ;;  %v2448_v33 = vadd.f32 %v2447_v24, %v2040_v44 }
 0x48b   : > { %v2593_v63 = vpop.f32.mrf.mxu0 }
 0x48c   : > { %v10399_v4 = vpop.f32.mrf.mxu1  ;;  %v2594_v18 = vadd.f32 %v2593_v63, %v2517_v14  ;;  %v2292_v14 = vadd.f32 %v10391_v1, %v2215_v0 }
 0x48d   : > { %v2595_v54 = vpop.f32.mrf.mxu0 }
 0x48e   : > { %v10401_v56 = vpop.f32.mrf.mxu1  ;;  %v10449_v1 = vadd.f32 %v10393_v60, %v2292_v14  ;;  %v14161_v60 = vld [vmem:[#allocation9_spill] sm:$0xff] }
 0x48f   : > { %v2599_v19 = vpop.f32.mrf.mxu0 }
 0x490   : > { %v10405_v49 = vpop.f32.mrf.mxu1 }
 0x491   : > { %v10403_v27 = vpop.f32.mrf.mxu0  ;;  %14156 = vst [vmem:[#allocation11_spill] sm:$0xff] %v10405_v49  ;;  %v2442_v49 = vadd.f32 %v2441_v51, %v2040_v44 }
 0x492   : > { %14155 = vst [vmem:[#allocation10_spill] sm:$0xff] %v10403_v27  ;;  %v2824_v29 = vpop.f32.mrf.mxu1 }
 0x493   : > { %v2747_v6 = vpop.f32.mrf.mxu0  ;;  %v2519_v28 = vadd.f32 %v2518_v17, %v2442_v49  ;;  %v2525_v17 = vadd.f32 %v10397_v62, %v2448_v33 }
 0x494   : > { %v10407_v36 = vpop.f32.mrf.mxu1  ;;  %v2748_v27 = vadd.f32 %v2747_v6, %v2044_v21 }
 0x495   : > { %v2749_v53 = vpop.f32.mrf.mxu0  ;;  %14157 = vst [vmem:[#allocation12_spill] sm:$0xff] %v10407_v36  ;;  %v2217_v36 = vadd.f32 %v2216_v48, %v2140_v3  ;;  %v10440_v48 = vadd.f32 %v2670_v2, %v2594_v18  ;;  %v2596_v7 = vadd.f32 %v2595_v54, %v2519_v28  ;;  %v2052_v2 = vrot.slane %v10415_v23, %v7036_v31 }
 0x496   : > { %v2830_v58 = vpop.f32.mrf.mxu1  ;;  %v2825_v20 = vadd.f32 %v2824_v29, %v2748_v27  ;;  %v2750_v12 = vadd.f32 %v2749_v53, %v2048_v16 }
 0x497   : > { %v2753_v8 = vpop.f32.mrf.mxu0  ;;  %v2294_v43 = vadd.f32 %v2293_v5, %v2217_v36  ;;  %v10453_v24 = vadd.f32 %v10399_v4, %v2596_v7  ;;  %v2056_v36 = vrot.slane %v10415_v23, %v14161_v60 }
 0x498   : > { %v10419_v45 = vpop.f32.mrf.mxu1  ;;  %v2754_v47 = vadd.f32 %v2753_v8, %v2044_v21 }
 0x499   : > { %v2755_v46 = vpop.f32.mrf.mxu0  ;;  %14158 = vst [vmem:[#allocation13_spill] sm:$0xff] %v10419_v45  ;;  %v2288_v45 = vadd.f32 %v2287_v9, %v2211_v25  ;;  %v2523_v9 = vadd.f32 %v2522_v37, %v2446_v41  ;;  %v10445_v5 = vadd.f32 %v10395_v32, %v2294_v43  ;;  %v14159_v32 = vld [vmem:[#allocation10_spill] sm:$0xff]  ;;  %v14162_v25 = vld [vmem:[#allocation11_spill] sm:$0xff] }
 0x49a   : > { %v2602_v27 = vadd.f32 %v14159_v32, %v2525_v17  ;;  %v2831_v29 = vadd.f32 %v2830_v58, %v2754_v47  ;;  %v2756_v53 = vadd.f32 %v2755_v46, %v2048_v16 }
 0x49b   : > { %v10434_v15 = vadd.f32 %v2364_v13, %v2288_v45  ;;  %v2600_v6 = vadd.f32 %v2599_v19, %v2523_v9  ;;  %v3314_v4 = vadd.f32 %v10445_v5, %v10449_v1 }
 0x49c   : > { %v14160_v62 = vld [vmem:[#allocation12_spill] sm:$0xff]  ;;  %v10471_v58 = vadd.f32 %v14162_v25, %v2602_v27 }
 0x49d   : > { %v3305_v13 = vadd.f32 %v10434_v15, %v10437_v59  ;;  %v10458_v19 = vadd.f32 %v10401_v56, %v2600_v6  ;;  %v2827_v49 = vadd.f32 %v14160_v62, %v2750_v12 }
 0x49f   : > { %v3306_v37 = vadd.f32 %v3305_v13, %v10440_v48  ;;  %v3315_v44 = vadd.f32 %v3314_v4, %v10458_v19  ;;  %v3708_v4 = vld [vmem:[%s14130_s3 + $0x3c0] sm:$0xff] }
 0x4a0   : > { %v14163_v16 = vld [vmem:[#allocation13_spill] sm:$0xff] }
 0x4a1   : > { %v3307_v40 = vadd.f32 %v3306_v37, %v10453_v24  ;;  %v2833_v46 = vadd.f32 %v14163_v16, %v2756_v53  ;;  %v3316_v0 = vadd.f32 %v3315_v44, %v10471_v58  ;;  %v3709_v53 = vld [vmem:[%s14130_s3 + $0x3c8] sm:$0xff] }
 0x4a2   : > { %4657 = vmatprep.subr.mxu0 %v3709_v53 }
 0x4a3   : > { %4658 = vmatpush1.msra.mxu0 %v3708_v4 }
 0x4b3   : > { %v2901_v38 = vpop.f32.mrf.mxu0 }
 0x4b4   : > { %v2978_v61 = vpop.f32.mrf.mxu1  ;;  %v2902_v39 = vadd.f32 %v2901_v38, %v2825_v20 }
 0x4b5   : > { %v2903_v57 = vpop.f32.mrf.mxu0 }
 0x4b6   : > { %v10427_v34 = vpop.f32.mrf.mxu1  ;;  %v10466_v8 = vadd.f32 %v2978_v61, %v2902_v39  ;;  %v2904_v45 = vadd.f32 %v2903_v57, %v2827_v49 }
 0x4b8   : > { %v3308_v55 = vadd.f32 %v3307_v40, %v10466_v8  ;;  %v10476_v61 = vadd.f32 %v10427_v34, %v2904_v45  ;;  %v3964_v45 = vld [vmem:[%s14130_s3 + $0xbc0] sm:$0xff] }
 0x4b9   : > { %v2907_v11 = vpop.f32.mrf.mxu0 }
 0x4ba   : > { %v2984_v52 = vpop.f32.mrf.mxu1  ;;  %v2908_v38 = vadd.f32 %v2907_v11, %v2831_v29  ;;  %v3309_v14 = vadd.f32 %v3308_v55, %v10476_v61 }
 0x4bb   : > { %v2909_v22 = vpop.f32.mrf.mxu0 }
 0x4bc   : > { %v2986_v35 = vpop.f32.mrf.mxu1  ;;  %v10478_v57 = vadd.f32 %v2984_v52, %v2908_v38  ;;  %v2910_v3 = vadd.f32 %v2909_v22, %v2833_v46 }
 0x4be   : > { %v3317_v7 = vadd.f32 %v3316_v0, %v10478_v57  ;;  %v10483_v6 = vadd.f32 %v2986_v35, %v2910_v3 }
 0x4f7   : > { %v3055_v51 = vpop.f32.mrf.mxu0 }
 0x4f8   : > { %v3132_v63 = vpop.f32.mrf.mxu1  ;;  %v3056_v10 = vadd.f32 %v3055_v51, %v2052_v2 }
 0x4f9   : > { %v3057_v50 = vpop.f32.mrf.mxu0 }
 0x4fa   : > { %v3134_v54 = vpop.f32.mrf.mxu1  ;;  %v3058_v23 = vadd.f32 %v3057_v50, %v2056_v36  ;;  %v3133_v21 = vadd.f32 %v3132_v63, %v3056_v10 }
 0x4fc   : > { %v3135_v43 = vadd.f32 %v3134_v54, %v3058_v23 }
 0x4fd   : > { %v3061_v42 = vpop.f32.mrf.mxu0 }
 0x4fe   : > { %v3138_v56 = vpop.f32.mrf.mxu1  ;;  %v3062_v41 = vadd.f32 %v3061_v42, %v2052_v2  ;;  %v3318_v2 = vadd.f32 %v3317_v7, %v10483_v6 }
 0x4ff   : > { %v3063_v11 = vpop.f32.mrf.mxu0 }
 0x500   : > { %v3140_v18 = vpop.f32.mrf.mxu1  ;;  %v3064_v9 = vadd.f32 %v3063_v11, %v2056_v36  ;;  %v3139_v52 = vadd.f32 %v3138_v56, %v3062_v41  ;;  %v3965_v36 = vld [vmem:[%s14130_s3 + $0xbc8] sm:$0xff] }
 0x501   : > { %4734 = vmatprep.subr.mxu1 %v3965_v36 }
 0x502   : > { %v3141_v47 = vadd.f32 %v3140_v18, %v3064_v9  ;;  %4735 = vmatpush1.msra.mxu1 %v3964_v45 }
 0x53b   : > { %v3209_v28 = vpop.f32.mrf.mxu0 }
 0x53c   : > { %v3210_v33 = vadd.f32 %v3209_v28, %v3133_v21  ;;  %v3286_v51 = vpop.f32.mrf.mxu1 }
 0x53d   : > { %v3211_v34 = vpop.f32.mrf.mxu0 }
 0x53e   : > { %v10485_v20 = vadd.f32 %v3286_v51, %v3210_v33  ;;  %v3212_v22 = vadd.f32 %v3211_v34, %v3135_v43  ;;  %v3288_v63 = vpop.f32.mrf.mxu1 }
 0x53f   : > { %v3215_v12 = vpop.f32.mrf.mxu0 }
 0x540   : > { %v10487_v13 = vadd.f32 %v3288_v63, %v3212_v22  ;;  %v3216_v17 = vadd.f32 %v3215_v12, %v3139_v52  ;;  %v3292_v39 = vpop.f32.mrf.mxu1  ;;  %v3310_v50 = vadd.f32 %v3309_v14, %v10485_v20 }
 0x541   : > { %v3217_v37 = vpop.f32.mrf.mxu0 }
 0x542   : > { %v10491_v54 = vadd.f32 %v3292_v39, %v3216_v17  ;;  %v3218_v35 = vadd.f32 %v3217_v37, %v3141_v47  ;;  %v3311_v32 = vadd.f32 %v3310_v50, %v10487_v13  ;;  %v3294_v27 = vpop.f32.mrf.mxu1 }
 0x544   : > { %v10494_v62 = vadd.f32 %v3294_v27, %v3218_v35  ;;  %3312 = vadd.xlane.f32.xlu0 %v3311_v32  ;;  %v3319_v49 = vadd.f32 %v3318_v2, %v10491_v54 }
 0x546   : > { %v3320_v29 = vadd.f32 %v3319_v49, %v10494_v62 }
 0x548   : > { %3321 = vadd.xlane.f32.xlu1 %v3320_v29 }
 0x5cd   : > { %v3313_v38 = vpop.xlane.xlu0 %3312 }
 0x5d1   : > { %v3322_v42 = vpop.xlane.xlu1 %3321 }
 0x5d2   : > { %v3323_v10 = vadd.f32 %v3322_v42, %v3313_v38 }
 0x5d4   : > { %v3324_v56 = vrot.slane %v3323_v10, 4 }
 0x5d6   : > { %v3325_v40 = vadd.f32 %v3324_v56, %v3323_v10 }
 0x5d8   : > { %v3326_v44 = vrot.slane %v3325_v40, 2 }
 0x5da   : > { %v3327_v25 = vadd.f32 %v3326_v44, %v3325_v40 }
 0x5dc   : > { %v3328_v16 = vrot.slane %v3327_v25, 1 }
 0x5de   : > { %v3329_v46 = vadd.f32 %v3328_v16, %v3327_v25 }
 0x5e0   : > { %v10510_v23 = vmul.f32 6.1035156e-05, %v3329_v46 }
 0x5e2   : > { %v3339_v55 = vsub.f32 %v10449_v1, %v10510_v23  ;;  %v3340_v11 = vsub.f32 %v10445_v5, %v10510_v23  ;;  %v3341_v3 = vsub.f32 %v10458_v19, %v10510_v23  ;;  %v3342_v21 = vsub.f32 %v10471_v58, %v10510_v23 }
 0x5e3   : > { %v3343_v0 = vsub.f32 %v10478_v57, %v10510_v23  ;;  %v3331_v9 = vsub.f32 %v10437_v59, %v10510_v23  ;;  %v3332_v33 = vsub.f32 %v10434_v15, %v10510_v23  ;;  %v3333_v51 = vsub.f32 %v10440_v48, %v10510_v23 }
 0x5e4   : > { %v3355_v41 = vmul.f32 %v3339_v55, %v3339_v55  ;;  %v3356_v18 = vmul.f32 %v3340_v11, %v3340_v11  ;;  %v3357_v28 = vmul.f32 %v3341_v3, %v3341_v3  ;;  %v3344_v14 = vsub.f32 %v10483_v6, %v10510_v23 }
 0x5e5   : > { %v3358_v7 = vmul.f32 %v3342_v21, %v3342_v21  ;;  %v3334_v52 = vsub.f32 %v10453_v24, %v10510_v23  ;;  %v3347_v22 = vmul.f32 %v3331_v9, %v3331_v9  ;;  %v3348_v63 = vmul.f32 %v3332_v33, %v3332_v33  ;;  %v3701_v21 = vld [vmem:[%s14130_s3 + $0x388] sm:$0xff]  ;;  %v3692_v9 = vld [vmem:[%s14130_s3 + $0x340] sm:$0xff] }
 0x5e6   : > { %v3372_v43 = vadd.f32 %v3356_v18, %v3355_v41  ;;  %v3345_v12 = vsub.f32 %v10491_v54, %v10510_v23  ;;  %v3359_v47 = vmul.f32 %v3343_v0, %v3343_v0  ;;  %v3335_v39 = vsub.f32 %v10466_v8, %v10510_v23  ;;  %v3957_v41 = vld [vmem:[%s14130_s3 + $0xb88] sm:$0xff]  ;;  %4659 = vmatprep.subr.mxu0 %v3701_v21  ;;  %v3700_v18 = vld [vmem:[%s14130_s3 + $0x380] sm:$0xff] }
 0x5e7   : > { %v3349_v50 = vmul.f32 %v3333_v51, %v3333_v51  ;;  %v3363_v37 = vadd.f32 %v3348_v63, %v3347_v22  ;;  %v3346_v2 = vsub.f32 %v10494_v62, %v10510_v23  ;;  %v3360_v35 = vmul.f32 %v3344_v14, %v3344_v14  ;;  %4736 = vmatprep.subr.mxu1 %v3957_v41  ;;  %v3956_v0 = vld [vmem:[%s14130_s3 + $0xb80] sm:$0xff]  ;;  %v3685_v51 = vld [vmem:[%s14130_s3 + $0x308] sm:$0xff] }
 0x5e8   : > { %v3373_v34 = vadd.f32 %v3372_v43, %v3357_v28  ;;  %v3336_v27 = vsub.f32 %v10476_v61, %v10510_v23  ;;  %v3350_v49 = vmul.f32 %v3334_v52, %v3334_v52  ;;  %v3361_v53 = vmul.f32 %v3345_v12, %v3345_v12  ;;  %4660 = vmatpush1.msra.mxu0 %v3700_v18  ;;  %v3693_v28 = vld [vmem:[%s14130_s3 + $0x348] sm:$0xff]  ;;  %v3948_v33 = vld [vmem:[%s14130_s3 + $0xb40] sm:$0xff] }
 0x5e9   : > { %v3364_v29 = vadd.f32 %v3363_v37, %v3349_v50  ;;  %v3337_v4 = vsub.f32 %v10485_v20, %v10510_v23  ;;  %v3351_v45 = vmul.f32 %v3335_v39, %v3335_v39  ;;  %v3362_v42 = vmul.f32 %v3346_v2, %v3346_v2  ;;  %4737 = vmatpush1.msra.mxu1 %v3956_v0  ;;  %v3949_v43 = vld [vmem:[%s14130_s3 + $0xb48] sm:$0xff]  ;;  %v3676_v63 = vld [vmem:[%s14130_s3 + $0x2c0] sm:$0xff] }
 0x5ea   : > { %v3374_v17 = vadd.f32 %v3373_v34, %v3358_v7  ;;  %v3338_v56 = vsub.f32 %v10487_v13, %v10510_v23  ;;  %v3352_v40 = vmul.f32 %v3336_v27, %v3336_v27  ;;  %4661 = vmatprep.subr.mxu0 %v3693_v28  ;;  %4738 = vmatprep.subr.mxu1 %v3949_v43  ;;  %v3941_v14 = vld [vmem:[%s14130_s3 + $0xb08] sm:$0xff]  ;;  %v3684_v7 = vld [vmem:[%s14130_s3 + $0x300] sm:$0xff] }
 0x5eb   : > { %v3365_v38 = vadd.f32 %v3364_v29, %v3350_v49  ;;  %v3353_v16 = vmul.f32 %v3337_v4, %v3337_v4  ;;  %4662 = vmatpush1.msra.mxu0 %v3692_v9  ;;  %4739 = vmatpush1.msra.mxu1 %v3948_v33  ;;  %v3940_v34 = vld [vmem:[%s14130_s3 + $0xb00] sm:$0xff]  ;;  %v3677_v52 = vld [vmem:[%s14130_s3 + $0x2c8] sm:$0xff] }
 0x5ec   : > { %v3375_v32 = vadd.f32 %v3374_v17, %v3359_v47  ;;  %v3354_v55 = vmul.f32 %v3338_v56, %v3338_v56  ;;  %4663 = vmatprep.subr.mxu0 %v3685_v51  ;;  %4740 = vmatprep.subr.mxu1 %v3941_v14  ;;  %v3933_v22 = vld [vmem:[%s14130_s3 + $0xac8] sm:$0xff]  ;;  %v3932_v12 = vld [vmem:[%s14130_s3 + $0xac0] sm:$0xff] }
 0x5ed   : > { %v3366_v44 = vadd.f32 %v3365_v38, %v3351_v45  ;;  %4664 = vmatpush1.msra.mxu0 %v3684_v7  ;;  %4741 = vmatpush1.msra.mxu1 %v3940_v34  ;;  %v3669_v47 = vld [vmem:[%s14130_s3 + $0x288] sm:$0xff]  ;;  %v3668_v39 = vld [vmem:[%s14130_s3 + $0x280] sm:$0xff] }
 0x5ee   : > { %v3376_v36 = vadd.f32 %v3375_v32, %v3360_v35  ;;  %4665 = vmatprep.subr.mxu0 %v3677_v52  ;;  %4742 = vmatprep.subr.mxu1 %v3933_v22  ;;  %v3925_v17 = vld [vmem:[%s14130_s3 + $0xa88] sm:$0xff]  ;;  %v3924_v50 = vld [vmem:[%s14130_s3 + $0xa80] sm:$0xff] }
 0x5ef   : > { %v3367_v46 = vadd.f32 %v3366_v44, %v3352_v40  ;;  %4666 = vmatpush1.msra.mxu0 %v3676_v63  ;;  %4743 = vmatpush1.msra.mxu1 %v3932_v12  ;;  %v3661_v37 = vld [vmem:[%s14130_s3 + $0x248] sm:$0xff]  ;;  %v3660_v35 = vld [vmem:[%s14130_s3 + $0x240] sm:$0xff] }
 0x5f0   : > { %v3377_v10 = vadd.f32 %v3376_v36, %v3361_v53  ;;  %4667 = vmatprep.subr.mxu0 %v3669_v47  ;;  %4744 = vmatprep.subr.mxu1 %v3925_v17  ;;  %v3917_v2 = vld [vmem:[%s14130_s3 + $0xa48] sm:$0xff]  ;;  %v3916_v32 = vld [vmem:[%s14130_s3 + $0xa40] sm:$0xff] }
 0x5f1   : > { %v3368_v11 = vadd.f32 %v3367_v46, %v3353_v16  ;;  %4668 = vmatpush1.msra.mxu0 %v3668_v39  ;;  %4745 = vmatpush1.msra.mxu1 %v3924_v50  ;;  %v3653_v27 = vld [vmem:[%s14130_s3 + $0x208] sm:$0xff]  ;;  %v3652_v29 = vld [vmem:[%s14130_s3 + $0x200] sm:$0xff] }
 0x5f2   : > { %v3378_v25 = vadd.f32 %v3377_v10, %v3362_v42  ;;  %4669 = vmatprep.subr.mxu0 %v3661_v37  ;;  %4746 = vmatprep.subr.mxu1 %v3917_v2  ;;  %v3909_v49 = vld [vmem:[%s14130_s3 + $0xa08] sm:$0xff]  ;;  %v3908_v53 = vld [vmem:[%s14130_s3 + $0xa00] sm:$0xff] }
 0x5f3   : > { %v3369_v3 = vadd.f32 %v3368_v11, %v3354_v55  ;;  %4670 = vmatpush1.msra.mxu0 %v3660_v35  ;;  %4747 = vmatpush1.msra.mxu1 %v3916_v32  ;;  %v3645_v36 = vld [vmem:[%s14130_s3 + $0x1c8] sm:$0xff]  ;;  %v3644_v45 = vld [vmem:[%s14130_s3 + $0x1c0] sm:$0xff] }
 0x5f4   : > { %3379 = vadd.xlane.f32.xlu1 %v3378_v25  ;;  %4671 = vmatprep.subr.mxu0 %v3653_v27  ;;  %v3901_v4 = vld [vmem:[%s14130_s3 + $0x9c8] sm:$0xff]  ;;  %v3900_v38 = vld [vmem:[%s14130_s3 + $0x9c0] sm:$0xff] }
 0x5f5   : > { %3370 = vadd.xlane.f32.xlu0 %v3369_v3  ;;  %4748 = vmatprep.subr.mxu1 %v3909_v49  ;;  %v3637_v42 = vld [vmem:[%s14130_s3 + $0x188] sm:$0xff]  ;;  %v3636_v56 = vld [vmem:[%s14130_s3 + $0x180] sm:$0xff] }
 0x5f6   : > { %4672 = vmatpush1.msra.mxu0 %v3652_v29  ;;  %4749 = vmatpush1.msra.mxu1 %v3908_v53  ;;  %v3893_v10 = vld [vmem:[%s14130_s3 + $0x988] sm:$0xff]  ;;  %v3892_v40 = vld [vmem:[%s14130_s3 + $0x980] sm:$0xff] }
 0x5f7   : > { %4673 = vmatprep.subr.mxu0 %v3645_v36  ;;  %4750 = vmatprep.subr.mxu1 %v3901_v4  ;;  %v3629_v44 = vld [vmem:[%s14130_s3 + $0x148] sm:$0xff]  ;;  %v3628_v16 = vld [vmem:[%s14130_s3 + $0x140] sm:$0xff] }
 0x5f8   : > { %4674 = vmatpush1.msra.mxu0 %v3644_v45  ;;  %4751 = vmatpush1.msra.mxu1 %v3900_v38  ;;  %v3885_v25 = vld [vmem:[%s14130_s3 + $0x948] sm:$0xff]  ;;  %v3884_v46 = vld [vmem:[%s14130_s3 + $0x940] sm:$0xff] }
 0x5f9   : > { %4675 = vmatprep.subr.mxu0 %v3637_v42  ;;  %4752 = vmatprep.subr.mxu1 %v3893_v10  ;;  %v3621_v55 = vld [vmem:[%s14130_s3 + $0x108] sm:$0xff]  ;;  %v3620_v3 = vld [vmem:[%s14130_s3 + $0x100] sm:$0xff] }
 0x5fa   : > { %4676 = vmatpush1.msra.mxu0 %v3636_v56  ;;  %4753 = vmatpush1.msra.mxu1 %v3892_v40  ;;  %v3877_v11 = vld [vmem:[%s14130_s3 + $0x908] sm:$0xff]  ;;  %v3876_v21 = vld [vmem:[%s14130_s3 + $0x900] sm:$0xff] }
 0x5fb   : > { %4677 = vmatprep.subr.mxu0 %v3629_v44  ;;  %4754 = vmatprep.subr.mxu1 %v3885_v25  ;;  %v3613_v41 = vld [vmem:[%s14130_s3 + $0xc8] sm:$0xff]  ;;  %v3612_v0 = vld [vmem:[%s14130_s3 + $0xc0] sm:$0xff] }
 0x5fc   : > { %4678 = vmatpush1.msra.mxu0 %v3628_v16  ;;  %4755 = vmatpush1.msra.mxu1 %v3884_v46  ;;  %v3869_v18 = vld [vmem:[%s14130_s3 + $0x8c8] sm:$0xff]  ;;  %v3868_v28 = vld [vmem:[%s14130_s3 + $0x8c0] sm:$0xff] }
 0x5fd   : > { %4679 = vmatprep.subr.mxu0 %v3621_v55  ;;  %4756 = vmatprep.subr.mxu1 %v3877_v11  ;;  %v3605_v43 = vld [vmem:[%s14130_s3 + $0x88] sm:$0xff]  ;;  %v3604_v33 = vld [vmem:[%s14130_s3 + $0x80] sm:$0xff] }
 0x5fe   : > { %4680 = vmatpush1.msra.mxu0 %v3620_v3  ;;  %4757 = vmatpush1.msra.mxu1 %v3876_v21  ;;  %v3861_v9 = vld [vmem:[%s14130_s3 + $0x888] sm:$0xff]  ;;  %v3860_v51 = vld [vmem:[%s14130_s3 + $0x880] sm:$0xff] }
 0x5ff   : > { %4681 = vmatprep.subr.mxu0 %v3613_v41  ;;  %4758 = vmatprep.subr.mxu1 %v3869_v18  ;;  %v3597_v14 = vld [vmem:[%s14130_s3 + $0x48] sm:$0xff]  ;;  %v3596_v34 = vld [vmem:[%s14130_s3 + $0x40] sm:$0xff] }
 0x600   : > { %4682 = vmatpush1.msra.mxu0 %v3612_v0  ;;  %4759 = vmatpush1.msra.mxu1 %v3868_v28  ;;  %v3853_v7 = vld [vmem:[%s14130_s3 + $0x848] sm:$0xff]  ;;  %v3852_v52 = vld [vmem:[%s14130_s3 + $0x840] sm:$0xff] }
 0x601   : > { %4683 = vmatprep.subr.mxu0 %v3605_v43  ;;  %4760 = vmatprep.subr.mxu1 %v3861_v9  ;;  %v3589_v22 = vld [vmem:[%s14130_s3 + $0x8] sm:$0xff]  ;;  %v3588_v12 = vld [vmem:[%s14130_s3] sm:$0xff] }
 0x602   : > { %4684 = vmatpush1.msra.mxu0 %v3604_v33  ;;  %4761 = vmatpush1.msra.mxu1 %v3860_v51  ;;  %v3845_v63 = vld [vmem:[%s14130_s3 + $0x808] sm:$0xff]  ;;  %v3844_v47 = vld [vmem:[%s14130_s3 + $0x800] sm:$0xff] }
 0x603   : > { %4685 = vmatprep.subr.mxu0 %v3597_v14  ;;  %4762 = vmatprep.subr.mxu1 %v3853_v7  ;;  %v3837_v17 = vld [vmem:[%s14130_s3 + $0x7c8] sm:$0xff]  ;;  %v3836_v50 = vld [vmem:[%s14130_s3 + $0x7c0] sm:$0xff] }
 0x604   : > { %4686 = vmatpush1.msra.mxu0 %v3596_v34  ;;  %4763 = vmatpush1.msra.mxu1 %v3852_v52  ;;  %v4093_v39 = vld [vmem:[%s14130_s3 + $0xfc8] sm:$0xff]  ;;  %v4092_v37 = vld [vmem:[%s14130_s3 + $0xfc0] sm:$0xff] }
 0x605   : > { %4687 = vmatprep.subr.mxu0 %v3589_v22  ;;  %4764 = vmatprep.subr.mxu1 %v3845_v63  ;;  %v3829_v2 = vld [vmem:[%s14130_s3 + $0x788] sm:$0xff]  ;;  %v3828_v32 = vld [vmem:[%s14130_s3 + $0x780] sm:$0xff] }
 0x606   : > { %4688 = vmatpush1.msra.mxu0 %v3588_v12  ;;  %4765 = vmatpush1.msra.mxu1 %v3844_v47  ;;  %v4085_v35 = vld [vmem:[%s14130_s3 + $0xf88] sm:$0xff]  ;;  %v4084_v27 = vld [vmem:[%s14130_s3 + $0xf80] sm:$0xff] }
 0x607   : > { %4689 = vmatprep.subr.mxu0 %v3837_v17  ;;  %4766 = vmatprep.subr.mxu1 %v4093_v39  ;;  %v3821_v49 = vld [vmem:[%s14130_s3 + $0x748] sm:$0xff]  ;;  %v3820_v53 = vld [vmem:[%s14130_s3 + $0x740] sm:$0xff] }
 0x608   : > { %4690 = vmatpush2.msra.mxu0 %v3836_v50  ;;  %4767 = vmatpush2.msra.mxu1 %v4092_v37  ;;  %v4077_v29 = vld [vmem:[%s14130_s3 + $0xf48] sm:$0xff]  ;;  %v4076_v36 = vld [vmem:[%s14130_s3 + $0xf40] sm:$0xff] }
 0x609   : > { %4691 = vmatprep.subr.mxu0 %v3829_v2  ;;  %4768 = vmatprep.subr.mxu1 %v4085_v35  ;;  %v3813_v4 = vld [vmem:[%s14130_s3 + $0x708] sm:$0xff]  ;;  %v3812_v38 = vld [vmem:[%s14130_s3 + $0x700] sm:$0xff] }
 0x60a   : > { %4692 = vmatpush2.msra.mxu0 %v3828_v32  ;;  %4769 = vmatpush2.msra.mxu1 %v4084_v27  ;;  %v4069_v45 = vld [vmem:[%s14130_s3 + $0xf08] sm:$0xff]  ;;  %v4068_v42 = vld [vmem:[%s14130_s3 + $0xf00] sm:$0xff] }
 0x60b   : > { %4693 = vmatprep.subr.mxu0 %v3821_v49  ;;  %4770 = vmatprep.subr.mxu1 %v4077_v29  ;;  %v3805_v10 = vld [vmem:[%s14130_s3 + $0x6c8] sm:$0xff]  ;;  %v3804_v40 = vld [vmem:[%s14130_s3 + $0x6c0] sm:$0xff] }
 0x60c   : > { %4694 = vmatpush2.msra.mxu0 %v3820_v53  ;;  %4771 = vmatpush2.msra.mxu1 %v4076_v36  ;;  %v4061_v56 = vld [vmem:[%s14130_s3 + $0xec8] sm:$0xff]  ;;  %v4060_v44 = vld [vmem:[%s14130_s3 + $0xec0] sm:$0xff] }
 0x60d   : > { %4695 = vmatprep.subr.mxu0 %v3813_v4  ;;  %4772 = vmatprep.subr.mxu1 %v4069_v45  ;;  %v3797_v25 = vld [vmem:[%s14130_s3 + $0x688] sm:$0xff]  ;;  %v3796_v46 = vld [vmem:[%s14130_s3 + $0x680] sm:$0xff] }
 0x60e   : > { %4696 = vmatpush2.msra.mxu0 %v3812_v38  ;;  %4773 = vmatpush2.msra.mxu1 %v4068_v42  ;;  %v4053_v16 = vld [vmem:[%s14130_s3 + $0xe88] sm:$0xff]  ;;  %v4052_v55 = vld [vmem:[%s14130_s3 + $0xe80] sm:$0xff] }
 0x60f   : > { %4697 = vmatprep.subr.mxu0 %v3805_v10  ;;  %4774 = vmatprep.subr.mxu1 %v4061_v56  ;;  %v3789_v11 = vld [vmem:[%s14130_s3 + $0x648] sm:$0xff]  ;;  %v3788_v21 = vld [vmem:[%s14130_s3 + $0x640] sm:$0xff] }
 0x610   : > { %4698 = vmatpush2.msra.mxu0 %v3804_v40  ;;  %4775 = vmatpush2.msra.mxu1 %v4060_v44  ;;  %v4045_v3 = vld [vmem:[%s14130_s3 + $0xe48] sm:$0xff]  ;;  %v4044_v41 = vld [vmem:[%s14130_s3 + $0xe40] sm:$0xff] }
 0x611   : > { %4699 = vmatprep.subr.mxu0 %v3797_v25  ;;  %4776 = vmatprep.subr.mxu1 %v4053_v16  ;;  %v3781_v18 = vld [vmem:[%s14130_s3 + $0x608] sm:$0xff]  ;;  %v3780_v28 = vld [vmem:[%s14130_s3 + $0x600] sm:$0xff] }
 0x612   : > { %4700 = vmatpush2.msra.mxu0 %v3796_v46  ;;  %4777 = vmatpush2.msra.mxu1 %v4052_v55  ;;  %v4037_v0 = vld [vmem:[%s14130_s3 + $0xe08] sm:$0xff]  ;;  %v4036_v43 = vld [vmem:[%s14130_s3 + $0xe00] sm:$0xff] }
 0x613   : > { %4701 = vmatprep.subr.mxu0 %v3789_v11  ;;  %4778 = vmatprep.subr.mxu1 %v4045_v3  ;;  %v3773_v9 = vld [vmem:[%s14130_s3 + $0x5c8] sm:$0xff]  ;;  %v3772_v51 = vld [vmem:[%s14130_s3 + $0x5c0] sm:$0xff] }
 0x614   : > { %4702 = vmatpush2.msra.mxu0 %v3788_v21  ;;  %4779 = vmatpush2.msra.mxu1 %v4044_v41  ;;  %v4029_v33 = vld [vmem:[%s14130_s3 + $0xdc8] sm:$0xff]  ;;  %v4028_v14 = vld [vmem:[%s14130_s3 + $0xdc0] sm:$0xff] }
 0x615   : > { %4703 = vmatprep.subr.mxu0 %v3781_v18  ;;  %4780 = vmatprep.subr.mxu1 %v4037_v0  ;;  %v3765_v7 = vld [vmem:[%s14130_s3 + $0x588] sm:$0xff]  ;;  %v3764_v52 = vld [vmem:[%s14130_s3 + $0x580] sm:$0xff] }
 0x616   : > { %4704 = vmatpush2.msra.mxu0 %v3780_v28  ;;  %4781 = vmatpush2.msra.mxu1 %v4036_v43  ;;  %v4021_v34 = vld [vmem:[%s14130_s3 + $0xd88] sm:$0xff]  ;;  %v4020_v22 = vld [vmem:[%s14130_s3 + $0xd80] sm:$0xff] }
 0x617   : > { %4705 = vmatprep.subr.mxu0 %v3773_v9  ;;  %4782 = vmatprep.subr.mxu1 %v4029_v33  ;;  %v3757_v63 = vld [vmem:[%s14130_s3 + $0x548] sm:$0xff]  ;;  %v3756_v47 = vld [vmem:[%s14130_s3 + $0x540] sm:$0xff] }
 0x618   : > { %4706 = vmatpush2.msra.mxu0 %v3772_v51  ;;  %4783 = vmatpush2.msra.mxu1 %v4028_v14  ;;  %v4013_v12 = vld [vmem:[%s14130_s3 + $0xd48] sm:$0xff]  ;;  %v4012_v17 = vld [vmem:[%s14130_s3 + $0xd40] sm:$0xff] }
 0x619   : > { %4707 = vmatprep.subr.mxu0 %v3765_v7  ;;  %4784 = vmatprep.subr.mxu1 %v4021_v34  ;;  %v3749_v39 = vld [vmem:[%s14130_s3 + $0x508] sm:$0xff]  ;;  %v3748_v37 = vld [vmem:[%s14130_s3 + $0x500] sm:$0xff] }
 0x61a   : > { %4708 = vmatpush2.msra.mxu0 %v3764_v52  ;;  %4785 = vmatpush2.msra.mxu1 %v4020_v22  ;;  %v4005_v50 = vld [vmem:[%s14130_s3 + $0xd08] sm:$0xff]  ;;  %v4004_v2 = vld [vmem:[%s14130_s3 + $0xd00] sm:$0xff] }
 0x61b   : > { %4709 = vmatprep.subr.mxu0 %v3757_v63  ;;  %4786 = vmatprep.subr.mxu1 %v4013_v12  ;;  %v3741_v35 = vld [vmem:[%s14130_s3 + $0x4c8] sm:$0xff]  ;;  %v3740_v27 = vld [vmem:[%s14130_s3 + $0x4c0] sm:$0xff] }
 0x61c   : > { %4710 = vmatpush2.msra.mxu0 %v3756_v47  ;;  %4787 = vmatpush2.msra.mxu1 %v4012_v17  ;;  %v3997_v32 = vld [vmem:[%s14130_s3 + $0xcc8] sm:$0xff]  ;;  %v3996_v49 = vld [vmem:[%s14130_s3 + $0xcc0] sm:$0xff] }
 0x61d   : > { %4711 = vmatprep.subr.mxu0 %v3749_v39  ;;  %4788 = vmatprep.subr.mxu1 %v4005_v50  ;;  %v3733_v29 = vld [vmem:[%s14130_s3 + $0x488] sm:$0xff]  ;;  %v3732_v36 = vld [vmem:[%s14130_s3 + $0x480] sm:$0xff]  ;;  %v14165_v50 = vld [vmem:[#allocation8_spill] sm:$0xff] }
 0x61e   : > { %4712 = vmatpush2.msra.mxu0 %v3748_v37  ;;  %4789 = vmatpush2.msra.mxu1 %v4004_v2  ;;  %v3989_v53 = vld [vmem:[%s14130_s3 + $0xc88] sm:$0xff]  ;;  %v3988_v4 = vld [vmem:[%s14130_s3 + $0xc80] sm:$0xff] }
 0x61f   : > { %4713 = vmatprep.subr.mxu0 %v3741_v35  ;;  %4790 = vmatprep.subr.mxu1 %v3997_v32  ;;  %v3725_v45 = vld [vmem:[%s14130_s3 + $0x448] sm:$0xff]  ;;  %v3724_v42 = vld [vmem:[%s14130_s3 + $0x440] sm:$0xff]  ;;  %v14167_v32 = vld [vmem:[#allocation7_spill] sm:$0xff] }
 0x620   : > { %4714 = vmatpush2.msra.mxu0 %v3740_v27  ;;  %4791 = vmatpush2.msra.mxu1 %v3996_v49  ;;  %v3981_v38 = vld [vmem:[%s14130_s3 + $0xc48] sm:$0xff]  ;;  %v3980_v10 = vld [vmem:[%s14130_s3 + $0xc40] sm:$0xff] }
 0x621   : > { %4715 = vmatprep.subr.mxu0 %v3733_v29  ;;  %4792 = vmatprep.subr.mxu1 %v3989_v53  ;;  %v3717_v56 = vld [vmem:[%s14130_s3 + $0x408] sm:$0xff]  ;;  %v3716_v44 = vld [vmem:[%s14130_s3 + $0x400] sm:$0xff] }
 0x622   : > { %4716 = vmatpush2.msra.mxu0 %v3732_v36  ;;  %4793 = vmatpush2.msra.mxu1 %v3988_v4  ;;  %v3973_v40 = vld [vmem:[%s14130_s3 + $0xc08] sm:$0xff]  ;;  %v3972_v25 = vld [vmem:[%s14130_s3 + $0xc00] sm:$0xff] }
 0x623   : > { %4717 = vmatprep.subr.mxu0 %v3725_v45  ;;  %4794 = vmatprep.subr.mxu1 %v3981_v38  ;;  %v4221_v16 = vld [vmem:[%s14130_s3 + $0x13c8] sm:$0xff]  ;;  %v14166_v2 = vld [vmem:[#allocation5_spill] sm:$0xff] }
 0x624   : > { %4718 = vmatpush2.msra.mxu0 %v3724_v42  ;;  %4795 = vmatpush2.msra.mxu1 %v3980_v10  ;;  %v4477_v46 = vld [vmem:[%s14130_s3 + $0x1bc8] sm:$0xff] }
 0x625   : > { %4719 = vmatprep.subr.mxu0 %v3717_v56  ;;  %4796 = vmatprep.subr.mxu1 %v3973_v40  ;;  %v6285_v51 = vld [vmem:[%s14131_s4 + $0x4] ss:$8 sm:$0xf]  ;;  %v6287_v34 = vld [vmem:[%s14131_s4 + $0x5] ss:$8 sm:$0xf] }
 0x626   : > { %4720 = vmatpush2.msra.mxu0 %v3716_v44  ;;  %4797 = vmatpush2.msra.mxu1 %v3972_v25  ;;  %v6286_v14 = vld [vmem:[%s14131_s4 + $0x4] ss:$8 sm:$0xf0]  ;;  %v6288_v52 = vld [vmem:[%s14131_s4 + $0x5] ss:$8 sm:$0xf0] }
 0x627   : > { %4811 = vmatprep.subr.mxu0 %v4221_v16  ;;  %4888 = vmatprep.subr.mxu1 %v4477_v46  ;;  %v3300_v7 = vor.u32 %v6286_v14, %v6285_v51  ;;  %v3304_v12 = vor.u32 %v6288_v52, %v6287_v34  ;;  %v14164_v17 = vld [vmem:[#allocation6_spill] sm:$0xff] }
 0x67d   : > { %v3380_v55 = vpop.xlane.xlu1 %3379 }
 0x67e   : > { %v3371_v11 = vpop.xlane.xlu0 %3370 }
 0x67f   : > { %v3381_v3 = vadd.f32 %v3380_v55, %v3371_v11 }
 0x681   : > { %v3382_v21 = vrot.slane %v3381_v3, 4 }
 0x683   : > { %v3383_v41 = vadd.f32 %v3382_v21, %v3381_v3 }
 0x685   : > { %v3384_v18 = vrot.slane %v3383_v41, 2 }
 0x687   : > { %v3385_v0 = vadd.f32 %v3384_v18, %v3383_v41 }
 0x689   : > { %v3386_v28 = vrot.slane %v3385_v0, 1 }
 0x68b   : > { %v3387_v43 = vadd.f32 %v3386_v28, %v3385_v0 }
 0x68d   : > { %v3388_v9 = vmul.f32 6.1035156e-05, %v3387_v43 }
 0x68f   : > { %v3389_v33 = vadd.f32 1e-05, %v3388_v9 }
 0x691   : > { %6378 = vrsqrt.f32 %v3389_v33 }
 0x69e   : > { %v6379_v22 = vpop.eup %6378 }
 0x69f   : > { %v3391_v63 = vmul.f32 %v6379_v22, %v3300_v7 }
 0x6a1   : > { %v3392_v47 = vmul.f32 %v3391_v63, %v10510_v23  ;;  %v3402_v39 = vrot.slane %v3391_v63, %v14164_v17  ;;  %v3410_v37 = vrot.slane %v3391_v63, %v14165_v50  ;;  %v3398_v35 = vrot.slane %v3391_v63, %v14166_v2 }
 0x6a2   : > { %v3406_v27 = vrot.slane %v3391_v63, %v14167_v32  ;;  %v10940_v29 = vrot.slane %v3391_v63, %v7034_v30  ;;  %v10960_v11 = vrot.slane %v3391_v63, %v14161_v60  ;;  %v3414_v41 = vrot.slane %v3391_v63, %v7030_v26 }
 0x6a3   : > { %v3393_v49 = vsub.f32 %v3304_v12, %v3392_v47  ;;  %v3436_v53 = vmul.f32 %v3402_v39, %v10434_v15  ;;  %v3438_v36 = vmul.f32 %v3410_v37, %v10453_v24  ;;  %v3435_v4 = vmul.f32 %v3398_v35, %v10437_v59 }
 0x6a4   : > { %v3437_v23 = vmul.f32 %v3406_v27, %v10440_v48  ;;  %v3444_v56 = vmul.f32 %v3402_v39, %v10445_v5  ;;  %v3446_v40 = vmul.f32 %v3410_v37, %v10471_v58  ;;  %v3443_v15 = vmul.f32 %v3398_v35, %v10449_v1 }
 0x6a5   : > { %v3459_v45 = vrot.slane %v3393_v49, %v14164_v17  ;;  %v3467_v38 = vrot.slane %v3393_v49, %v14165_v50  ;;  %v3455_v42 = vrot.slane %v3393_v49, %v14166_v2  ;;  %v3463_v10 = vrot.slane %v3393_v49, %v14167_v32 }
 0x6a6   : > { %v3445_v24 = vmul.f32 %v3406_v27, %v10458_v19  ;;  %v10957_v55 = vrot.slane %v3393_v49, %v7034_v30  ;;  %v3440_v0 = vmul.f32 %v10940_v29, %v10476_v61  ;;  %v3442_v43 = vmul.f32 %v10960_v11, %v10487_v13 }
 0x6a7   : > { %v3493_v44 = vadd.f32 %v3459_v45, %v3436_v53  ;;  %v3495_v59 = vadd.f32 %v3467_v38, %v3438_v36  ;;  %v3492_v25 = vadd.f32 %v3455_v42, %v3435_v4  ;;  %v3494_v48 = vadd.f32 %v3463_v10, %v3437_v23 }
 0x6a8   : > { %v3501_v16 = vadd.f32 %v3459_v45, %v3444_v56  ;;  %v10954_v46 = vadd.f32 %v3467_v38, %v3446_v40  ;;  %v10962_v58 = vadd.f32 %v3455_v42, %v3443_v15  ;;  %v10964_v1 = vadd.f32 %v3463_v10, %v3445_v24 }
 0x6a9   : > { %v3525_v5 = vmul.f32 0.70710677, %v3493_v44  ;;  %v3527_v3 = vmul.f32 0.70710677, %v3495_v59  ;;  %v3524_v19 = vmul.f32 0.70710677, %v3492_v25  ;;  %v10975_v51 = vadd.f32 %v10957_v55, %v3440_v0 }
 0x6aa   : > { %v3526_v21 = vmul.f32 0.70710677, %v3494_v48  ;;  %v3533_v18 = vmul.f32 0.70710677, %v3501_v16  ;;  %v3535_v28 = vmul.f32 0.70710677, %v10954_v46  ;;  %v10978_v14 = vrot.slane %v3393_v49, %v14161_v60 }
 0x6ab   : > { %6380 = verf.f32 %v3525_v5  ;;  %v3532_v9 = vmul.f32 0.70710677, %v10962_v58  ;;  %v3534_v33 = vmul.f32 0.70710677, %v10964_v1  ;;  %v3439_v61 = vmul.f32 %v3414_v41, %v10466_v8 }
 0x6ac   : > { %6382 = verf.f32 %v3527_v3  ;;  %v3471_v7 = vrot.slane %v3393_v49, %v7030_v26  ;;  %v3529_v34 = vmul.f32 0.70710677, %v10975_v51  ;;  %v3422_v13 = vrot.slane %v3391_v63, %v7036_v31 }
 0x6ad   : > { %6384 = verf.f32 %v3524_v19  ;;  %v10985_v52 = vadd.f32 %v10978_v14, %v3442_v43  ;;  %v3479_v12 = vrot.slane %v3393_v49, %v7036_v31  ;;  %v3447_v63 = vmul.f32 %v3414_v41, %v10478_v57 }
 0x6ae   : > { %6386 = verf.f32 %v3526_v21  ;;  %v10987_v22 = vadd.f32 %v3471_v7, %v3439_v61  ;;  %v3441_v47 = vmul.f32 %v3422_v13, %v10485_v20  ;;  %v3449_v37 = vmul.f32 %v3422_v13, %v10491_v54  ;;  %v4205_v13 = vld [vmem:[%s14130_s3 + $0x1348] sm:$0xff] }
 0x6af   : > { %6388 = verf.f32 %v3533_v18  ;;  %v3531_v8 = vmul.f32 0.70710677, %v10985_v52  ;;  %v10996_v35 = vadd.f32 %v3471_v7, %v3447_v63  ;;  %v3509_v36 = vmul.f32 0.5, %v3493_v44  ;;  %v4220_v44 = vld [vmem:[%s14130_s3 + $0x13c0] sm:$0xff] }
 0x6b0   : > { %6390 = verf.f32 %v3535_v28  ;;  %v10992_v39 = vadd.f32 %v3479_v12, %v3441_v47  ;;  %v10998_v27 = vadd.f32 %v3479_v12, %v3449_v37  ;;  %v3511_v23 = vmul.f32 0.5, %v3495_v59  ;;  %v4461_v47 = vld [vmem:[%s14130_s3 + $0x1b48] sm:$0xff] }
 0x6b1   : > { %6392 = verf.f32 %v3532_v9  ;;  %v3508_v10 = vmul.f32 0.5, %v3492_v25  ;;  %v3510_v54 = vmul.f32 0.5, %v3494_v48  ;;  %v3517_v59 = vmul.f32 0.5, %v3501_v16  ;;  %v4476_v48 = vld [vmem:[%s14130_s3 + $0x1bc0] sm:$0xff]  ;;  %v4213_v16 = vld [vmem:[%s14130_s3 + $0x1388] sm:$0xff] }
 0x6b2   : > { %6394 = verf.f32 %v3534_v33  ;;  %v3519_v21 = vmul.f32 0.5, %v10954_v46  ;;  %v4469_v46 = vld [vmem:[%s14130_s3 + $0x1b88] sm:$0xff]  ;;  %v4212_v33 = vld [vmem:[%s14130_s3 + $0x1380] sm:$0xff]  ;;  %v3516_v12 = vmul.f32 0.5, %v10962_v58 }
 0x6b3   : > { %6396 = verf.f32 %v3529_v34  ;;  %v4468_v34 = vld [vmem:[%s14130_s3 + $0x1b80] sm:$0xff] }
 0x6b4   : > { %6398 = verf.f32 %v3531_v8  ;;  %v3518_v8 = vmul.f32 0.5, %v10964_v1  ;;  %v4197_v1 = vld [vmem:[%s14130_s3 + $0x1308] sm:$0xff] }
 0x6b8   : > { %v6381_v53 = vpop.eup %6380 }
 0x6b9   : > { %v6383_v49 = vpop.eup %6382  ;;  %v3557_v4 = vadd.f32 1.0, %v6381_v53  ;;  %v4204_v53 = vld [vmem:[%s14130_s3 + $0x1340] sm:$0xff] }
 0x6ba   : > { %v6385_v20 = vpop.eup %6384  ;;  %v3559_v45 = vadd.f32 1.0, %v6383_v49 }
 0x6bb   : > { %v6387_v38 = vpop.eup %6386  ;;  %v11000_v42 = vmul.f32 %v3557_v4, %v3509_v36  ;;  %v3556_v56 = vadd.f32 1.0, %v6385_v20  ;;  %v4460_v36 = vld [vmem:[%s14130_s3 + $0x1b40] sm:$0xff]  ;;  %v3513_v4 = vmul.f32 0.5, %v10975_v51  ;;  %v4453_v20 = vld [vmem:[%s14130_s3 + $0x1b08] sm:$0xff] }
 0x6bc   : > { %v6389_v40 = vpop.eup %6388  ;;  %v11002_v57 = vmul.f32 %v3559_v45, %v3511_v23  ;;  %v3558_v15 = vadd.f32 1.0, %v6387_v38  ;;  %v3515_v23 = vmul.f32 0.5, %v10985_v52  ;;  %v4196_v38 = vld [vmem:[%s14130_s3 + $0x1300] sm:$0xff]  ;;  %v4189_v52 = vld [vmem:[%s14130_s3 + $0x12c8] sm:$0xff] }
 0x6bd   : > { %v6391_v24 = vpop.eup %6390  ;;  %4721 = vmatprep.mubr.f32.mxu0 %v11000_v42  ;;  %v11005_v5 = vmul.f32 %v3556_v56, %v3508_v10  ;;  %v3565_v3 = vadd.f32 1.0, %v6389_v40  ;;  %v4452_v10 = vld [vmem:[%s14130_s3 + $0x1b00] sm:$0xff]  ;;  %v4445_v56 = vld [vmem:[%s14130_s3 + $0x1ac8] sm:$0xff] }
 0x6be   : > { %v6393_v19 = vpop.eup %6392  ;;  %4798 = vmatprep.mubr.f32.mxu1 %v11002_v57  ;;  %v11011_v25 = vmul.f32 %v3558_v15, %v3510_v54  ;;  %v3567_v41 = vadd.f32 1.0, %v6391_v24  ;;  %v4188_v40 = vld [vmem:[%s14130_s3 + $0x12c0] sm:$0xff]  ;;  %v4181_v15 = vld [vmem:[%s14130_s3 + $0x1288] sm:$0xff] }
 0x6bf   : > { %v6395_v18 = vpop.eup %6394  ;;  %4722 = vmatmul.mubr.f32.vlgmr.msra.gmra.mxu0 %v11005_v5  ;;  %v11018_v0 = vmul.f32 %v3565_v3, %v3517_v59  ;;  %v3564_v28 = vadd.f32 1.0, %v6393_v19  ;;  %v4444_v54 = vld [vmem:[%s14130_s3 + $0x1ac0] sm:$0xff]  ;;  %v4437_v24 = vld [vmem:[%s14130_s3 + $0x1a88] sm:$0xff] }
 0x6c0   : > { %v6397_v43 = vpop.eup %6396  ;;  %4799 = vmatmul.mubr.f32.vlgmr.msra.gmra.mxu1 %v11011_v25  ;;  %4812 = vmatpush1.msra.mxu0 %v4220_v44  ;;  %v11024_v9 = vmul.f32 %v3567_v41, %v3519_v21  ;;  %v3566_v61 = vadd.f32 1.0, %v6395_v18  ;;  %v4180_v44 = vld [vmem:[%s14130_s3 + $0x1280] sm:$0xff]  ;;  %v4173_v3 = vld [vmem:[%s14130_s3 + $0x1248] sm:$0xff] }
 0x6c1   : > { %v6399_v7 = vpop.eup %6398  ;;  %4889 = vmatpush1.msra.mxu1 %v4476_v48  ;;  %4727 = vmatprep.mubr.f32.mxu0 %v11018_v0  ;;  %v3561_v63 = vadd.f32 1.0, %v6397_v43  ;;  %v11045_v37 = vmul.f32 %v3564_v28, %v3516_v12  ;;  %v4436_v59 = vld [vmem:[%s14130_s3 + $0x1a80] sm:$0xff]  ;;  %v4429_v19 = vld [vmem:[%s14130_s3 + $0x1a48] sm:$0xff] }
 0x6c2   : > { %4804 = vmatprep.mubr.f32.mxu1 %v11024_v9  ;;  %4813 = vmatprep.subr.mxu0 %v4213_v16  ;;  %v3563_v49 = vadd.f32 1.0, %v6399_v7  ;;  %v11050_v58 = vmul.f32 %v3566_v61, %v3518_v8  ;;  %v4172_v48 = vld [vmem:[%s14130_s3 + $0x1240] sm:$0xff]  ;;  %v4165_v41 = vld [vmem:[%s14130_s3 + $0x1208] sm:$0xff] }
 0x6c3   : > { %4890 = vmatprep.subr.mxu1 %v4469_v46  ;;  %4814 = vmatpush1.msra.mxu0 %v4212_v33  ;;  %v11065_v45 = vmul.f32 %v3561_v63, %v3513_v4  ;;  %v4428_v21 = vld [vmem:[%s14130_s3 + $0x1a40] sm:$0xff]  ;;  %v4421_v18 = vld [vmem:[%s14130_s3 + $0x1a08] sm:$0xff] }
 0x6c4   : > { %4891 = vmatpush1.msra.mxu1 %v4468_v34  ;;  %4815 = vmatprep.subr.mxu0 %v4205_v13  ;;  %v11070_v51 = vmul.f32 %v3563_v49, %v3515_v23  ;;  %v4164_v16 = vld [vmem:[%s14130_s3 + $0x1200] sm:$0xff]  ;;  %v4157_v43 = vld [vmem:[%s14130_s3 + $0x11c8] sm:$0xff] }
 0x6c5   : > { %4892 = vmatprep.subr.mxu1 %v4461_v47  ;;  %4728 = vmatmul.mubr.f32.gmra.mxu0 %v11045_v37  ;;  %v4420_v28 = vld [vmem:[%s14130_s3 + $0x1a00] sm:$0xff]  ;;  %v4413_v46 = vld [vmem:[%s14130_s3 + $0x19c8] sm:$0xff] }
 0x6c6   : > { %4805 = vmatmul.mubr.f32.gmra.mxu1 %v11050_v58  ;;  %4816 = vmatpush1.msra.mxu0 %v4204_v53  ;;  %v4156_v33 = vld [vmem:[%s14130_s3 + $0x11c0] sm:$0xff]  ;;  %v4149_v7 = vld [vmem:[%s14130_s3 + $0x1188] sm:$0xff] }
 0x6c7   : > { %4893 = vmatpush1.msra.mxu1 %v4460_v36  ;;  %4817 = vmatprep.subr.mxu0 %v4197_v1  ;;  %v4412_v61 = vld [vmem:[%s14130_s3 + $0x19c0] sm:$0xff]  ;;  %v4405_v34 = vld [vmem:[%s14130_s3 + $0x1988] sm:$0xff] }
 0x6c8   : > { %4875 = vmatprep.mubr.f32.mxu0 %v11065_v45  ;;  %4894 = vmatprep.subr.mxu1 %v4453_v20  ;;  %v4148_v13 = vld [vmem:[%s14130_s3 + $0x1180] sm:$0xff]  ;;  %v4141_v47 = vld [vmem:[%s14130_s3 + $0x1148] sm:$0xff] }
 0x6c9   : > { %4952 = vmatprep.mubr.f32.mxu1 %v11070_v51  ;;  %4818 = vmatpush1.msra.mxu0 %v4196_v38  ;;  %v4404_v12 = vld [vmem:[%s14130_s3 + $0x1980] sm:$0xff]  ;;  %v4397_v8 = vld [vmem:[%s14130_s3 + $0x1948] sm:$0xff] }
 0x6ca   : > { %4895 = vmatpush1.msra.mxu1 %v4452_v10  ;;  %4819 = vmatprep.subr.mxu0 %v4189_v52  ;;  %v4140_v63 = vld [vmem:[%s14130_s3 + $0x1140] sm:$0xff]  ;;  %v4133_v49 = vld [vmem:[%s14130_s3 + $0x1108] sm:$0xff] }
 0x6cb   : > { %4896 = vmatprep.subr.mxu1 %v4445_v56  ;;  %4820 = vmatpush1.msra.mxu0 %v4188_v40  ;;  %v4396_v53 = vld [vmem:[%s14130_s3 + $0x1940] sm:$0xff]  ;;  %v4389_v36 = vld [vmem:[%s14130_s3 + $0x1908] sm:$0xff] }
 0x6cc   : > { %4897 = vmatpush1.msra.mxu1 %v4444_v54  ;;  %4821 = vmatprep.subr.mxu0 %v4181_v15  ;;  %v4132_v1 = vld [vmem:[%s14130_s3 + $0x1100] sm:$0xff]  ;;  %v4125_v20 = vld [vmem:[%s14130_s3 + $0x10c8] sm:$0xff] }
 0x6cd   : > { %4898 = vmatprep.subr.mxu1 %v4437_v24  ;;  %4822 = vmatpush1.msra.mxu0 %v4180_v44  ;;  %v4388_v4 = vld [vmem:[%s14130_s3 + $0x1900] sm:$0xff]  ;;  %v4381_v23 = vld [vmem:[%s14130_s3 + $0x18c8] sm:$0xff] }
 0x6ce   : > { %4899 = vmatpush1.msra.mxu1 %v4436_v59  ;;  %4823 = vmatprep.subr.mxu0 %v4173_v3  ;;  %v4124_v38 = vld [vmem:[%s14130_s3 + $0x10c0] sm:$0xff]  ;;  %v4117_v52 = vld [vmem:[%s14130_s3 + $0x1088] sm:$0xff] }
 0x6cf   : > { %4900 = vmatprep.subr.mxu1 %v4429_v19  ;;  %4824 = vmatpush1.msra.mxu0 %v4172_v48  ;;  %v4380_v10 = vld [vmem:[%s14130_s3 + $0x18c0] sm:$0xff]  ;;  %v4373_v56 = vld [vmem:[%s14130_s3 + $0x1888] sm:$0xff] }
 0x6d0   : > { %4901 = vmatpush1.msra.mxu1 %v4428_v21  ;;  %4825 = vmatprep.subr.mxu0 %v4165_v41  ;;  %v4116_v40 = vld [vmem:[%s14130_s3 + $0x1080] sm:$0xff]  ;;  %v4109_v15 = vld [vmem:[%s14130_s3 + $0x1048] sm:$0xff] }
 0x6d1   : > { %4902 = vmatprep.subr.mxu1 %v4421_v18  ;;  %4826 = vmatpush1.msra.mxu0 %v4164_v16  ;;  %v4372_v54 = vld [vmem:[%s14130_s3 + $0x1880] sm:$0xff]  ;;  %v4365_v24 = vld [vmem:[%s14130_s3 + $0x1848] sm:$0xff] }
 0x6d2   : > { %4903 = vmatpush1.msra.mxu1 %v4420_v28  ;;  %4827 = vmatprep.subr.mxu0 %v4157_v43  ;;  %v4108_v44 = vld [vmem:[%s14130_s3 + $0x1040] sm:$0xff]  ;;  %v4101_v3 = vld [vmem:[%s14130_s3 + $0x1008] sm:$0xff] }
 0x6d3   : > { %4904 = vmatprep.subr.mxu1 %v4413_v46  ;;  %4828 = vmatpush1.msra.mxu0 %v4156_v33  ;;  %v4364_v59 = vld [vmem:[%s14130_s3 + $0x1840] sm:$0xff]  ;;  %v4357_v19 = vld [vmem:[%s14130_s3 + $0x1808] sm:$0xff] }
 0x6d4   : > { %4905 = vmatpush1.msra.mxu1 %v4412_v61  ;;  %4829 = vmatprep.subr.mxu0 %v4149_v7  ;;  %v4100_v48 = vld [vmem:[%s14130_s3 + $0x1000] sm:$0xff]  ;;  %v4349_v41 = vld [vmem:[%s14130_s3 + $0x17c8] sm:$0xff] }
 0x6d5   : > { %4906 = vmatprep.subr.mxu1 %v4405_v34  ;;  %4830 = vmatpush1.msra.mxu0 %v4148_v13  ;;  %v4356_v21 = vld [vmem:[%s14130_s3 + $0x1800] sm:$0xff]  ;;  %v4605_v18 = vld [vmem:[%s14130_s3 + $0x1fc8] sm:$0xff] }
 0x6d6   : > { %4907 = vmatpush1.msra.mxu1 %v4404_v12  ;;  %4831 = vmatprep.subr.mxu0 %v4141_v47  ;;  %v4348_v16 = vld [vmem:[%s14130_s3 + $0x17c0] sm:$0xff]  ;;  %v4341_v43 = vld [vmem:[%s14130_s3 + $0x1788] sm:$0xff]  ;;  %v3448_v12 = vmul.f32 %v10940_v29, %v10483_v6 }
 0x6d7   : > { %4908 = vmatprep.subr.mxu1 %v4397_v8  ;;  %4832 = vmatpush1.msra.mxu0 %v4140_v63  ;;  %v4604_v28 = vld [vmem:[%s14130_s3 + $0x1fc0] sm:$0xff]  ;;  %v4597_v46 = vld [vmem:[%s14130_s3 + $0x1f88] sm:$0xff]  ;;  %v3450_v63 = vmul.f32 %v10960_v11, %v10494_v62 }
 0x6d8   : > { %4909 = vmatpush1.msra.mxu1 %v4396_v53  ;;  %4833 = vmatprep.subr.mxu0 %v4133_v49  ;;  %v4340_v33 = vld [vmem:[%s14130_s3 + $0x1780] sm:$0xff]  ;;  %v4333_v7 = vld [vmem:[%s14130_s3 + $0x1748] sm:$0xff]  ;;  %v11271_v29 = vadd.f32 %v10957_v55, %v3448_v12 }
 0x6d9   : > { %4910 = vmatprep.subr.mxu1 %v4389_v36  ;;  %4834 = vmatpush1.msra.mxu0 %v4132_v1  ;;  %v4596_v61 = vld [vmem:[%s14130_s3 + $0x1f80] sm:$0xff]  ;;  %v4589_v34 = vld [vmem:[%s14130_s3 + $0x1f48] sm:$0xff]  ;;  %v11280_v11 = vadd.f32 %v10978_v14, %v3450_v63  ;;  %v3528_v1 = vmul.f32 0.70710677, %v10987_v22 }
 0x6da   : > { %4911 = vmatpush1.msra.mxu1 %v4388_v4  ;;  %4835 = vmatprep.subr.mxu0 %v4125_v20  ;;  %v4332_v13 = vld [vmem:[%s14130_s3 + $0x1740] sm:$0xff]  ;;  %v4325_v8 = vld [vmem:[%s14130_s3 + $0x1708] sm:$0xff]  ;;  %v3530_v20 = vmul.f32 0.70710677, %v10992_v39 }
 0x6db   : > { %4912 = vmatprep.subr.mxu1 %v4381_v23  ;;  %4836 = vmatpush1.msra.mxu0 %v4124_v38  ;;  %v4588_v47 = vld [vmem:[%s14130_s3 + $0x1f40] sm:$0xff]  ;;  %v4581_v53 = vld [vmem:[%s14130_s3 + $0x1f08] sm:$0xff]  ;;  %6400 = verf.f32 %v3528_v1 }
 0x6dc   : > { %4913 = vmatpush1.msra.mxu1 %v4380_v10  ;;  %4837 = vmatprep.subr.mxu0 %v4117_v52  ;;  %v4324_v6 = vld [vmem:[%s14130_s3 + $0x1700] sm:$0xff]  ;;  %v4317_v62 = vld [vmem:[%s14130_s3 + $0x16c8] sm:$0xff]  ;;  %v3537_v10 = vmul.f32 0.70710677, %v11271_v29  ;;  %6402 = verf.f32 %v3530_v20 }
 0x6dd   : > { %4914 = vmatprep.subr.mxu1 %v4373_v56  ;;  %4838 = vmatpush1.msra.mxu0 %v4116_v40  ;;  %v4580_v49 = vld [vmem:[%s14130_s3 + $0x1f00] sm:$0xff]  ;;  %v4573_v55 = vld [vmem:[%s14130_s3 + $0x1ec8] sm:$0xff]  ;;  %v3539_v40 = vmul.f32 0.70710677, %v11280_v11 }
 0x6de   : > { %4915 = vmatpush1.msra.mxu1 %v4372_v54  ;;  %4839 = vmatprep.subr.mxu0 %v4109_v15  ;;  %v4316_v36 = vld [vmem:[%s14130_s3 + $0x16c0] sm:$0xff]  ;;  %v4309_v14 = vld [vmem:[%s14130_s3 + $0x1688] sm:$0xff]  ;;  %6404 = verf.f32 %v3537_v10 }
 0x6df   : > { %4916 = vmatprep.subr.mxu1 %v4365_v24  ;;  %4840 = vmatpush1.msra.mxu0 %v4108_v44  ;;  %v4572_v4 = vld [vmem:[%s14130_s3 + $0x1ec0] sm:$0xff]  ;;  %v4565_v23 = vld [vmem:[%s14130_s3 + $0x1e88] sm:$0xff]  ;;  %6406 = verf.f32 %v3539_v40 }
 0x6e0   : > { %4917 = vmatpush1.msra.mxu1 %v4364_v59  ;;  %4841 = vmatprep.subr.mxu0 %v4101_v3  ;;  %v4308_v38 = vld [vmem:[%s14130_s3 + $0x1680] sm:$0xff]  ;;  %v4301_v56 = vld [vmem:[%s14130_s3 + $0x1648] sm:$0xff] }
 0x6e1   : > { %4918 = vmatprep.subr.mxu1 %v4357_v19  ;;  %4842 = vmatpush1.msra.mxu0 %v4100_v48  ;;  %v4564_v52 = vld [vmem:[%s14130_s3 + $0x1e80] sm:$0xff]  ;;  %v4557_v54 = vld [vmem:[%s14130_s3 + $0x1e48] sm:$0xff]  ;;  %v3536_v19 = vmul.f32 0.70710677, %v10996_v35 }
 0x6e2   : > { %4919 = vmatpush1.msra.mxu1 %v4356_v21  ;;  %4843 = vmatprep.subr.mxu0 %v4349_v41  ;;  %v4300_v15 = vld [vmem:[%s14130_s3 + $0x1640] sm:$0xff]  ;;  %v4293_v44 = vld [vmem:[%s14130_s3 + $0x1608] sm:$0xff]  ;;  %v3538_v41 = vmul.f32 0.70710677, %v10998_v27 }
 0x6e3   : > { %4920 = vmatprep.subr.mxu1 %v4605_v18  ;;  %4844 = vmatpush2.msra.mxu0 %v4348_v16  ;;  %v4556_v24 = vld [vmem:[%s14130_s3 + $0x1e40] sm:$0xff]  ;;  %v4549_v59 = vld [vmem:[%s14130_s3 + $0x1e08] sm:$0xff]  ;;  %6408 = verf.f32 %v3536_v19  ;;  %v3512_v19 = vmul.f32 0.5, %v10987_v22  ;;  %v3711_v22 = vld [vmem:[%s14130_s3 + $0x3d8] sm:$0xff] }
 0x6e4   : > { %4921 = vmatpush2.msra.mxu1 %v4604_v28  ;;  %4845 = vmatprep.subr.mxu0 %v4341_v43  ;;  %v4292_v3 = vld [vmem:[%s14130_s3 + $0x1600] sm:$0xff]  ;;  %v4285_v21 = vld [vmem:[%s14130_s3 + $0x15c8] sm:$0xff]  ;;  %6410 = verf.f32 %v3538_v41 }
 0x6e5   : > { %4922 = vmatprep.subr.mxu1 %v4597_v46  ;;  %4846 = vmatpush2.msra.mxu0 %v4340_v33  ;;  %v4548_v48 = vld [vmem:[%s14130_s3 + $0x1e00] sm:$0xff]  ;;  %v4541_v18 = vld [vmem:[%s14130_s3 + $0x1dc8] sm:$0xff] }
 0x6e6   : > { %4923 = vmatpush2.msra.mxu1 %v4596_v61  ;;  %4847 = vmatprep.subr.mxu0 %v4333_v7  ;;  %v4284_v16 = vld [vmem:[%s14130_s3 + $0x15c0] sm:$0xff]  ;;  %v4277_v43 = vld [vmem:[%s14130_s3 + $0x1588] sm:$0xff] }
 0x6e7   : > { %4924 = vmatprep.subr.mxu1 %v4589_v34  ;;  %4848 = vmatpush2.msra.mxu0 %v4332_v13  ;;  %v4540_v28 = vld [vmem:[%s14130_s3 + $0x1dc0] sm:$0xff]  ;;  %v4533_v46 = vld [vmem:[%s14130_s3 + $0x1d88] sm:$0xff] }
 0x6e8   : > { %4925 = vmatpush2.msra.mxu1 %v4588_v47  ;;  %4849 = vmatprep.subr.mxu0 %v4325_v8  ;;  %v4276_v33 = vld [vmem:[%s14130_s3 + $0x1580] sm:$0xff]  ;;  %v4269_v7 = vld [vmem:[%s14130_s3 + $0x1548] sm:$0xff] }
 0x6e9   : > { %4926 = vmatprep.subr.mxu1 %v4581_v53  ;;  %4850 = vmatpush2.msra.mxu0 %v4324_v6  ;;  %v4532_v61 = vld [vmem:[%s14130_s3 + $0x1d80] sm:$0xff]  ;;  %v4525_v34 = vld [vmem:[%s14130_s3 + $0x1d48] sm:$0xff] }
 0x6ea   : > { %4927 = vmatpush2.msra.mxu1 %v4580_v49  ;;  %4851 = vmatprep.subr.mxu0 %v4317_v62  ;;  %v4268_v13 = vld [vmem:[%s14130_s3 + $0x1540] sm:$0xff]  ;;  %v4261_v47 = vld [vmem:[%s14130_s3 + $0x1508] sm:$0xff] }
 0x6eb   : > { %4928 = vmatprep.subr.mxu1 %v4573_v55  ;;  %4852 = vmatpush2.msra.mxu0 %v4316_v36  ;;  %v4524_v12 = vld [vmem:[%s14130_s3 + $0x1d40] sm:$0xff]  ;;  %v4517_v8 = vld [vmem:[%s14130_s3 + $0x1d08] sm:$0xff]  ;;  %v6401_v55 = vpop.eup %6400 }
 0x6ec   : > { %4929 = vmatpush2.msra.mxu1 %v4572_v4  ;;  %4853 = vmatprep.subr.mxu0 %v4309_v14  ;;  %v4260_v63 = vld [vmem:[%s14130_s3 + $0x1500] sm:$0xff]  ;;  %v4253_v6 = vld [vmem:[%s14130_s3 + $0x14c8] sm:$0xff]  ;;  %v6403_v4 = vpop.eup %6402 }
 0x6ed   : > { %4930 = vmatprep.subr.mxu1 %v4565_v23  ;;  %4854 = vmatpush2.msra.mxu0 %v4308_v38  ;;  %v4516_v53 = vld [vmem:[%s14130_s3 + $0x1d00] sm:$0xff]  ;;  %v4509_v49 = vld [vmem:[%s14130_s3 + $0x1cc8] sm:$0xff]  ;;  %v6405_v23 = vpop.eup %6404 }
 0x6ee   : > { %4931 = vmatpush2.msra.mxu1 %v4564_v52  ;;  %4855 = vmatprep.subr.mxu0 %v4301_v56  ;;  %v4252_v62 = vld [vmem:[%s14130_s3 + $0x14c0] sm:$0xff]  ;;  %v4245_v1 = vld [vmem:[%s14130_s3 + $0x1488] sm:$0xff]  ;;  %v6407_v52 = vpop.eup %6406 }
 0x6ef   : > { %4932 = vmatprep.subr.mxu1 %v4557_v54  ;;  %4856 = vmatpush2.msra.mxu0 %v4300_v15  ;;  %v4508_v36 = vld [vmem:[%s14130_s3 + $0x1cc0] sm:$0xff]  ;;  %v4501_v14 = vld [vmem:[%s14130_s3 + $0x1c88] sm:$0xff]  ;;  %v3560_v54 = vadd.f32 1.0, %v6401_v55  ;;  %v3695_v55 = vld [vmem:[%s14130_s3 + $0x358] sm:$0xff] }
 0x6f0   : > { %4933 = vmatpush2.msra.mxu1 %v4556_v24  ;;  %4857 = vmatprep.subr.mxu0 %v4293_v44  ;;  %v4244_v20 = vld [vmem:[%s14130_s3 + $0x1480] sm:$0xff]  ;;  %v4237_v10 = vld [vmem:[%s14130_s3 + $0x1448] sm:$0xff]  ;;  %v3562_v44 = vadd.f32 1.0, %v6403_v4  ;;  %v3687_v4 = vld [vmem:[%s14130_s3 + $0x318] sm:$0xff] }
 0x6f1   : > { %4934 = vmatprep.subr.mxu1 %v4549_v59  ;;  %4858 = vmatpush2.msra.mxu0 %v4292_v3  ;;  %v4500_v38 = vld [vmem:[%s14130_s3 + $0x1c80] sm:$0xff]  ;;  %v4493_v56 = vld [vmem:[%s14130_s3 + $0x1c48] sm:$0xff] }
 0x6f2   : > { %4935 = vmatpush2.msra.mxu1 %v4548_v48  ;;  %4859 = vmatprep.subr.mxu0 %v4285_v21  ;;  %v4236_v40 = vld [vmem:[%s14130_s3 + $0x1440] sm:$0xff]  ;;  %v4229_v24 = vld [vmem:[%s14130_s3 + $0x1408] sm:$0xff]  ;;  %v3569_v48 = vadd.f32 1.0, %v6405_v23  ;;  %v6409_v21 = vpop.eup %6408  ;;  %v3942_v23 = vld [vmem:[%s14130_s3 + $0xb10] sm:$0xff] }
 0x6f3   : > { %4936 = vmatprep.subr.mxu1 %v4541_v18  ;;  %4860 = vmatpush2.msra.mxu0 %v4284_v16  ;;  %v4492_v15 = vld [vmem:[%s14130_s3 + $0x1c40] sm:$0xff]  ;;  %v4485_v59 = vld [vmem:[%s14130_s3 + $0x1c08] sm:$0xff]  ;;  %v3514_v18 = vmul.f32 0.5, %v10992_v39  ;;  %v3571_v16 = vadd.f32 1.0, %v6407_v52  ;;  %v3967_v39 = vld [vmem:[%s14130_s3 + $0xbd8] sm:$0xff] }
 0x6f4   : > { %4937 = vmatpush2.msra.mxu1 %v4540_v28  ;;  %4861 = vmatprep.subr.mxu0 %v4277_v43  ;;  %v4228_v3 = vld [vmem:[%s14130_s3 + $0x1400] sm:$0xff]  ;;  %v6411_v28 = vpop.eup %6410  ;;  %v11431_v43 = vmul.f32 %v3560_v54, %v3512_v19  ;;  %v3678_v52 = vld [vmem:[%s14130_s3 + $0x2d0] sm:$0xff]  ;;  %v3927_v54 = vld [vmem:[%s14130_s3 + $0xa98] sm:$0xff] }
 0x6f5   : > { %4938 = vmatprep.subr.mxu1 %v4533_v46  ;;  %4862 = vmatpush2.msra.mxu0 %v4276_v33  ;;  %v4484_v41 = vld [vmem:[%s14130_s3 + $0x1c00] sm:$0xff]  ;;  %v3521_v46 = vmul.f32 0.5, %v11271_v29  ;;  %v11437_v33 = vmul.f32 %v3562_v44, %v3514_v18  ;;  %v3568_v29 = vadd.f32 1.0, %v6409_v21  ;;  %v3663_v44 = vld [vmem:[%s14130_s3 + $0x258] sm:$0xff]  ;;  %v3918_v19 = vld [vmem:[%s14130_s3 + $0xa50] sm:$0xff] }
 0x6f6   : > { %4939 = vmatpush2.msra.mxu1 %v4532_v61  ;;  %4863 = vmatprep.subr.mxu0 %v4269_v7  ;;  %v3523_v61 = vmul.f32 0.5, %v11280_v11  ;;  %v3703_v11 = vld [vmem:[%s14130_s3 + $0x398] sm:$0xff]  ;;  %v3910_v18 = vld [vmem:[%s14130_s3 + $0xa10] sm:$0xff] }
 0x6f7   : > { %4940 = vmatprep.subr.mxu1 %v4525_v34  ;;  %4864 = vmatpush2.msra.mxu0 %v4268_v13  ;;  %v11444_v7 = vmul.f32 %v3569_v48, %v3521_v46  ;;  %v3710_v34 = vld [vmem:[%s14130_s3 + $0x3d0] sm:$0xff]  ;;  %v3655_v48 = vld [vmem:[%s14130_s3 + $0x218] sm:$0xff] }
 0x6f8   : > { %4941 = vmatpush2.msra.mxu1 %v4524_v12  ;;  %4865 = vmatprep.subr.mxu0 %v4261_v47  ;;  %v11450_v13 = vmul.f32 %v3571_v16, %v3523_v61  ;;  %v3966_v12 = vld [vmem:[%s14130_s3 + $0xbd0] sm:$0xff]  ;;  %v3570_v47 = vadd.f32 1.0, %v6411_v28  ;;  %v3911_v21 = vld [vmem:[%s14130_s3 + $0xa18] sm:$0xff] }
 0x6f9   : > { %4942 = vmatprep.subr.mxu1 %v4517_v8  ;;  %4866 = vmatpush2.msra.mxu0 %v4260_v63  ;;  %v3959_v8 = vld [vmem:[%s14130_s3 + $0xb98] sm:$0xff]  ;;  %v3702_v63 = vld [vmem:[%s14130_s3 + $0x390] sm:$0xff] }
 0x6fa   : > { %4943 = vmatpush2.msra.mxu1 %v4516_v53  ;;  %4867 = vmatprep.subr.mxu0 %v4253_v6  ;;  %v3520_v53 = vmul.f32 0.5, %v10996_v35  ;;  %v3958_v6 = vld [vmem:[%s14130_s3 + $0xb90] sm:$0xff]  ;;  %v3647_v16 = vld [vmem:[%s14130_s3 + $0x1d8] sm:$0xff] }
 0x6fb   : > { %4944 = vmatprep.subr.mxu1 %v4509_v49  ;;  %4868 = vmatpush2.msra.mxu0 %v4252_v62  ;;  %v3522_v49 = vmul.f32 0.5, %v10998_v27  ;;  %v3694_v27 = vld [vmem:[%s14130_s3 + $0x350] sm:$0xff]  ;;  %v3903_v28 = vld [vmem:[%s14130_s3 + $0x9d8] sm:$0xff] }
 0x6fc   : > { %4945 = vmatpush2.msra.mxu1 %v4508_v36  ;;  %4869 = vmatprep.subr.mxu0 %v4245_v1  ;;  %v11471_v62 = vmul.f32 %v3568_v29, %v3520_v53  ;;  %v3951_v36 = vld [vmem:[%s14130_s3 + $0xb58] sm:$0xff]  ;;  %v3950_v1 = vld [vmem:[%s14130_s3 + $0xb50] sm:$0xff] }
 0x6fd   : > { %4946 = vmatprep.subr.mxu1 %v4501_v14  ;;  %4870 = vmatpush2.msra.mxu0 %v4244_v20  ;;  %v11476_v35 = vmul.f32 %v3570_v47, %v3522_v49  ;;  %v3943_v14 = vld [vmem:[%s14130_s3 + $0xb18] sm:$0xff]  ;;  %v3686_v20 = vld [vmem:[%s14130_s3 + $0x310] sm:$0xff] }
 0x6fe   : > { %4947 = vmatpush2.msra.mxu1 %v4500_v38  ;;  %4871 = vmatprep.subr.mxu0 %v4237_v10  ;;  %v3679_v38 = vld [vmem:[%s14130_s3 + $0x2d8] sm:$0xff]  ;;  %v3902_v46 = vld [vmem:[%s14130_s3 + $0x9d0] sm:$0xff] }
 0x6ff   : > { %4948 = vmatprep.subr.mxu1 %v4493_v56  ;;  %4872 = vmatpush2.msra.mxu0 %v4236_v40  ;;  %v3935_v10 = vld [vmem:[%s14130_s3 + $0xad8] sm:$0xff]  ;;  %v3934_v56 = vld [vmem:[%s14130_s3 + $0xad0] sm:$0xff] }
 0x700   : > { %4949 = vmatpush2.msra.mxu1 %v4492_v15  ;;  %4873 = vmatprep.subr.mxu0 %v4229_v24  ;;  %v3671_v40 = vld [vmem:[%s14130_s3 + $0x298] sm:$0xff]  ;;  %v3670_v15 = vld [vmem:[%s14130_s3 + $0x290] sm:$0xff] }
 0x701   : > { %4950 = vmatprep.subr.mxu1 %v4485_v59  ;;  %4874 = vmatpush2.msra.mxu0 %v4228_v3  ;;  %v3926_v24 = vld [vmem:[%s14130_s3 + $0xa90] sm:$0xff]  ;;  %v3919_v59 = vld [vmem:[%s14130_s3 + $0xa58] sm:$0xff] }
 0x702   : > { %4951 = vmatpush2.msra.mxu1 %v4484_v41  ;;  %4876 = vmatmul.mubr.f32.vlgmr.msra.gmra.mxu0 %v11431_v43  ;;  %v3662_v3 = vld [vmem:[%s14130_s3 + $0x250] sm:$0xff]  ;;  %v3895_v61 = vld [vmem:[%s14130_s3 + $0x998] sm:$0xff] }
 0x703   : > { %4953 = vmatmul.mubr.f32.vlgmr.msra.gmra.mxu1 %v11437_v33  ;;  %4965 = vmatprep.subr.mxu0 %v3711_v22  ;;  %v3654_v41 = vld [vmem:[%s14130_s3 + $0x210] sm:$0xff]  ;;  %v3879_v53 = vld [vmem:[%s14130_s3 + $0x918] sm:$0xff] }
 0x704   : > { %5042 = vmatprep.subr.mxu1 %v3967_v39  ;;  %4881 = vmatprep.mubr.f32.mxu0 %v11444_v7  ;;  %v3646_v22 = vld [vmem:[%s14130_s3 + $0x1d0] sm:$0xff]  ;;  %v3639_v39 = vld [vmem:[%s14130_s3 + $0x198] sm:$0xff] }
 0x705   : > { %4958 = vmatprep.mubr.f32.mxu1 %v11450_v13  ;;  %4966 = vmatpush1.msra.mxu0 %v3710_v34  ;;  %v3638_v34 = vld [vmem:[%s14130_s3 + $0x190] sm:$0xff] }
 0x706   : > { %5043 = vmatpush1.msra.mxu1 %v3966_v12  ;;  %4967 = vmatprep.subr.mxu0 %v3703_v11  ;;  %v3894_v29 = vld [vmem:[%s14130_s3 + $0x990] sm:$0xff]  ;;  %v3631_v12 = vld [vmem:[%s14130_s3 + $0x158] sm:$0xff] }
 0x707   : > { %5044 = vmatprep.subr.mxu1 %v3959_v8  ;;  %4968 = vmatpush1.msra.mxu0 %v3702_v63  ;;  %v3887_v11 = vld [vmem:[%s14130_s3 + $0x958] sm:$0xff]  ;;  %v3630_v47 = vld [vmem:[%s14130_s3 + $0x150] sm:$0xff] }
 0x708   : > { %5045 = vmatpush1.msra.mxu1 %v3958_v6  ;;  %4882 = vmatmul.mubr.f32.gmra.mxu0 %v11471_v62  ;;  %v3886_v8 = vld [vmem:[%s14130_s3 + $0x950] sm:$0xff]  ;;  %v3623_v63 = vld [vmem:[%s14130_s3 + $0x118] sm:$0xff] }
 0x709   : > { %4959 = vmatmul.mubr.f32.gmra.mxu1 %v11476_v35  ;;  %4969 = vmatprep.subr.mxu0 %v3695_v55  ;;  %v3622_v6 = vld [vmem:[%s14130_s3 + $0x110] sm:$0xff]  ;;  %v3615_v55 = vld [vmem:[%s14130_s3 + $0xd8] sm:$0xff] }
 0x70a   : > { %5046 = vmatprep.subr.mxu1 %v3951_v36  ;;  %4970 = vmatpush1.msra.mxu0 %v3694_v27  ;;  %v3878_v49 = vld [vmem:[%s14130_s3 + $0x910] sm:$0xff]  ;;  %v3871_v36 = vld [vmem:[%s14130_s3 + $0x8d8] sm:$0xff] }
 0x70b   : > { %5029 = vmatprep.mubr.f32.mxu0 %v11000_v42  ;;  %5047 = vmatpush1.msra.mxu1 %v3950_v1  ;;  %v3614_v27 = vld [vmem:[%s14130_s3 + $0xd0] sm:$0xff] }
 0x70c   : > { %5106 = vmatprep.mubr.f32.mxu1 %v11002_v57  ;;  %4971 = vmatprep.subr.mxu0 %v3687_v4  ;;  %v3870_v1 = vld [vmem:[%s14130_s3 + $0x8d0] sm:$0xff]  ;;  %v3607_v4 = vld [vmem:[%s14130_s3 + $0x98] sm:$0xff] }
 0x70d   : > { %5048 = vmatprep.subr.mxu1 %v3943_v14  ;;  %4972 = vmatpush1.msra.mxu0 %v3686_v20  ;;  %v3863_v14 = vld [vmem:[%s14130_s3 + $0x898] sm:$0xff]  ;;  %v3606_v20 = vld [vmem:[%s14130_s3 + $0x90] sm:$0xff] }
 0x70e   : > { %5049 = vmatpush1.msra.mxu1 %v3942_v23  ;;  %4973 = vmatprep.subr.mxu0 %v3679_v38  ;;  %v3862_v23 = vld [vmem:[%s14130_s3 + $0x890] sm:$0xff]  ;;  %v3599_v38 = vld [vmem:[%s14130_s3 + $0x58] sm:$0xff] }
 0x70f   : > { %5050 = vmatprep.subr.mxu1 %v3935_v10  ;;  %4974 = vmatpush1.msra.mxu0 %v3678_v52  ;;  %v3855_v10 = vld [vmem:[%s14130_s3 + $0x858] sm:$0xff]  ;;  %v3598_v52 = vld [vmem:[%s14130_s3 + $0x50] sm:$0xff] }
 0x710   : > { %5051 = vmatpush1.msra.mxu1 %v3934_v56  ;;  %4975 = vmatprep.subr.mxu0 %v3671_v40  ;;  %v3854_v56 = vld [vmem:[%s14130_s3 + $0x850] sm:$0xff]  ;;  %v3591_v40 = vld [vmem:[%s14130_s3 + $0x18] sm:$0xff] }
 0x711   : > { %5052 = vmatprep.subr.mxu1 %v3927_v54  ;;  %4976 = vmatpush1.msra.mxu0 %v3670_v15  ;;  %v3847_v54 = vld [vmem:[%s14130_s3 + $0x818] sm:$0xff]  ;;  %v3590_v15 = vld [vmem:[%s14130_s3 + $0x10] sm:$0xff] }
 0x712   : > { %5053 = vmatpush1.msra.mxu1 %v3926_v24  ;;  %4977 = vmatprep.subr.mxu0 %v3663_v44  ;;  %v3846_v24 = vld [vmem:[%s14130_s3 + $0x810] sm:$0xff]  ;;  %v3839_v44 = vld [vmem:[%s14130_s3 + $0x7d8] sm:$0xff] }
 0x713   : > { %5054 = vmatprep.subr.mxu1 %v3919_v59  ;;  %4978 = vmatpush1.msra.mxu0 %v3662_v3  ;;  %v4095_v59 = vld [vmem:[%s14130_s3 + $0xfd8] sm:$0xff]  ;;  %v3838_v3 = vld [vmem:[%s14130_s3 + $0x7d0] sm:$0xff] }
 0x714   : > { %5055 = vmatpush1.msra.mxu1 %v3918_v19  ;;  %4979 = vmatprep.subr.mxu0 %v3655_v48  ;;  %v4094_v19 = vld [vmem:[%s14130_s3 + $0xfd0] sm:$0xff]  ;;  %v3831_v48 = vld [vmem:[%s14130_s3 + $0x798] sm:$0xff] }
 0x715   : > { %5056 = vmatprep.subr.mxu1 %v3911_v21  ;;  %4980 = vmatpush1.msra.mxu0 %v3654_v41  ;;  %v4087_v21 = vld [vmem:[%s14130_s3 + $0xf98] sm:$0xff]  ;;  %v3830_v41 = vld [vmem:[%s14130_s3 + $0x790] sm:$0xff] }
 0x716   : > { %5057 = vmatpush1.msra.mxu1 %v3910_v18  ;;  %4981 = vmatprep.subr.mxu0 %v3647_v16  ;;  %v4086_v18 = vld [vmem:[%s14130_s3 + $0xf90] sm:$0xff]  ;;  %v3823_v16 = vld [vmem:[%s14130_s3 + $0x758] sm:$0xff] }
 0x717   : > { %5058 = vmatprep.subr.mxu1 %v3903_v28  ;;  %4982 = vmatpush1.msra.mxu0 %v3646_v22  ;;  %v4079_v28 = vld [vmem:[%s14130_s3 + $0xf58] sm:$0xff]  ;;  %v3822_v22 = vld [vmem:[%s14130_s3 + $0x750] sm:$0xff] }
 0x718   : > { %5059 = vmatpush1.msra.mxu1 %v3902_v46  ;;  %4983 = vmatprep.subr.mxu0 %v3639_v39  ;;  %v4078_v46 = vld [vmem:[%s14130_s3 + $0xf50] sm:$0xff]  ;;  %v3815_v39 = vld [vmem:[%s14130_s3 + $0x718] sm:$0xff] }
 0x719   : > { %5060 = vmatprep.subr.mxu1 %v3895_v61  ;;  %4984 = vmatpush1.msra.mxu0 %v3638_v34  ;;  %v4071_v61 = vld [vmem:[%s14130_s3 + $0xf18] sm:$0xff]  ;;  %v3814_v34 = vld [vmem:[%s14130_s3 + $0x710] sm:$0xff] }
 0x71a   : > { %5061 = vmatpush1.msra.mxu1 %v3894_v29  ;;  %4985 = vmatprep.subr.mxu0 %v3631_v12  ;;  %v4070_v29 = vld [vmem:[%s14130_s3 + $0xf10] sm:$0xff]  ;;  %v3807_v12 = vld [vmem:[%s14130_s3 + $0x6d8] sm:$0xff] }
 0x71b   : > { %5062 = vmatprep.subr.mxu1 %v3887_v11  ;;  %4986 = vmatpush1.msra.mxu0 %v3630_v47  ;;  %v4063_v11 = vld [vmem:[%s14130_s3 + $0xed8] sm:$0xff]  ;;  %v3806_v47 = vld [vmem:[%s14130_s3 + $0x6d0] sm:$0xff] }
 0x71c   : > { %5063 = vmatpush1.msra.mxu1 %v3886_v8  ;;  %4987 = vmatprep.subr.mxu0 %v3623_v63  ;;  %v4062_v8 = vld [vmem:[%s14130_s3 + $0xed0] sm:$0xff]  ;;  %v3799_v63 = vld [vmem:[%s14130_s3 + $0x698] sm:$0xff] }
 0x71d   : > { %5064 = vmatprep.subr.mxu1 %v3879_v53  ;;  %4988 = vmatpush1.msra.mxu0 %v3622_v6  ;;  %v4055_v53 = vld [vmem:[%s14130_s3 + $0xe98] sm:$0xff]  ;;  %v3798_v6 = vld [vmem:[%s14130_s3 + $0x690] sm:$0xff] }
 0x71e   : > { %5065 = vmatpush1.msra.mxu1 %v3878_v49  ;;  %4989 = vmatprep.subr.mxu0 %v3615_v55  ;;  %v4054_v49 = vld [vmem:[%s14130_s3 + $0xe90] sm:$0xff]  ;;  %v3791_v55 = vld [vmem:[%s14130_s3 + $0x658] sm:$0xff] }
 0x71f   : > { %5066 = vmatprep.subr.mxu1 %v3871_v36  ;;  %4990 = vmatpush1.msra.mxu0 %v3614_v27  ;;  %v4047_v36 = vld [vmem:[%s14130_s3 + $0xe58] sm:$0xff]  ;;  %v3790_v27 = vld [vmem:[%s14130_s3 + $0x650] sm:$0xff] }
 0x720   : > { %5067 = vmatpush1.msra.mxu1 %v3870_v1  ;;  %4991 = vmatprep.subr.mxu0 %v3607_v4  ;;  %v4046_v1 = vld [vmem:[%s14130_s3 + $0xe50] sm:$0xff]  ;;  %v3783_v4 = vld [vmem:[%s14130_s3 + $0x618] sm:$0xff] }
 0x721   : > { %5068 = vmatprep.subr.mxu1 %v3863_v14  ;;  %4992 = vmatpush1.msra.mxu0 %v3606_v20  ;;  %v4039_v14 = vld [vmem:[%s14130_s3 + $0xe18] sm:$0xff]  ;;  %v3782_v20 = vld [vmem:[%s14130_s3 + $0x610] sm:$0xff] }
 0x722   : > { %5069 = vmatpush1.msra.mxu1 %v3862_v23  ;;  %4993 = vmatprep.subr.mxu0 %v3599_v38  ;;  %v4038_v23 = vld [vmem:[%s14130_s3 + $0xe10] sm:$0xff]  ;;  %v3775_v38 = vld [vmem:[%s14130_s3 + $0x5d8] sm:$0xff] }
 0x723   : > { %5070 = vmatprep.subr.mxu1 %v3855_v10  ;;  %4994 = vmatpush1.msra.mxu0 %v3598_v52  ;;  %v4031_v10 = vld [vmem:[%s14130_s3 + $0xdd8] sm:$0xff]  ;;  %v3774_v52 = vld [vmem:[%s14130_s3 + $0x5d0] sm:$0xff] }
 0x724   : > { %5071 = vmatpush1.msra.mxu1 %v3854_v56  ;;  %4995 = vmatprep.subr.mxu0 %v3591_v40  ;;  %v4030_v56 = vld [vmem:[%s14130_s3 + $0xdd0] sm:$0xff]  ;;  %v3767_v40 = vld [vmem:[%s14130_s3 + $0x598] sm:$0xff] }
 0x725   : > { %5072 = vmatprep.subr.mxu1 %v3847_v54  ;;  %4996 = vmatpush1.msra.mxu0 %v3590_v15  ;;  %v4023_v54 = vld [vmem:[%s14130_s3 + $0xd98] sm:$0xff]  ;;  %v3766_v15 = vld [vmem:[%s14130_s3 + $0x590] sm:$0xff] }
 0x726   : > { %5073 = vmatpush1.msra.mxu1 %v3846_v24  ;;  %4997 = vmatprep.subr.mxu0 %v3839_v44  ;;  %v4022_v24 = vld [vmem:[%s14130_s3 + $0xd90] sm:$0xff]  ;;  %v3759_v44 = vld [vmem:[%s14130_s3 + $0x558] sm:$0xff] }
 0x727   : > { %5074 = vmatprep.subr.mxu1 %v4095_v59  ;;  %4998 = vmatpush2.msra.mxu0 %v3838_v3  ;;  %v4015_v59 = vld [vmem:[%s14130_s3 + $0xd58] sm:$0xff]  ;;  %v3758_v3 = vld [vmem:[%s14130_s3 + $0x550] sm:$0xff] }
 0x728   : > { %5075 = vmatpush2.msra.mxu1 %v4094_v19  ;;  %4999 = vmatprep.subr.mxu0 %v3831_v48  ;;  %v4014_v19 = vld [vmem:[%s14130_s3 + $0xd50] sm:$0xff]  ;;  %v3751_v48 = vld [vmem:[%s14130_s3 + $0x518] sm:$0xff] }
 0x729   : > { %5076 = vmatprep.subr.mxu1 %v4087_v21  ;;  %5000 = vmatpush2.msra.mxu0 %v3830_v41  ;;  %v4007_v21 = vld [vmem:[%s14130_s3 + $0xd18] sm:$0xff]  ;;  %v3750_v41 = vld [vmem:[%s14130_s3 + $0x510] sm:$0xff] }
 0x72a   : > { %5077 = vmatpush2.msra.mxu1 %v4086_v18  ;;  %5001 = vmatprep.subr.mxu0 %v3823_v16  ;;  %v4006_v18 = vld [vmem:[%s14130_s3 + $0xd10] sm:$0xff]  ;;  %v3743_v16 = vld [vmem:[%s14130_s3 + $0x4d8] sm:$0xff] }
 0x72b   : > { %5078 = vmatprep.subr.mxu1 %v4079_v28  ;;  %5002 = vmatpush2.msra.mxu0 %v3822_v22  ;;  %v3999_v28 = vld [vmem:[%s14130_s3 + $0xcd8] sm:$0xff]  ;;  %v3742_v22 = vld [vmem:[%s14130_s3 + $0x4d0] sm:$0xff] }
 0x72c   : > { %5079 = vmatpush2.msra.mxu1 %v4078_v46  ;;  %5003 = vmatprep.subr.mxu0 %v3815_v39  ;;  %v3998_v46 = vld [vmem:[%s14130_s3 + $0xcd0] sm:$0xff]  ;;  %v3735_v39 = vld [vmem:[%s14130_s3 + $0x498] sm:$0xff] }
 0x72d   : > { %5080 = vmatprep.subr.mxu1 %v4071_v61  ;;  %5004 = vmatpush2.msra.mxu0 %v3814_v34  ;;  %v3991_v61 = vld [vmem:[%s14130_s3 + $0xc98] sm:$0xff]  ;;  %v3734_v34 = vld [vmem:[%s14130_s3 + $0x490] sm:$0xff] }
 0x72e   : > { %5081 = vmatpush2.msra.mxu1 %v4070_v29  ;;  %5005 = vmatprep.subr.mxu0 %v3807_v12  ;;  %v3990_v29 = vld [vmem:[%s14130_s3 + $0xc90] sm:$0xff]  ;;  %v3727_v12 = vld [vmem:[%s14130_s3 + $0x458] sm:$0xff] }
 0x72f   : > { %5082 = vmatprep.subr.mxu1 %v4063_v11  ;;  %5006 = vmatpush2.msra.mxu0 %v3806_v47  ;;  %v3983_v11 = vld [vmem:[%s14130_s3 + $0xc58] sm:$0xff]  ;;  %v3726_v47 = vld [vmem:[%s14130_s3 + $0x450] sm:$0xff] }
 0x730   : > { %5083 = vmatpush2.msra.mxu1 %v4062_v8  ;;  %5007 = vmatprep.subr.mxu0 %v3799_v63  ;;  %v3982_v8 = vld [vmem:[%s14130_s3 + $0xc50] sm:$0xff]  ;;  %v3719_v63 = vld [vmem:[%s14130_s3 + $0x418] sm:$0xff] }
 0x731   : > { %5084 = vmatprep.subr.mxu1 %v4055_v53  ;;  %5008 = vmatpush2.msra.mxu0 %v3798_v6  ;;  %v3975_v53 = vld [vmem:[%s14130_s3 + $0xc18] sm:$0xff]  ;;  %v3718_v6 = vld [vmem:[%s14130_s3 + $0x410] sm:$0xff] }
 0x732   : > { %5085 = vmatpush2.msra.mxu1 %v4054_v49  ;;  %5009 = vmatprep.subr.mxu0 %v3791_v55  ;;  %v3974_v49 = vld [vmem:[%s14130_s3 + $0xc10] sm:$0xff]  ;;  %v4223_v55 = vld [vmem:[%s14130_s3 + $0x13d8] sm:$0xff] }
 0x733   : > { %5086 = vmatprep.subr.mxu1 %v4047_v36  ;;  %5010 = vmatpush2.msra.mxu0 %v3790_v27  ;;  %v4479_v36 = vld [vmem:[%s14130_s3 + $0x1bd8] sm:$0xff]  ;;  %v4222_v27 = vld [vmem:[%s14130_s3 + $0x13d0] sm:$0xff] }
 0x734   : > { %5087 = vmatpush2.msra.mxu1 %v4046_v1  ;;  %5011 = vmatprep.subr.mxu0 %v3783_v4  ;;  %v4478_v1 = vld [vmem:[%s14130_s3 + $0x1bd0] sm:$0xff]  ;;  %v4215_v4 = vld [vmem:[%s14130_s3 + $0x1398] sm:$0xff] }
 0x735   : > { %5088 = vmatprep.subr.mxu1 %v4039_v14  ;;  %5012 = vmatpush2.msra.mxu0 %v3782_v20  ;;  %v4471_v14 = vld [vmem:[%s14130_s3 + $0x1b98] sm:$0xff]  ;;  %v4214_v20 = vld [vmem:[%s14130_s3 + $0x1390] sm:$0xff] }
 0x736   : > { %5089 = vmatpush2.msra.mxu1 %v4038_v23  ;;  %5013 = vmatprep.subr.mxu0 %v3775_v38  ;;  %v4470_v23 = vld [vmem:[%s14130_s3 + $0x1b90] sm:$0xff]  ;;  %v4207_v38 = vld [vmem:[%s14130_s3 + $0x1358] sm:$0xff] }
 0x737   : > { %5090 = vmatprep.subr.mxu1 %v4031_v10  ;;  %5014 = vmatpush2.msra.mxu0 %v3774_v52  ;;  %v4463_v10 = vld [vmem:[%s14130_s3 + $0x1b58] sm:$0xff]  ;;  %v4206_v52 = vld [vmem:[%s14130_s3 + $0x1350] sm:$0xff] }
 0x738   : > { %5091 = vmatpush2.msra.mxu1 %v4030_v56  ;;  %5015 = vmatprep.subr.mxu0 %v3767_v40  ;;  %v4462_v56 = vld [vmem:[%s14130_s3 + $0x1b50] sm:$0xff]  ;;  %v4199_v40 = vld [vmem:[%s14130_s3 + $0x1318] sm:$0xff] }
 0x739   : > { %5092 = vmatprep.subr.mxu1 %v4023_v54  ;;  %5016 = vmatpush2.msra.mxu0 %v3766_v15  ;;  %v4455_v54 = vld [vmem:[%s14130_s3 + $0x1b18] sm:$0xff]  ;;  %v4198_v15 = vld [vmem:[%s14130_s3 + $0x1310] sm:$0xff] }
 0x73a   : > { %5093 = vmatpush2.msra.mxu1 %v4022_v24  ;;  %5017 = vmatprep.subr.mxu0 %v3759_v44  ;;  %v4454_v24 = vld [vmem:[%s14130_s3 + $0x1b10] sm:$0xff]  ;;  %v4191_v44 = vld [vmem:[%s14130_s3 + $0x12d8] sm:$0xff] }
 0x73b   : > { %5094 = vmatprep.subr.mxu1 %v4015_v59  ;;  %5018 = vmatpush2.msra.mxu0 %v3758_v3  ;;  %v4447_v59 = vld [vmem:[%s14130_s3 + $0x1ad8] sm:$0xff]  ;;  %v4190_v3 = vld [vmem:[%s14130_s3 + $0x12d0] sm:$0xff] }
 0x73c   : > { %5095 = vmatpush2.msra.mxu1 %v4014_v19  ;;  %5019 = vmatprep.subr.mxu0 %v3751_v48  ;;  %v4446_v19 = vld [vmem:[%s14130_s3 + $0x1ad0] sm:$0xff]  ;;  %v4183_v48 = vld [vmem:[%s14130_s3 + $0x1298] sm:$0xff] }
 0x73d   : > { %5096 = vmatprep.subr.mxu1 %v4007_v21  ;;  %5020 = vmatpush2.msra.mxu0 %v3750_v41  ;;  %v4439_v21 = vld [vmem:[%s14130_s3 + $0x1a98] sm:$0xff]  ;;  %v4182_v41 = vld [vmem:[%s14130_s3 + $0x1290] sm:$0xff] }
 0x73e   : > { %5097 = vmatpush2.msra.mxu1 %v4006_v18  ;;  %5021 = vmatprep.subr.mxu0 %v3743_v16  ;;  %v4438_v18 = vld [vmem:[%s14130_s3 + $0x1a90] sm:$0xff]  ;;  %v4175_v16 = vld [vmem:[%s14130_s3 + $0x1258] sm:$0xff] }
 0x73f   : > { %5098 = vmatprep.subr.mxu1 %v3999_v28  ;;  %5022 = vmatpush2.msra.mxu0 %v3742_v22  ;;  %v4431_v28 = vld [vmem:[%s14130_s3 + $0x1a58] sm:$0xff]  ;;  %v4174_v22 = vld [vmem:[%s14130_s3 + $0x1250] sm:$0xff] }
 0x740   : > { %5099 = vmatpush2.msra.mxu1 %v3998_v46  ;;  %5023 = vmatprep.subr.mxu0 %v3735_v39  ;;  %v4430_v46 = vld [vmem:[%s14130_s3 + $0x1a50] sm:$0xff]  ;;  %v4167_v39 = vld [vmem:[%s14130_s3 + $0x1218] sm:$0xff] }
 0x741   : > { %5100 = vmatprep.subr.mxu1 %v3991_v61  ;;  %5024 = vmatpush2.msra.mxu0 %v3734_v34  ;;  %v4423_v61 = vld [vmem:[%s14130_s3 + $0x1a18] sm:$0xff]  ;;  %v4166_v34 = vld [vmem:[%s14130_s3 + $0x1210] sm:$0xff] }
 0x742   : > { %5101 = vmatpush2.msra.mxu1 %v3990_v29  ;;  %5025 = vmatprep.subr.mxu0 %v3727_v12  ;;  %v4422_v29 = vld [vmem:[%s14130_s3 + $0x1a10] sm:$0xff]  ;;  %v4159_v12 = vld [vmem:[%s14130_s3 + $0x11d8] sm:$0xff] }
 0x743   : > { %5102 = vmatprep.subr.mxu1 %v3983_v11  ;;  %5026 = vmatpush2.msra.mxu0 %v3726_v47  ;;  %v4415_v11 = vld [vmem:[%s14130_s3 + $0x19d8] sm:$0xff]  ;;  %v4158_v47 = vld [vmem:[%s14130_s3 + $0x11d0] sm:$0xff] }
 0x744   : > { %5103 = vmatpush2.msra.mxu1 %v3982_v8  ;;  %5027 = vmatprep.subr.mxu0 %v3719_v63  ;;  %v4414_v8 = vld [vmem:[%s14130_s3 + $0x19d0] sm:$0xff]  ;;  %v4151_v63 = vld [vmem:[%s14130_s3 + $0x1198] sm:$0xff] }
 0x745   : > { %5104 = vmatprep.subr.mxu1 %v3975_v53  ;;  %5028 = vmatpush2.msra.mxu0 %v3718_v6  ;;  %v4407_v53 = vld [vmem:[%s14130_s3 + $0x1998] sm:$0xff]  ;;  %v4150_v6 = vld [vmem:[%s14130_s3 + $0x1190] sm:$0xff] }
 0x746   : > { %5105 = vmatpush2.msra.mxu1 %v3974_v49  ;;  %5030 = vmatmul.mubr.f32.vlgmr.msra.gmra.mxu0 %v11005_v5  ;;  %v4406_v49 = vld [vmem:[%s14130_s3 + $0x1990] sm:$0xff] }
 0x747   : > { %5107 = vmatmul.mubr.f32.vlgmr.msra.gmra.mxu1 %v11011_v25  ;;  %5119 = vmatprep.subr.mxu0 %v4223_v55  ;;  %v4143_v55 = vld [vmem:[%s14130_s3 + $0x1158] sm:$0xff] }
 0x748   : > { %5196 = vmatprep.subr.mxu1 %v4479_v36  ;;  %5035 = vmatprep.mubr.f32.mxu0 %v11018_v0  ;;  %v4399_v36 = vld [vmem:[%s14130_s3 + $0x1958] sm:$0xff] }
 0x749   : > { %5112 = vmatprep.mubr.f32.mxu1 %v11024_v9  ;;  %5120 = vmatpush1.msra.mxu0 %v4222_v27  ;;  %v4142_v27 = vld [vmem:[%s14130_s3 + $0x1150] sm:$0xff] }
 0x74a   : > { %5197 = vmatpush1.msra.mxu1 %v4478_v1  ;;  %5121 = vmatprep.subr.mxu0 %v4215_v4  ;;  %v4398_v1 = vld [vmem:[%s14130_s3 + $0x1950] sm:$0xff]  ;;  %v4135_v4 = vld [vmem:[%s14130_s3 + $0x1118] sm:$0xff] }
 0x74b   : > { %5198 = vmatprep.subr.mxu1 %v4471_v14  ;;  %5122 = vmatpush1.msra.mxu0 %v4214_v20  ;;  %v4391_v14 = vld [vmem:[%s14130_s3 + $0x1918] sm:$0xff]  ;;  %v4134_v20 = vld [vmem:[%s14130_s3 + $0x1110] sm:$0xff] }
 0x74c   : > { %5199 = vmatpush1.msra.mxu1 %v4470_v23  ;;  %5036 = vmatmul.mubr.f32.gmra.mxu0 %v11045_v37  ;;  %v4390_v23 = vld [vmem:[%s14130_s3 + $0x1910] sm:$0xff] }
 0x74d   : > { %5113 = vmatmul.mubr.f32.gmra.mxu1 %v11050_v58  ;;  %5123 = vmatprep.subr.mxu0 %v4207_v38  ;;  %v4127_v38 = vld [vmem:[%s14130_s3 + $0x10d8] sm:$0xff] }
 0x74e   : > { %5200 = vmatprep.subr.mxu1 %v4463_v10  ;;  %5124 = vmatpush1.msra.mxu0 %v4206_v52  ;;  %v4383_v10 = vld [vmem:[%s14130_s3 + $0x18d8] sm:$0xff]  ;;  %v4126_v52 = vld [vmem:[%s14130_s3 + $0x10d0] sm:$0xff] }
 0x74f   : > { %5183 = vmatprep.mubr.f32.mxu0 %v11065_v45  ;;  %5201 = vmatpush1.msra.mxu1 %v4462_v56  ;;  %v4382_v56 = vld [vmem:[%s14130_s3 + $0x18d0] sm:$0xff] }
 0x750   : > { %5260 = vmatprep.mubr.f32.mxu1 %v11070_v51  ;;  %5125 = vmatprep.subr.mxu0 %v4199_v40  ;;  %v4119_v40 = vld [vmem:[%s14130_s3 + $0x1098] sm:$0xff] }
 0x751   : > { %5202 = vmatprep.subr.mxu1 %v4455_v54  ;;  %5126 = vmatpush1.msra.mxu0 %v4198_v15  ;;  %v4375_v54 = vld [vmem:[%s14130_s3 + $0x1898] sm:$0xff]  ;;  %v4118_v15 = vld [vmem:[%s14130_s3 + $0x1090] sm:$0xff] }
 0x752   : > { %5203 = vmatpush1.msra.mxu1 %v4454_v24  ;;  %5127 = vmatprep.subr.mxu0 %v4191_v44  ;;  %v4374_v24 = vld [vmem:[%s14130_s3 + $0x1890] sm:$0xff]  ;;  %v4111_v44 = vld [vmem:[%s14130_s3 + $0x1058] sm:$0xff] }
 0x753   : > { %5204 = vmatprep.subr.mxu1 %v4447_v59  ;;  %5128 = vmatpush1.msra.mxu0 %v4190_v3  ;;  %v4367_v59 = vld [vmem:[%s14130_s3 + $0x1858] sm:$0xff]  ;;  %v4110_v3 = vld [vmem:[%s14130_s3 + $0x1050] sm:$0xff] }
 0x754   : > { %5205 = vmatpush1.msra.mxu1 %v4446_v19  ;;  %5129 = vmatprep.subr.mxu0 %v4183_v48  ;;  %v4366_v19 = vld [vmem:[%s14130_s3 + $0x1850] sm:$0xff]  ;;  %v4103_v48 = vld [vmem:[%s14130_s3 + $0x1018] sm:$0xff] }
 0x755   : > { %5206 = vmatprep.subr.mxu1 %v4439_v21  ;;  %5130 = vmatpush1.msra.mxu0 %v4182_v41  ;;  %v4359_v21 = vld [vmem:[%s14130_s3 + $0x1818] sm:$0xff]  ;;  %v4102_v41 = vld [vmem:[%s14130_s3 + $0x1010] sm:$0xff] }
 0x756   : > { %5207 = vmatpush1.msra.mxu1 %v4438_v18  ;;  %5131 = vmatprep.subr.mxu0 %v4175_v16  ;;  %v4358_v18 = vld [vmem:[%s14130_s3 + $0x1810] sm:$0xff]  ;;  %v4351_v16 = vld [vmem:[%s14130_s3 + $0x17d8] sm:$0xff] }
 0x757   : > { %5208 = vmatprep.subr.mxu1 %v4431_v28  ;;  %5132 = vmatpush1.msra.mxu0 %v4174_v22  ;;  %v4607_v28 = vld [vmem:[%s14130_s3 + $0x1fd8] sm:$0xff]  ;;  %v4350_v22 = vld [vmem:[%s14130_s3 + $0x17d0] sm:$0xff] }
 0x758   : > { %5209 = vmatpush1.msra.mxu1 %v4430_v46  ;;  %5133 = vmatprep.subr.mxu0 %v4167_v39  ;;  %v4606_v46 = vld [vmem:[%s14130_s3 + $0x1fd0] sm:$0xff]  ;;  %v4343_v39 = vld [vmem:[%s14130_s3 + $0x1798] sm:$0xff] }
 0x759   : > { %5210 = vmatprep.subr.mxu1 %v4423_v61  ;;  %5134 = vmatpush1.msra.mxu0 %v4166_v34  ;;  %v4599_v61 = vld [vmem:[%s14130_s3 + $0x1f98] sm:$0xff]  ;;  %v4342_v34 = vld [vmem:[%s14130_s3 + $0x1790] sm:$0xff] }
 0x75a   : > { %5211 = vmatpush1.msra.mxu1 %v4422_v29  ;;  %5135 = vmatprep.subr.mxu0 %v4159_v12  ;;  %v4598_v29 = vld [vmem:[%s14130_s3 + $0x1f90] sm:$0xff]  ;;  %v4335_v12 = vld [vmem:[%s14130_s3 + $0x1758] sm:$0xff] }
 0x75b   : > { %5212 = vmatprep.subr.mxu1 %v4415_v11  ;;  %5136 = vmatpush1.msra.mxu0 %v4158_v47  ;;  %v4591_v11 = vld [vmem:[%s14130_s3 + $0x1f58] sm:$0xff]  ;;  %v4334_v47 = vld [vmem:[%s14130_s3 + $0x1750] sm:$0xff] }
 0x75c   : > { %5213 = vmatpush1.msra.mxu1 %v4414_v8  ;;  %5137 = vmatprep.subr.mxu0 %v4151_v63  ;;  %v4590_v8 = vld [vmem:[%s14130_s3 + $0x1f50] sm:$0xff]  ;;  %v4327_v63 = vld [vmem:[%s14130_s3 + $0x1718] sm:$0xff] }
 0x75d   : > { %5214 = vmatprep.subr.mxu1 %v4407_v53  ;;  %5138 = vmatpush1.msra.mxu0 %v4150_v6  ;;  %v4583_v53 = vld [vmem:[%s14130_s3 + $0x1f18] sm:$0xff]  ;;  %v4326_v6 = vld [vmem:[%s14130_s3 + $0x1710] sm:$0xff] }
 0x75e   : > { %5215 = vmatpush1.msra.mxu1 %v4406_v49  ;;  %5139 = vmatprep.subr.mxu0 %v4143_v55  ;;  %v4582_v49 = vld [vmem:[%s14130_s3 + $0x1f10] sm:$0xff]  ;;  %v4319_v55 = vld [vmem:[%s14130_s3 + $0x16d8] sm:$0xff] }
 0x75f   : > { %5216 = vmatprep.subr.mxu1 %v4399_v36  ;;  %5140 = vmatpush1.msra.mxu0 %v4142_v27  ;;  %v4575_v36 = vld [vmem:[%s14130_s3 + $0x1ed8] sm:$0xff]  ;;  %v4318_v27 = vld [vmem:[%s14130_s3 + $0x16d0] sm:$0xff] }
 0x760   : > { %5217 = vmatpush1.msra.mxu1 %v4398_v1  ;;  %5141 = vmatprep.subr.mxu0 %v4135_v4  ;;  %v4574_v1 = vld [vmem:[%s14130_s3 + $0x1ed0] sm:$0xff]  ;;  %v4311_v4 = vld [vmem:[%s14130_s3 + $0x1698] sm:$0xff] }
 0x761   : > { %5218 = vmatprep.subr.mxu1 %v4391_v14  ;;  %5142 = vmatpush1.msra.mxu0 %v4134_v20  ;;  %v4567_v14 = vld [vmem:[%s14130_s3 + $0x1e98] sm:$0xff]  ;;  %v4310_v20 = vld [vmem:[%s14130_s3 + $0x1690] sm:$0xff] }
 0x762   : > { %5219 = vmatpush1.msra.mxu1 %v4390_v23  ;;  %5143 = vmatprep.subr.mxu0 %v4127_v38  ;;  %v4566_v23 = vld [vmem:[%s14130_s3 + $0x1e90] sm:$0xff]  ;;  %v4303_v38 = vld [vmem:[%s14130_s3 + $0x1658] sm:$0xff] }
 0x763   : > { %5220 = vmatprep.subr.mxu1 %v4383_v10  ;;  %5144 = vmatpush1.msra.mxu0 %v4126_v52  ;;  %v4559_v10 = vld [vmem:[%s14130_s3 + $0x1e58] sm:$0xff]  ;;  %v4302_v52 = vld [vmem:[%s14130_s3 + $0x1650] sm:$0xff] }
 0x764   : > { %5221 = vmatpush1.msra.mxu1 %v4382_v56  ;;  %5145 = vmatprep.subr.mxu0 %v4119_v40  ;;  %v4558_v56 = vld [vmem:[%s14130_s3 + $0x1e50] sm:$0xff]  ;;  %v4295_v40 = vld [vmem:[%s14130_s3 + $0x1618] sm:$0xff] }
 0x765   : > { %5222 = vmatprep.subr.mxu1 %v4375_v54  ;;  %5146 = vmatpush1.msra.mxu0 %v4118_v15  ;;  %v4551_v54 = vld [vmem:[%s14130_s3 + $0x1e18] sm:$0xff]  ;;  %v4294_v15 = vld [vmem:[%s14130_s3 + $0x1610] sm:$0xff] }
 0x766   : > { %5223 = vmatpush1.msra.mxu1 %v4374_v24  ;;  %5147 = vmatprep.subr.mxu0 %v4111_v44  ;;  %v4550_v24 = vld [vmem:[%s14130_s3 + $0x1e10] sm:$0xff]  ;;  %v4287_v44 = vld [vmem:[%s14130_s3 + $0x15d8] sm:$0xff] }
 0x767   : > { %5224 = vmatprep.subr.mxu1 %v4367_v59  ;;  %5148 = vmatpush1.msra.mxu0 %v4110_v3  ;;  %v4543_v59 = vld [vmem:[%s14130_s3 + $0x1dd8] sm:$0xff]  ;;  %v4286_v3 = vld [vmem:[%s14130_s3 + $0x15d0] sm:$0xff] }
 0x768   : > { %5225 = vmatpush1.msra.mxu1 %v4366_v19  ;;  %5149 = vmatprep.subr.mxu0 %v4103_v48  ;;  %v4542_v19 = vld [vmem:[%s14130_s3 + $0x1dd0] sm:$0xff]  ;;  %v4279_v48 = vld [vmem:[%s14130_s3 + $0x1598] sm:$0xff] }
 0x769   : > { %5226 = vmatprep.subr.mxu1 %v4359_v21  ;;  %5150 = vmatpush1.msra.mxu0 %v4102_v41  ;;  %v4535_v21 = vld [vmem:[%s14130_s3 + $0x1d98] sm:$0xff]  ;;  %v4278_v41 = vld [vmem:[%s14130_s3 + $0x1590] sm:$0xff] }
 0x76a   : > { %5227 = vmatpush1.msra.mxu1 %v4358_v18  ;;  %5151 = vmatprep.subr.mxu0 %v4351_v16  ;;  %v4534_v18 = vld [vmem:[%s14130_s3 + $0x1d90] sm:$0xff]  ;;  %v4271_v16 = vld [vmem:[%s14130_s3 + $0x1558] sm:$0xff] }
 0x76b   : > { %5228 = vmatprep.subr.mxu1 %v4607_v28  ;;  %5152 = vmatpush2.msra.mxu0 %v4350_v22  ;;  %v4527_v28 = vld [vmem:[%s14130_s3 + $0x1d58] sm:$0xff]  ;;  %v4270_v22 = vld [vmem:[%s14130_s3 + $0x1550] sm:$0xff] }
 0x76c   : > { %5229 = vmatpush2.msra.mxu1 %v4606_v46  ;;  %5153 = vmatprep.subr.mxu0 %v4343_v39  ;;  %v4526_v46 = vld [vmem:[%s14130_s3 + $0x1d50] sm:$0xff]  ;;  %v4263_v39 = vld [vmem:[%s14130_s3 + $0x1518] sm:$0xff] }
 0x76d   : > { %5230 = vmatprep.subr.mxu1 %v4599_v61  ;;  %5154 = vmatpush2.msra.mxu0 %v4342_v34  ;;  %v4519_v61 = vld [vmem:[%s14130_s3 + $0x1d18] sm:$0xff]  ;;  %v4262_v34 = vld [vmem:[%s14130_s3 + $0x1510] sm:$0xff] }
 0x76e   : > { %5231 = vmatpush2.msra.mxu1 %v4598_v29  ;;  %5155 = vmatprep.subr.mxu0 %v4335_v12  ;;  %v4518_v29 = vld [vmem:[%s14130_s3 + $0x1d10] sm:$0xff]  ;;  %v4255_v12 = vld [vmem:[%s14130_s3 + $0x14d8] sm:$0xff] }
 0x76f   : > { %5232 = vmatprep.subr.mxu1 %v4591_v11  ;;  %5156 = vmatpush2.msra.mxu0 %v4334_v47  ;;  %v4511_v11 = vld [vmem:[%s14130_s3 + $0x1cd8] sm:$0xff]  ;;  %v4254_v47 = vld [vmem:[%s14130_s3 + $0x14d0] sm:$0xff] }
 0x770   : > { %5233 = vmatpush2.msra.mxu1 %v4590_v8  ;;  %5157 = vmatprep.subr.mxu0 %v4327_v63  ;;  %v4510_v8 = vld [vmem:[%s14130_s3 + $0x1cd0] sm:$0xff]  ;;  %v4247_v63 = vld [vmem:[%s14130_s3 + $0x1498] sm:$0xff] }
 0x771   : > { %5234 = vmatprep.subr.mxu1 %v4583_v53  ;;  %5158 = vmatpush2.msra.mxu0 %v4326_v6  ;;  %v4503_v53 = vld [vmem:[%s14130_s3 + $0x1c98] sm:$0xff]  ;;  %v4246_v6 = vld [vmem:[%s14130_s3 + $0x1490] sm:$0xff] }
 0x772   : > { %5235 = vmatpush2.msra.mxu1 %v4582_v49  ;;  %5159 = vmatprep.subr.mxu0 %v4319_v55  ;;  %v4502_v49 = vld [vmem:[%s14130_s3 + $0x1c90] sm:$0xff]  ;;  %v4239_v55 = vld [vmem:[%s14130_s3 + $0x1458] sm:$0xff] }
 0x773   : > { %5236 = vmatprep.subr.mxu1 %v4575_v36  ;;  %5160 = vmatpush2.msra.mxu0 %v4318_v27  ;;  %v4495_v36 = vld [vmem:[%s14130_s3 + $0x1c58] sm:$0xff]  ;;  %v4238_v27 = vld [vmem:[%s14130_s3 + $0x1450] sm:$0xff] }
 0x774   : > { %5237 = vmatpush2.msra.mxu1 %v4574_v1  ;;  %5161 = vmatprep.subr.mxu0 %v4311_v4  ;;  %v4494_v1 = vld [vmem:[%s14130_s3 + $0x1c50] sm:$0xff]  ;;  %v4231_v4 = vld [vmem:[%s14130_s3 + $0x1418] sm:$0xff] }
 0x775   : > { %5238 = vmatprep.subr.mxu1 %v4567_v14  ;;  %5162 = vmatpush2.msra.mxu0 %v4310_v20  ;;  %v4487_v14 = vld [vmem:[%s14130_s3 + $0x1c18] sm:$0xff]  ;;  %v4230_v20 = vld [vmem:[%s14130_s3 + $0x1410] sm:$0xff] }
 0x776   : > { %5239 = vmatpush2.msra.mxu1 %v4566_v23  ;;  %5163 = vmatprep.subr.mxu0 %v4303_v38  ;;  %v4486_v23 = vld [vmem:[%s14130_s3 + $0x1c10] sm:$0xff]  ;;  %v3713_v38 = vld [vmem:[%s14130_s3 + $0x3e8] sm:$0xff] }
 0x777   : > { %5240 = vmatprep.subr.mxu1 %v4559_v10  ;;  %5164 = vmatpush2.msra.mxu0 %v4302_v52  ;;  %v3969_v10 = vld [vmem:[%s14130_s3 + $0xbe8] sm:$0xff]  ;;  %v3712_v52 = vld [vmem:[%s14130_s3 + $0x3e0] sm:$0xff] }
 0x778   : > { %5241 = vmatpush2.msra.mxu1 %v4558_v56  ;;  %5165 = vmatprep.subr.mxu0 %v4295_v40  ;;  %v3968_v56 = vld [vmem:[%s14130_s3 + $0xbe0] sm:$0xff]  ;;  %v3705_v40 = vld [vmem:[%s14130_s3 + $0x3a8] sm:$0xff] }
 0x779   : > { %5242 = vmatprep.subr.mxu1 %v4551_v54  ;;  %5166 = vmatpush2.msra.mxu0 %v4294_v15  ;;  %v3961_v54 = vld [vmem:[%s14130_s3 + $0xba8] sm:$0xff]  ;;  %v3704_v15 = vld [vmem:[%s14130_s3 + $0x3a0] sm:$0xff] }
 0x77a   : > { %5243 = vmatpush2.msra.mxu1 %v4550_v24  ;;  %5167 = vmatprep.subr.mxu0 %v4287_v44  ;;  %v3960_v24 = vld [vmem:[%s14130_s3 + $0xba0] sm:$0xff]  ;;  %v3697_v44 = vld [vmem:[%s14130_s3 + $0x368] sm:$0xff] }
 0x77b   : > { %5244 = vmatprep.subr.mxu1 %v4543_v59  ;;  %5168 = vmatpush2.msra.mxu0 %v4286_v3  ;;  %v3953_v59 = vld [vmem:[%s14130_s3 + $0xb68] sm:$0xff]  ;;  %v3696_v3 = vld [vmem:[%s14130_s3 + $0x360] sm:$0xff] }
 0x77c   : > { %5245 = vmatpush2.msra.mxu1 %v4542_v19  ;;  %5169 = vmatprep.subr.mxu0 %v4279_v48  ;;  %v3952_v19 = vld [vmem:[%s14130_s3 + $0xb60] sm:$0xff]  ;;  %v3689_v48 = vld [vmem:[%s14130_s3 + $0x328] sm:$0xff] }
 0x77d   : > { %5246 = vmatprep.subr.mxu1 %v4535_v21  ;;  %5170 = vmatpush2.msra.mxu0 %v4278_v41  ;;  %v3945_v21 = vld [vmem:[%s14130_s3 + $0xb28] sm:$0xff]  ;;  %v3688_v41 = vld [vmem:[%s14130_s3 + $0x320] sm:$0xff] }
 0x77e   : > { %5247 = vmatpush2.msra.mxu1 %v4534_v18  ;;  %5171 = vmatprep.subr.mxu0 %v4271_v16  ;;  %v3944_v18 = vld [vmem:[%s14130_s3 + $0xb20] sm:$0xff]  ;;  %v3681_v16 = vld [vmem:[%s14130_s3 + $0x2e8] sm:$0xff] }
 0x77f   : > { %5248 = vmatprep.subr.mxu1 %v4527_v28  ;;  %5172 = vmatpush2.msra.mxu0 %v4270_v22  ;;  %v3937_v28 = vld [vmem:[%s14130_s3 + $0xae8] sm:$0xff]  ;;  %v3680_v22 = vld [vmem:[%s14130_s3 + $0x2e0] sm:$0xff] }
 0x780   : > { %5249 = vmatpush2.msra.mxu1 %v4526_v46  ;;  %5173 = vmatprep.subr.mxu0 %v4263_v39  ;;  %v3936_v46 = vld [vmem:[%s14130_s3 + $0xae0] sm:$0xff]  ;;  %v3673_v39 = vld [vmem:[%s14130_s3 + $0x2a8] sm:$0xff] }
 0x781   : > { %5250 = vmatprep.subr.mxu1 %v4519_v61  ;;  %5174 = vmatpush2.msra.mxu0 %v4262_v34  ;;  %v3929_v61 = vld [vmem:[%s14130_s3 + $0xaa8] sm:$0xff]  ;;  %v3672_v34 = vld [vmem:[%s14130_s3 + $0x2a0] sm:$0xff] }
 0x782   : > { %5251 = vmatpush2.msra.mxu1 %v4518_v29  ;;  %5175 = vmatprep.subr.mxu0 %v4255_v12  ;;  %v3928_v29 = vld [vmem:[%s14130_s3 + $0xaa0] sm:$0xff]  ;;  %v3665_v12 = vld [vmem:[%s14130_s3 + $0x268] sm:$0xff] }
 0x783   : > { %5252 = vmatprep.subr.mxu1 %v4511_v11  ;;  %5176 = vmatpush2.msra.mxu0 %v4254_v47  ;;  %v3921_v11 = vld [vmem:[%s14130_s3 + $0xa68] sm:$0xff]  ;;  %v3664_v47 = vld [vmem:[%s14130_s3 + $0x260] sm:$0xff] }
 0x784   : > { %5253 = vmatpush2.msra.mxu1 %v4510_v8  ;;  %5177 = vmatprep.subr.mxu0 %v4247_v63  ;;  %v3920_v8 = vld [vmem:[%s14130_s3 + $0xa60] sm:$0xff]  ;;  %v3657_v63 = vld [vmem:[%s14130_s3 + $0x228] sm:$0xff] }
 0x785   : > { %5254 = vmatprep.subr.mxu1 %v4503_v53  ;;  %5178 = vmatpush2.msra.mxu0 %v4246_v6  ;;  %v3913_v53 = vld [vmem:[%s14130_s3 + $0xa28] sm:$0xff]  ;;  %v3656_v6 = vld [vmem:[%s14130_s3 + $0x220] sm:$0xff] }
 0x786   : > { %5255 = vmatpush2.msra.mxu1 %v4502_v49  ;;  %5179 = vmatprep.subr.mxu0 %v4239_v55  ;;  %v3912_v49 = vld [vmem:[%s14130_s3 + $0xa20] sm:$0xff]  ;;  %v3649_v55 = vld [vmem:[%s14130_s3 + $0x1e8] sm:$0xff] }
 0x787   : > { %5256 = vmatprep.subr.mxu1 %v4495_v36  ;;  %5180 = vmatpush2.msra.mxu0 %v4238_v27  ;;  %v3905_v36 = vld [vmem:[%s14130_s3 + $0x9e8] sm:$0xff]  ;;  %v3648_v27 = vld [vmem:[%s14130_s3 + $0x1e0] sm:$0xff] }
 0x788   : > { %5257 = vmatpush2.msra.mxu1 %v4494_v1  ;;  %5181 = vmatprep.subr.mxu0 %v4231_v4  ;;  %v3904_v1 = vld [vmem:[%s14130_s3 + $0x9e0] sm:$0xff]  ;;  %v3641_v4 = vld [vmem:[%s14130_s3 + $0x1a8] sm:$0xff] }
 0x789   : > { %5258 = vmatprep.subr.mxu1 %v4487_v14  ;;  %5182 = vmatpush2.msra.mxu0 %v4230_v20  ;;  %v3897_v14 = vld [vmem:[%s14130_s3 + $0x9a8] sm:$0xff]  ;;  %v3640_v20 = vld [vmem:[%s14130_s3 + $0x1a0] sm:$0xff] }
 0x78a   : > { %5259 = vmatpush2.msra.mxu1 %v4486_v23  ;;  %5184 = vmatmul.mubr.f32.vlgmr.msra.gmra.mxu0 %v11431_v43  ;;  %v3896_v23 = vld [vmem:[%s14130_s3 + $0x9a0] sm:$0xff] }
 0x78b   : > { %5261 = vmatmul.mubr.f32.vlgmr.msra.gmra.mxu1 %v11437_v33  ;;  %5273 = vmatprep.subr.mxu0 %v3713_v38  ;;  %v3633_v38 = vld [vmem:[%s14130_s3 + $0x168] sm:$0xff] }
 0x78c   : > { %5350 = vmatprep.subr.mxu1 %v3969_v10  ;;  %5189 = vmatprep.mubr.f32.mxu0 %v11444_v7  ;;  %v3889_v10 = vld [vmem:[%s14130_s3 + $0x968] sm:$0xff] }
 0x78d   : > { %5266 = vmatprep.mubr.f32.mxu1 %v11450_v13  ;;  %5274 = vmatpush1.msra.mxu0 %v3712_v52  ;;  %v3632_v52 = vld [vmem:[%s14130_s3 + $0x160] sm:$0xff] }
 0x78e   : > { %5351 = vmatpush1.msra.mxu1 %v3968_v56  ;;  %5275 = vmatprep.subr.mxu0 %v3705_v40  ;;  %v3888_v56 = vld [vmem:[%s14130_s3 + $0x960] sm:$0xff]  ;;  %v3625_v40 = vld [vmem:[%s14130_s3 + $0x128] sm:$0xff] }
 0x78f   : > { %5352 = vmatprep.subr.mxu1 %v3961_v54  ;;  %5276 = vmatpush1.msra.mxu0 %v3704_v15  ;;  %v3881_v54 = vld [vmem:[%s14130_s3 + $0x928] sm:$0xff]  ;;  %v3624_v15 = vld [vmem:[%s14130_s3 + $0x120] sm:$0xff] }
 0x790   : > { %5353 = vmatpush1.msra.mxu1 %v3960_v24  ;;  %5190 = vmatmul.mubr.f32.gmra.mxu0 %v11471_v62  ;;  %v3880_v24 = vld [vmem:[%s14130_s3 + $0x920] sm:$0xff] }
 0x791   : > { %5267 = vmatmul.mubr.f32.gmra.mxu1 %v11476_v35  ;;  %5277 = vmatprep.subr.mxu0 %v3697_v44  ;;  %v3617_v44 = vld [vmem:[%s14130_s3 + $0xe8] sm:$0xff] }
 0x792   : > { %5354 = vmatprep.subr.mxu1 %v3953_v59  ;;  %5278 = vmatpush1.msra.mxu0 %v3696_v3  ;;  %v3873_v59 = vld [vmem:[%s14130_s3 + $0x8e8] sm:$0xff]  ;;  %v3616_v3 = vld [vmem:[%s14130_s3 + $0xe0] sm:$0xff] }
 0x793   : > { %5337 = vmatprep.mubr.f32.mxu0 %v11000_v42  ;;  %5355 = vmatpush1.msra.mxu1 %v3952_v19  ;;  %v3872_v19 = vld [vmem:[%s14130_s3 + $0x8e0] sm:$0xff] }
 0x794   : > { %5414 = vmatprep.mubr.f32.mxu1 %v11002_v57  ;;  %5279 = vmatprep.subr.mxu0 %v3689_v48  ;;  %v3609_v48 = vld [vmem:[%s14130_s3 + $0xa8] sm:$0xff] }
 0x795   : > { %5356 = vmatprep.subr.mxu1 %v3945_v21  ;;  %5280 = vmatpush1.msra.mxu0 %v3688_v41  ;;  %v3865_v21 = vld [vmem:[%s14130_s3 + $0x8a8] sm:$0xff]  ;;  %v3608_v41 = vld [vmem:[%s14130_s3 + $0xa0] sm:$0xff] }
 0x796   : > { %5357 = vmatpush1.msra.mxu1 %v3944_v18  ;;  %5281 = vmatprep.subr.mxu0 %v3681_v16  ;;  %v3864_v18 = vld [vmem:[%s14130_s3 + $0x8a0] sm:$0xff]  ;;  %v3601_v16 = vld [vmem:[%s14130_s3 + $0x68] sm:$0xff] }
 0x797   : > { %5358 = vmatprep.subr.mxu1 %v3937_v28  ;;  %5282 = vmatpush1.msra.mxu0 %v3680_v22  ;;  %v3857_v28 = vld [vmem:[%s14130_s3 + $0x868] sm:$0xff]  ;;  %v3600_v22 = vld [vmem:[%s14130_s3 + $0x60] sm:$0xff] }
 0x798   : > { %5359 = vmatpush1.msra.mxu1 %v3936_v46  ;;  %5283 = vmatprep.subr.mxu0 %v3673_v39  ;;  %v3856_v46 = vld [vmem:[%s14130_s3 + $0x860] sm:$0xff]  ;;  %v3593_v39 = vld [vmem:[%s14130_s3 + $0x28] sm:$0xff] }
 0x799   : > { %5360 = vmatprep.subr.mxu1 %v3929_v61  ;;  %5284 = vmatpush1.msra.mxu0 %v3672_v34  ;;  %v3849_v61 = vld [vmem:[%s14130_s3 + $0x828] sm:$0xff]  ;;  %v3592_v34 = vld [vmem:[%s14130_s3 + $0x20] sm:$0xff] }
 0x79a   : > { %5361 = vmatpush1.msra.mxu1 %v3928_v29  ;;  %5285 = vmatprep.subr.mxu0 %v3665_v12  ;;  %v3848_v29 = vld [vmem:[%s14130_s3 + $0x820] sm:$0xff]  ;;  %v3841_v12 = vld [vmem:[%s14130_s3 + $0x7e8] sm:$0xff] }
 0x79b   : > { %5362 = vmatprep.subr.mxu1 %v3921_v11  ;;  %5286 = vmatpush1.msra.mxu0 %v3664_v47  ;;  %v4097_v11 = vld [vmem:[%s14130_s3 + $0xfe8] sm:$0xff]  ;;  %v3840_v47 = vld [vmem:[%s14130_s3 + $0x7e0] sm:$0xff] }
 0x79c   : > { %5363 = vmatpush1.msra.mxu1 %v3920_v8  ;;  %5287 = vmatprep.subr.mxu0 %v3657_v63  ;;  %v4096_v8 = vld [vmem:[%s14130_s3 + $0xfe0] sm:$0xff]  ;;  %v3833_v63 = vld [vmem:[%s14130_s3 + $0x7a8] sm:$0xff] }
 0x79d   : > { %5364 = vmatprep.subr.mxu1 %v3913_v53  ;;  %5288 = vmatpush1.msra.mxu0 %v3656_v6  ;;  %v4089_v53 = vld [vmem:[%s14130_s3 + $0xfa8] sm:$0xff]  ;;  %v3832_v6 = vld [vmem:[%s14130_s3 + $0x7a0] sm:$0xff] }
 0x79e   : > { %5365 = vmatpush1.msra.mxu1 %v3912_v49  ;;  %5289 = vmatprep.subr.mxu0 %v3649_v55  ;;  %v4088_v49 = vld [vmem:[%s14130_s3 + $0xfa0] sm:$0xff]  ;;  %v3825_v55 = vld [vmem:[%s14130_s3 + $0x768] sm:$0xff] }
 0x79f   : > { %5366 = vmatprep.subr.mxu1 %v3905_v36  ;;  %5290 = vmatpush1.msra.mxu0 %v3648_v27  ;;  %v4081_v36 = vld [vmem:[%s14130_s3 + $0xf68] sm:$0xff]  ;;  %v3824_v27 = vld [vmem:[%s14130_s3 + $0x760] sm:$0xff] }
 0x7a0   : > { %5367 = vmatpush1.msra.mxu1 %v3904_v1  ;;  %5291 = vmatprep.subr.mxu0 %v3641_v4  ;;  %v4080_v1 = vld [vmem:[%s14130_s3 + $0xf60] sm:$0xff]  ;;  %v3817_v4 = vld [vmem:[%s14130_s3 + $0x728] sm:$0xff] }
 0x7a1   : > { %5368 = vmatprep.subr.mxu1 %v3897_v14  ;;  %5292 = vmatpush1.msra.mxu0 %v3640_v20  ;;  %v4073_v14 = vld [vmem:[%s14130_s3 + $0xf28] sm:$0xff]  ;;  %v3816_v20 = vld [vmem:[%s14130_s3 + $0x720] sm:$0xff] }
 0x7a2   : > { %5369 = vmatpush1.msra.mxu1 %v3896_v23  ;;  %5293 = vmatprep.subr.mxu0 %v3633_v38  ;;  %v4072_v23 = vld [vmem:[%s14130_s3 + $0xf20] sm:$0xff]  ;;  %v3809_v38 = vld [vmem:[%s14130_s3 + $0x6e8] sm:$0xff] }
 0x7a3   : > { %5370 = vmatprep.subr.mxu1 %v3889_v10  ;;  %5294 = vmatpush1.msra.mxu0 %v3632_v52  ;;  %v4065_v10 = vld [vmem:[%s14130_s3 + $0xee8] sm:$0xff]  ;;  %v3808_v52 = vld [vmem:[%s14130_s3 + $0x6e0] sm:$0xff] }
 0x7a4   : > { %5371 = vmatpush1.msra.mxu1 %v3888_v56  ;;  %5295 = vmatprep.subr.mxu0 %v3625_v40  ;;  %v4064_v56 = vld [vmem:[%s14130_s3 + $0xee0] sm:$0xff]  ;;  %v3801_v40 = vld [vmem:[%s14130_s3 + $0x6a8] sm:$0xff] }
 0x7a5   : > { %5372 = vmatprep.subr.mxu1 %v3881_v54  ;;  %5296 = vmatpush1.msra.mxu0 %v3624_v15  ;;  %v4057_v54 = vld [vmem:[%s14130_s3 + $0xea8] sm:$0xff]  ;;  %v3800_v15 = vld [vmem:[%s14130_s3 + $0x6a0] sm:$0xff] }
 0x7a6   : > { %5373 = vmatpush1.msra.mxu1 %v3880_v24  ;;  %5297 = vmatprep.subr.mxu0 %v3617_v44  ;;  %v4056_v24 = vld [vmem:[%s14130_s3 + $0xea0] sm:$0xff]  ;;  %v3793_v44 = vld [vmem:[%s14130_s3 + $0x668] sm:$0xff] }
 0x7a7   : > { %5374 = vmatprep.subr.mxu1 %v3873_v59  ;;  %5298 = vmatpush1.msra.mxu0 %v3616_v3  ;;  %v4049_v59 = vld [vmem:[%s14130_s3 + $0xe68] sm:$0xff]  ;;  %v3792_v3 = vld [vmem:[%s14130_s3 + $0x660] sm:$0xff] }
 0x7a8   : > { %5375 = vmatpush1.msra.mxu1 %v3872_v19  ;;  %5299 = vmatprep.subr.mxu0 %v3609_v48  ;;  %v4048_v19 = vld [vmem:[%s14130_s3 + $0xe60] sm:$0xff]  ;;  %v3785_v48 = vld [vmem:[%s14130_s3 + $0x628] sm:$0xff] }
 0x7a9   : > { %5376 = vmatprep.subr.mxu1 %v3865_v21  ;;  %5300 = vmatpush1.msra.mxu0 %v3608_v41  ;;  %v4041_v21 = vld [vmem:[%s14130_s3 + $0xe28] sm:$0xff]  ;;  %v3784_v41 = vld [vmem:[%s14130_s3 + $0x620] sm:$0xff] }
 0x7aa   : > { %5377 = vmatpush1.msra.mxu1 %v3864_v18  ;;  %5301 = vmatprep.subr.mxu0 %v3601_v16  ;;  %v4040_v18 = vld [vmem:[%s14130_s3 + $0xe20] sm:$0xff]  ;;  %v3777_v16 = vld [vmem:[%s14130_s3 + $0x5e8] sm:$0xff] }
 0x7ab   : > { %5378 = vmatprep.subr.mxu1 %v3857_v28  ;;  %5302 = vmatpush1.msra.mxu0 %v3600_v22  ;;  %v4033_v28 = vld [vmem:[%s14130_s3 + $0xde8] sm:$0xff]  ;;  %v3776_v22 = vld [vmem:[%s14130_s3 + $0x5e0] sm:$0xff] }
 0x7ac   : > { %5379 = vmatpush1.msra.mxu1 %v3856_v46  ;;  %5303 = vmatprep.subr.mxu0 %v3593_v39  ;;  %v4032_v46 = vld [vmem:[%s14130_s3 + $0xde0] sm:$0xff]  ;;  %v3769_v39 = vld [vmem:[%s14130_s3 + $0x5a8] sm:$0xff] }
 0x7ad   : > { %5380 = vmatprep.subr.mxu1 %v3849_v61  ;;  %5304 = vmatpush1.msra.mxu0 %v3592_v34  ;;  %v4025_v61 = vld [vmem:[%s14130_s3 + $0xda8] sm:$0xff]  ;;  %v3768_v34 = vld [vmem:[%s14130_s3 + $0x5a0] sm:$0xff] }
 0x7ae   : > { %5381 = vmatpush1.msra.mxu1 %v3848_v29  ;;  %5305 = vmatprep.subr.mxu0 %v3841_v12  ;;  %v4024_v29 = vld [vmem:[%s14130_s3 + $0xda0] sm:$0xff]  ;;  %v3761_v12 = vld [vmem:[%s14130_s3 + $0x568] sm:$0xff] }
 0x7af   : > { %5382 = vmatprep.subr.mxu1 %v4097_v11  ;;  %5306 = vmatpush2.msra.mxu0 %v3840_v47  ;;  %v4017_v11 = vld [vmem:[%s14130_s3 + $0xd68] sm:$0xff]  ;;  %v3760_v47 = vld [vmem:[%s14130_s3 + $0x560] sm:$0xff] }
 0x7b0   : > { %5383 = vmatpush2.msra.mxu1 %v4096_v8  ;;  %5307 = vmatprep.subr.mxu0 %v3833_v63  ;;  %v4016_v8 = vld [vmem:[%s14130_s3 + $0xd60] sm:$0xff]  ;;  %v3753_v63 = vld [vmem:[%s14130_s3 + $0x528] sm:$0xff] }
 0x7b1   : > { %5384 = vmatprep.subr.mxu1 %v4089_v53  ;;  %5308 = vmatpush2.msra.mxu0 %v3832_v6  ;;  %v4009_v53 = vld [vmem:[%s14130_s3 + $0xd28] sm:$0xff]  ;;  %v3752_v6 = vld [vmem:[%s14130_s3 + $0x520] sm:$0xff] }
 0x7b2   : > { %5385 = vmatpush2.msra.mxu1 %v4088_v49  ;;  %5309 = vmatprep.subr.mxu0 %v3825_v55  ;;  %v4008_v49 = vld [vmem:[%s14130_s3 + $0xd20] sm:$0xff]  ;;  %v3745_v55 = vld [vmem:[%s14130_s3 + $0x4e8] sm:$0xff] }
 0x7b3   : > { %5386 = vmatprep.subr.mxu1 %v4081_v36  ;;  %5310 = vmatpush2.msra.mxu0 %v3824_v27  ;;  %v4001_v36 = vld [vmem:[%s14130_s3 + $0xce8] sm:$0xff]  ;;  %v3744_v27 = vld [vmem:[%s14130_s3 + $0x4e0] sm:$0xff] }
 0x7b4   : > { %5387 = vmatpush2.msra.mxu1 %v4080_v1  ;;  %5311 = vmatprep.subr.mxu0 %v3817_v4  ;;  %v4000_v1 = vld [vmem:[%s14130_s3 + $0xce0] sm:$0xff]  ;;  %v3737_v4 = vld [vmem:[%s14130_s3 + $0x4a8] sm:$0xff] }
 0x7b5   : > { %5388 = vmatprep.subr.mxu1 %v4073_v14  ;;  %5312 = vmatpush2.msra.mxu0 %v3816_v20  ;;  %v3993_v14 = vld [vmem:[%s14130_s3 + $0xca8] sm:$0xff]  ;;  %v3736_v20 = vld [vmem:[%s14130_s3 + $0x4a0] sm:$0xff] }
 0x7b6   : > { %5389 = vmatpush2.msra.mxu1 %v4072_v23  ;;  %5313 = vmatprep.subr.mxu0 %v3809_v38  ;;  %v3992_v23 = vld [vmem:[%s14130_s3 + $0xca0] sm:$0xff]  ;;  %v3729_v38 = vld [vmem:[%s14130_s3 + $0x468] sm:$0xff] }
 0x7b7   : > { %5390 = vmatprep.subr.mxu1 %v4065_v10  ;;  %5314 = vmatpush2.msra.mxu0 %v3808_v52  ;;  %v3985_v10 = vld [vmem:[%s14130_s3 + $0xc68] sm:$0xff]  ;;  %v3728_v52 = vld [vmem:[%s14130_s3 + $0x460] sm:$0xff] }
 0x7b8   : > { %5391 = vmatpush2.msra.mxu1 %v4064_v56  ;;  %5315 = vmatprep.subr.mxu0 %v3801_v40  ;;  %v3984_v56 = vld [vmem:[%s14130_s3 + $0xc60] sm:$0xff]  ;;  %v3721_v40 = vld [vmem:[%s14130_s3 + $0x428] sm:$0xff] }
 0x7b9   : > { %5392 = vmatprep.subr.mxu1 %v4057_v54  ;;  %5316 = vmatpush2.msra.mxu0 %v3800_v15  ;;  %v3977_v54 = vld [vmem:[%s14130_s3 + $0xc28] sm:$0xff]  ;;  %v3720_v15 = vld [vmem:[%s14130_s3 + $0x420] sm:$0xff] }
 0x7ba   : > { %5393 = vmatpush2.msra.mxu1 %v4056_v24  ;;  %5317 = vmatprep.subr.mxu0 %v3793_v44  ;;  %v3976_v24 = vld [vmem:[%s14130_s3 + $0xc20] sm:$0xff]  ;;  %v4225_v44 = vld [vmem:[%s14130_s3 + $0x13e8] sm:$0xff] }
 0x7bb   : > { %5394 = vmatprep.subr.mxu1 %v4049_v59  ;;  %5318 = vmatpush2.msra.mxu0 %v3792_v3  ;;  %v4481_v59 = vld [vmem:[%s14130_s3 + $0x1be8] sm:$0xff]  ;;  %v4224_v3 = vld [vmem:[%s14130_s3 + $0x13e0] sm:$0xff] }
 0x7bc   : > { %5395 = vmatpush2.msra.mxu1 %v4048_v19  ;;  %5319 = vmatprep.subr.mxu0 %v3785_v48  ;;  %v4480_v19 = vld [vmem:[%s14130_s3 + $0x1be0] sm:$0xff]  ;;  %v4217_v48 = vld [vmem:[%s14130_s3 + $0x13a8] sm:$0xff] }
 0x7bd   : > { %5396 = vmatprep.subr.mxu1 %v4041_v21  ;;  %5320 = vmatpush2.msra.mxu0 %v3784_v41  ;;  %v4473_v21 = vld [vmem:[%s14130_s3 + $0x1ba8] sm:$0xff]  ;;  %v4216_v41 = vld [vmem:[%s14130_s3 + $0x13a0] sm:$0xff] }
 0x7be   : > { %5397 = vmatpush2.msra.mxu1 %v4040_v18  ;;  %5321 = vmatprep.subr.mxu0 %v3777_v16  ;;  %v4472_v18 = vld [vmem:[%s14130_s3 + $0x1ba0] sm:$0xff]  ;;  %v4209_v16 = vld [vmem:[%s14130_s3 + $0x1368] sm:$0xff] }
 0x7bf   : > { %5398 = vmatprep.subr.mxu1 %v4033_v28  ;;  %5322 = vmatpush2.msra.mxu0 %v3776_v22  ;;  %v4465_v28 = vld [vmem:[%s14130_s3 + $0x1b68] sm:$0xff]  ;;  %v4208_v22 = vld [vmem:[%s14130_s3 + $0x1360] sm:$0xff] }
 0x7c0   : > { %5399 = vmatpush2.msra.mxu1 %v4032_v46  ;;  %5323 = vmatprep.subr.mxu0 %v3769_v39  ;;  %v4464_v46 = vld [vmem:[%s14130_s3 + $0x1b60] sm:$0xff]  ;;  %v4201_v39 = vld [vmem:[%s14130_s3 + $0x1328] sm:$0xff] }
 0x7c1   : > { %5400 = vmatprep.subr.mxu1 %v4025_v61  ;;  %5324 = vmatpush2.msra.mxu0 %v3768_v34  ;;  %v4457_v61 = vld [vmem:[%s14130_s3 + $0x1b28] sm:$0xff]  ;;  %v4200_v34 = vld [vmem:[%s14130_s3 + $0x1320] sm:$0xff] }
 0x7c2   : > { %5401 = vmatpush2.msra.mxu1 %v4024_v29  ;;  %5325 = vmatprep.subr.mxu0 %v3761_v12  ;;  %v4456_v29 = vld [vmem:[%s14130_s3 + $0x1b20] sm:$0xff]  ;;  %v4193_v12 = vld [vmem:[%s14130_s3 + $0x12e8] sm:$0xff] }
 0x7c3   : > { %5402 = vmatprep.subr.mxu1 %v4017_v11  ;;  %5326 = vmatpush2.msra.mxu0 %v3760_v47  ;;  %v4449_v11 = vld [vmem:[%s14130_s3 + $0x1ae8] sm:$0xff]  ;;  %v4192_v47 = vld [vmem:[%s14130_s3 + $0x12e0] sm:$0xff] }
 0x7c4   : > { %5403 = vmatpush2.msra.mxu1 %v4016_v8  ;;  %5327 = vmatprep.subr.mxu0 %v3753_v63  ;;  %v4448_v8 = vld [vmem:[%s14130_s3 + $0x1ae0] sm:$0xff]  ;;  %v4185_v63 = vld [vmem:[%s14130_s3 + $0x12a8] sm:$0xff] }
 0x7c5   : > { %5404 = vmatprep.subr.mxu1 %v4009_v53  ;;  %5328 = vmatpush2.msra.mxu0 %v3752_v6  ;;  %v4441_v53 = vld [vmem:[%s14130_s3 + $0x1aa8] sm:$0xff]  ;;  %v4184_v6 = vld [vmem:[%s14130_s3 + $0x12a0] sm:$0xff] }
 0x7c6   : > { %5405 = vmatpush2.msra.mxu1 %v4008_v49  ;;  %5329 = vmatprep.subr.mxu0 %v3745_v55  ;;  %v4440_v49 = vld [vmem:[%s14130_s3 + $0x1aa0] sm:$0xff]  ;;  %v4177_v55 = vld [vmem:[%s14130_s3 + $0x1268] sm:$0xff] }
 0x7c7   : > { %5406 = vmatprep.subr.mxu1 %v4001_v36  ;;  %5330 = vmatpush2.msra.mxu0 %v3744_v27  ;;  %v4433_v36 = vld [vmem:[%s14130_s3 + $0x1a68] sm:$0xff]  ;;  %v4176_v27 = vld [vmem:[%s14130_s3 + $0x1260] sm:$0xff] }
 0x7c8   : > { %5407 = vmatpush2.msra.mxu1 %v4000_v1  ;;  %5331 = vmatprep.subr.mxu0 %v3737_v4  ;;  %v4432_v1 = vld [vmem:[%s14130_s3 + $0x1a60] sm:$0xff]  ;;  %v4169_v4 = vld [vmem:[%s14130_s3 + $0x1228] sm:$0xff] }
 0x7c9   : > { %5408 = vmatprep.subr.mxu1 %v3993_v14  ;;  %5332 = vmatpush2.msra.mxu0 %v3736_v20  ;;  %v4425_v14 = vld [vmem:[%s14130_s3 + $0x1a28] sm:$0xff]  ;;  %v4168_v20 = vld [vmem:[%s14130_s3 + $0x1220] sm:$0xff] }
 0x7ca   : > { %5409 = vmatpush2.msra.mxu1 %v3992_v23  ;;  %5333 = vmatprep.subr.mxu0 %v3729_v38  ;;  %v4424_v23 = vld [vmem:[%s14130_s3 + $0x1a20] sm:$0xff]  ;;  %v4161_v38 = vld [vmem:[%s14130_s3 + $0x11e8] sm:$0xff] }
 0x7cb   : > { %5410 = vmatprep.subr.mxu1 %v3985_v10  ;;  %5334 = vmatpush2.msra.mxu0 %v3728_v52  ;;  %v4417_v10 = vld [vmem:[%s14130_s3 + $0x19e8] sm:$0xff]  ;;  %v4160_v52 = vld [vmem:[%s14130_s3 + $0x11e0] sm:$0xff] }
 0x7cc   : > { %5411 = vmatpush2.msra.mxu1 %v3984_v56  ;;  %5335 = vmatprep.subr.mxu0 %v3721_v40  ;;  %v4416_v56 = vld [vmem:[%s14130_s3 + $0x19e0] sm:$0xff]  ;;  %v4153_v40 = vld [vmem:[%s14130_s3 + $0x11a8] sm:$0xff] }
 0x7cd   : > { %5412 = vmatprep.subr.mxu1 %v3977_v54  ;;  %5336 = vmatpush2.msra.mxu0 %v3720_v15  ;;  %v4409_v54 = vld [vmem:[%s14130_s3 + $0x19a8] sm:$0xff]  ;;  %v4152_v15 = vld [vmem:[%s14130_s3 + $0x11a0] sm:$0xff] }
 0x7ce   : > { %5413 = vmatpush2.msra.mxu1 %v3976_v24  ;;  %5338 = vmatmul.mubr.f32.vlgmr.msra.gmra.mxu0 %v11005_v5  ;;  %v4408_v24 = vld [vmem:[%s14130_s3 + $0x19a0] sm:$0xff] }
 0x7cf   : > { %5415 = vmatmul.mubr.f32.vlgmr.msra.gmra.mxu1 %v11011_v25  ;;  %5427 = vmatprep.subr.mxu0 %v4225_v44  ;;  %v4145_v44 = vld [vmem:[%s14130_s3 + $0x1168] sm:$0xff] }
 0x7d0   : > { %5504 = vmatprep.subr.mxu1 %v4481_v59  ;;  %5343 = vmatprep.mubr.f32.mxu0 %v11018_v0  ;;  %v4401_v59 = vld [vmem:[%s14130_s3 + $0x1968] sm:$0xff] }
 0x7d1   : > { %5420 = vmatprep.mubr.f32.mxu1 %v11024_v9  ;;  %5428 = vmatpush1.msra.mxu0 %v4224_v3  ;;  %v4144_v3 = vld [vmem:[%s14130_s3 + $0x1160] sm:$0xff] }
 0x7d2   : > { %5505 = vmatpush1.msra.mxu1 %v4480_v19  ;;  %5429 = vmatprep.subr.mxu0 %v4217_v48  ;;  %v4400_v19 = vld [vmem:[%s14130_s3 + $0x1960] sm:$0xff]  ;;  %v4137_v48 = vld [vmem:[%s14130_s3 + $0x1128] sm:$0xff] }
 0x7d3   : > { %5506 = vmatprep.subr.mxu1 %v4473_v21  ;;  %5430 = vmatpush1.msra.mxu0 %v4216_v41  ;;  %v4393_v21 = vld [vmem:[%s14130_s3 + $0x1928] sm:$0xff]  ;;  %v4136_v41 = vld [vmem:[%s14130_s3 + $0x1120] sm:$0xff] }
 0x7d4   : > { %5507 = vmatpush1.msra.mxu1 %v4472_v18  ;;  %5344 = vmatmul.mubr.f32.gmra.mxu0 %v11045_v37  ;;  %v4392_v18 = vld [vmem:[%s14130_s3 + $0x1920] sm:$0xff] }
 0x7d5   : > { %5421 = vmatmul.mubr.f32.gmra.mxu1 %v11050_v58  ;;  %5431 = vmatprep.subr.mxu0 %v4209_v16  ;;  %v4129_v16 = vld [vmem:[%s14130_s3 + $0x10e8] sm:$0xff] }
 0x7d6   : > { %5508 = vmatprep.subr.mxu1 %v4465_v28  ;;  %5432 = vmatpush1.msra.mxu0 %v4208_v22  ;;  %v4385_v28 = vld [vmem:[%s14130_s3 + $0x18e8] sm:$0xff]  ;;  %v4128_v22 = vld [vmem:[%s14130_s3 + $0x10e0] sm:$0xff] }
 0x7d7   : > { %5491 = vmatprep.mubr.f32.mxu0 %v11065_v45  ;;  %5509 = vmatpush1.msra.mxu1 %v4464_v46  ;;  %v4384_v46 = vld [vmem:[%s14130_s3 + $0x18e0] sm:$0xff] }
 0x7d8   : > { %5568 = vmatprep.mubr.f32.mxu1 %v11070_v51  ;;  %5433 = vmatprep.subr.mxu0 %v4201_v39  ;;  %v4121_v39 = vld [vmem:[%s14130_s3 + $0x10a8] sm:$0xff] }
 0x7d9   : > { %5510 = vmatprep.subr.mxu1 %v4457_v61  ;;  %5434 = vmatpush1.msra.mxu0 %v4200_v34  ;;  %v4377_v61 = vld [vmem:[%s14130_s3 + $0x18a8] sm:$0xff]  ;;  %v4120_v34 = vld [vmem:[%s14130_s3 + $0x10a0] sm:$0xff] }
 0x7da   : > { %5511 = vmatpush1.msra.mxu1 %v4456_v29  ;;  %5435 = vmatprep.subr.mxu0 %v4193_v12  ;;  %v4376_v29 = vld [vmem:[%s14130_s3 + $0x18a0] sm:$0xff]  ;;  %v4113_v12 = vld [vmem:[%s14130_s3 + $0x1068] sm:$0xff] }
 0x7db   : > { %5512 = vmatprep.subr.mxu1 %v4449_v11  ;;  %5436 = vmatpush1.msra.mxu0 %v4192_v47  ;;  %v4369_v11 = vld [vmem:[%s14130_s3 + $0x1868] sm:$0xff]  ;;  %v4112_v47 = vld [vmem:[%s14130_s3 + $0x1060] sm:$0xff] }
 0x7dc   : > { %5513 = vmatpush1.msra.mxu1 %v4448_v8  ;;  %5437 = vmatprep.subr.mxu0 %v4185_v63  ;;  %v4368_v8 = vld [vmem:[%s14130_s3 + $0x1860] sm:$0xff]  ;;  %v4105_v63 = vld [vmem:[%s14130_s3 + $0x1028] sm:$0xff] }
 0x7dd   : > { %5514 = vmatprep.subr.mxu1 %v4441_v53  ;;  %5438 = vmatpush1.msra.mxu0 %v4184_v6  ;;  %v4361_v53 = vld [vmem:[%s14130_s3 + $0x1828] sm:$0xff]  ;;  %v4104_v6 = vld [vmem:[%s14130_s3 + $0x1020] sm:$0xff] }
 0x7de   : > { %5515 = vmatpush1.msra.mxu1 %v4440_v49  ;;  %5439 = vmatprep.subr.mxu0 %v4177_v55  ;;  %v4360_v49 = vld [vmem:[%s14130_s3 + $0x1820] sm:$0xff]  ;;  %v4353_v55 = vld [vmem:[%s14130_s3 + $0x17e8] sm:$0xff] }
 0x7df   : > { %5516 = vmatprep.subr.mxu1 %v4433_v36  ;;  %5440 = vmatpush1.msra.mxu0 %v4176_v27  ;;  %v4609_v36 = vld [vmem:[%s14130_s3 + $0x1fe8] sm:$0xff]  ;;  %v4352_v27 = vld [vmem:[%s14130_s3 + $0x17e0] sm:$0xff] }
 0x7e0   : > { %5517 = vmatpush1.msra.mxu1 %v4432_v1  ;;  %5441 = vmatprep.subr.mxu0 %v4169_v4  ;;  %v4608_v1 = vld [vmem:[%s14130_s3 + $0x1fe0] sm:$0xff]  ;;  %v4345_v4 = vld [vmem:[%s14130_s3 + $0x17a8] sm:$0xff] }
 0x7e1   : > { %5518 = vmatprep.subr.mxu1 %v4425_v14  ;;  %5442 = vmatpush1.msra.mxu0 %v4168_v20  ;;  %v4601_v14 = vld [vmem:[%s14130_s3 + $0x1fa8] sm:$0xff]  ;;  %v4344_v20 = vld [vmem:[%s14130_s3 + $0x17a0] sm:$0xff] }
 0x7e2   : > { %5519 = vmatpush1.msra.mxu1 %v4424_v23  ;;  %5443 = vmatprep.subr.mxu0 %v4161_v38  ;;  %v4600_v23 = vld [vmem:[%s14130_s3 + $0x1fa0] sm:$0xff]  ;;  %v4337_v38 = vld [vmem:[%s14130_s3 + $0x1768] sm:$0xff] }
 0x7e3   : > { %5520 = vmatprep.subr.mxu1 %v4417_v10  ;;  %5444 = vmatpush1.msra.mxu0 %v4160_v52  ;;  %v4593_v10 = vld [vmem:[%s14130_s3 + $0x1f68] sm:$0xff]  ;;  %v4336_v52 = vld [vmem:[%s14130_s3 + $0x1760] sm:$0xff] }
 0x7e4   : > { %5521 = vmatpush1.msra.mxu1 %v4416_v56  ;;  %5445 = vmatprep.subr.mxu0 %v4153_v40  ;;  %v4592_v56 = vld [vmem:[%s14130_s3 + $0x1f60] sm:$0xff]  ;;  %v4329_v40 = vld [vmem:[%s14130_s3 + $0x1728] sm:$0xff] }
 0x7e5   : > { %5522 = vmatprep.subr.mxu1 %v4409_v54  ;;  %5446 = vmatpush1.msra.mxu0 %v4152_v15  ;;  %v4585_v54 = vld [vmem:[%s14130_s3 + $0x1f28] sm:$0xff]  ;;  %v4328_v15 = vld [vmem:[%s14130_s3 + $0x1720] sm:$0xff] }
 0x7e6   : > { %5523 = vmatpush1.msra.mxu1 %v4408_v24  ;;  %5447 = vmatprep.subr.mxu0 %v4145_v44  ;;  %v4584_v24 = vld [vmem:[%s14130_s3 + $0x1f20] sm:$0xff]  ;;  %v4321_v44 = vld [vmem:[%s14130_s3 + $0x16e8] sm:$0xff] }
 0x7e7   : > { %5524 = vmatprep.subr.mxu1 %v4401_v59  ;;  %5448 = vmatpush1.msra.mxu0 %v4144_v3  ;;  %v4577_v59 = vld [vmem:[%s14130_s3 + $0x1ee8] sm:$0xff]  ;;  %v4320_v3 = vld [vmem:[%s14130_s3 + $0x16e0] sm:$0xff] }
 0x7e8   : > { %5525 = vmatpush1.msra.mxu1 %v4400_v19  ;;  %5449 = vmatprep.subr.mxu0 %v4137_v48  ;;  %v4576_v19 = vld [vmem:[%s14130_s3 + $0x1ee0] sm:$0xff]  ;;  %v4313_v48 = vld [vmem:[%s14130_s3 + $0x16a8] sm:$0xff] }
 0x7e9   : > { %5526 = vmatprep.subr.mxu1 %v4393_v21  ;;  %5450 = vmatpush1.msra.mxu0 %v4136_v41  ;;  %v4569_v21 = vld [vmem:[%s14130_s3 + $0x1ea8] sm:$0xff]  ;;  %v4312_v41 = vld [vmem:[%s14130_s3 + $0x16a0] sm:$0xff] }
 0x7ea   : > { %5527 = vmatpush1.msra.mxu1 %v4392_v18  ;;  %5451 = vmatprep.subr.mxu0 %v4129_v16  ;;  %v4568_v18 = vld [vmem:[%s14130_s3 + $0x1ea0] sm:$0xff]  ;;  %v4305_v16 = vld [vmem:[%s14130_s3 + $0x1668] sm:$0xff] }
 0x7eb   : > { %5528 = vmatprep.subr.mxu1 %v4385_v28  ;;  %5452 = vmatpush1.msra.mxu0 %v4128_v22  ;;  %v4561_v28 = vld [vmem:[%s14130_s3 + $0x1e68] sm:$0xff]  ;;  %v4304_v22 = vld [vmem:[%s14130_s3 + $0x1660] sm:$0xff] }
 0x7ec   : > { %5529 = vmatpush1.msra.mxu1 %v4384_v46  ;;  %5453 = vmatprep.subr.mxu0 %v4121_v39  ;;  %v4560_v46 = vld [vmem:[%s14130_s3 + $0x1e60] sm:$0xff]  ;;  %v4297_v39 = vld [vmem:[%s14130_s3 + $0x1628] sm:$0xff] }
 0x7ed   : > { %5530 = vmatprep.subr.mxu1 %v4377_v61  ;;  %5454 = vmatpush1.msra.mxu0 %v4120_v34  ;;  %v4553_v61 = vld [vmem:[%s14130_s3 + $0x1e28] sm:$0xff]  ;;  %v4296_v34 = vld [vmem:[%s14130_s3 + $0x1620] sm:$0xff] }
 0x7ee   : > { %5531 = vmatpush1.msra.mxu1 %v4376_v29  ;;  %5455 = vmatprep.subr.mxu0 %v4113_v12  ;;  %v4552_v29 = vld [vmem:[%s14130_s3 + $0x1e20] sm:$0xff]  ;;  %v4289_v12 = vld [vmem:[%s14130_s3 + $0x15e8] sm:$0xff] }
 0x7ef   : > { %5532 = vmatprep.subr.mxu1 %v4369_v11  ;;  %5456 = vmatpush1.msra.mxu0 %v4112_v47  ;;  %v4545_v11 = vld [vmem:[%s14130_s3 + $0x1de8] sm:$0xff]  ;;  %v4288_v47 = vld [vmem:[%s14130_s3 + $0x15e0] sm:$0xff] }
 0x7f0   : > { %5533 = vmatpush1.msra.mxu1 %v4368_v8  ;;  %5457 = vmatprep.subr.mxu0 %v4105_v63  ;;  %v4544_v8 = vld [vmem:[%s14130_s3 + $0x1de0] sm:$0xff]  ;;  %v4281_v63 = vld [vmem:[%s14130_s3 + $0x15a8] sm:$0xff] }
 0x7f1   : > { %5534 = vmatprep.subr.mxu1 %v4361_v53  ;;  %5458 = vmatpush1.msra.mxu0 %v4104_v6  ;;  %v4537_v53 = vld [vmem:[%s14130_s3 + $0x1da8] sm:$0xff]  ;;  %v4280_v6 = vld [vmem:[%s14130_s3 + $0x15a0] sm:$0xff] }
 0x7f2   : > { %5535 = vmatpush1.msra.mxu1 %v4360_v49  ;;  %5459 = vmatprep.subr.mxu0 %v4353_v55  ;;  %v4536_v49 = vld [vmem:[%s14130_s3 + $0x1da0] sm:$0xff]  ;;  %v4273_v55 = vld [vmem:[%s14130_s3 + $0x1568] sm:$0xff] }
 0x7f3   : > { %5536 = vmatprep.subr.mxu1 %v4609_v36  ;;  %5460 = vmatpush2.msra.mxu0 %v4352_v27  ;;  %v4529_v36 = vld [vmem:[%s14130_s3 + $0x1d68] sm:$0xff]  ;;  %v4272_v27 = vld [vmem:[%s14130_s3 + $0x1560] sm:$0xff] }
 0x7f4   : > { %5537 = vmatpush2.msra.mxu1 %v4608_v1  ;;  %5461 = vmatprep.subr.mxu0 %v4345_v4  ;;  %v4528_v1 = vld [vmem:[%s14130_s3 + $0x1d60] sm:$0xff]  ;;  %v4265_v4 = vld [vmem:[%s14130_s3 + $0x1528] sm:$0xff] }
 0x7f5   : > { %5538 = vmatprep.subr.mxu1 %v4601_v14  ;;  %5462 = vmatpush2.msra.mxu0 %v4344_v20  ;;  %v4521_v14 = vld [vmem:[%s14130_s3 + $0x1d28] sm:$0xff]  ;;  %v4264_v20 = vld [vmem:[%s14130_s3 + $0x1520] sm:$0xff] }
 0x7f6   : > { %5539 = vmatpush2.msra.mxu1 %v4600_v23  ;;  %5463 = vmatprep.subr.mxu0 %v4337_v38  ;;  %v4520_v23 = vld [vmem:[%s14130_s3 + $0x1d20] sm:$0xff]  ;;  %v4257_v38 = vld [vmem:[%s14130_s3 + $0x14e8] sm:$0xff] }
 0x7f7   : > { %5540 = vmatprep.subr.mxu1 %v4593_v10  ;;  %5464 = vmatpush2.msra.mxu0 %v4336_v52  ;;  %v4513_v10 = vld [vmem:[%s14130_s3 + $0x1ce8] sm:$0xff]  ;;  %v4256_v52 = vld [vmem:[%s14130_s3 + $0x14e0] sm:$0xff] }
 0x7f8   : > { %5541 = vmatpush2.msra.mxu1 %v4592_v56  ;;  %5465 = vmatprep.subr.mxu0 %v4329_v40  ;;  %v4512_v56 = vld [vmem:[%s14130_s3 + $0x1ce0] sm:$0xff]  ;;  %v4249_v40 = vld [vmem:[%s14130_s3 + $0x14a8] sm:$0xff] }
 0x7f9   : > { %5542 = vmatprep.subr.mxu1 %v4585_v54  ;;  %5466 = vmatpush2.msra.mxu0 %v4328_v15  ;;  %v4505_v54 = vld [vmem:[%s14130_s3 + $0x1ca8] sm:$0xff]  ;;  %v4248_v15 = vld [vmem:[%s14130_s3 + $0x14a0] sm:$0xff] }
 0x7fa   : > { %5543 = vmatpush2.msra.mxu1 %v4584_v24  ;;  %5467 = vmatprep.subr.mxu0 %v4321_v44  ;;  %v4504_v24 = vld [vmem:[%s14130_s3 + $0x1ca0] sm:$0xff]  ;;  %v4241_v44 = vld [vmem:[%s14130_s3 + $0x1468] sm:$0xff] }
 0x7fb   : > { %5544 = vmatprep.subr.mxu1 %v4577_v59  ;;  %5468 = vmatpush2.msra.mxu0 %v4320_v3  ;;  %v4497_v59 = vld [vmem:[%s14130_s3 + $0x1c68] sm:$0xff]  ;;  %v4240_v3 = vld [vmem:[%s14130_s3 + $0x1460] sm:$0xff] }
 0x7fc   : > { %5545 = vmatpush2.msra.mxu1 %v4576_v19  ;;  %5469 = vmatprep.subr.mxu0 %v4313_v48  ;;  %v4496_v19 = vld [vmem:[%s14130_s3 + $0x1c60] sm:$0xff]  ;;  %v4233_v48 = vld [vmem:[%s14130_s3 + $0x1428] sm:$0xff] }
 0x7fd   : > { %5546 = vmatprep.subr.mxu1 %v4569_v21  ;;  %5470 = vmatpush2.msra.mxu0 %v4312_v41  ;;  %v4489_v21 = vld [vmem:[%s14130_s3 + $0x1c28] sm:$0xff]  ;;  %v4232_v41 = vld [vmem:[%s14130_s3 + $0x1420] sm:$0xff] }
 0x7fe   : > { %5547 = vmatpush2.msra.mxu1 %v4568_v18  ;;  %5471 = vmatprep.subr.mxu0 %v4305_v16  ;;  %v4488_v18 = vld [vmem:[%s14130_s3 + $0x1c20] sm:$0xff]  ;;  %v3715_v16 = vld [vmem:[%s14130_s3 + $0x3f8] sm:$0xff] }
 0x7ff   : > { %5548 = vmatprep.subr.mxu1 %v4561_v28  ;;  %5472 = vmatpush2.msra.mxu0 %v4304_v22  ;;  %v3971_v28 = vld [vmem:[%s14130_s3 + $0xbf8] sm:$0xff]  ;;  %v3714_v22 = vld [vmem:[%s14130_s3 + $0x3f0] sm:$0xff] }
 0x800   : > { %5549 = vmatpush2.msra.mxu1 %v4560_v46  ;;  %5473 = vmatprep.subr.mxu0 %v4297_v39  ;;  %v3970_v46 = vld [vmem:[%s14130_s3 + $0xbf0] sm:$0xff]  ;;  %v3707_v39 = vld [vmem:[%s14130_s3 + $0x3b8] sm:$0xff] }
 0x801   : > { %5550 = vmatprep.subr.mxu1 %v4553_v61  ;;  %5474 = vmatpush2.msra.mxu0 %v4296_v34  ;;  %v3963_v61 = vld [vmem:[%s14130_s3 + $0xbb8] sm:$0xff]  ;;  %v3706_v34 = vld [vmem:[%s14130_s3 + $0x3b0] sm:$0xff] }
 0x802   : > { %5551 = vmatpush2.msra.mxu1 %v4552_v29  ;;  %5475 = vmatprep.subr.mxu0 %v4289_v12  ;;  %v3962_v29 = vld [vmem:[%s14130_s3 + $0xbb0] sm:$0xff]  ;;  %v3699_v12 = vld [vmem:[%s14130_s3 + $0x378] sm:$0xff] }
 0x803   : > { %5552 = vmatprep.subr.mxu1 %v4545_v11  ;;  %5476 = vmatpush2.msra.mxu0 %v4288_v47  ;;  %v3955_v11 = vld [vmem:[%s14130_s3 + $0xb78] sm:$0xff]  ;;  %v3698_v47 = vld [vmem:[%s14130_s3 + $0x370] sm:$0xff] }
 0x804   : > { %5553 = vmatpush2.msra.mxu1 %v4544_v8  ;;  %5477 = vmatprep.subr.mxu0 %v4281_v63  ;;  %v3954_v8 = vld [vmem:[%s14130_s3 + $0xb70] sm:$0xff]  ;;  %v3691_v63 = vld [vmem:[%s14130_s3 + $0x338] sm:$0xff] }
 0x805   : > { %5554 = vmatprep.subr.mxu1 %v4537_v53  ;;  %5478 = vmatpush2.msra.mxu0 %v4280_v6  ;;  %v3947_v53 = vld [vmem:[%s14130_s3 + $0xb38] sm:$0xff]  ;;  %v3690_v6 = vld [vmem:[%s14130_s3 + $0x330] sm:$0xff] }
 0x806   : > { %5555 = vmatpush2.msra.mxu1 %v4536_v49  ;;  %5479 = vmatprep.subr.mxu0 %v4273_v55  ;;  %v3946_v49 = vld [vmem:[%s14130_s3 + $0xb30] sm:$0xff]  ;;  %v3683_v55 = vld [vmem:[%s14130_s3 + $0x2f8] sm:$0xff] }
 0x807   : > { %5556 = vmatprep.subr.mxu1 %v4529_v36  ;;  %5480 = vmatpush2.msra.mxu0 %v4272_v27  ;;  %v3939_v36 = vld [vmem:[%s14130_s3 + $0xaf8] sm:$0xff]  ;;  %v3938_v27 = vld [vmem:[%s14130_s3 + $0xaf0] sm:$0xff] }
 0x808   : > { %5557 = vmatpush2.msra.mxu1 %v4528_v1  ;;  %5481 = vmatprep.subr.mxu0 %v4265_v4  ;;  %v3675_v1 = vld [vmem:[%s14130_s3 + $0x2b8] sm:$0xff]  ;;  %v3674_v4 = vld [vmem:[%s14130_s3 + $0x2b0] sm:$0xff] }
 0x809   : > { %5558 = vmatprep.subr.mxu1 %v4521_v14  ;;  %5482 = vmatpush2.msra.mxu0 %v4264_v20  ;;  %v3930_v14 = vld [vmem:[%s14130_s3 + $0xab0] sm:$0xff]  ;;  %v3667_v20 = vld [vmem:[%s14130_s3 + $0x278] sm:$0xff] }
 0x80a   : > { %5559 = vmatpush2.msra.mxu1 %v4520_v23  ;;  %5483 = vmatprep.subr.mxu0 %v4257_v38  ;;  %v3923_v23 = vld [vmem:[%s14130_s3 + $0xa78] sm:$0xff]  ;;  %v3666_v38 = vld [vmem:[%s14130_s3 + $0x270] sm:$0xff] }
 0x80b   : > { %5560 = vmatprep.subr.mxu1 %v4513_v10  ;;  %5484 = vmatpush2.msra.mxu0 %v4256_v52  ;;  %v3922_v10 = vld [vmem:[%s14130_s3 + $0xa70] sm:$0xff]  ;;  %v3659_v52 = vld [vmem:[%s14130_s3 + $0x238] sm:$0xff] }
 0x80c   : > { %5561 = vmatpush2.msra.mxu1 %v4512_v56  ;;  %5485 = vmatprep.subr.mxu0 %v4249_v40  ;;  %v3915_v56 = vld [vmem:[%s14130_s3 + $0xa38] sm:$0xff]  ;;  %v3658_v40 = vld [vmem:[%s14130_s3 + $0x230] sm:$0xff] }
 0x80d   : > { %5562 = vmatprep.subr.mxu1 %v4505_v54  ;;  %5486 = vmatpush2.msra.mxu0 %v4248_v15  ;;  %v3914_v54 = vld [vmem:[%s14130_s3 + $0xa30] sm:$0xff]  ;;  %v3651_v15 = vld [vmem:[%s14130_s3 + $0x1f8] sm:$0xff] }
 0x80e   : > { %5563 = vmatpush2.msra.mxu1 %v4504_v24  ;;  %5487 = vmatprep.subr.mxu0 %v4241_v44  ;;  %v3907_v24 = vld [vmem:[%s14130_s3 + $0x9f8] sm:$0xff]  ;;  %v3650_v44 = vld [vmem:[%s14130_s3 + $0x1f0] sm:$0xff] }
 0x80f   : > { %5564 = vmatprep.subr.mxu1 %v4497_v59  ;;  %5488 = vmatpush2.msra.mxu0 %v4240_v3  ;;  %v3906_v59 = vld [vmem:[%s14130_s3 + $0x9f0] sm:$0xff]  ;;  %v3643_v3 = vld [vmem:[%s14130_s3 + $0x1b8] sm:$0xff] }
 0x810   : > { %5565 = vmatpush2.msra.mxu1 %v4496_v19  ;;  %5489 = vmatprep.subr.mxu0 %v4233_v48  ;;  %v3899_v19 = vld [vmem:[%s14130_s3 + $0x9b8] sm:$0xff]  ;;  %v3642_v48 = vld [vmem:[%s14130_s3 + $0x1b0] sm:$0xff] }
 0x811   : > { %5566 = vmatprep.subr.mxu1 %v4489_v21  ;;  %5490 = vmatpush2.msra.mxu0 %v4232_v41  ;;  %v3898_v21 = vld [vmem:[%s14130_s3 + $0x9b0] sm:$0xff]  ;;  %v3635_v41 = vld [vmem:[%s14130_s3 + $0x178] sm:$0xff] }
 0x812   : > { %5567 = vmatpush2.msra.mxu1 %v4488_v18  ;;  %5492 = vmatmul.mubr.f32.vlgmr.msra.gmra.mxu0 %v11431_v43  ;;  %v3891_v18 = vld [vmem:[%s14130_s3 + $0x978] sm:$0xff] }
 0x813   : > { %5569 = vmatmul.mubr.f32.vlgmr.msra.gmra.mxu1 %v11437_v33  ;;  %5581 = vmatprep.subr.mxu0 %v3715_v16  ;;  %v3634_v16 = vld [vmem:[%s14130_s3 + $0x170] sm:$0xff] }
 0x814   : > { %5658 = vmatprep.subr.mxu1 %v3971_v28  ;;  %5497 = vmatprep.mubr.f32.mxu0 %v11444_v7  ;;  %v3890_v28 = vld [vmem:[%s14130_s3 + $0x970] sm:$0xff] }
 0x815   : > { %5574 = vmatprep.mubr.f32.mxu1 %v11450_v13  ;;  %5582 = vmatpush1.msra.mxu0 %v3714_v22  ;;  %v3627_v22 = vld [vmem:[%s14130_s3 + $0x138] sm:$0xff] }
 0x816   : > { %5659 = vmatpush1.msra.mxu1 %v3970_v46  ;;  %5583 = vmatprep.subr.mxu0 %v3707_v39  ;;  %v3883_v46 = vld [vmem:[%s14130_s3 + $0x938] sm:$0xff]  ;;  %v3626_v39 = vld [vmem:[%s14130_s3 + $0x130] sm:$0xff] }
 0x817   : > { %5660 = vmatprep.subr.mxu1 %v3963_v61  ;;  %5584 = vmatpush1.msra.mxu0 %v3706_v34  ;;  %v3882_v61 = vld [vmem:[%s14130_s3 + $0x930] sm:$0xff]  ;;  %v3619_v34 = vld [vmem:[%s14130_s3 + $0xf8] sm:$0xff] }
 0x818   : > { %5661 = vmatpush1.msra.mxu1 %v3962_v29  ;;  %5498 = vmatmul.mubr.f32.gmra.mxu0 %v11471_v62  ;;  %v3875_v29 = vld [vmem:[%s14130_s3 + $0x8f8] sm:$0xff] }
 0x819   : > { %5575 = vmatmul.mubr.f32.gmra.mxu1 %v11476_v35  ;;  %5585 = vmatprep.subr.mxu0 %v3699_v12  ;;  %v3618_v12 = vld [vmem:[%s14130_s3 + $0xf0] sm:$0xff] }
 0x81a   : > { %5662 = vmatprep.subr.mxu1 %v3955_v11  ;;  %5586 = vmatpush1.msra.mxu0 %v3698_v47  ;;  %v3874_v11 = vld [vmem:[%s14130_s3 + $0x8f0] sm:$0xff]  ;;  %v3611_v47 = vld [vmem:[%s14130_s3 + $0xb8] sm:$0xff] }
 0x81b   : > { %5645 = vmatprep.mubr.f32.mxu0 %v11000_v42  ;;  %5663 = vmatpush1.msra.mxu1 %v3954_v8  ;;  %v3682_v42 = vld [vmem:[%s14130_s3 + $0x2f0] sm:$0xff]  ;;  %v3867_v8 = vld [vmem:[%s14130_s3 + $0x8b8] sm:$0xff] }
 0x81c   : > { %5722 = vmatprep.mubr.f32.mxu1 %v11002_v57  ;;  %5587 = vmatprep.subr.mxu0 %v3691_v63  ;;  %v3931_v57 = vld [vmem:[%s14130_s3 + $0xab8] sm:$0xff]  ;;  %v3610_v63 = vld [vmem:[%s14130_s3 + $0xb0] sm:$0xff] }
 0x81d   : > { %5664 = vmatprep.subr.mxu1 %v3947_v53  ;;  %5588 = vmatpush1.msra.mxu0 %v3690_v6  ;;  %v3866_v53 = vld [vmem:[%s14130_s3 + $0x8b0] sm:$0xff]  ;;  %v3603_v6 = vld [vmem:[%s14130_s3 + $0x78] sm:$0xff] }
 0x81e   : > { %5665 = vmatpush1.msra.mxu1 %v3946_v49  ;;  %5589 = vmatprep.subr.mxu0 %v3683_v55  ;;  %v3859_v49 = vld [vmem:[%s14130_s3 + $0x878] sm:$0xff]  ;;  %v3602_v55 = vld [vmem:[%s14130_s3 + $0x70] sm:$0xff] }
 0x81f   : > { %5666 = vmatprep.subr.mxu1 %v3939_v36  ;;  %5590 = vmatpush1.msra.mxu0 %v3682_v42  ;;  %v3858_v36 = vld [vmem:[%s14130_s3 + $0x870] sm:$0xff]  ;;  %v3595_v42 = vld [vmem:[%s14130_s3 + $0x38] sm:$0xff] }
 0x820   : > { %5667 = vmatpush1.msra.mxu1 %v3938_v27  ;;  %5591 = vmatprep.subr.mxu0 %v3675_v1  ;;  %v3851_v27 = vld [vmem:[%s14130_s3 + $0x838] sm:$0xff]  ;;  %v3594_v1 = vld [vmem:[%s14130_s3 + $0x30] sm:$0xff] }
 0x821   : > { %5668 = vmatprep.subr.mxu1 %v3931_v57  ;;  %5592 = vmatpush1.msra.mxu0 %v3674_v4  ;;  %v3850_v57 = vld [vmem:[%s14130_s3 + $0x830] sm:$0xff]  ;;  %v3843_v4 = vld [vmem:[%s14130_s3 + $0x7f8] sm:$0xff] }
 0x822   : > { %5669 = vmatpush1.msra.mxu1 %v3930_v14  ;;  %5593 = vmatprep.subr.mxu0 %v3667_v20  ;;  %v4099_v14 = vld [vmem:[%s14130_s3 + $0xff8] sm:$0xff]  ;;  %v3842_v20 = vld [vmem:[%s14130_s3 + $0x7f0] sm:$0xff] }
 0x823   : > { %5670 = vmatprep.subr.mxu1 %v3923_v23  ;;  %5594 = vmatpush1.msra.mxu0 %v3666_v38  ;;  %v4098_v23 = vld [vmem:[%s14130_s3 + $0xff0] sm:$0xff]  ;;  %v3835_v38 = vld [vmem:[%s14130_s3 + $0x7b8] sm:$0xff] }
 0x824   : > { %5671 = vmatpush1.msra.mxu1 %v3922_v10  ;;  %5595 = vmatprep.subr.mxu0 %v3659_v52  ;;  %v4091_v10 = vld [vmem:[%s14130_s3 + $0xfb8] sm:$0xff]  ;;  %v3834_v52 = vld [vmem:[%s14130_s3 + $0x7b0] sm:$0xff] }
 0x825   : > { %5672 = vmatprep.subr.mxu1 %v3915_v56  ;;  %5596 = vmatpush1.msra.mxu0 %v3658_v40  ;;  %v4090_v56 = vld [vmem:[%s14130_s3 + $0xfb0] sm:$0xff]  ;;  %v3827_v40 = vld [vmem:[%s14130_s3 + $0x778] sm:$0xff] }
 0x826   : > { %5673 = vmatpush1.msra.mxu1 %v3914_v54  ;;  %5597 = vmatprep.subr.mxu0 %v3651_v15  ;;  %v4083_v54 = vld [vmem:[%s14130_s3 + $0xf78] sm:$0xff]  ;;  %v3826_v15 = vld [vmem:[%s14130_s3 + $0x770] sm:$0xff] }
 0x827   : > { %5674 = vmatprep.subr.mxu1 %v3907_v24  ;;  %5598 = vmatpush1.msra.mxu0 %v3650_v44  ;;  %v4082_v24 = vld [vmem:[%s14130_s3 + $0xf70] sm:$0xff]  ;;  %v3819_v44 = vld [vmem:[%s14130_s3 + $0x738] sm:$0xff] }
 0x828   : > { %5675 = vmatpush1.msra.mxu1 %v3906_v59  ;;  %5599 = vmatprep.subr.mxu0 %v3643_v3  ;;  %v4075_v59 = vld [vmem:[%s14130_s3 + $0xf38] sm:$0xff]  ;;  %v3818_v3 = vld [vmem:[%s14130_s3 + $0x730] sm:$0xff] }
 0x829   : > { %5676 = vmatprep.subr.mxu1 %v3899_v19  ;;  %5600 = vmatpush1.msra.mxu0 %v3642_v48  ;;  %v4074_v19 = vld [vmem:[%s14130_s3 + $0xf30] sm:$0xff]  ;;  %v3811_v48 = vld [vmem:[%s14130_s3 + $0x6f8] sm:$0xff] }
 0x82a   : > { %5677 = vmatpush1.msra.mxu1 %v3898_v21  ;;  %5601 = vmatprep.subr.mxu0 %v3635_v41  ;;  %v4067_v21 = vld [vmem:[%s14130_s3 + $0xef8] sm:$0xff]  ;;  %v3810_v41 = vld [vmem:[%s14130_s3 + $0x6f0] sm:$0xff] }
 0x82b   : > { %5678 = vmatprep.subr.mxu1 %v3891_v18  ;;  %5602 = vmatpush1.msra.mxu0 %v3634_v16  ;;  %v4066_v18 = vld [vmem:[%s14130_s3 + $0xef0] sm:$0xff]  ;;  %v3803_v16 = vld [vmem:[%s14130_s3 + $0x6b8] sm:$0xff] }
 0x82c   : > { %5679 = vmatpush1.msra.mxu1 %v3890_v28  ;;  %5603 = vmatprep.subr.mxu0 %v3627_v22  ;;  %v4059_v28 = vld [vmem:[%s14130_s3 + $0xeb8] sm:$0xff]  ;;  %v3802_v22 = vld [vmem:[%s14130_s3 + $0x6b0] sm:$0xff] }
 0x82d   : > { %5680 = vmatprep.subr.mxu1 %v3883_v46  ;;  %5604 = vmatpush1.msra.mxu0 %v3626_v39  ;;  %v4058_v46 = vld [vmem:[%s14130_s3 + $0xeb0] sm:$0xff]  ;;  %v3795_v39 = vld [vmem:[%s14130_s3 + $0x678] sm:$0xff] }
 0x82e   : > { %5681 = vmatpush1.msra.mxu1 %v3882_v61  ;;  %5605 = vmatprep.subr.mxu0 %v3619_v34  ;;  %v4051_v61 = vld [vmem:[%s14130_s3 + $0xe78] sm:$0xff]  ;;  %v3794_v34 = vld [vmem:[%s14130_s3 + $0x670] sm:$0xff] }
 0x82f   : > { %5682 = vmatprep.subr.mxu1 %v3875_v29  ;;  %5606 = vmatpush1.msra.mxu0 %v3618_v12  ;;  %v4050_v29 = vld [vmem:[%s14130_s3 + $0xe70] sm:$0xff]  ;;  %v3787_v12 = vld [vmem:[%s14130_s3 + $0x638] sm:$0xff] }
 0x830   : > { %5683 = vmatpush1.msra.mxu1 %v3874_v11  ;;  %5607 = vmatprep.subr.mxu0 %v3611_v47  ;;  %v4043_v11 = vld [vmem:[%s14130_s3 + $0xe38] sm:$0xff]  ;;  %v3786_v47 = vld [vmem:[%s14130_s3 + $0x630] sm:$0xff] }
 0x831   : > { %5684 = vmatprep.subr.mxu1 %v3867_v8  ;;  %5608 = vmatpush1.msra.mxu0 %v3610_v63  ;;  %v4042_v8 = vld [vmem:[%s14130_s3 + $0xe30] sm:$0xff]  ;;  %v3779_v63 = vld [vmem:[%s14130_s3 + $0x5f8] sm:$0xff] }
 0x832   : > { %5685 = vmatpush1.msra.mxu1 %v3866_v53  ;;  %5609 = vmatprep.subr.mxu0 %v3603_v6  ;;  %v4035_v53 = vld [vmem:[%s14130_s3 + $0xdf8] sm:$0xff]  ;;  %v3778_v6 = vld [vmem:[%s14130_s3 + $0x5f0] sm:$0xff] }
 0x833   : > { %5686 = vmatprep.subr.mxu1 %v3859_v49  ;;  %5610 = vmatpush1.msra.mxu0 %v3602_v55  ;;  %v4034_v49 = vld [vmem:[%s14130_s3 + $0xdf0] sm:$0xff]  ;;  %v3771_v55 = vld [vmem:[%s14130_s3 + $0x5b8] sm:$0xff] }
 0x834   : > { %5687 = vmatpush1.msra.mxu1 %v3858_v36  ;;  %5611 = vmatprep.subr.mxu0 %v3595_v42  ;;  %v4027_v36 = vld [vmem:[%s14130_s3 + $0xdb8] sm:$0xff]  ;;  %v3770_v42 = vld [vmem:[%s14130_s3 + $0x5b0] sm:$0xff] }
 0x835   : > { %5688 = vmatprep.subr.mxu1 %v3851_v27  ;;  %5612 = vmatpush1.msra.mxu0 %v3594_v1  ;;  %v4026_v27 = vld [vmem:[%s14130_s3 + $0xdb0] sm:$0xff]  ;;  %v3763_v1 = vld [vmem:[%s14130_s3 + $0x578] sm:$0xff] }
 0x836   : > { %5689 = vmatpush1.msra.mxu1 %v3850_v57  ;;  %5613 = vmatprep.subr.mxu0 %v3843_v4  ;;  %v4019_v57 = vld [vmem:[%s14130_s3 + $0xd78] sm:$0xff]  ;;  %v3762_v4 = vld [vmem:[%s14130_s3 + $0x570] sm:$0xff] }
 0x837   : > { %5690 = vmatprep.subr.mxu1 %v4099_v14  ;;  %5614 = vmatpush2.msra.mxu0 %v3842_v20  ;;  %v4018_v14 = vld [vmem:[%s14130_s3 + $0xd70] sm:$0xff]  ;;  %v3755_v20 = vld [vmem:[%s14130_s3 + $0x538] sm:$0xff] }
 0x838   : > { %5691 = vmatpush2.msra.mxu1 %v4098_v23  ;;  %5615 = vmatprep.subr.mxu0 %v3835_v38  ;;  %v4011_v23 = vld [vmem:[%s14130_s3 + $0xd38] sm:$0xff]  ;;  %v3754_v38 = vld [vmem:[%s14130_s3 + $0x530] sm:$0xff] }
 0x839   : > { %5692 = vmatprep.subr.mxu1 %v4091_v10  ;;  %5616 = vmatpush2.msra.mxu0 %v3834_v52  ;;  %v4010_v10 = vld [vmem:[%s14130_s3 + $0xd30] sm:$0xff]  ;;  %v3747_v52 = vld [vmem:[%s14130_s3 + $0x4f8] sm:$0xff] }
 0x83a   : > { %5693 = vmatpush2.msra.mxu1 %v4090_v56  ;;  %5617 = vmatprep.subr.mxu0 %v3827_v40  ;;  %v4003_v56 = vld [vmem:[%s14130_s3 + $0xcf8] sm:$0xff]  ;;  %v3746_v40 = vld [vmem:[%s14130_s3 + $0x4f0] sm:$0xff] }
 0x83b   : > { %5694 = vmatprep.subr.mxu1 %v4083_v54  ;;  %5618 = vmatpush2.msra.mxu0 %v3826_v15  ;;  %v4002_v54 = vld [vmem:[%s14130_s3 + $0xcf0] sm:$0xff]  ;;  %v3739_v15 = vld [vmem:[%s14130_s3 + $0x4b8] sm:$0xff] }
 0x83c   : > { %5695 = vmatpush2.msra.mxu1 %v4082_v24  ;;  %5619 = vmatprep.subr.mxu0 %v3819_v44  ;;  %v3995_v24 = vld [vmem:[%s14130_s3 + $0xcb8] sm:$0xff]  ;;  %v3738_v44 = vld [vmem:[%s14130_s3 + $0x4b0] sm:$0xff] }
 0x83d   : > { %5696 = vmatprep.subr.mxu1 %v4075_v59  ;;  %5620 = vmatpush2.msra.mxu0 %v3818_v3  ;;  %v3994_v59 = vld [vmem:[%s14130_s3 + $0xcb0] sm:$0xff]  ;;  %v3731_v3 = vld [vmem:[%s14130_s3 + $0x478] sm:$0xff] }
 0x83e   : > { %5697 = vmatpush2.msra.mxu1 %v4074_v19  ;;  %5621 = vmatprep.subr.mxu0 %v3811_v48  ;;  %v3987_v19 = vld [vmem:[%s14130_s3 + $0xc78] sm:$0xff]  ;;  %v3730_v48 = vld [vmem:[%s14130_s3 + $0x470] sm:$0xff] }
 0x83f   : > { %5698 = vmatprep.subr.mxu1 %v4067_v21  ;;  %5622 = vmatpush2.msra.mxu0 %v3810_v41  ;;  %v3986_v21 = vld [vmem:[%s14130_s3 + $0xc70] sm:$0xff]  ;;  %v3723_v41 = vld [vmem:[%s14130_s3 + $0x438] sm:$0xff] }
 0x840   : > { %5699 = vmatpush2.msra.mxu1 %v4066_v18  ;;  %5623 = vmatprep.subr.mxu0 %v3803_v16  ;;  %v3979_v18 = vld [vmem:[%s14130_s3 + $0xc38] sm:$0xff]  ;;  %v3722_v16 = vld [vmem:[%s14130_s3 + $0x430] sm:$0xff] }
 0x841   : > { %5700 = vmatprep.subr.mxu1 %v4059_v28  ;;  %5624 = vmatpush2.msra.mxu0 %v3802_v22  ;;  %v3978_v28 = vld [vmem:[%s14130_s3 + $0xc30] sm:$0xff]  ;;  %v4227_v22 = vld [vmem:[%s14130_s3 + $0x13f8] sm:$0xff] }
 0x842   : > { %5701 = vmatpush2.msra.mxu1 %v4058_v46  ;;  %5625 = vmatprep.subr.mxu0 %v3795_v39  ;;  %v4483_v46 = vld [vmem:[%s14130_s3 + $0x1bf8] sm:$0xff]  ;;  %v4226_v39 = vld [vmem:[%s14130_s3 + $0x13f0] sm:$0xff] }
 0x843   : > { %5702 = vmatprep.subr.mxu1 %v4051_v61  ;;  %5626 = vmatpush2.msra.mxu0 %v3794_v34  ;;  %v4482_v61 = vld [vmem:[%s14130_s3 + $0x1bf0] sm:$0xff]  ;;  %v4219_v34 = vld [vmem:[%s14130_s3 + $0x13b8] sm:$0xff] }
 0x844   : > { %5703 = vmatpush2.msra.mxu1 %v4050_v29  ;;  %5627 = vmatprep.subr.mxu0 %v3787_v12  ;;  %v4474_v29 = vld [vmem:[%s14130_s3 + $0x1bb0] sm:$0xff]  ;;  %v4467_v12 = vld [vmem:[%s14130_s3 + $0x1b78] sm:$0xff] }
 0x845   : > { %5704 = vmatprep.subr.mxu1 %v4043_v11  ;;  %5628 = vmatpush2.msra.mxu0 %v3786_v47  ;;  %v4466_v11 = vld [vmem:[%s14130_s3 + $0x1b70] sm:$0xff]  ;;  %v4203_v47 = vld [vmem:[%s14130_s3 + $0x1338] sm:$0xff] }
 0x846   : > { %5705 = vmatpush2.msra.mxu1 %v4042_v8  ;;  %5629 = vmatprep.subr.mxu0 %v3779_v63  ;;  %v4459_v8 = vld [vmem:[%s14130_s3 + $0x1b38] sm:$0xff] }
 0x847   : > { %5706 = vmatprep.subr.mxu1 %v4035_v53  ;;  %5630 = vmatpush2.msra.mxu0 %v3778_v6  ;;  %v4195_v63 = vld [vmem:[%s14130_s3 + $0x12f8] sm:$0xff]  ;;  %v4450_v6 = vld [vmem:[%s14130_s3 + $0x1af0] sm:$0xff] }
 0x848   : > { %5707 = vmatpush2.msra.mxu1 %v4034_v49  ;;  %5631 = vmatprep.subr.mxu0 %v3771_v55  ;;  %v4451_v53 = vld [vmem:[%s14130_s3 + $0x1af8] sm:$0xff]  ;;  %v4186_v55 = vld [vmem:[%s14130_s3 + $0x12b0] sm:$0xff] }
 0x849   : > { %5708 = vmatprep.subr.mxu1 %v4027_v36  ;;  %5632 = vmatpush2.msra.mxu0 %v3770_v42  ;;  %v4187_v49 = vld [vmem:[%s14130_s3 + $0x12b8] sm:$0xff]  ;;  %v4442_v36 = vld [vmem:[%s14130_s3 + $0x1ab0] sm:$0xff] }
 0x84a   : > { %5709 = vmatpush2.msra.mxu1 %v4026_v27  ;;  %5633 = vmatprep.subr.mxu0 %v3763_v1  ;;  %v4179_v42 = vld [vmem:[%s14130_s3 + $0x1278] sm:$0xff]  ;;  %v4178_v1 = vld [vmem:[%s14130_s3 + $0x1270] sm:$0xff] }
 0x84b   : > { %5710 = vmatprep.subr.mxu1 %v4019_v57  ;;  %5634 = vmatpush2.msra.mxu0 %v3762_v4  ;;  %v4435_v27 = vld [vmem:[%s14130_s3 + $0x1a78] sm:$0xff]  ;;  %v4434_v57 = vld [vmem:[%s14130_s3 + $0x1a70] sm:$0xff] }
 0x84c   : > { %5711 = vmatpush2.msra.mxu1 %v4018_v14  ;;  %5635 = vmatprep.subr.mxu0 %v3755_v20  ;;  %v4171_v4 = vld [vmem:[%s14130_s3 + $0x1238] sm:$0xff]  ;;  %v4170_v20 = vld [vmem:[%s14130_s3 + $0x1230] sm:$0xff] }
 0x84d   : > { %5712 = vmatprep.subr.mxu1 %v4011_v23  ;;  %5636 = vmatpush2.msra.mxu0 %v3754_v38  ;;  %v4427_v14 = vld [vmem:[%s14130_s3 + $0x1a38] sm:$0xff]  ;;  %v4426_v23 = vld [vmem:[%s14130_s3 + $0x1a30] sm:$0xff] }
 0x84e   : > { %5713 = vmatpush2.msra.mxu1 %v4010_v10  ;;  %5637 = vmatprep.subr.mxu0 %v3747_v52  ;;  %v4163_v38 = vld [vmem:[%s14130_s3 + $0x11f8] sm:$0xff]  ;;  %v4162_v52 = vld [vmem:[%s14130_s3 + $0x11f0] sm:$0xff] }
 0x84f   : > { %5714 = vmatprep.subr.mxu1 %v4003_v56  ;;  %5638 = vmatpush2.msra.mxu0 %v3746_v40  ;;  %v4419_v10 = vld [vmem:[%s14130_s3 + $0x19f8] sm:$0xff]  ;;  %v4418_v56 = vld [vmem:[%s14130_s3 + $0x19f0] sm:$0xff] }
 0x850   : > { %5715 = vmatpush2.msra.mxu1 %v4002_v54  ;;  %5639 = vmatprep.subr.mxu0 %v3739_v15  ;;  %v4155_v40 = vld [vmem:[%s14130_s3 + $0x11b8] sm:$0xff]  ;;  %v4154_v15 = vld [vmem:[%s14130_s3 + $0x11b0] sm:$0xff] }
 0x851   : > { %5716 = vmatprep.subr.mxu1 %v3995_v24  ;;  %5640 = vmatpush2.msra.mxu0 %v3738_v44  ;;  %v4411_v54 = vld [vmem:[%s14130_s3 + $0x19b8] sm:$0xff]  ;;  %v4410_v24 = vld [vmem:[%s14130_s3 + $0x19b0] sm:$0xff] }
 0x852   : > { %5717 = vmatpush2.msra.mxu1 %v3994_v59  ;;  %5641 = vmatprep.subr.mxu0 %v3731_v3  ;;  %v4147_v44 = vld [vmem:[%s14130_s3 + $0x1178] sm:$0xff]  ;;  %v4146_v3 = vld [vmem:[%s14130_s3 + $0x1170] sm:$0xff] }
 0x853   : > { %5718 = vmatprep.subr.mxu1 %v3987_v19  ;;  %5642 = vmatpush2.msra.mxu0 %v3730_v48  ;;  %v4403_v59 = vld [vmem:[%s14130_s3 + $0x1978] sm:$0xff]  ;;  %v4402_v19 = vld [vmem:[%s14130_s3 + $0x1970] sm:$0xff] }
 0x854   : > { %5719 = vmatpush2.msra.mxu1 %v3986_v21  ;;  %5643 = vmatprep.subr.mxu0 %v3723_v41  ;;  %v4139_v48 = vld [vmem:[%s14130_s3 + $0x1138] sm:$0xff]  ;;  %v4138_v41 = vld [vmem:[%s14130_s3 + $0x1130] sm:$0xff] }
 0x855   : > { %5720 = vmatprep.subr.mxu1 %v3979_v18  ;;  %5644 = vmatpush2.msra.mxu0 %v3722_v16  ;;  %v4395_v21 = vld [vmem:[%s14130_s3 + $0x1938] sm:$0xff]  ;;  %v4394_v18 = vld [vmem:[%s14130_s3 + $0x1930] sm:$0xff] }
 0x856   : > { %5721 = vmatpush2.msra.mxu1 %v3978_v28  ;;  %5646 = vmatmul.mubr.f32.vlgmr.msra.gmra.mxu0 %v11005_v5  ;;  %v4475_v5 = vld [vmem:[%s14130_s3 + $0x1bb8] sm:$0xff] }
 0x857   : > { %5723 = vmatmul.mubr.f32.vlgmr.msra.gmra.mxu1 %v11011_v25  ;;  %5735 = vmatprep.subr.mxu0 %v4227_v22  ;;  %v4218_v25 = vld [vmem:[%s14130_s3 + $0x13b0] sm:$0xff]  ;;  %v4131_v16 = vld [vmem:[%s14130_s3 + $0x10f8] sm:$0xff] }
 0x858   : > { %5812 = vmatprep.subr.mxu1 %v4483_v46  ;;  %5651 = vmatprep.mubr.f32.mxu0 %v11018_v0  ;;  %v4211_v0 = vld [vmem:[%s14130_s3 + $0x1378] sm:$0xff]  ;;  %v4130_v22 = vld [vmem:[%s14130_s3 + $0x10f0] sm:$0xff] }
 0x859   : > { %5728 = vmatprep.mubr.f32.mxu1 %v11024_v9  ;;  %5736 = vmatpush1.msra.mxu0 %v4226_v39  ;;  %v4210_v9 = vld [vmem:[%s14130_s3 + $0x1370] sm:$0xff]  ;;  %v4387_v28 = vld [vmem:[%s14130_s3 + $0x18f8] sm:$0xff] }
 0x85a   : > { %5813 = vmatpush1.msra.mxu1 %v4482_v61  ;;  %5737 = vmatprep.subr.mxu0 %v4219_v34  ;;  %v4386_v46 = vld [vmem:[%s14130_s3 + $0x18f0] sm:$0xff]  ;;  %v4123_v39 = vld [vmem:[%s14130_s3 + $0x10b8] sm:$0xff] }
 0x85b   : > { %5814 = vmatprep.subr.mxu1 %v4475_v5  ;;  %5738 = vmatpush1.msra.mxu0 %v4218_v25  ;;  %v4379_v61 = vld [vmem:[%s14130_s3 + $0x18b8] sm:$0xff]  ;;  %v4122_v34 = vld [vmem:[%s14130_s3 + $0x10b0] sm:$0xff] }
 0x85c   : > { %5815 = vmatpush1.msra.mxu1 %v4474_v29  ;;  %5652 = vmatmul.mubr.f32.gmra.mxu0 %v11045_v37  ;;  %v4202_v37 = vld [vmem:[%s14130_s3 + $0x1330] sm:$0xff]  ;;  %v4115_v25 = vld [vmem:[%s14130_s3 + $0x1078] sm:$0xff] }
 0x85d   : > { %5729 = vmatmul.mubr.f32.gmra.mxu1 %v11050_v58  ;;  %5739 = vmatprep.subr.mxu0 %v4211_v0  ;;  %v4458_v58 = vld [vmem:[%s14130_s3 + $0x1b30] sm:$0xff]  ;;  %v4371_v29 = vld [vmem:[%s14130_s3 + $0x1878] sm:$0xff] }
 0x85e   : > { %5816 = vmatprep.subr.mxu1 %v4467_v12  ;;  %5740 = vmatpush1.msra.mxu0 %v4210_v9  ;;  %v4378_v5 = vld [vmem:[%s14130_s3 + $0x18b0] sm:$0xff]  ;;  %v4107_v9 = vld [vmem:[%s14130_s3 + $0x1038] sm:$0xff] }
 0x85f   : > { %5799 = vmatprep.mubr.f32.mxu0 %v11065_v45  ;;  %5817 = vmatpush1.msra.mxu1 %v4466_v11  ;;  %v4194_v45 = vld [vmem:[%s14130_s3 + $0x12f0] sm:$0xff]  ;;  %v4363_v11 = vld [vmem:[%s14130_s3 + $0x1838] sm:$0xff] }
 0x860   : > { %5876 = vmatprep.mubr.f32.mxu1 %v11070_v51  ;;  %5741 = vmatprep.subr.mxu0 %v4203_v47  ;;  %v4443_v51 = vld [vmem:[%s14130_s3 + $0x1ab8] sm:$0xff]  ;;  %v4114_v0 = vld [vmem:[%s14130_s3 + $0x1070] sm:$0xff] }
 0x861   : > { %5818 = vmatprep.subr.mxu1 %v4459_v8  ;;  %5742 = vmatpush1.msra.mxu0 %v4202_v37  ;;  %v4370_v12 = vld [vmem:[%s14130_s3 + $0x1870] sm:$0xff]  ;;  %v4355_v37 = vld [vmem:[%s14130_s3 + $0x17f8] sm:$0xff] }
 0x862   : > { %5819 = vmatpush1.msra.mxu1 %v4458_v58  ;;  %5743 = vmatprep.subr.mxu0 %v4195_v63  ;;  %v4106_v47 = vld [vmem:[%s14130_s3 + $0x1030] sm:$0xff]  ;;  %v4611_v58 = vld [vmem:[%s14130_s3 + $0x1ff8] sm:$0xff] }
 0x863   : > { %5820 = vmatprep.subr.mxu1 %v4451_v53  ;;  %5744 = vmatpush1.msra.mxu0 %v4194_v45  ;;  %v4362_v8 = vld [vmem:[%s14130_s3 + $0x1830] sm:$0xff]  ;;  %v4347_v45 = vld [vmem:[%s14130_s3 + $0x17b8] sm:$0xff] }
 0x864   : > { %5821 = vmatpush1.msra.mxu1 %v4450_v6  ;;  %5745 = vmatprep.subr.mxu0 %v4187_v49  ;;  %v4354_v63 = vld [vmem:[%s14130_s3 + $0x17f0] sm:$0xff]  ;;  %v4603_v6 = vld [vmem:[%s14130_s3 + $0x1fb8] sm:$0xff] }
 0x865   : > { %5822 = vmatprep.subr.mxu1 %v4443_v51  ;;  %5746 = vmatpush1.msra.mxu0 %v4186_v55  ;;  %v4610_v53 = vld [vmem:[%s14130_s3 + $0x1ff0] sm:$0xff]  ;;  %v4339_v55 = vld [vmem:[%s14130_s3 + $0x1778] sm:$0xff] }
 0x866   : > { %5823 = vmatpush1.msra.mxu1 %v4442_v36  ;;  %5747 = vmatprep.subr.mxu0 %v4179_v42  ;;  %v4346_v49 = vld [vmem:[%s14130_s3 + $0x17b0] sm:$0xff]  ;;  %v4595_v36 = vld [vmem:[%s14130_s3 + $0x1f78] sm:$0xff] }
 0x867   : > { %5824 = vmatprep.subr.mxu1 %v4435_v27  ;;  %5748 = vmatpush1.msra.mxu0 %v4178_v1  ;;  %v4602_v51 = vld [vmem:[%s14130_s3 + $0x1fb0] sm:$0xff]  ;;  %v4331_v1 = vld [vmem:[%s14130_s3 + $0x1738] sm:$0xff] }
 0x868   : > { %5825 = vmatpush1.msra.mxu1 %v4434_v57  ;;  %5749 = vmatprep.subr.mxu0 %v4171_v4  ;;  %v4338_v42 = vld [vmem:[%s14130_s3 + $0x1770] sm:$0xff]  ;;  %v4587_v57 = vld [vmem:[%s14130_s3 + $0x1f38] sm:$0xff] }
 0x869   : > { %5826 = vmatprep.subr.mxu1 %v4427_v14  ;;  %5750 = vmatpush1.msra.mxu0 %v4170_v20  ;;  %v4594_v27 = vld [vmem:[%s14130_s3 + $0x1f70] sm:$0xff]  ;;  %v4323_v20 = vld [vmem:[%s14130_s3 + $0x16f8] sm:$0xff] }
 0x86a   : > { %5827 = vmatpush1.msra.mxu1 %v4426_v23  ;;  %5751 = vmatprep.subr.mxu0 %v4163_v38  ;;  %v4330_v4 = vld [vmem:[%s14130_s3 + $0x1730] sm:$0xff]  ;;  %v4579_v23 = vld [vmem:[%s14130_s3 + $0x1ef8] sm:$0xff] }
 0x86b   : > { %5828 = vmatprep.subr.mxu1 %v4419_v10  ;;  %5752 = vmatpush1.msra.mxu0 %v4162_v52  ;;  %v4586_v14 = vld [vmem:[%s14130_s3 + $0x1f30] sm:$0xff]  ;;  %v4315_v52 = vld [vmem:[%s14130_s3 + $0x16b8] sm:$0xff] }
 0x86c   : > { %5829 = vmatpush1.msra.mxu1 %v4418_v56  ;;  %5753 = vmatprep.subr.mxu0 %v4155_v40  ;;  %v4322_v38 = vld [vmem:[%s14130_s3 + $0x16f0] sm:$0xff]  ;;  %v4571_v56 = vld [vmem:[%s14130_s3 + $0x1eb8] sm:$0xff] }
 0x86d   : > { %5830 = vmatprep.subr.mxu1 %v4411_v54  ;;  %5754 = vmatpush1.msra.mxu0 %v4154_v15  ;;  %v4578_v10 = vld [vmem:[%s14130_s3 + $0x1ef0] sm:$0xff]  ;;  %v4307_v15 = vld [vmem:[%s14130_s3 + $0x1678] sm:$0xff] }
 0x86e   : > { %5831 = vmatpush1.msra.mxu1 %v4410_v24  ;;  %5755 = vmatprep.subr.mxu0 %v4147_v44  ;;  %v4314_v40 = vld [vmem:[%s14130_s3 + $0x16b0] sm:$0xff]  ;;  %v4563_v24 = vld [vmem:[%s14130_s3 + $0x1e78] sm:$0xff] }
 0x86f   : > { %5832 = vmatprep.subr.mxu1 %v4403_v59  ;;  %5756 = vmatpush1.msra.mxu0 %v4146_v3  ;;  %v4570_v54 = vld [vmem:[%s14130_s3 + $0x1eb0] sm:$0xff]  ;;  %v4299_v3 = vld [vmem:[%s14130_s3 + $0x1638] sm:$0xff] }
 0x870   : > { %5833 = vmatpush1.msra.mxu1 %v4402_v19  ;;  %5757 = vmatprep.subr.mxu0 %v4139_v48  ;;  %v4306_v44 = vld [vmem:[%s14130_s3 + $0x1670] sm:$0xff]  ;;  %v4555_v19 = vld [vmem:[%s14130_s3 + $0x1e38] sm:$0xff] }
 0x871   : > { %5834 = vmatprep.subr.mxu1 %v4395_v21  ;;  %5758 = vmatpush1.msra.mxu0 %v4138_v41  ;;  %v4562_v59 = vld [vmem:[%s14130_s3 + $0x1e70] sm:$0xff]  ;;  %v4291_v41 = vld [vmem:[%s14130_s3 + $0x15f8] sm:$0xff] }
 0x872   : > { %5835 = vmatpush1.msra.mxu1 %v4394_v18  ;;  %5759 = vmatprep.subr.mxu0 %v4131_v16  ;;  %v4298_v48 = vld [vmem:[%s14130_s3 + $0x1630] sm:$0xff]  ;;  %v4547_v18 = vld [vmem:[%s14130_s3 + $0x1df8] sm:$0xff] }
 0x873   : > { %5836 = vmatprep.subr.mxu1 %v4387_v28  ;;  %5760 = vmatpush1.msra.mxu0 %v4130_v22  ;;  %v4554_v21 = vld [vmem:[%s14130_s3 + $0x1e30] sm:$0xff]  ;;  %v4283_v22 = vld [vmem:[%s14130_s3 + $0x15b8] sm:$0xff] }
 0x874   : > { %5837 = vmatpush1.msra.mxu1 %v4386_v46  ;;  %5761 = vmatprep.subr.mxu0 %v4123_v39  ;;  %v4290_v16 = vld [vmem:[%s14130_s3 + $0x15f0] sm:$0xff]  ;;  %v4539_v46 = vld [vmem:[%s14130_s3 + $0x1db8] sm:$0xff] }
 0x875   : > { %5838 = vmatprep.subr.mxu1 %v4379_v61  ;;  %5762 = vmatpush1.msra.mxu0 %v4122_v34  ;;  %v4546_v28 = vld [vmem:[%s14130_s3 + $0x1df0] sm:$0xff]  ;;  %v4275_v34 = vld [vmem:[%s14130_s3 + $0x1578] sm:$0xff] }
 0x876   : > { %5839 = vmatpush1.msra.mxu1 %v4378_v5  ;;  %5763 = vmatprep.subr.mxu0 %v4115_v25  ;;  %v4282_v39 = vld [vmem:[%s14130_s3 + $0x15b0] sm:$0xff]  ;;  %v4531_v5 = vld [vmem:[%s14130_s3 + $0x1d78] sm:$0xff] }
 0x877   : > { %5840 = vmatprep.subr.mxu1 %v4371_v29  ;;  %5764 = vmatpush1.msra.mxu0 %v4114_v0  ;;  %v4538_v61 = vld [vmem:[%s14130_s3 + $0x1db0] sm:$0xff]  ;;  %v4267_v0 = vld [vmem:[%s14130_s3 + $0x1538] sm:$0xff] }
 0x878   : > { %5841 = vmatpush1.msra.mxu1 %v4370_v12  ;;  %5765 = vmatprep.subr.mxu0 %v4107_v9  ;;  %v4274_v25 = vld [vmem:[%s14130_s3 + $0x1570] sm:$0xff]  ;;  %v4523_v12 = vld [vmem:[%s14130_s3 + $0x1d38] sm:$0xff] }
 0x879   : > { %5842 = vmatprep.subr.mxu1 %v4363_v11  ;;  %5766 = vmatpush1.msra.mxu0 %v4106_v47  ;;  %v4530_v29 = vld [vmem:[%s14130_s3 + $0x1d70] sm:$0xff]  ;;  %v4259_v47 = vld [vmem:[%s14130_s3 + $0x14f8] sm:$0xff] }
 0x87a   : > { %5843 = vmatpush1.msra.mxu1 %v4362_v8  ;;  %5767 = vmatprep.subr.mxu0 %v4355_v37  ;;  %v4266_v9 = vld [vmem:[%s14130_s3 + $0x1530] sm:$0xff]  ;;  %v4515_v8 = vld [vmem:[%s14130_s3 + $0x1cf8] sm:$0xff] }
 0x87b   : > { %5844 = vmatprep.subr.mxu1 %v4611_v58  ;;  %5768 = vmatpush2.msra.mxu0 %v4354_v63  ;;  %v4522_v11 = vld [vmem:[%s14130_s3 + $0x1d30] sm:$0xff]  ;;  %v4251_v63 = vld [vmem:[%s14130_s3 + $0x14b8] sm:$0xff] }
 0x87c   : > { %5845 = vmatpush2.msra.mxu1 %v4610_v53  ;;  %5769 = vmatprep.subr.mxu0 %v4347_v45  ;;  %v4258_v37 = vld [vmem:[%s14130_s3 + $0x14f0] sm:$0xff]  ;;  %v4507_v53 = vld [vmem:[%s14130_s3 + $0x1cb8] sm:$0xff] }
 0x87d   : > { %5846 = vmatprep.subr.mxu1 %v4603_v6  ;;  %5770 = vmatpush2.msra.mxu0 %v4346_v49  ;;  %v4514_v58 = vld [vmem:[%s14130_s3 + $0x1cf0] sm:$0xff]  ;;  %v4243_v49 = vld [vmem:[%s14130_s3 + $0x1478] sm:$0xff] }
 0x87e   : > { %5847 = vmatpush2.msra.mxu1 %v4602_v51  ;;  %5771 = vmatprep.subr.mxu0 %v4339_v55  ;;  %v4250_v45 = vld [vmem:[%s14130_s3 + $0x14b0] sm:$0xff]  ;;  %v4499_v51 = vld [vmem:[%s14130_s3 + $0x1c78] sm:$0xff] }
 0x87f   : > { %5848 = vmatprep.subr.mxu1 %v4595_v36  ;;  %5772 = vmatpush2.msra.mxu0 %v4338_v42  ;;  %v4506_v6 = vld [vmem:[%s14130_s3 + $0x1cb0] sm:$0xff]  ;;  %v4235_v42 = vld [vmem:[%s14130_s3 + $0x1438] sm:$0xff] }
 0x880   : > { %5849 = vmatpush2.msra.mxu1 %v4594_v27  ;;  %5773 = vmatprep.subr.mxu0 %v4331_v1  ;;  %v4242_v55 = vld [vmem:[%s14130_s3 + $0x1470] sm:$0xff]  ;;  %v4491_v27 = vld [vmem:[%s14130_s3 + $0x1c38] sm:$0xff] }
 0x881   : > { %5850 = vmatprep.subr.mxu1 %v4587_v57  ;;  %5774 = vmatpush2.msra.mxu0 %v4330_v4  ;;  %v4498_v36 = vld [vmem:[%s14130_s3 + $0x1c70] sm:$0xff]  ;;  %v4723_v4 = vpop.f32.mrf.mxu0 }
 0x882   : > { %5851 = vmatpush2.msra.mxu1 %v4586_v14  ;;  %5775 = vmatprep.subr.mxu0 %v4323_v20  ;;  %v4234_v1 = vld [vmem:[%s14130_s3 + $0x1430] sm:$0xff]  ;;  %v4800_v14 = vpop.f32.mrf.mxu1 }
 0x883   : > { %5852 = vmatprep.subr.mxu1 %v4579_v23  ;;  %5776 = vmatpush2.msra.mxu0 %v4322_v38  ;;  %v4490_v57 = vld [vmem:[%s14130_s3 + $0x1c30] sm:$0xff]  ;;  %v4725_v20 = vpop.f32.mrf.mxu0 }
 0x884   : > { %5853 = vmatpush2.msra.mxu1 %v4578_v10  ;;  %5777 = vmatprep.subr.mxu0 %v4315_v52  ;;  %v4802_v23 = vpop.f32.mrf.mxu1 }
 0x885   : > { %5854 = vmatprep.subr.mxu1 %v4571_v56  ;;  %5778 = vmatpush2.msra.mxu0 %v4314_v40  ;;  %v4729_v38 = vpop.f32.mrf.mxu0 }
 0x886   : > { %5855 = vmatpush2.msra.mxu1 %v4570_v54  ;;  %5779 = vmatprep.subr.mxu0 %v4307_v15  ;;  %v13805_v10 = vpop.f32.mrf.mxu1 }
 0x887   : > { %5856 = vmatprep.subr.mxu1 %v4563_v24  ;;  %5780 = vmatpush2.msra.mxu0 %v4306_v44  ;;  %v4731_v52 = vpop.f32.mrf.mxu0 }
 0x888   : > { %5857 = vmatpush2.msra.mxu1 %v4562_v59  ;;  %5781 = vmatprep.subr.mxu0 %v4299_v3  ;;  %v4808_v56 = vpop.f32.mrf.mxu1 }
 0x889   : > { %5858 = vmatprep.subr.mxu1 %v4555_v19  ;;  %5782 = vmatpush2.msra.mxu0 %v4298_v48 }
 0x88a   : > { %5859 = vmatpush2.msra.mxu1 %v4554_v21  ;;  %5783 = vmatprep.subr.mxu0 %v4291_v41  ;;  %v13807_v40 = vpop.f32.mrf.mxu1 }
 0x88b   : > { %5860 = vmatprep.subr.mxu1 %v4547_v18  ;;  %5784 = vmatpush2.msra.mxu0 %v4290_v16 }
 0x88c   : > { %5861 = vmatpush2.msra.mxu1 %v4546_v28  ;;  %5785 = vmatprep.subr.mxu0 %v4283_v22 }
 0x88d   : > { %5862 = vmatprep.subr.mxu1 %v4539_v46  ;;  %5786 = vmatpush2.msra.mxu0 %v4282_v39 }
 0x88e   : > { %5863 = vmatpush2.msra.mxu1 %v4538_v61  ;;  %5787 = vmatprep.subr.mxu0 %v4275_v34 }
 0x88f   : > { %5864 = vmatprep.subr.mxu1 %v4531_v5  ;;  %5788 = vmatpush2.msra.mxu0 %v4274_v25 }
 0x890   : > { %5865 = vmatpush2.msra.mxu1 %v4530_v29  ;;  %5789 = vmatprep.subr.mxu0 %v4267_v0  ;;  %v6289_v0 = vld [vmem:[%s14131_s4 + $0x6] ss:$8 sm:$0xf] }
 0x891   : > { %5866 = vmatprep.subr.mxu1 %v4523_v12  ;;  %5790 = vmatpush2.msra.mxu0 %v4266_v9  ;;  %v6290_v12 = vld [vmem:[%s14131_s4 + $0x6] ss:$8 sm:$0xf0] }
 0x892   : > { %5867 = vmatpush2.msra.mxu1 %v4522_v11  ;;  %5791 = vmatprep.subr.mxu0 %v4259_v47  ;;  %v13833_v47 = vor.u32 %v6290_v12, %v6289_v0 }
 0x893   : > { %5868 = vmatprep.subr.mxu1 %v4515_v8  ;;  %5792 = vmatpush2.msra.mxu0 %v4258_v37 }
 0x894   : > { %5869 = vmatpush2.msra.mxu1 %v4514_v58  ;;  %5793 = vmatprep.subr.mxu0 %v4251_v63  ;;  %v4624_v37 = vrot.slane %v13833_v47, %v14164_v17  ;;  %v4620_v63 = vrot.slane %v13833_v47, %v14166_v2  ;;  %v4636_v12 = vrot.slane %v13833_v47, %v7030_v26 }
 0x895   : > { %5870 = vmatprep.subr.mxu1 %v4507_v53  ;;  %5794 = vmatpush2.msra.mxu0 %v4250_v45  ;;  %v4628_v45 = vrot.slane %v13833_v47, %v14167_v32 }
 0x896   : > { %5871 = vmatpush2.msra.mxu1 %v4506_v6  ;;  %5795 = vmatprep.subr.mxu0 %v4243_v49  ;;  %v4726_v49 = vadd.f32 %v4725_v20, %v4624_v37  ;;  %v4732_v0 = vadd.f32 %v4731_v52, %v4624_v37  ;;  %v4730_v2 = vadd.f32 %v4729_v38, %v4620_v63 }
 0x897   : > { %5872 = vmatprep.subr.mxu1 %v4499_v51  ;;  %5796 = vmatpush2.msra.mxu0 %v4242_v55  ;;  %v4724_v51 = vadd.f32 %v4723_v4, %v4620_v63 }
 0x898   : > { %5873 = vmatpush2.msra.mxu1 %v4498_v36  ;;  %5797 = vmatprep.subr.mxu0 %v4235_v42  ;;  %v4632_v42 = vrot.slane %v13833_v47, %v14165_v50  ;;  %v4640_v50 = vrot.slane %v13833_v47, %v7034_v30 }
 0x899   : > { %5874 = vmatprep.subr.mxu1 %v4491_v27  ;;  %5798 = vmatpush2.msra.mxu0 %v4234_v1  ;;  %v4803_v1 = vadd.f32 %v4802_v23, %v4726_v49 }
 0x89a   : > { %5875 = vmatpush2.msra.mxu1 %v4490_v57  ;;  %5800 = vmatmul.mubr.f32.vlgmr.msra.gmra.mxu0 %v11431_v43  ;;  %v4877_v43 = vpop.f32.mrf.mxu0  ;;  %v4801_v57 = vadd.f32 %v4800_v14, %v4724_v51  ;;  %v4807_v14 = vadd.f32 %v13805_v10, %v4730_v2 }
 0x89b   : > { %5877 = vmatmul.mubr.f32.vlgmr.msra.gmra.mxu1 %v11437_v33  ;;  %5805 = vmatprep.mubr.f32.mxu0 %v11444_v7  ;;  %v4956_v7 = vpop.f32.mrf.mxu1 }
 0x89c   : > { %5882 = vmatprep.mubr.f32.mxu1 %v11450_v13  ;;  %v4879_v33 = vpop.f32.mrf.mxu0  ;;  %v4878_v60 = vadd.f32 %v4877_v43, %v4801_v57 }
 0x89d   : > { %v13811_v13 = vpop.f32.mrf.mxu1 }
 0x89e   : > { %5806 = vmatmul.mubr.f32.gmra.mxu0 %v11471_v62  ;;  %v13809_v54 = vpop.f32.mrf.mxu0 }
 0x89f   : > { %5883 = vmatmul.mubr.f32.gmra.mxu1 %v11476_v35  ;;  %v13813_v35 = vpop.f32.mrf.mxu1 }
 0x8a0   : > { %v4885_v62 = vpop.f32.mrf.mxu0 }
 0x8a1   : > { %v5108_v24 = vpop.f32.mrf.mxu1 }
 0x8a2   : > { %v5031_v15 = vpop.f32.mrf.mxu0 }
 0x8a3   : > { %v5110_v59 = vpop.f32.mrf.mxu1  ;;  %v5032_v36 = vadd.f32 %v5031_v15, %v4628_v45 }
 0x8a4   : > { %v5033_v44 = vpop.f32.mrf.mxu0 }
 0x8a5   : > { %v5114_v19 = vpop.f32.mrf.mxu1  ;;  %v5109_v32 = vadd.f32 %v5108_v24, %v5032_v36 }
 0x8a6   : > { %v5037_v3 = vpop.f32.mrf.mxu0 }
 0x8a7   : > { %v13815_v21 = vpop.f32.mrf.mxu1  ;;  %v5038_v4 = vadd.f32 %v5037_v3, %v4628_v45  ;;  %v13855_v3 = vadd.f32 %v13807_v40, %v4878_v60 }
 0x8a8   : > { %v5039_v48 = vpop.f32.mrf.mxu0 }
 0x8a9   : > { %v5262_v18 = vpop.f32.mrf.mxu1  ;;  %v5040_v24 = vadd.f32 %v5039_v48, %v4632_v42 }
 0x8aa   : > { %v5185_v41 = vpop.f32.mrf.mxu0 }
 0x8ab   : > { %v13817_v28 = vpop.f32.mrf.mxu1  ;;  %v5186_v15 = vadd.f32 %v5185_v41, %v5109_v32  ;;  %v4884_v32 = vadd.f32 %v13809_v54, %v4807_v14 }
 0x8ac   : > { %v5187_v16 = vpop.f32.mrf.mxu0 }
 0x8ad   : > { %v13819_v46 = vpop.f32.mrf.mxu1  ;;  %v13867_v54 = vadd.f32 %v13811_v13, %v4884_v32  ;;  %v14174_v13 = vld [vmem:[#allocation9_spill] sm:$0xff] }
 0x8ae   : > { %v5191_v22 = vpop.f32.mrf.mxu0 }
 0x8af   : > { %v13823_v61 = vpop.f32.mrf.mxu1 }
 0x8b0   : > { %v13821_v39 = vpop.f32.mrf.mxu0  ;;  %14169 = vst [vmem:[#allocation12_spill] sm:$0xff] %v13823_v61  ;;  %v5034_v61 = vadd.f32 %v5033_v44, %v4632_v42 }
 0x8b1   : > { %14168 = vst [vmem:[#allocation10_spill] sm:$0xff] %v13821_v39  ;;  %v5416_v5 = vpop.f32.mrf.mxu1 }
 0x8b2   : > { %v5339_v34 = vpop.f32.mrf.mxu0  ;;  %v5111_v37 = vadd.f32 %v5110_v59, %v5034_v61  ;;  %v5117_v59 = vadd.f32 %v13815_v21, %v5040_v24 }
 0x8b3   : > { %v13825_v29 = vpop.f32.mrf.mxu1  ;;  %v5340_v39 = vadd.f32 %v5339_v34, %v4636_v12 }
 0x8b4   : > { %v5341_v25 = vpop.f32.mrf.mxu0  ;;  %14170 = vst [vmem:[#allocation11_spill] sm:$0xff] %v13825_v29  ;;  %v4809_v29 = vadd.f32 %v4808_v56, %v4732_v0  ;;  %v13858_v56 = vadd.f32 %v5262_v18, %v5186_v15  ;;  %v5188_v43 = vadd.f32 %v5187_v16, %v5111_v37  ;;  %v4644_v18 = vrot.slane %v13833_v47, %v7036_v31 }
 0x8b5   : > { %v5422_v11 = vpop.f32.mrf.mxu1  ;;  %v5417_v63 = vadd.f32 %v5416_v5, %v5340_v39  ;;  %v5342_v2 = vadd.f32 %v5341_v25, %v4640_v50 }
 0x8b6   : > { %v5345_v9 = vpop.f32.mrf.mxu0  ;;  %v4886_v38 = vadd.f32 %v4885_v62, %v4809_v29  ;;  %v13871_v48 = vadd.f32 %v13817_v28, %v5188_v43  ;;  %v4648_v29 = vrot.slane %v13833_v47, %v14174_v13 }
 0x8b7   : > { %v13837_v58 = vpop.f32.mrf.mxu1  ;;  %v5346_v10 = vadd.f32 %v5345_v9, %v4636_v12 }
 0x8b8   : > { %v5347_v8 = vpop.f32.mrf.mxu0  ;;  %14171 = vst [vmem:[#allocation13_spill] sm:$0xff] %v13837_v58  ;;  %v4880_v58 = vadd.f32 %v4879_v33, %v4803_v1  ;;  %v5115_v33 = vadd.f32 %v5114_v19, %v5038_v4  ;;  %v13863_v62 = vadd.f32 %v13813_v35, %v4886_v38  ;;  %v14172_v35 = vld [vmem:[#allocation10_spill] sm:$0xff]  ;;  %v14175_v1 = vld [vmem:[#allocation12_spill] sm:$0xff] }
 0x8b9   : > { %v5194_v39 = vadd.f32 %v14172_v35, %v5117_v59  ;;  %v5423_v5 = vadd.f32 %v5422_v11, %v5346_v10  ;;  %v5348_v25 = vadd.f32 %v5347_v8, %v4640_v50 }
 0x8ba   : > { %v13852_v52 = vadd.f32 %v4956_v7, %v4880_v58  ;;  %v5192_v34 = vadd.f32 %v5191_v22, %v5115_v33  ;;  %v5906_v28 = vadd.f32 %v13863_v62, %v13867_v54 }
 0x8bb   : > { %v14173_v21 = vld [vmem:[#allocation11_spill] sm:$0xff]  ;;  %v13889_v11 = vadd.f32 %v14175_v1, %v5194_v39 }
 0x8bc   : > { %v5897_v7 = vadd.f32 %v13852_v52, %v13855_v3  ;;  %v13876_v22 = vadd.f32 %v13819_v46, %v5192_v34  ;;  %v5419_v61 = vadd.f32 %v14173_v21, %v5342_v2 }
 0x8be   : > { %v5898_v19 = vadd.f32 %v5897_v7, %v13858_v56  ;;  %v5907_v42 = vadd.f32 %v5906_v28, %v13876_v22 }
 0x8bf   : > { %v14176_v50 = vld [vmem:[#allocation13_spill] sm:$0xff] }
 0x8c0   : > { %v5899_v36 = vadd.f32 %v5898_v19, %v13871_v48  ;;  %v5425_v8 = vadd.f32 %v14176_v50, %v5348_v25  ;;  %v5908_v14 = vadd.f32 %v5907_v42, %v13889_v11 }
 0x8d2   : > { %v5493_v53 = vpop.f32.mrf.mxu0 }
 0x8d3   : > { %v5570_v6 = vpop.f32.mrf.mxu1  ;;  %v5494_v60 = vadd.f32 %v5493_v53, %v5417_v63 }
 0x8d4   : > { %v5495_v55 = vpop.f32.mrf.mxu0 }
 0x8d5   : > { %v13845_v27 = vpop.f32.mrf.mxu1  ;;  %v13884_v9 = vadd.f32 %v5570_v6, %v5494_v60  ;;  %v5496_v58 = vadd.f32 %v5495_v55, %v5419_v61 }
 0x8d7   : > { %v5900_v57 = vadd.f32 %v5899_v36, %v13884_v9  ;;  %v13894_v6 = vadd.f32 %v13845_v27, %v5496_v58 }
 0x8d8   : > { %v5499_v17 = vpop.f32.mrf.mxu0 }
 0x8d9   : > { %v5576_v20 = vpop.f32.mrf.mxu1  ;;  %v5500_v53 = vadd.f32 %v5499_v17, %v5423_v5  ;;  %v5901_v32 = vadd.f32 %v5900_v57, %v13894_v6 }
 0x8da   : > { %v5501_v23 = vpop.f32.mrf.mxu0 }
 0x8db   : > { %v5578_v49 = vpop.f32.mrf.mxu1  ;;  %v13896_v55 = vadd.f32 %v5576_v20, %v5500_v53  ;;  %v5502_v0 = vadd.f32 %v5501_v23, %v5425_v8 }
 0x8dd   : > { %v5909_v43 = vadd.f32 %v5908_v14, %v13896_v55  ;;  %v13901_v34 = vadd.f32 %v5578_v49, %v5502_v0 }
 0x916   : > { %v5647_v44 = vpop.f32.mrf.mxu0 }
 0x917   : > { %v5724_v41 = vpop.f32.mrf.mxu1  ;;  %v5648_v51 = vadd.f32 %v5647_v44, %v4644_v18 }
 0x918   : > { %v5649_v40 = vpop.f32.mrf.mxu0 }
 0x919   : > { %v5726_v16 = vpop.f32.mrf.mxu1  ;;  %v5650_v47 = vadd.f32 %v5649_v40, %v4648_v29  ;;  %v5725_v12 = vadd.f32 %v5724_v41, %v5648_v51 }
 0x91b   : > { %v5727_v38 = vadd.f32 %v5726_v16, %v5650_v47 }
 0x91c   : > { %v5653_v45 = vpop.f32.mrf.mxu0 }
 0x91d   : > { %v5730_v46 = vpop.f32.mrf.mxu1  ;;  %v5654_v4 = vadd.f32 %v5653_v45, %v4644_v18  ;;  %v5910_v18 = vadd.f32 %v5909_v43, %v13901_v34 }
 0x91e   : > { %v5655_v17 = vpop.f32.mrf.mxu0 }
 0x91f   : > { %v5732_v15 = vpop.f32.mrf.mxu1  ;;  %v5656_v33 = vadd.f32 %v5655_v17, %v4648_v29  ;;  %v5731_v20 = vadd.f32 %v5730_v46, %v5654_v4 }
 0x921   : > { %v5733_v10 = vadd.f32 %v5732_v15, %v5656_v33 }
 0x95a   : > { %v5801_v37 = vpop.f32.mrf.mxu0 }
 0x95b   : > { %v5802_v24 = vadd.f32 %v5801_v37, %v5725_v12  ;;  %v5878_v44 = vpop.f32.mrf.mxu1 }
 0x95c   : > { %v5803_v27 = vpop.f32.mrf.mxu0 }
 0x95d   : > { %v13903_v63 = vadd.f32 %v5878_v44, %v5802_v24  ;;  %v5804_v23 = vadd.f32 %v5803_v27, %v5727_v38  ;;  %v5880_v41 = vpop.f32.mrf.mxu1 }
 0x95e   : > { %v5807_v2 = vpop.f32.mrf.mxu0 }
 0x95f   : > { %v13905_v7 = vadd.f32 %v5880_v41, %v5804_v23  ;;  %v5808_v59 = vadd.f32 %v5807_v2, %v5731_v20  ;;  %v5884_v60 = vpop.f32.mrf.mxu1  ;;  %v5902_v40 = vadd.f32 %v5901_v32, %v13903_v63 }
 0x960   : > { %v5809_v19 = vpop.f32.mrf.mxu0 }
 0x961   : > { %v13909_v16 = vadd.f32 %v5884_v60, %v5808_v59  ;;  %v5810_v49 = vadd.f32 %v5809_v19, %v5733_v10  ;;  %v5903_v35 = vadd.f32 %v5902_v40, %v13905_v7  ;;  %v5886_v39 = vpop.f32.mrf.mxu1 }
 0x963   : > { %v13912_v21 = vadd.f32 %v5886_v39, %v5810_v49  ;;  %5904 = vadd.xlane.f32.xlu0 %v5903_v35  ;;  %v5911_v61 = vadd.f32 %v5910_v18, %v13909_v16 }
 0x965   : > { %v5912_v5 = vadd.f32 %v5911_v61, %v13912_v21 }
 0x967   : > { %5913 = vadd.xlane.f32.xlu1 %v5912_v5 }
 0x9ec   : > { %v5905_v25 = vpop.xlane.xlu0 %5904 }
 0x9f0   : > { %v5914_v29 = vpop.xlane.xlu1 %5913 }
 0x9f1   : > { %v5915_v28 = vadd.f32 %v5914_v29, %v5905_v25 }
 0x9f3   : > { %v5916_v58 = vrot.slane %v5915_v28, 4 }
 0x9f5   : > { %v5917_v53 = vadd.f32 %v5916_v58, %v5915_v28 }
 0x9f7   : > { %v5918_v45 = vrot.slane %v5917_v53, 2 }
 0x9f9   : > { %v5919_v51 = vadd.f32 %v5918_v45, %v5917_v53 }
 0x9fb   : > { %v5920_v46 = vrot.slane %v5919_v51, 1 }
 0x9fd   : > { %v5921_v36 = vadd.f32 %v5920_v46, %v5919_v51 }
 0x9ff   : > { %v13916_v42 = vmul.f32 6.1035156e-05, %v5921_v36 }
 0xa01   : > { %v5931_v1 = vsub.f32 %v13867_v54, %v13916_v42  ;;  %v5932_v50 = vsub.f32 %v13863_v62, %v13916_v42  ;;  %v5933_v8 = vsub.f32 %v13876_v22, %v13916_v42  ;;  %v5934_v47 = vsub.f32 %v13889_v11, %v13916_v42 }
 0xa02   : > { %v5935_v0 = vsub.f32 %v13896_v55, %v13916_v42  ;;  %v5923_v15 = vsub.f32 %v13855_v3, %v13916_v42  ;;  %v5924_v14 = vsub.f32 %v13852_v52, %v13916_v42  ;;  %v5925_v37 = vsub.f32 %v13858_v56, %v13916_v42 }
 0xa03   : > { %v5947_v57 = vmul.f32 %v5931_v1, %v5931_v1  ;;  %v5948_v17 = vmul.f32 %v5932_v50, %v5932_v50  ;;  %v5949_v12 = vmul.f32 %v5933_v8, %v5933_v8  ;;  %v5936_v38 = vsub.f32 %v13901_v34, %v13916_v42 }
 0xa04   : > { %v5950_v33 = vmul.f32 %v5934_v47, %v5934_v47  ;;  %v5926_v44 = vsub.f32 %v13871_v48, %v13916_v42  ;;  %v5939_v32 = vmul.f32 %v5923_v15, %v5923_v15  ;;  %v5940_v43 = vmul.f32 %v5924_v14, %v5924_v14 }
 0xa05   : > { %v5964_v4 = vadd.f32 %v5948_v17, %v5947_v57  ;;  %v5937_v27 = vsub.f32 %v13909_v16, %v13916_v42  ;;  %v5951_v20 = vmul.f32 %v5935_v0, %v5935_v0  ;;  %v5927_v41 = vsub.f32 %v13884_v9, %v13916_v42 }
 0xa06   : > { %v5941_v2 = vmul.f32 %v5925_v37, %v5925_v37  ;;  %v5955_v10 = vadd.f32 %v5940_v43, %v5939_v32  ;;  %v5938_v59 = vsub.f32 %v13912_v21, %v13916_v42  ;;  %v5952_v60 = vmul.f32 %v5936_v38, %v5936_v38 }
 0xa07   : > { %v5965_v24 = vadd.f32 %v5964_v4, %v5949_v12  ;;  %v5928_v19 = vsub.f32 %v13894_v6, %v13916_v42  ;;  %v5942_v18 = vmul.f32 %v5926_v44, %v5926_v44  ;;  %v5953_v35 = vmul.f32 %v5937_v27, %v5937_v27  ;;  %v6292_v44 = vld [vmem:[%s14131_s4 + $0x7] ss:$8 sm:$0xf0]  ;;  %v6293_v27 = vld [vmem:[%s14131_s4 + $0x40] ss:$8 sm:$0xf] }
 0xa08   : > { %v5956_v49 = vadd.f32 %v5955_v10, %v5941_v2  ;;  %v5929_v61 = vsub.f32 %v13903_v63, %v13916_v42  ;;  %v5943_v5 = vmul.f32 %v5927_v41, %v5927_v41  ;;  %v5954_v29 = vmul.f32 %v5938_v59, %v5938_v59  ;;  %v14177_v59 = vld [vmem:[#allocation5_spill] sm:$0xff] }
 0xa09   : > { %v5966_v23 = vadd.f32 %v5965_v24, %v5950_v33  ;;  %v5930_v58 = vsub.f32 %v13905_v7, %v13916_v42  ;;  %v5944_v53 = vmul.f32 %v5928_v19, %v5928_v19  ;;  %v6291_v24 = vld [vmem:[%s14131_s4 + $0x7] ss:$8 sm:$0xf] }
 0xa0a   : > { %v5957_v25 = vadd.f32 %v5956_v49, %v5942_v18  ;;  %v5945_v46 = vmul.f32 %v5929_v61, %v5929_v61  ;;  %v5892_v32 = vor.u32 %v6292_v44, %v6291_v24  ;;  %v14179_v18 = vld [vmem:[#allocation7_spill] sm:$0xff] }
 0xa0b   : > { %v5967_v40 = vadd.f32 %v5966_v23, %v5951_v20  ;;  %v5946_v1 = vmul.f32 %v5930_v58, %v5930_v58  ;;  %v6294_v20 = vld [vmem:[%s14131_s4 + $0x40] ss:$8 sm:$0xf0] }
 0xa0c   : > { %v5958_v45 = vadd.f32 %v5957_v25, %v5943_v5  ;;  %v5896_v41 = vor.u32 %v6294_v20, %v6293_v27 }
 0xa0d   : > { %v5968_v39 = vadd.f32 %v5967_v40, %v5952_v60  ;;  %v14178_v40 = vld [vmem:[#allocation6_spill] sm:$0xff] }
 0xa0e   : > { %v5959_v36 = vadd.f32 %v5958_v45, %v5944_v53 }
 0xa0f   : > { %v5969_v28 = vadd.f32 %v5968_v39, %v5953_v35  ;;  %v14180_v35 = vld [vmem:[#allocation8_spill] sm:$0xff] }
 0xa10   : > { %v5960_v50 = vadd.f32 %v5959_v36, %v5945_v46 }
 0xa11   : > { %v5970_v51 = vadd.f32 %v5969_v28, %v5954_v29 }
 0xa12   : > { %v5961_v8 = vadd.f32 %v5960_v50, %v5946_v1 }
 0xa13   : > { %5971 = vadd.xlane.f32.xlu1 %v5970_v51 }
 0xa14   : > { %5962 = vadd.xlane.f32.xlu0 %v5961_v8 }
 0xa9c   : > { %v5972_v47 = vpop.xlane.xlu1 %5971 }
 0xa9d   : > { %v5963_v57 = vpop.xlane.xlu0 %5962 }
 0xa9e   : > { %v5973_v17 = vadd.f32 %v5972_v47, %v5963_v57 }
 0xaa0   : > { %v5974_v0 = vrot.slane %v5973_v17, 4 }
 0xaa2   : > { %v5975_v12 = vadd.f32 %v5974_v0, %v5973_v17 }
 0xaa4   : > { %v5976_v4 = vrot.slane %v5975_v12, 2 }
 0xaa6   : > { %v5977_v15 = vadd.f32 %v5976_v4, %v5975_v12 }
 0xaa8   : > { %v5978_v14 = vrot.slane %v5977_v15, 1 }
 0xaaa   : > { %v5979_v37 = vadd.f32 %v5978_v14, %v5977_v15 }
 0xaac   : > { %v5980_v38 = vmul.f32 6.1035156e-05, %v5979_v37 }
 0xaae   : > { %v5981_v33 = vadd.f32 1e-05, %v5980_v38 }
 0xab0   : > { %6412 = vrsqrt.f32 %v5981_v33 }
 0xabd   : > { %v6413_v43 = vpop.eup %6412 }
 0xabe   : > { %v5983_v23 = vmul.f32 %v6413_v43, %v5892_v32 }
 0xac0   : > { %v5984_v2 = vmul.f32 %v5983_v23, %v13916_v42  ;;  %v5990_v60 = vrot.slane %v5983_v23, %v14177_v59  ;;  %v5994_v19 = vrot.slane %v5983_v23, %v14178_v40  ;;  %v5998_v49 = vrot.slane %v5983_v23, %v14179_v18 }
 0xac1   : > { %v6002_v39 = vrot.slane %v5983_v23, %v14180_v35  ;;  %v6006_v61 = vrot.slane %v5983_v23, %v7030_v26  ;;  %v6010_v29 = vrot.slane %v5983_v23, %v7034_v30  ;;  %v6014_v58 = vrot.slane %v5983_v23, %v7036_v31 }
 0xac2   : > { %v5985_v10 = vsub.f32 %v5896_v41, %v5984_v2  ;;  %v6027_v53 = vmul.f32 %v5990_v60, %v13855_v3  ;;  %v6028_v45 = vmul.f32 %v5994_v19, %v13852_v52  ;;  %v6018_v46 = vrot.slane %v5983_v23, %v14174_v13 }
 0xac3   : > { %v6029_v36 = vmul.f32 %v5998_v49, %v13858_v56  ;;  %v6030_v1 = vmul.f32 %v6002_v39, %v13871_v48  ;;  %v6031_v8 = vmul.f32 %v6006_v61, %v13884_v9  ;;  %v6032_v3 = vmul.f32 %v6010_v29, %v13894_v6 }
 0xac4   : > { %v6047_v5 = vrot.slane %v5985_v10, %v14177_v59  ;;  %v6051_v25 = vrot.slane %v5985_v10, %v14178_v40  ;;  %v6055_v28 = vrot.slane %v5985_v10, %v14179_v18  ;;  %v6059_v42 = vrot.slane %v5985_v10, %v14180_v35 }
 0xac5   : > { %v6063_v51 = vrot.slane %v5985_v10, %v7030_v26  ;;  %v6067_v50 = vrot.slane %v5985_v10, %v7034_v30  ;;  %v6071_v47 = vrot.slane %v5985_v10, %v7036_v31  ;;  %v6075_v52 = vrot.slane %v5985_v10, %v14174_v13 }
 0xac6   : > { %v6084_v57 = vadd.f32 %v6047_v5, %v6027_v53  ;;  %v13983_v17 = vadd.f32 %v6051_v25, %v6028_v45  ;;  %v13987_v26 = vadd.f32 %v6055_v28, %v6029_v36  ;;  %v13989_v0 = vadd.f32 %v6059_v42, %v6030_v1 }
 0xac7   : > { %v6033_v56 = vmul.f32 %v6014_v58, %v13903_v63  ;;  %v13992_v48 = vadd.f32 %v6063_v51, %v6031_v8  ;;  %v6034_v30 = vmul.f32 %v6018_v46, %v13905_v7  ;;  %v13995_v9 = vadd.f32 %v6067_v50, %v6032_v3 }
 0xac8   : > { %v6035_v31 = vmul.f32 %v5990_v60, %v13867_v54  ;;  %v6116_v4 = vmul.f32 0.70710677, %v6084_v57  ;;  %v6117_v6 = vmul.f32 0.70710677, %v13983_v17  ;;  %v6036_v13 = vmul.f32 %v5994_v19, %v13863_v62 }
 0xac9   : > { %v13998_v12 = vadd.f32 %v6071_v47, %v6033_v56  ;;  %v14002_v15 = vadd.f32 %v6075_v52, %v6034_v30  ;;  %v6118_v14 = vmul.f32 0.70710677, %v13987_v26  ;;  %v6119_v63 = vmul.f32 0.70710677, %v13989_v0 }
 0xaca   : > { %v6037_v37 = vmul.f32 %v5998_v49, %v13876_v22  ;;  %v14007_v7 = vadd.f32 %v6047_v5, %v6035_v31  ;;  %v6120_v38 = vmul.f32 0.70710677, %v13992_v48  ;;  %6414 = verf.f32 %v6116_v4 }
 0xacb   : > { %v6038_v54 = vmul.f32 %v6002_v39, %v13889_v11  ;;  %v14011_v33 = vadd.f32 %v6051_v25, %v6036_v13  ;;  %v6121_v24 = vmul.f32 0.70710677, %v13995_v9  ;;  %6416 = verf.f32 %v6117_v6 }
 0xacc   : > { %v6039_v62 = vmul.f32 %v6006_v61, %v13896_v55  ;;  %v14015_v44 = vadd.f32 %v6055_v28, %v6037_v37  ;;  %v6122_v32 = vmul.f32 0.70710677, %v13998_v12  ;;  %6418 = verf.f32 %v6118_v14 }
 0xacd   : > { %v6040_v22 = vmul.f32 %v6010_v29, %v13901_v34  ;;  %v14019_v43 = vadd.f32 %v6059_v42, %v6038_v54  ;;  %v6123_v27 = vmul.f32 0.70710677, %v14002_v15  ;;  %6420 = verf.f32 %v6119_v63 }
 0xace   : > { %v6041_v11 = vmul.f32 %v6014_v58, %v13909_v16  ;;  %v14023_v20 = vadd.f32 %v6063_v51, %v6039_v62  ;;  %v6124_v23 = vmul.f32 0.70710677, %v14007_v7  ;;  %6422 = verf.f32 %v6120_v38 }
 0xacf   : > { %v6042_v55 = vmul.f32 %v6018_v46, %v13912_v21  ;;  %v14027_v41 = vadd.f32 %v6067_v50, %v6040_v22  ;;  %v6125_v2 = vmul.f32 0.70710677, %v14011_v33  ;;  %6424 = verf.f32 %v6121_v24 }
 0xad0   : > { %v14030_v34 = vadd.f32 %v6071_v47, %v6041_v11  ;;  %v6126_v10 = vmul.f32 0.70710677, %v14015_v44  ;;  %6426 = verf.f32 %v6122_v32  ;;  %v6127_v59 = vmul.f32 0.70710677, %v14019_v43 }
 0xad1   : > { %v14033_v16 = vadd.f32 %v6075_v52, %v6042_v55  ;;  %6428 = verf.f32 %v6123_v27  ;;  %v6128_v60 = vmul.f32 0.70710677, %v14023_v20  ;;  %v6129_v21 = vmul.f32 0.70710677, %v14027_v41 }
 0xad2   : > { %6430 = verf.f32 %v6124_v23  ;;  %v6130_v40 = vmul.f32 0.70710677, %v14030_v34  ;;  %v6100_v35 = vmul.f32 0.5, %v6084_v57  ;;  %v6101_v5 = vmul.f32 0.5, %v13983_v17 }
 0xad3   : > { %6432 = verf.f32 %v6125_v2  ;;  %v6131_v19 = vmul.f32 0.70710677, %v14033_v16  ;;  %v6102_v28 = vmul.f32 0.5, %v13987_v26  ;;  %v6103_v45 = vmul.f32 0.5, %v13989_v0 }
 0xad4   : > { %6434 = verf.f32 %v6126_v10  ;;  %v6104_v1 = vmul.f32 0.5, %v13992_v48  ;;  %v6105_v57 = vmul.f32 0.5, %v13995_v9  ;;  %v6106_v26 = vmul.f32 0.5, %v13998_v12 }
 0xad5   : > { %6436 = verf.f32 %v6127_v59  ;;  %v6107_v30 = vmul.f32 0.5, %v14002_v15  ;;  %v6108_v9 = vmul.f32 0.5, %v14007_v7  ;;  %v6109_v12 = vmul.f32 0.5, %v14011_v33 }
 0xad6   : > { %6438 = verf.f32 %v6128_v60  ;;  %v6110_v15 = vmul.f32 0.5, %v14015_v44  ;;  %v6111_v32 = vmul.f32 0.5, %v14019_v43  ;;  %v6112_v11 = vmul.f32 0.5, %v14023_v20 }
 0xad7   : > { %v6415_v18 = vpop.eup %6414  ;;  %6440 = verf.f32 %v6129_v21  ;;  %v6113_v2 = vmul.f32 0.5, %v14027_v41  ;;  %v6114_v60 = vmul.f32 0.5, %v14030_v34 }
 0xad8   : > { %v6417_v49 = vpop.eup %6416  ;;  %6442 = verf.f32 %v6130_v40  ;;  %v6148_v39 = vadd.f32 1.0, %v6415_v18  ;;  %v6115_v40 = vmul.f32 0.5, %v14033_v16 }
 0xad9   : > { %v6419_v61 = vpop.eup %6418  ;;  %6444 = verf.f32 %v6131_v19  ;;  %v6149_v25 = vadd.f32 1.0, %v6417_v49 }
 0xada   : > { %v6421_v29 = vpop.eup %6420  ;;  %v6150_v42 = vadd.f32 1.0, %v6419_v61  ;;  %v6164_v58 = vmul.f32 %v6148_v39, %v6100_v35 }
 0xadb   : > { %v6423_v53 = vpop.eup %6422  ;;  %v6151_v51 = vadd.f32 1.0, %v6421_v29  ;;  %v6165_v46 = vmul.f32 %v6149_v25, %v6101_v5 }
 0xadc   : > { %v6425_v36 = vpop.eup %6424  ;;  %v6152_v50 = vadd.f32 1.0, %v6423_v53  ;;  %v6166_v8 = vmul.f32 %v6150_v42, %v6102_v28  ;;  %6180 = vst [vmem:[%s14047_s17] sm:$0xff] %v6164_v58 }
 0xadd   : > { %v6427_v47 = vpop.eup %6426  ;;  %v6153_v17 = vadd.f32 1.0, %v6425_v36  ;;  %v6167_v3 = vmul.f32 %v6151_v51, %v6103_v45  ;;  %6181 = vst [vmem:[%s14047_s17 + $0x8] sm:$0xff] %v6165_v46 }
 0xade   : > { %v6429_v52 = vpop.eup %6428  ;;  %v6154_v0 = vadd.f32 1.0, %v6427_v47  ;;  %v6168_v56 = vmul.f32 %v6152_v50, %v6104_v1  ;;  %6182 = vst [vmem:[%s14047_s17 + $0x10] sm:$0xff] %v6166_v8 }
 0xadf   : > { %v6431_v48 = vpop.eup %6430  ;;  %v6155_v31 = vadd.f32 1.0, %v6429_v52  ;;  %v6169_v4 = vmul.f32 %v6153_v17, %v6105_v57  ;;  %6183 = vst [vmem:[%s14047_s17 + $0x18] sm:$0xff] %v6167_v3 }
 0xae0   : > { %v6433_v6 = vpop.eup %6432  ;;  %v6156_v13 = vadd.f32 1.0, %v6431_v48  ;;  %v6170_v14 = vmul.f32 %v6154_v0, %v6106_v26  ;;  %6184 = vst [vmem:[%s14047_s17 + $0x20] sm:$0xff] %v6168_v56 }
 0xae1   : > { %v6435_v63 = vpop.eup %6434  ;;  %v6157_v37 = vadd.f32 1.0, %v6433_v6  ;;  %v6171_v38 = vmul.f32 %v6155_v31, %v6107_v30  ;;  %6185 = vst [vmem:[%s14047_s17 + $0x28] sm:$0xff] %v6169_v4 }
 0xae2   : > { %v6437_v54 = vpop.eup %6436  ;;  %v6158_v24 = vadd.f32 1.0, %v6435_v63  ;;  %v6172_v62 = vmul.f32 %v6156_v13, %v6108_v9  ;;  %6186 = vst [vmem:[%s14047_s17 + $0x30] sm:$0xff] %v6170_v14 }
 0xae3   : > { %v6439_v7 = vpop.eup %6438  ;;  %v6159_v22 = vadd.f32 1.0, %v6437_v54  ;;  %v6173_v27 = vmul.f32 %v6157_v37, %v6109_v12  ;;  %6187 = vst [vmem:[%s14047_s17 + $0x38] sm:$0xff] %v6171_v38 }
 0xae4   : > { %v6441_v33 = vpop.eup %6440  ;;  %v6160_v23 = vadd.f32 1.0, %v6439_v7  ;;  %v6174_v55 = vmul.f32 %v6158_v24, %v6110_v15  ;;  %6188 = vst [vmem:[%s14047_s17 + $0x40] sm:$0xff] %v6172_v62 }
 0xae5   : > { %v6443_v44 = vpop.eup %6442  ;;  %v6161_v10 = vadd.f32 1.0, %v6441_v33  ;;  %v6175_v59 = vmul.f32 %v6159_v22, %v6111_v32  ;;  %6189 = vst [vmem:[%s14047_s17 + $0x48] sm:$0xff] %v6173_v27 }
 0xae6   : > { %v6445_v43 = vpop.eup %6444  ;;  %v6162_v20 = vadd.f32 1.0, %v6443_v44  ;;  %v6176_v21 = vmul.f32 %v6160_v23, %v6112_v11  ;;  %6190 = vst [vmem:[%s14047_s17 + $0x50] sm:$0xff] %v6174_v55 }
 0xae7   : > { %v6163_v41 = vadd.f32 1.0, %v6445_v43  ;;  %v6177_v19 = vmul.f32 %v6161_v10, %v6113_v2  ;;  %6191 = vst [vmem:[%s14047_s17 + $0x58] sm:$0xff] %v6175_v59 }
 0xae8   : > { %v6178_v18 = vmul.f32 %v6162_v20, %v6114_v60  ;;  %6192 = vst [vmem:[%s14047_s17 + $0x60] sm:$0xff] %v6176_v21 }
 0xae9   : > { %v6179_v34 = vmul.f32 %v6163_v41, %v6115_v40  ;;  %6193 = vst [vmem:[%s14047_s17 + $0x68] sm:$0xff] %v6177_v19 }
 0xaea   : > { %6194 = vst [vmem:[%s14047_s17 + $0x70] sm:$0xff] %v6178_v18 }
 0xaeb   : > { %6195 = vst [vmem:[%s14047_s17 + $0x78] sm:$0xff] %v6179_v34 }
 0xaec   : > { %6459 = shalt.err (!%p6456_p3)
}
 0xaed   : > { %s6460_s25 = scalar_lea.hbm %s14078_s11, 2048  ;;  %s6464_s6 = scalar_lea.hbm %s14132_s5, 4096 }
 0xaee   : > { %p6461_p4 = scmp.ne.s32.totalorder %s14078_s11, %s6460_s25  ;;  %p6465_p9 = scmp.lt.s32.totalorder %s14078_s11, %s14132_s5 }
 0xaef   : > { %p6466_p10 = scmp.lt.s32.totalorder %s6464_s6, %s6460_s25 }
 0xaf0   : > { %p6462_p7 = pnand %p6461_p4, %p6580_p5 }
 0xaf1   : > { %p6467_p11 = por %p6466_p10, %p6465_p9 }
 0xaf2   : > { %p6463_p8 = pneg %p6462_p7 }
 0xaf4   : > { %p6468_p12 = pnand %p6467_p11, %p6463_p8 }
 0xaf6   : > { %6471 = shalt.err (!%p6468_p12)
}
 0xaf7   : > { %s6510_s17 = smov 1024   ;;  %s6511_s9 = smov 64  }
 0xaf8   : > { %6302 = dma.vmem_to_hbm [thread:$0]  (%p6580_p5), %s14080_s15, 2048, %s14078_s11, %s14087_s12, %s6510_s17, %s6510_s17, %s6511_s9  }
 0xaf9 PF: > { %p6308_p13 = scmp.ge.s32.totalorder %s6506_s21, 2  ;;  %s6225_s22 = sand.u32 1, %s6494_s18  }
 0xafa   : > { %s6226_s10 = scalar_lea.sflag [#allocation3], %s6225_s22 }
 0xafb   : > { %p6305_p0 = pnand %p6308_p13, %p6584_p6 }
 0xafd   : > { %p6306_p1 = pneg %p6305_p0 }
 0xaff   : > { %6489 = dma.done.wait (%p6306_p1), %s6226_s10, 2048  }
 0xb00   : > { %6491 = vsyncadd (%p6306_p1), %s6226_s10, 4294965248  ;;  %p15_p2 = scmp.ge.s32.totalorder %s6567_s24, 4   ;;  %s14181_s18 = smov %s6498_s19 }
 0xb01   : > { %s14182_s19 = smov %s6502_s20  ;;  %s14183_s20 = smov %s6578_s27 }
 0xb02   : > { %s14184_s21 = smov %s6567_s24  ;;  %17 = sbr.rel (!%p15_p2) target bundleno = 3 (0x3), region = 83 }
 0xb07   :  { %6231 = vsyncpa [#allocation3], 1 }
 0xb08   :  { %6233 = vsyncpa [#allocation3 + $0x1], 1 }

</bundles_post_ra>
